<compile_context>
chip_gen: v6e
topology: v6e:2x2x1
jax: 0.10.0
libtpu: 0.0.40
codegen_flags: <defaults>
</compile_context>

<pallas_src>
import functools
import math

import jax
import jax.numpy as jnp
from jax.experimental import pallas as pl
from jax.experimental.pallas import tpu as pltpu

KSIZE = 7
PAD = KSIZE // 2
LN_EPS = 1e-6
GRN_EPS = 1e-6
LANE = 128


def _ceil_to(x, m):
    return (x + m - 1) // m * m


def _bytes(shape, dtype):
    return math.prod(shape) * jnp.dtype(dtype).itemsize


def _vmem_limit(block_bytes, scratch_bytes=0):
    # double-buffered streamed blocks + resident scratch + headroom, capped below
    # v7x's 64 MiB physical VMEM (could be raised toward ~100 MiB on v5e/v6e).
    need = 2 * block_bytes + scratch_bytes + (4 << 20)
    return int(min(max(need, 16 << 20), 48 << 20))


# ----------------------------- pass 1: 7x7 depthwise stencil -----------------------------
def _dwconv_kernel(x_ref, dw_wt_ref, out_ref, xpad_ref, *, C):
    # x_ref:     (1, H, W*C)  lane-dense input block (one image)
    # dw_wt_ref: (49, W*C)    depthwise weights pre-tiled along W
    # out_ref:   (1, H, W*C)  depthwise conv output (bias added in pass 2)
    # xpad_ref:  (H+2P, WPC)  VMEM scratch: lane-aligned zero-padded slab
    _, H, WC = x_ref.shape
    WPC = xpad_ref.shape[-1]
    LOFF = _ceil_to(PAD * C, LANE)  # interior starts lane-aligned

    # ---- zero only the halo; interior written once from the input block ----
    xpad_ref[:PAD, :] = jnp.zeros((PAD, WPC), jnp.float32)
    xpad_ref[PAD + H:, :] = jnp.zeros((PAD, WPC), jnp.float32)
    xpad_ref[PAD:PAD + H, :LOFF] = jnp.zeros((H, LOFF), jnp.float32)
    xpad_ref[PAD:PAD + H, LOFF + WC:] = jnp.zeros((H, WPC - LOFF - WC), jnp.float32)
    xpad_ref[PAD:PAD + H, LOFF:LOFF + WC] = x_ref[0]

    # ---- 7x7 stencil, lane-dense, vreg-resident accumulator (single store) ----
    # Zero padding == Minkowski depthwise conv on a fully occupied grid.
    # kj shift: unaligned lane slice of the slab (lowers to an XLU lane rotate,
    # equivalent to pltpu.roll by -(kj*C)), hoisted once per kj and consumed
    # in-register; ki shift: sublane window of that value.
    acc = None
    for kj in range(KSIZE):
        soff = LOFF - PAD * C + kj * C
        cols = xpad_ref[:, soff:soff + WC]                    # (H+2P, W*C)
        for ki in range(KSIZE):
            tap = cols[ki:ki + H, :] * dw_wt_ref[ki * KSIZE + kj, :]
            acc = tap if acc is None else acc + tap
    out_ref[0] = acc


# ------------------- pass 2: bias + LayerNorm + pwconv1 + GELU + GRN partials -------------------
def _ln_pw1_kernel(xdw_ref, dw_b_ref, ln_w_ref, ln_b_ref, w1_ref, b1_ref,
                   h_ref, ssq_ref):
    # xdw_ref: (1, N, C) dwconv rows of one image; h_ref: (1, N, 4C) bf16 stash
    # ssq_ref: (1, 1, 4C) per-image partial sum(h^2) for the global GRN stats
    f = xdw_ref[0] + dw_b_ref[...]                            # depthwise bias
    mean = jnp.mean(f, axis=-1, keepdims=True)                # LN over channels
    xc = f - mean
    var = jnp.mean(xc * xc, axis=-1, keepdims=True)
    f = xc * jax.lax.rsqrt(var + LN_EPS) * ln_w_ref[...] + ln_b_ref[...]
    h = jnp.dot(f.astype(jnp.bfloat16), w1_ref[...],          # pwconv1 on the MXU
                preferred_element_type=jnp.float32) + b1_ref[...]
    h = jax.nn.gelu(h, approximate=False)                     # exact (erf) GELU
    ssq_ref[0] = jnp.sum(h * h, axis=0, keepdims=True)        # f32 GRN partials
    h_ref[0] = h.astype(jnp.bfloat16)                         # bf16 stash to HBM


# --------------------------- pass 3: GRN + pwconv2 + residual ---------------------------
def _grn_pw2_kernel(h_ref, xres_ref, nx_ref, g_ref, b_ref, w2_ref, b2_ref, out_ref):
    h = h_ref[0].astype(jnp.float32)
    hg = g_ref[...] * (h * nx_ref[...]) + b_ref[...] + h      # GRN (global nx)
    y = jnp.dot(hg.astype(jnp.bfloat16), w2_ref[...],         # pwconv2 on the MXU
                preferred_element_type=jnp.float32)
    out_ref[0] = y + b2_ref[...] + xres_ref[0]                 # bias + residual


def convnextv2_sparse_block_nhwc(x_nhwc, params):
    """x_nhwc: (B, H, W, C) float32. Returns (B, H, W, C) float32."""
    B, H, W, C = x_nhwc.shape
    hidden = 4 * C
    WC = W * C
    N = H * W
    LOFF = _ceil_to(PAD * C, LANE)
    WPC = _ceil_to(LOFF + WC + PAD * C, LANE)

    x = x_nhwc.astype(jnp.float32)
    x_ld = x.reshape(B, H, WC)   # lane-dense view for the stencil (free reshape)
    x_nc = x.reshape(B, N, C)    # point-major view for the residual (free reshape)

    dw_wt = jnp.tile(params["dw_w"].astype(jnp.float32), (1, W))      # (49, W*C)
    dw_b = params["dw_b"].astype(jnp.float32)
    ln_w = params["ln_w"].astype(jnp.float32)
    ln_b = params["ln_b"].astype(jnp.float32)
    w1 = params["w1"].astype(jnp.bfloat16)
    b1 = params["b1"].astype(jnp.float32)
    grn_g = params["grn_gamma"].astype(jnp.float32)
    grn_b = params["grn_beta"].astype(jnp.float32)
    w2 = params["w2"].astype(jnp.bfloat16)
    b2 = params["b2"].astype(jnp.float32)

    par = ("parallel",)

    def full(shp):  # whole (small) parameter array resident across the grid
        return pl.BlockSpec(tuple(shp), lambda b: (0,) * len(shp))

    # ---- pass 1: depthwise stencil, grid over images ----
    scratch1 = _bytes((H + 2 * PAD, WPC), jnp.float32)
    blk1 = 2 * _bytes((1, H, WC), jnp.float32) + _bytes(dw_wt.shape, jnp.float32)
    dwout = pl.pallas_call(
        functools.partial(_dwconv_kernel, C=C),
        out_shape=jax.ShapeDtypeStruct((B, H, WC), jnp.float32),
        grid=(B,),
        in_specs=[pl.BlockSpec((1, H, WC), lambda b: (b, 0, 0)),
                  full(dw_wt.shape)],
        out_specs=pl.BlockSpec((1, H, WC), lambda b: (b, 0, 0)),
        scratch_shapes=[pltpu.VMEM((H + 2 * PAD, WPC), jnp.float32)],
        compiler_params=pltpu.CompilerParams(
            dimension_semantics=par,
            vmem_limit_bytes=_vmem_limit(blk1, scratch1)),
    )(x_ld, dw_wt)

    # ---- pass 2: LN + pwconv1 + GELU + GRN partial sums ----
    x_dw = dwout.reshape(B, N, C)   # FREE row-major reshape (same linear layout)
    blk2 = (_bytes((1, N, C), jnp.float32) + _bytes((1, N, hidden), jnp.bfloat16)
            + _bytes((1, 1, hidden), jnp.float32) + _bytes(w1.shape, jnp.bfloat16)
            + 5 * _bytes((1, hidden), jnp.float32))
    h, ssq = pl.pallas_call(
        _ln_pw1_kernel,
        out_shape=(jax.ShapeDtypeStruct((B, N, hidden), jnp.bfloat16),
                   jax.ShapeDtypeStruct((B, 1, hidden), jnp.float32)),
        grid=(B,),
        in_specs=[pl.BlockSpec((1, N, C), lambda b: (b, 0, 0)),
                  full(dw_b.shape), full(ln_w.shape), full(ln_b.shape),
                  full(w1.shape), full(b1.shape)],
        out_specs=(pl.BlockSpec((1, N, hidden), lambda b: (b, 0, 0)),
                   pl.BlockSpec((1, 1, hidden), lambda b: (b, 0, 0))),
        compiler_params=pltpu.CompilerParams(
            dimension_semantics=par, vmem_limit_bytes=_vmem_limit(blk2)),
    )(x_dw, dw_b, ln_w, ln_b, w1, b1)

    # ---- global GRN statistics (tiny cross-image reduction, plain XLA) ----
    gx = jnp.sqrt(jnp.sum(ssq, axis=0))                        # (1, 4C)
    nx = gx / (jnp.mean(gx, axis=-1, keepdims=True) + GRN_EPS)

    # ---- pass 3: GRN scale + pwconv2 + residual ----
    blk3 = (_bytes((1, N, hidden), jnp.bfloat16) + 2 * _bytes((1, N, C), jnp.float32)
            + _bytes(w2.shape, jnp.bfloat16) + 4 * _bytes((1, hidden), jnp.float32))
    out = pl.pallas_call(
        _grn_pw2_kernel,
        out_shape=jax.ShapeDtypeStruct((B, N, C), jnp.float32),
        grid=(B,),
        in_specs=[pl.BlockSpec((1, N, hidden), lambda b: (b, 0, 0)),
                  pl.BlockSpec((1, N, C), lambda b: (b, 0, 0)),
                  full(nx.shape), full(grn_g.shape), full(grn_b.shape),
                  full(w2.shape), full(b2.shape)],
        out_specs=pl.BlockSpec((1, N, C), lambda b: (b, 0, 0)),
        compiler_params=pltpu.CompilerParams(
            dimension_semantics=par, vmem_limit_bytes=_vmem_limit(blk3)),
    )(h, x_nc, nx, grn_g, grn_b, w2, b2)

    return out.reshape(B, H, W, C)   # free reshape back to NHWC


def convnextv2_sparse_block(x_nchw, params):
    """NCHW adapter matching the PyTorch dense layout (transposes are wrapper-only)."""
    out = convnextv2_sparse_block_nhwc(jnp.transpose(x_nchw, (0, 2, 3, 1)), params)
    return jnp.transpose(out, (0, 3, 1, 2))


def init_params(key, dim):
    """Deterministic synthetic parameters with the module's shapes."""
    hidden = 4 * dim
    ks = jax.random.split(key, 8)
    return {
        "dw_w": 0.05 * jax.random.normal(ks[0], (KSIZE * KSIZE, dim), jnp.float32),
        "dw_b": 0.05 * jax.random.normal(ks[1], (1, dim), jnp.float32),
        "ln_w": 1.0 + 0.05 * jax.random.normal(ks[2], (1, dim), jnp.float32),
        "ln_b": 0.05 * jax.random.normal(ks[3], (1, dim), jnp.float32),
        "w1": 0.05 * jax.random.normal(ks[4], (dim, hidden), jnp.float32),
        "b1": 0.05 * jax.random.normal(ks[5], (1, hidden), jnp.float32),
        # module inits GRN gamma/beta to zero; use small nonzero values so the
        # GRN path is actually exercised (still deterministic).
        "grn_gamma": jnp.full((1, hidden), 0.1, jnp.float32),
        "grn_beta": jnp.full((1, hidden), 0.01, jnp.float32),
        "w2": 0.05 * jax.random.normal(ks[6], (hidden, dim), jnp.float32),
        "b2": 0.05 * jax.random.normal(ks[7], (1, dim), jnp.float32),
    }


def reference_block(x_nchw, p):
    """Pure-JAX f32 reference (same math, outside Pallas) for a sanity check."""
    B, C, H, W = x_nchw.shape
    x = jnp.transpose(x_nchw, (0, 2, 3, 1)).astype(jnp.float32)
    residual = x
    xp = jnp.pad(x, ((0, 0), (PAD, PAD), (PAD, PAD), (0, 0)))
    acc = jnp.zeros_like(x)
    for ki in range(KSIZE):
        for kj in range(KSIZE):
            acc = acc + xp[:, ki:ki + H, kj:kj + W, :] * p["dw_w"][ki * KSIZE + kj]
    y = acc + p["dw_b"][0]
    mean = jnp.mean(y, -1, keepdims=True)
    var = jnp.mean((y - mean) ** 2, -1, keepdims=True)
    y = (y - mean) * jax.lax.rsqrt(var + LN_EPS) * p["ln_w"][0] + p["ln_b"][0]
    f = y.reshape(-1, C)
    h = f @ p["w1"] + p["b1"][0]
    h = jax.nn.gelu(h, approximate=False)
    gx = jnp.sqrt(jnp.sum(h * h, axis=0, keepdims=True))
    nx = gx / (jnp.mean(gx, -1, keepdims=True) + GRN_EPS)
    h = p["grn_gamma"] * (h * nx) + p["grn_beta"] + h
    out = (h @ p["w2"] + p["b2"][0]).reshape(B, H, W, C) + residual
    return jnp.transpose(out, (0, 3, 1, 2))


if __name__ == "__main__":
    key = jax.random.PRNGKey(0)
    k_x, k_p = jax.random.split(key)

    # dim=32 -> hidden=128 (lane/MXU aligned); NCHW input like the module's dense IO.
    B, C, H, W = 2, 32, 16, 16
    x = jax.random.normal(k_x, (B, C, H, W), jnp.float32)
    params = init_params(k_p, C)

    out = jax.block_until_ready(convnextv2_sparse_block(x, params))
    ref = jax.block_until_ready(reference_block(x, params))

    assert out.shape == (B, C, H, W)
    # bf16 MXU operands / bf16 h stash vs f32 reference -> modest tolerance.
    assert jnp.allclose(out, ref, rtol=2e-2, atol=2e-2), "mismatch vs JAX reference"

    print("KERNEL_OK")
</pallas_src>

<mosaic_0001>
module attributes {stable_mosaic.version = 11 : i64} {
  func.func @_dwconv_kernel(%arg0: i32, %arg1: memref<1x16x512xf32, #tpu.memory_space<vmem>>, %arg2: memref<49x512xf32, #tpu.memory_space<vmem>>, %arg3: memref<1x16x512xf32, #tpu.memory_space<vmem>>, %arg4: memref<22x768xf32, #tpu.memory_space<vmem>>) attributes {dimension_semantics = [#tpu.dimension_semantics<parallel>], iteration_bounds = array<i64: 2>, scalar_prefetch = 0 : i64, scratch_operands = 1 : i64, tpu.core_type = #tpu.core_type<tc>, window_params = [{transform_indices = @transform_0, window_bounds = array<i64: 1, 16, 512>}, {pipeline_mode = #tpu.pipeline_mode<synchronous>, transform_indices = @transform_1, window_bounds = array<i64: 49, 512>}, {transform_indices = @transform_2, window_bounds = array<i64: 1, 16, 512>}]} {
    %cst = arith.constant 0.000000e+00 : f32
    %0 = vector.broadcast %cst : f32 to vector<3x768xf32>
    %c0 = arith.constant 0 : index
    %c0_0 = arith.constant 0 : index
    %1 = vector.load %arg4[%c0, %c0_0] : memref<22x768xf32, #tpu.memory_space<vmem>>, vector<3x768xf32>
    tpu.vector_store %arg4[%c0, %c0_0], %0 {strides = array<i32>} : memref<22x768xf32, #tpu.memory_space<vmem>>, vector<3x768xf32>,
    %cst_1 = arith.constant 0.000000e+00 : f32
    %2 = vector.broadcast %cst_1 : f32 to vector<3x768xf32>
    %c19 = arith.constant 19 : index
    %c0_2 = arith.constant 0 : index
    %3 = vector.load %arg4[%c19, %c0_2] : memref<22x768xf32, #tpu.memory_space<vmem>>, vector<3x768xf32>
    tpu.vector_store %arg4[%c19, %c0_2], %2 {strides = array<i32>} : memref<22x768xf32, #tpu.memory_space<vmem>>, vector<3x768xf32>,
    %cst_3 = arith.constant 0.000000e+00 : f32
    %4 = vector.broadcast %cst_3 : f32 to vector<16x128xf32>
    %c3 = arith.constant 3 : index
    %c0_4 = arith.constant 0 : index
    %5 = vector.load %arg4[%c3, %c0_4] : memref<22x768xf32, #tpu.memory_space<vmem>>, vector<16x128xf32>
    tpu.vector_store %arg4[%c3, %c0_4], %4 {strides = array<i32>} : memref<22x768xf32, #tpu.memory_space<vmem>>, vector<16x128xf32>,
    %cst_5 = arith.constant 0.000000e+00 : f32
    %6 = vector.broadcast %cst_5 : f32 to vector<16x128xf32>
    %c3_6 = arith.constant 3 : index
    %c640 = arith.constant 640 : index
    %7 = vector.load %arg4[%c3_6, %c640] : memref<22x768xf32, #tpu.memory_space<vmem>>, vector<16x128xf32>
    tpu.vector_store %arg4[%c3_6, %c640], %6 {strides = array<i32>} : memref<22x768xf32, #tpu.memory_space<vmem>>, vector<16x128xf32>,
    %c0_7 = arith.constant 0 : index
    %c0_8 = arith.constant 0 : index
    %c0_9 = arith.constant 0 : index
    %8 = vector.load %arg1[%c0_7, %c0_8, %c0_9] : memref<1x16x512xf32, #tpu.memory_space<vmem>>, vector<1x16x512xf32>
    %9 = vector.shape_cast %8 : vector<1x16x512xf32> to vector<16x512xf32>
    %c3_10 = arith.constant 3 : index
    %c128 = arith.constant 128 : index
    %10 = vector.load %arg4[%c3_10, %c128] : memref<22x768xf32, #tpu.memory_space<vmem>>, vector<16x512xf32>
    tpu.vector_store %arg4[%c3_10, %c128], %9 {strides = array<i32>} : memref<22x768xf32, #tpu.memory_space<vmem>>, vector<16x512xf32>,
    %c0_11 = arith.constant 0 : index
    %c32 = arith.constant 32 : index
    %11 = vector.load %arg4[%c0_11, %c32] : memref<22x768xf32, #tpu.memory_space<vmem>>, vector<22x512xf32>
    %12 = vector.extract_strided_slice %11 {offsets = [0, 0], sizes = [16, 512], strides = [1, 1]} : vector<22x512xf32> to vector<16x512xf32>
    %c0_12 = arith.constant 0 : index
    %c0_13 = arith.constant 0 : index
    %13 = vector.load %arg2[%c0_12, %c0_13] : memref<49x512xf32, #tpu.memory_space<vmem>>, vector<1x512xf32>
    %14 = vector.shape_cast %13 : vector<1x512xf32> to vector<512xf32>
    %15 = vector.shape_cast %14 : vector<512xf32> to vector<1x512xf32>
    %16 = vector.broadcast %15 : vector<1x512xf32> to vector<16x512xf32>
    %17 = arith.mulf %12, %16 : vector<16x512xf32>
    %18 = vector.extract_strided_slice %11 {offsets = [1, 0], sizes = [16, 512], strides = [1, 1]} : vector<22x512xf32> to vector<16x512xf32>
    %c7 = arith.constant 7 : index
    %c0_14 = arith.constant 0 : index
    %19 = vector.load %arg2[%c7, %c0_14] : memref<49x512xf32, #tpu.memory_space<vmem>>, vector<1x512xf32>
    %20 = vector.shape_cast %19 : vector<1x512xf32> to vector<512xf32>
    %21 = vector.shape_cast %20 : vector<512xf32> to vector<1x512xf32>
    %22 = vector.broadcast %21 : vector<1x512xf32> to vector<16x512xf32>
    %23 = arith.mulf %18, %22 : vector<16x512xf32>
    %24 = arith.addf %17, %23 : vector<16x512xf32>
    %25 = vector.extract_strided_slice %11 {offsets = [2, 0], sizes = [16, 512], strides = [1, 1]} : vector<22x512xf32> to vector<16x512xf32>
    %c14 = arith.constant 14 : index
    %c0_15 = arith.constant 0 : index
    %26 = vector.load %arg2[%c14, %c0_15] : memref<49x512xf32, #tpu.memory_space<vmem>>, vector<1x512xf32>
    %27 = vector.shape_cast %26 : vector<1x512xf32> to vector<512xf32>
    %28 = vector.shape_cast %27 : vector<512xf32> to vector<1x512xf32>
    %29 = vector.broadcast %28 : vector<1x512xf32> to vector<16x512xf32>
    %30 = arith.mulf %25, %29 : vector<16x512xf32>
    %31 = arith.addf %24, %30 : vector<16x512xf32>
    %32 = vector.extract_strided_slice %11 {offsets = [3, 0], sizes = [16, 512], strides = [1, 1]} : vector<22x512xf32> to vector<16x512xf32>
    %c21 = arith.constant 21 : index
    %c0_16 = arith.constant 0 : index
    %33 = vector.load %arg2[%c21, %c0_16] : memref<49x512xf32, #tpu.memory_space<vmem>>, vector<1x512xf32>
    %34 = vector.shape_cast %33 : vector<1x512xf32> to vector<512xf32>
    %35 = vector.shape_cast %34 : vector<512xf32> to vector<1x512xf32>
    %36 = vector.broadcast %35 : vector<1x512xf32> to vector<16x512xf32>
    %37 = arith.mulf %32, %36 : vector<16x512xf32>
    %38 = arith.addf %31, %37 : vector<16x512xf32>
    %39 = vector.extract_strided_slice %11 {offsets = [4, 0], sizes = [16, 512], strides = [1, 1]} : vector<22x512xf32> to vector<16x512xf32>
    %c28 = arith.constant 28 : index
    %c0_17 = arith.constant 0 : index
    %40 = vector.load %arg2[%c28, %c0_17] : memref<49x512xf32, #tpu.memory_space<vmem>>, vector<1x512xf32>
    %41 = vector.shape_cast %40 : vector<1x512xf32> to vector<512xf32>
    %42 = vector.shape_cast %41 : vector<512xf32> to vector<1x512xf32>
    %43 = vector.broadcast %42 : vector<1x512xf32> to vector<16x512xf32>
    %44 = arith.mulf %39, %43 : vector<16x512xf32>
    %45 = arith.addf %38, %44 : vector<16x512xf32>
    %46 = vector.extract_strided_slice %11 {offsets = [5, 0], sizes = [16, 512], strides = [1, 1]} : vector<22x512xf32> to vector<16x512xf32>
    %c35 = arith.constant 35 : index
    %c0_18 = arith.constant 0 : index
    %47 = vector.load %arg2[%c35, %c0_18] : memref<49x512xf32, #tpu.memory_space<vmem>>, vector<1x512xf32>
    %48 = vector.shape_cast %47 : vector<1x512xf32> to vector<512xf32>
    %49 = vector.shape_cast %48 : vector<512xf32> to vector<1x512xf32>
    %50 = vector.broadcast %49 : vector<1x512xf32> to vector<16x512xf32>
    %51 = arith.mulf %46, %50 : vector<16x512xf32>
    %52 = arith.addf %45, %51 : vector<16x512xf32>
    %53 = vector.extract_strided_slice %11 {offsets = [6, 0], sizes = [16, 512], strides = [1, 1]} : vector<22x512xf32> to vector<16x512xf32>
    %c42 = arith.constant 42 : index
    %c0_19 = arith.constant 0 : index
    %54 = vector.load %arg2[%c42, %c0_19] : memref<49x512xf32, #tpu.memory_space<vmem>>, vector<1x512xf32>
    %55 = vector.shape_cast %54 : vector<1x512xf32> to vector<512xf32>
    %56 = vector.shape_cast %55 : vector<512xf32> to vector<1x512xf32>
    %57 = vector.broadcast %56 : vector<1x512xf32> to vector<16x512xf32>
    %58 = arith.mulf %53, %57 : vector<16x512xf32>
    %59 = arith.addf %52, %58 : vector<16x512xf32>
    %c0_20 = arith.constant 0 : index
    %c64 = arith.constant 64 : index
    %60 = vector.load %arg4[%c0_20, %c64] : memref<22x768xf32, #tpu.memory_space<vmem>>, vector<22x512xf32>
    %61 = vector.extract_strided_slice %60 {offsets = [0, 0], sizes = [16, 512], strides = [1, 1]} : vector<22x512xf32> to vector<16x512xf32>
    %c1 = arith.constant 1 : index
    %c0_21 = arith.constant 0 : index
    %62 = vector.load %arg2[%c1, %c0_21] : memref<49x512xf32, #tpu.memory_space<vmem>>, vector<1x512xf32>
    %63 = vector.shape_cast %62 : vector<1x512xf32> to vector<512xf32>
    %64 = vector.shape_cast %63 : vector<512xf32> to vector<1x512xf32>
    %65 = vector.broadcast %64 : vector<1x512xf32> to vector<16x512xf32>
    %66 = arith.mulf %61, %65 : vector<16x512xf32>
    %67 = arith.addf %59, %66 : vector<16x512xf32>
    %68 = vector.extract_strided_slice %60 {offsets = [1, 0], sizes = [16, 512], strides = [1, 1]} : vector<22x512xf32> to vector<16x512xf32>
    %c8 = arith.constant 8 : index
    %c0_22 = arith.constant 0 : index
    %69 = vector.load %arg2[%c8, %c0_22] : memref<49x512xf32, #tpu.memory_space<vmem>>, vector<1x512xf32>
    %70 = vector.shape_cast %69 : vector<1x512xf32> to vector<512xf32>
    %71 = vector.shape_cast %70 : vector<512xf32> to vector<1x512xf32>
    %72 = vector.broadcast %71 : vector<1x512xf32> to vector<16x512xf32>
    %73 = arith.mulf %68, %72 : vector<16x512xf32>
    %74 = arith.addf %67, %73 : vector<16x512xf32>
    %75 = vector.extract_strided_slice %60 {offsets = [2, 0], sizes = [16, 512], strides = [1, 1]} : vector<22x512xf32> to vector<16x512xf32>
    %c15 = arith.constant 15 : index
    %c0_23 = arith.constant 0 : index
    %76 = vector.load %arg2[%c15, %c0_23] : memref<49x512xf32, #tpu.memory_space<vmem>>, vector<1x512xf32>
    %77 = vector.shape_cast %76 : vector<1x512xf32> to vector<512xf32>
    %78 = vector.shape_cast %77 : vector<512xf32> to vector<1x512xf32>
    %79 = vector.broadcast %78 : vector<1x512xf32> to vector<16x512xf32>
    %80 = arith.mulf %75, %79 : vector<16x512xf32>
    %81 = arith.addf %74, %80 : vector<16x512xf32>
    %82 = vector.extract_strided_slice %60 {offsets = [3, 0], sizes = [16, 512], strides = [1, 1]} : vector<22x512xf32> to vector<16x512xf32>
    %c22 = arith.constant 22 : index
    %c0_24 = arith.constant 0 : index
    %83 = vector.load %arg2[%c22, %c0_24] : memref<49x512xf32, #tpu.memory_space<vmem>>, vector<1x512xf32>
    %84 = vector.shape_cast %83 : vector<1x512xf32> to vector<512xf32>
    %85 = vector.shape_cast %84 : vector<512xf32> to vector<1x512xf32>
    %86 = vector.broadcast %85 : vector<1x512xf32> to vector<16x512xf32>
    %87 = arith.mulf %82, %86 : vector<16x512xf32>
    %88 = arith.addf %81, %87 : vector<16x512xf32>
    %89 = vector.extract_strided_slice %60 {offsets = [4, 0], sizes = [16, 512], strides = [1, 1]} : vector<22x512xf32> to vector<16x512xf32>
    %c29 = arith.constant 29 : index
    %c0_25 = arith.constant 0 : index
    %90 = vector.load %arg2[%c29, %c0_25] : memref<49x512xf32, #tpu.memory_space<vmem>>, vector<1x512xf32>
    %91 = vector.shape_cast %90 : vector<1x512xf32> to vector<512xf32>
    %92 = vector.shape_cast %91 : vector<512xf32> to vector<1x512xf32>
    %93 = vector.broadcast %92 : vector<1x512xf32> to vector<16x512xf32>
    %94 = arith.mulf %89, %93 : vector<16x512xf32>
    %95 = arith.addf %88, %94 : vector<16x512xf32>
    %96 = vector.extract_strided_slice %60 {offsets = [5, 0], sizes = [16, 512], strides = [1, 1]} : vector<22x512xf32> to vector<16x512xf32>
    %c36 = arith.constant 36 : index
    %c0_26 = arith.constant 0 : index
    %97 = vector.load %arg2[%c36, %c0_26] : memref<49x512xf32, #tpu.memory_space<vmem>>, vector<1x512xf32>
    %98 = vector.shape_cast %97 : vector<1x512xf32> to vector<512xf32>
    %99 = vector.shape_cast %98 : vector<512xf32> to vector<1x512xf32>
    %100 = vector.broadcast %99 : vector<1x512xf32> to vector<16x512xf32>
    %101 = arith.mulf %96, %100 : vector<16x512xf32>
    %102 = arith.addf %95, %101 : vector<16x512xf32>
    %103 = vector.extract_strided_slice %60 {offsets = [6, 0], sizes = [16, 512], strides = [1, 1]} : vector<22x512xf32> to vector<16x512xf32>
    %c43 = arith.constant 43 : index
    %c0_27 = arith.constant 0 : index
    %104 = vector.load %arg2[%c43, %c0_27] : memref<49x512xf32, #tpu.memory_space<vmem>>, vector<1x512xf32>
    %105 = vector.shape_cast %104 : vector<1x512xf32> to vector<512xf32>
    %106 = vector.shape_cast %105 : vector<512xf32> to vector<1x512xf32>
    %107 = vector.broadcast %106 : vector<1x512xf32> to vector<16x512xf32>
    %108 = arith.mulf %103, %107 : vector<16x512xf32>
    %109 = arith.addf %102, %108 : vector<16x512xf32>
    %c0_28 = arith.constant 0 : index
    %c96 = arith.constant 96 : index
    %110 = vector.load %arg4[%c0_28, %c96] : memref<22x768xf32, #tpu.memory_space<vmem>>, vector<22x512xf32>
    %111 = vector.extract_strided_slice %110 {offsets = [0, 0], sizes = [16, 512], strides = [1, 1]} : vector<22x512xf32> to vector<16x512xf32>
    %c2 = arith.constant 2 : index
    %c0_29 = arith.constant 0 : index
    %112 = vector.load %arg2[%c2, %c0_29] : memref<49x512xf32, #tpu.memory_space<vmem>>, vector<1x512xf32>
    %113 = vector.shape_cast %112 : vector<1x512xf32> to vector<512xf32>
    %114 = vector.shape_cast %113 : vector<512xf32> to vector<1x512xf32>
    %115 = vector.broadcast %114 : vector<1x512xf32> to vector<16x512xf32>
    %116 = arith.mulf %111, %115 : vector<16x512xf32>
    %117 = arith.addf %109, %116 : vector<16x512xf32>
    %118 = vector.extract_strided_slice %110 {offsets = [1, 0], sizes = [16, 512], strides = [1, 1]} : vector<22x512xf32> to vector<16x512xf32>
    %c9 = arith.constant 9 : index
    %c0_30 = arith.constant 0 : index
    %119 = vector.load %arg2[%c9, %c0_30] : memref<49x512xf32, #tpu.memory_space<vmem>>, vector<1x512xf32>
    %120 = vector.shape_cast %119 : vector<1x512xf32> to vector<512xf32>
    %121 = vector.shape_cast %120 : vector<512xf32> to vector<1x512xf32>
    %122 = vector.broadcast %121 : vector<1x512xf32> to vector<16x512xf32>
    %123 = arith.mulf %118, %122 : vector<16x512xf32>
    %124 = arith.addf %117, %123 : vector<16x512xf32>
    %125 = vector.extract_strided_slice %110 {offsets = [2, 0], sizes = [16, 512], strides = [1, 1]} : vector<22x512xf32> to vector<16x512xf32>
    %c16 = arith.constant 16 : index
    %c0_31 = arith.constant 0 : index
    %126 = vector.load %arg2[%c16, %c0_31] : memref<49x512xf32, #tpu.memory_space<vmem>>, vector<1x512xf32>
    %127 = vector.shape_cast %126 : vector<1x512xf32> to vector<512xf32>
    %128 = vector.shape_cast %127 : vector<512xf32> to vector<1x512xf32>
    %129 = vector.broadcast %128 : vector<1x512xf32> to vector<16x512xf32>
    %130 = arith.mulf %125, %129 : vector<16x512xf32>
    %131 = arith.addf %124, %130 : vector<16x512xf32>
    %132 = vector.extract_strided_slice %110 {offsets = [3, 0], sizes = [16, 512], strides = [1, 1]} : vector<22x512xf32> to vector<16x512xf32>
    %c23 = arith.constant 23 : index
    %c0_32 = arith.constant 0 : index
    %133 = vector.load %arg2[%c23, %c0_32] : memref<49x512xf32, #tpu.memory_space<vmem>>, vector<1x512xf32>
    %134 = vector.shape_cast %133 : vector<1x512xf32> to vector<512xf32>
    %135 = vector.shape_cast %134 : vector<512xf32> to vector<1x512xf32>
    %136 = vector.broadcast %135 : vector<1x512xf32> to vector<16x512xf32>
    %137 = arith.mulf %132, %136 : vector<16x512xf32>
    %138 = arith.addf %131, %137 : vector<16x512xf32>
    %139 = vector.extract_strided_slice %110 {offsets = [4, 0], sizes = [16, 512], strides = [1, 1]} : vector<22x512xf32> to vector<16x512xf32>
    %c30 = arith.constant 30 : index
    %c0_33 = arith.constant 0 : index
    %140 = vector.load %arg2[%c30, %c0_33] : memref<49x512xf32, #tpu.memory_space<vmem>>, vector<1x512xf32>
    %141 = vector.shape_cast %140 : vector<1x512xf32> to vector<512xf32>
    %142 = vector.shape_cast %141 : vector<512xf32> to vector<1x512xf32>
    %143 = vector.broadcast %142 : vector<1x512xf32> to vector<16x512xf32>
    %144 = arith.mulf %139, %143 : vector<16x512xf32>
    %145 = arith.addf %138, %144 : vector<16x512xf32>
    %146 = vector.extract_strided_slice %110 {offsets = [5, 0], sizes = [16, 512], strides = [1, 1]} : vector<22x512xf32> to vector<16x512xf32>
    %c37 = arith.constant 37 : index
    %c0_34 = arith.constant 0 : index
    %147 = vector.load %arg2[%c37, %c0_34] : memref<49x512xf32, #tpu.memory_space<vmem>>, vector<1x512xf32>
    %148 = vector.shape_cast %147 : vector<1x512xf32> to vector<512xf32>
    %149 = vector.shape_cast %148 : vector<512xf32> to vector<1x512xf32>
    %150 = vector.broadcast %149 : vector<1x512xf32> to vector<16x512xf32>
    %151 = arith.mulf %146, %150 : vector<16x512xf32>
    %152 = arith.addf %145, %151 : vector<16x512xf32>
    %153 = vector.extract_strided_slice %110 {offsets = [6, 0], sizes = [16, 512], strides = [1, 1]} : vector<22x512xf32> to vector<16x512xf32>
    %c44 = arith.constant 44 : index
    %c0_35 = arith.constant 0 : index
    %154 = vector.load %arg2[%c44, %c0_35] : memref<49x512xf32, #tpu.memory_space<vmem>>, vector<1x512xf32>
    %155 = vector.shape_cast %154 : vector<1x512xf32> to vector<512xf32>
    %156 = vector.shape_cast %155 : vector<512xf32> to vector<1x512xf32>
    %157 = vector.broadcast %156 : vector<1x512xf32> to vector<16x512xf32>
    %158 = arith.mulf %153, %157 : vector<16x512xf32>
    %159 = arith.addf %152, %158 : vector<16x512xf32>
    %c0_36 = arith.constant 0 : index
    %c128_37 = arith.constant 128 : index
    %160 = vector.load %arg4[%c0_36, %c128_37] : memref<22x768xf32, #tpu.memory_space<vmem>>, vector<22x512xf32>
    %161 = vector.extract_strided_slice %160 {offsets = [0, 0], sizes = [16, 512], strides = [1, 1]} : vector<22x512xf32> to vector<16x512xf32>
    %c3_38 = arith.constant 3 : index
    %c0_39 = arith.constant 0 : index
    %162 = vector.load %arg2[%c3_38, %c0_39] : memref<49x512xf32, #tpu.memory_space<vmem>>, vector<1x512xf32>
    %163 = vector.shape_cast %162 : vector<1x512xf32> to vector<512xf32>
    %164 = vector.shape_cast %163 : vector<512xf32> to vector<1x512xf32>
    %165 = vector.broadcast %164 : vector<1x512xf32> to vector<16x512xf32>
    %166 = arith.mulf %161, %165 : vector<16x512xf32>
    %167 = arith.addf %159, %166 : vector<16x512xf32>
    %168 = vector.extract_strided_slice %160 {offsets = [1, 0], sizes = [16, 512], strides = [1, 1]} : vector<22x512xf32> to vector<16x512xf32>
    %c10 = arith.constant 10 : index
    %c0_40 = arith.constant 0 : index
    %169 = vector.load %arg2[%c10, %c0_40] : memref<49x512xf32, #tpu.memory_space<vmem>>, vector<1x512xf32>
    %170 = vector.shape_cast %169 : vector<1x512xf32> to vector<512xf32>
    %171 = vector.shape_cast %170 : vector<512xf32> to vector<1x512xf32>
    %172 = vector.broadcast %171 : vector<1x512xf32> to vector<16x512xf32>
    %173 = arith.mulf %168, %172 : vector<16x512xf32>
    %174 = arith.addf %167, %173 : vector<16x512xf32>
    %175 = vector.extract_strided_slice %160 {offsets = [2, 0], sizes = [16, 512], strides = [1, 1]} : vector<22x512xf32> to vector<16x512xf32>
    %c17 = arith.constant 17 : index
    %c0_41 = arith.constant 0 : index
    %176 = vector.load %arg2[%c17, %c0_41] : memref<49x512xf32, #tpu.memory_space<vmem>>, vector<1x512xf32>
    %177 = vector.shape_cast %176 : vector<1x512xf32> to vector<512xf32>
    %178 = vector.shape_cast %177 : vector<512xf32> to vector<1x512xf32>
    %179 = vector.broadcast %178 : vector<1x512xf32> to vector<16x512xf32>
    %180 = arith.mulf %175, %179 : vector<16x512xf32>
    %181 = arith.addf %174, %180 : vector<16x512xf32>
    %182 = vector.extract_strided_slice %160 {offsets = [3, 0], sizes = [16, 512], strides = [1, 1]} : vector<22x512xf32> to vector<16x512xf32>
    %c24 = arith.constant 24 : index
    %c0_42 = arith.constant 0 : index
    %183 = vector.load %arg2[%c24, %c0_42] : memref<49x512xf32, #tpu.memory_space<vmem>>, vector<1x512xf32>
    %184 = vector.shape_cast %183 : vector<1x512xf32> to vector<512xf32>
    %185 = vector.shape_cast %184 : vector<512xf32> to vector<1x512xf32>
    %186 = vector.broadcast %185 : vector<1x512xf32> to vector<16x512xf32>
    %187 = arith.mulf %182, %186 : vector<16x512xf32>
    %188 = arith.addf %181, %187 : vector<16x512xf32>
    %189 = vector.extract_strided_slice %160 {offsets = [4, 0], sizes = [16, 512], strides = [1, 1]} : vector<22x512xf32> to vector<16x512xf32>
    %c31 = arith.constant 31 : index
    %c0_43 = arith.constant 0 : index
    %190 = vector.load %arg2[%c31, %c0_43] : memref<49x512xf32, #tpu.memory_space<vmem>>, vector<1x512xf32>
    %191 = vector.shape_cast %190 : vector<1x512xf32> to vector<512xf32>
    %192 = vector.shape_cast %191 : vector<512xf32> to vector<1x512xf32>
    %193 = vector.broadcast %192 : vector<1x512xf32> to vector<16x512xf32>
    %194 = arith.mulf %189, %193 : vector<16x512xf32>
    %195 = arith.addf %188, %194 : vector<16x512xf32>
    %196 = vector.extract_strided_slice %160 {offsets = [5, 0], sizes = [16, 512], strides = [1, 1]} : vector<22x512xf32> to vector<16x512xf32>
    %c38 = arith.constant 38 : index
    %c0_44 = arith.constant 0 : index
    %197 = vector.load %arg2[%c38, %c0_44] : memref<49x512xf32, #tpu.memory_space<vmem>>, vector<1x512xf32>
    %198 = vector.shape_cast %197 : vector<1x512xf32> to vector<512xf32>
    %199 = vector.shape_cast %198 : vector<512xf32> to vector<1x512xf32>
    %200 = vector.broadcast %199 : vector<1x512xf32> to vector<16x512xf32>
    %201 = arith.mulf %196, %200 : vector<16x512xf32>
    %202 = arith.addf %195, %201 : vector<16x512xf32>
    %203 = vector.extract_strided_slice %160 {offsets = [6, 0], sizes = [16, 512], strides = [1, 1]} : vector<22x512xf32> to vector<16x512xf32>
    %c45 = arith.constant 45 : index
    %c0_45 = arith.constant 0 : index
    %204 = vector.load %arg2[%c45, %c0_45] : memref<49x512xf32, #tpu.memory_space<vmem>>, vector<1x512xf32>
    %205 = vector.shape_cast %204 : vector<1x512xf32> to vector<512xf32>
    %206 = vector.shape_cast %205 : vector<512xf32> to vector<1x512xf32>
    %207 = vector.broadcast %206 : vector<1x512xf32> to vector<16x512xf32>
    %208 = arith.mulf %203, %207 : vector<16x512xf32>
    %209 = arith.addf %202, %208 : vector<16x512xf32>
    %c0_46 = arith.constant 0 : index
    %c160 = arith.constant 160 : index
    %210 = vector.load %arg4[%c0_46, %c160] : memref<22x768xf32, #tpu.memory_space<vmem>>, vector<22x512xf32>
    %211 = vector.extract_strided_slice %210 {offsets = [0, 0], sizes = [16, 512], strides = [1, 1]} : vector<22x512xf32> to vector<16x512xf32>
    %c4 = arith.constant 4 : index
    %c0_47 = arith.constant 0 : index
    %212 = vector.load %arg2[%c4, %c0_47] : memref<49x512xf32, #tpu.memory_space<vmem>>, vector<1x512xf32>
    %213 = vector.shape_cast %212 : vector<1x512xf32> to vector<512xf32>
    %214 = vector.shape_cast %213 : vector<512xf32> to vector<1x512xf32>
    %215 = vector.broadcast %214 : vector<1x512xf32> to vector<16x512xf32>
    %216 = arith.mulf %211, %215 : vector<16x512xf32>
    %217 = arith.addf %209, %216 : vector<16x512xf32>
    %218 = vector.extract_strided_slice %210 {offsets = [1, 0], sizes = [16, 512], strides = [1, 1]} : vector<22x512xf32> to vector<16x512xf32>
    %c11 = arith.constant 11 : index
    %c0_48 = arith.constant 0 : index
    %219 = vector.load %arg2[%c11, %c0_48] : memref<49x512xf32, #tpu.memory_space<vmem>>, vector<1x512xf32>
    %220 = vector.shape_cast %219 : vector<1x512xf32> to vector<512xf32>
    %221 = vector.shape_cast %220 : vector<512xf32> to vector<1x512xf32>
    %222 = vector.broadcast %221 : vector<1x512xf32> to vector<16x512xf32>
    %223 = arith.mulf %218, %222 : vector<16x512xf32>
    %224 = arith.addf %217, %223 : vector<16x512xf32>
    %225 = vector.extract_strided_slice %210 {offsets = [2, 0], sizes = [16, 512], strides = [1, 1]} : vector<22x512xf32> to vector<16x512xf32>
    %c18 = arith.constant 18 : index
    %c0_49 = arith.constant 0 : index
    %226 = vector.load %arg2[%c18, %c0_49] : memref<49x512xf32, #tpu.memory_space<vmem>>, vector<1x512xf32>
    %227 = vector.shape_cast %226 : vector<1x512xf32> to vector<512xf32>
    %228 = vector.shape_cast %227 : vector<512xf32> to vector<1x512xf32>
    %229 = vector.broadcast %228 : vector<1x512xf32> to vector<16x512xf32>
    %230 = arith.mulf %225, %229 : vector<16x512xf32>
    %231 = arith.addf %224, %230 : vector<16x512xf32>
    %232 = vector.extract_strided_slice %210 {offsets = [3, 0], sizes = [16, 512], strides = [1, 1]} : vector<22x512xf32> to vector<16x512xf32>
    %c25 = arith.constant 25 : index
    %c0_50 = arith.constant 0 : index
    %233 = vector.load %arg2[%c25, %c0_50] : memref<49x512xf32, #tpu.memory_space<vmem>>, vector<1x512xf32>
    %234 = vector.shape_cast %233 : vector<1x512xf32> to vector<512xf32>
    %235 = vector.shape_cast %234 : vector<512xf32> to vector<1x512xf32>
    %236 = vector.broadcast %235 : vector<1x512xf32> to vector<16x512xf32>
    %237 = arith.mulf %232, %236 : vector<16x512xf32>
    %238 = arith.addf %231, %237 : vector<16x512xf32>
    %239 = vector.extract_strided_slice %210 {offsets = [4, 0], sizes = [16, 512], strides = [1, 1]} : vector<22x512xf32> to vector<16x512xf32>
    %c32_51 = arith.constant 32 : index
    %c0_52 = arith.constant 0 : index
    %240 = vector.load %arg2[%c32_51, %c0_52] : memref<49x512xf32, #tpu.memory_space<vmem>>, vector<1x512xf32>
    %241 = vector.shape_cast %240 : vector<1x512xf32> to vector<512xf32>
    %242 = vector.shape_cast %241 : vector<512xf32> to vector<1x512xf32>
    %243 = vector.broadcast %242 : vector<1x512xf32> to vector<16x512xf32>
    %244 = arith.mulf %239, %243 : vector<16x512xf32>
    %245 = arith.addf %238, %244 : vector<16x512xf32>
    %246 = vector.extract_strided_slice %210 {offsets = [5, 0], sizes = [16, 512], strides = [1, 1]} : vector<22x512xf32> to vector<16x512xf32>
    %c39 = arith.constant 39 : index
    %c0_53 = arith.constant 0 : index
    %247 = vector.load %arg2[%c39, %c0_53] : memref<49x512xf32, #tpu.memory_space<vmem>>, vector<1x512xf32>
    %248 = vector.shape_cast %247 : vector<1x512xf32> to vector<512xf32>
    %249 = vector.shape_cast %248 : vector<512xf32> to vector<1x512xf32>
    %250 = vector.broadcast %249 : vector<1x512xf32> to vector<16x512xf32>
    %251 = arith.mulf %246, %250 : vector<16x512xf32>
    %252 = arith.addf %245, %251 : vector<16x512xf32>
    %253 = vector.extract_strided_slice %210 {offsets = [6, 0], sizes = [16, 512], strides = [1, 1]} : vector<22x512xf32> to vector<16x512xf32>
    %c46 = arith.constant 46 : index
    %c0_54 = arith.constant 0 : index
    %254 = vector.load %arg2[%c46, %c0_54] : memref<49x512xf32, #tpu.memory_space<vmem>>, vector<1x512xf32>
    %255 = vector.shape_cast %254 : vector<1x512xf32> to vector<512xf32>
    %256 = vector.shape_cast %255 : vector<512xf32> to vector<1x512xf32>
    %257 = vector.broadcast %256 : vector<1x512xf32> to vector<16x512xf32>
    %258 = arith.mulf %253, %257 : vector<16x512xf32>
    %259 = arith.addf %252, %258 : vector<16x512xf32>
    %c0_55 = arith.constant 0 : index
    %c192 = arith.constant 192 : index
    %260 = vector.load %arg4[%c0_55, %c192] : memref<22x768xf32, #tpu.memory_space<vmem>>, vector<22x512xf32>
    %261 = vector.extract_strided_slice %260 {offsets = [0, 0], sizes = [16, 512], strides = [1, 1]} : vector<22x512xf32> to vector<16x512xf32>
    %c5 = arith.constant 5 : index
    %c0_56 = arith.constant 0 : index
    %262 = vector.load %arg2[%c5, %c0_56] : memref<49x512xf32, #tpu.memory_space<vmem>>, vector<1x512xf32>
    %263 = vector.shape_cast %262 : vector<1x512xf32> to vector<512xf32>
    %264 = vector.shape_cast %263 : vector<512xf32> to vector<1x512xf32>
    %265 = vector.broadcast %264 : vector<1x512xf32> to vector<16x512xf32>
    %266 = arith.mulf %261, %265 : vector<16x512xf32>
    %267 = arith.addf %259, %266 : vector<16x512xf32>
    %268 = vector.extract_strided_slice %260 {offsets = [1, 0], sizes = [16, 512], strides = [1, 1]} : vector<22x512xf32> to vector<16x512xf32>
    %c12 = arith.constant 12 : index
    %c0_57 = arith.constant 0 : index
    %269 = vector.load %arg2[%c12, %c0_57] : memref<49x512xf32, #tpu.memory_space<vmem>>, vector<1x512xf32>
    %270 = vector.shape_cast %269 : vector<1x512xf32> to vector<512xf32>
    %271 = vector.shape_cast %270 : vector<512xf32> to vector<1x512xf32>
    %272 = vector.broadcast %271 : vector<1x512xf32> to vector<16x512xf32>
    %273 = arith.mulf %268, %272 : vector<16x512xf32>
    %274 = arith.addf %267, %273 : vector<16x512xf32>
    %275 = vector.extract_strided_slice %260 {offsets = [2, 0], sizes = [16, 512], strides = [1, 1]} : vector<22x512xf32> to vector<16x512xf32>
    %c19_58 = arith.constant 19 : index
    %c0_59 = arith.constant 0 : index
    %276 = vector.load %arg2[%c19_58, %c0_59] : memref<49x512xf32, #tpu.memory_space<vmem>>, vector<1x512xf32>
    %277 = vector.shape_cast %276 : vector<1x512xf32> to vector<512xf32>
    %278 = vector.shape_cast %277 : vector<512xf32> to vector<1x512xf32>
    %279 = vector.broadcast %278 : vector<1x512xf32> to vector<16x512xf32>
    %280 = arith.mulf %275, %279 : vector<16x512xf32>
    %281 = arith.addf %274, %280 : vector<16x512xf32>
    %282 = vector.extract_strided_slice %260 {offsets = [3, 0], sizes = [16, 512], strides = [1, 1]} : vector<22x512xf32> to vector<16x512xf32>
    %c26 = arith.constant 26 : index
    %c0_60 = arith.constant 0 : index
    %283 = vector.load %arg2[%c26, %c0_60] : memref<49x512xf32, #tpu.memory_space<vmem>>, vector<1x512xf32>
    %284 = vector.shape_cast %283 : vector<1x512xf32> to vector<512xf32>
    %285 = vector.shape_cast %284 : vector<512xf32> to vector<1x512xf32>
    %286 = vector.broadcast %285 : vector<1x512xf32> to vector<16x512xf32>
    %287 = arith.mulf %282, %286 : vector<16x512xf32>
    %288 = arith.addf %281, %287 : vector<16x512xf32>
    %289 = vector.extract_strided_slice %260 {offsets = [4, 0], sizes = [16, 512], strides = [1, 1]} : vector<22x512xf32> to vector<16x512xf32>
    %c33 = arith.constant 33 : index
    %c0_61 = arith.constant 0 : index
    %290 = vector.load %arg2[%c33, %c0_61] : memref<49x512xf32, #tpu.memory_space<vmem>>, vector<1x512xf32>
    %291 = vector.shape_cast %290 : vector<1x512xf32> to vector<512xf32>
    %292 = vector.shape_cast %291 : vector<512xf32> to vector<1x512xf32>
    %293 = vector.broadcast %292 : vector<1x512xf32> to vector<16x512xf32>
    %294 = arith.mulf %289, %293 : vector<16x512xf32>
    %295 = arith.addf %288, %294 : vector<16x512xf32>
    %296 = vector.extract_strided_slice %260 {offsets = [5, 0], sizes = [16, 512], strides = [1, 1]} : vector<22x512xf32> to vector<16x512xf32>
    %c40 = arith.constant 40 : index
    %c0_62 = arith.constant 0 : index
    %297 = vector.load %arg2[%c40, %c0_62] : memref<49x512xf32, #tpu.memory_space<vmem>>, vector<1x512xf32>
    %298 = vector.shape_cast %297 : vector<1x512xf32> to vector<512xf32>
    %299 = vector.shape_cast %298 : vector<512xf32> to vector<1x512xf32>
    %300 = vector.broadcast %299 : vector<1x512xf32> to vector<16x512xf32>
    %301 = arith.mulf %296, %300 : vector<16x512xf32>
    %302 = arith.addf %295, %301 : vector<16x512xf32>
    %303 = vector.extract_strided_slice %260 {offsets = [6, 0], sizes = [16, 512], strides = [1, 1]} : vector<22x512xf32> to vector<16x512xf32>
    %c47 = arith.constant 47 : index
    %c0_63 = arith.constant 0 : index
    %304 = vector.load %arg2[%c47, %c0_63] : memref<49x512xf32, #tpu.memory_space<vmem>>, vector<1x512xf32>
    %305 = vector.shape_cast %304 : vector<1x512xf32> to vector<512xf32>
    %306 = vector.shape_cast %305 : vector<512xf32> to vector<1x512xf32>
    %307 = vector.broadcast %306 : vector<1x512xf32> to vector<16x512xf32>
    %308 = arith.mulf %303, %307 : vector<16x512xf32>
    %309 = arith.addf %302, %308 : vector<16x512xf32>
    %c0_64 = arith.constant 0 : index
    %c224 = arith.constant 224 : index
    %310 = vector.load %arg4[%c0_64, %c224] : memref<22x768xf32, #tpu.memory_space<vmem>>, vector<22x512xf32>
    %311 = vector.extract_strided_slice %310 {offsets = [0, 0], sizes = [16, 512], strides = [1, 1]} : vector<22x512xf32> to vector<16x512xf32>
    %c6 = arith.constant 6 : index
    %c0_65 = arith.constant 0 : index
    %312 = vector.load %arg2[%c6, %c0_65] : memref<49x512xf32, #tpu.memory_space<vmem>>, vector<1x512xf32>
    %313 = vector.shape_cast %312 : vector<1x512xf32> to vector<512xf32>
    %314 = vector.shape_cast %313 : vector<512xf32> to vector<1x512xf32>
    %315 = vector.broadcast %314 : vector<1x512xf32> to vector<16x512xf32>
    %316 = arith.mulf %311, %315 : vector<16x512xf32>
    %317 = arith.addf %309, %316 : vector<16x512xf32>
    %318 = vector.extract_strided_slice %310 {offsets = [1, 0], sizes = [16, 512], strides = [1, 1]} : vector<22x512xf32> to vector<16x512xf32>
    %c13 = arith.constant 13 : index
    %c0_66 = arith.constant 0 : index
    %319 = vector.load %arg2[%c13, %c0_66] : memref<49x512xf32, #tpu.memory_space<vmem>>, vector<1x512xf32>
    %320 = vector.shape_cast %319 : vector<1x512xf32> to vector<512xf32>
    %321 = vector.shape_cast %320 : vector<512xf32> to vector<1x512xf32>
    %322 = vector.broadcast %321 : vector<1x512xf32> to vector<16x512xf32>
    %323 = arith.mulf %318, %322 : vector<16x512xf32>
    %324 = arith.addf %317, %323 : vector<16x512xf32>
    %325 = vector.extract_strided_slice %310 {offsets = [2, 0], sizes = [16, 512], strides = [1, 1]} : vector<22x512xf32> to vector<16x512xf32>
    %c20 = arith.constant 20 : index
    %c0_67 = arith.constant 0 : index
    %326 = vector.load %arg2[%c20, %c0_67] : memref<49x512xf32, #tpu.memory_space<vmem>>, vector<1x512xf32>
    %327 = vector.shape_cast %326 : vector<1x512xf32> to vector<512xf32>
    %328 = vector.shape_cast %327 : vector<512xf32> to vector<1x512xf32>
    %329 = vector.broadcast %328 : vector<1x512xf32> to vector<16x512xf32>
    %330 = arith.mulf %325, %329 : vector<16x512xf32>
    %331 = arith.addf %324, %330 : vector<16x512xf32>
    %332 = vector.extract_strided_slice %310 {offsets = [3, 0], sizes = [16, 512], strides = [1, 1]} : vector<22x512xf32> to vector<16x512xf32>
    %c27 = arith.constant 27 : index
    %c0_68 = arith.constant 0 : index
    %333 = vector.load %arg2[%c27, %c0_68] : memref<49x512xf32, #tpu.memory_space<vmem>>, vector<1x512xf32>
    %334 = vector.shape_cast %333 : vector<1x512xf32> to vector<512xf32>
    %335 = vector.shape_cast %334 : vector<512xf32> to vector<1x512xf32>
    %336 = vector.broadcast %335 : vector<1x512xf32> to vector<16x512xf32>
    %337 = arith.mulf %332, %336 : vector<16x512xf32>
    %338 = arith.addf %331, %337 : vector<16x512xf32>
    %339 = vector.extract_strided_slice %310 {offsets = [4, 0], sizes = [16, 512], strides = [1, 1]} : vector<22x512xf32> to vector<16x512xf32>
    %c34 = arith.constant 34 : index
    %c0_69 = arith.constant 0 : index
    %340 = vector.load %arg2[%c34, %c0_69] : memref<49x512xf32, #tpu.memory_space<vmem>>, vector<1x512xf32>
    %341 = vector.shape_cast %340 : vector<1x512xf32> to vector<512xf32>
    %342 = vector.shape_cast %341 : vector<512xf32> to vector<1x512xf32>
    %343 = vector.broadcast %342 : vector<1x512xf32> to vector<16x512xf32>
    %344 = arith.mulf %339, %343 : vector<16x512xf32>
    %345 = arith.addf %338, %344 : vector<16x512xf32>
    %346 = vector.extract_strided_slice %310 {offsets = [5, 0], sizes = [16, 512], strides = [1, 1]} : vector<22x512xf32> to vector<16x512xf32>
    %c41 = arith.constant 41 : index
    %c0_70 = arith.constant 0 : index
    %347 = vector.load %arg2[%c41, %c0_70] : memref<49x512xf32, #tpu.memory_space<vmem>>, vector<1x512xf32>
    %348 = vector.shape_cast %347 : vector<1x512xf32> to vector<512xf32>
    %349 = vector.shape_cast %348 : vector<512xf32> to vector<1x512xf32>
    %350 = vector.broadcast %349 : vector<1x512xf32> to vector<16x512xf32>
    %351 = arith.mulf %346, %350 : vector<16x512xf32>
    %352 = arith.addf %345, %351 : vector<16x512xf32>
    %353 = vector.extract_strided_slice %310 {offsets = [6, 0], sizes = [16, 512], strides = [1, 1]} : vector<22x512xf32> to vector<16x512xf32>
    %c48 = arith.constant 48 : index
    %c0_71 = arith.constant 0 : index
    %354 = vector.load %arg2[%c48, %c0_71] : memref<49x512xf32, #tpu.memory_space<vmem>>, vector<1x512xf32>
    %355 = vector.shape_cast %354 : vector<1x512xf32> to vector<512xf32>
    %356 = vector.shape_cast %355 : vector<512xf32> to vector<1x512xf32>
    %357 = vector.broadcast %356 : vector<1x512xf32> to vector<16x512xf32>
    %358 = arith.mulf %353, %357 : vector<16x512xf32>
    %359 = arith.addf %352, %358 : vector<16x512xf32>
    %c0_72 = arith.constant 0 : index
    %c0_73 = arith.constant 0 : index
    %c0_74 = arith.constant 0 : index
    %360 = vector.load %arg3[%c0_72, %c0_73, %c0_74] : memref<1x16x512xf32, #tpu.memory_space<vmem>>, vector<1x16x512xf32>
    %361 = vector.shape_cast %360 : vector<1x16x512xf32> to vector<16x512xf32>
    %362 = vector.shape_cast %359 : vector<16x512xf32> to vector<1x16x512xf32>
    tpu.vector_store %arg3[%c0_72, %c0_73, %c0_74], %362 {strides = array<i32>} : memref<1x16x512xf32, #tpu.memory_space<vmem>>, vector<1x16x512xf32>,
    return
  }
  func.func @transform_0(%arg0: i32) -> (i32, i32, i32) {
    %c0_i32 = arith.constant 0 : i32
    %c0_i32_0 = arith.constant 0 : i32
    %c0_i32_1 = arith.constant 0 : i32
    return %arg0, %c0_i32, %c0_i32_0 : i32, i32, i32
  }
  func.func @transform_1(%arg0: i32) -> (i32, i32) {
    %c0_i32 = arith.constant 0 : i32
    %c0_i32_0 = arith.constant 0 : i32
    %c0_i32_1 = arith.constant 0 : i32
    return %c0_i32, %c0_i32_0 : i32, i32
  }
  func.func @transform_2(%arg0: i32) -> (i32, i32, i32) {
    %c0_i32 = arith.constant 0 : i32
    %c0_i32_0 = arith.constant 0 : i32
    %c0_i32_1 = arith.constant 0 : i32
    return %arg0, %c0_i32, %c0_i32_0 : i32, i32, i32
  }
}

</mosaic_0001>

<bundles_post_ra>
// kernel: tpu_custom_call.1
= control target key start
LH: loop header
LB: loop body
LE: loop exit
PB: predicated region body
PF: predicated region fallthrough
CT: control target
= control target key end

     0   :  { %7 = vsyncpa [#allocation4], 0  ;;  %s11520_s0 = inlined_call_operand.hbm [shape: f32[2,16,512], index: 0, kind: input, shape index: {}]   ;;  %s11521_s1 = inlined_call_operand.hbm [shape: f32[49,512], index: 1, kind: input, shape index: {}]   ;;  %s11522_s2 = inlined_call_operand.hbm [shape: f32[2,16,512], index: 2, kind: output, shape index: {}]  }
   0x1   :  { %9 = vsyncpa [#allocation4 + $0x1], 0 }
   0x2   :  { %10 = vsyncpa [#allocation7], 0 }
   0x3   :  { %11 = vsyncpa [#allocation5], 0 }
   0x4   :  { %13 = vsyncpa [#allocation5 + $0x1], 0  ;;  %s6618_s9 = smov 0   ;;  %s6620_s10 = smov 0  }
   0x5   :  { %s6622_s11 = smov 0   ;;  %s6624_s12 = smov 0  }
   0x6 LB: > { %s6639_s13 = sadd.s32 4294967295, %s6591_s12   ;;  %s6303_s14 = sadd.s32 4294967294, %s6591_s12   ;;  %s6591_s12 = sphi %s6624_s12, %s12697_s12   ;;  %s6587_s11 = sphi %s6622_s11, %s12696_s11   ;;  %s6583_s10 = sphi %s6620_s10, %s12695_s10   ;;  %s6579_s9 = sphi %s6618_s9, %s12694_s9  }
   0x7   : > { %p39_p0 = scmp.ne.s32.totalorder %s6583_s10, %s6579_s9  ;;  %p11523_p1 = scmp.eq.s32.totalorder %s6639_s13, 0 }
   0x8   : > { %p90_p3 = scmp.eq.s32.totalorder %s6303_s14, 1  ;;  %p6304_p5 = scmp.ge.s32.totalorder %s6591_s12, 1 }
   0x9   : > { %p6648_p4 = por %p11523_p1, %p39_p0  ;;  %p97_p7 = scmp.lt.s32.totalorder %s6591_s12, 3 }
   0xa   : > { %p6653_p6 = por %p90_p3, %p39_p0  ;;  %s6593_s18 = smov [#allocation6]  }
   0xb   : > { %s11848_s15 = scalar_select %p6648_p4, 1, 0 }
   0xc   : > { %s11849_s16 = scalar_select %p6653_p6, 1, 0 }
   0xd   : > { %p6658_p8 = pnand %p6304_p5, %p97_p7  ;;  %s109_s19 = sshll.u32 %s6593_s18, 4  ;;  %s110_s19 = int_to_ptr.vmem [resolvable:$true] %s109_s19 }
   0xe   : > { %s6672_s21 = sadd.s32 1, %s6591_s12   ;;  %s26_s22 = sadd.s32 1, %s6587_s11 }
   0xf   : > { %s11850_s17 = scalar_select %p6658_p8, 1, 0 }
  0x10   : > { %p6329_p9 = pneg %p6658_p8  ;;  %s23_s23 = ssub.s32 %s6591_s12, %s6672_s21 }
  0x11   : > { %s6480_s24 = scalar_lea.vmem %s110_s19, 3584  ;;  %p6488_p5 = scmp.lt.s32.totalorder %s110_s19, %s110_s19 }
  0x12   : > { %p6667_p11 = pnand %p6329_p9, %p11523_p1  ;;  %p6481_p13 = scmp.ne.s32.totalorder %s110_s19, %s6480_s24 }
  0x13   : > { %p6489_p7 = scmp.lt.s32.totalorder %s6480_s24, %s6480_s24 }
  0x14   : > { %p6471_p12 = pneg %p6667_p11 }
  0x15   : > { %p6490_p10 = por %p6489_p7, %p6488_p5 }
  0x16   : > { %p6483_p0 = pnand %p6481_p13, %p6471_p12 }
  0x18   : > { %p6484_p3 = pneg %p6483_p0 }
  0x1a   : > { %p6491_p2 = pnand %p6490_p10, %p6484_p3 }
  0x1c   : > { %6494 = shalt.err (!%p6491_p2)
}
  0x1d   : > { %s6594_s25 = smov 512   ;;  %s6595_s26 = smov 32  }
  0x1e   : > { %6332 = dma.hbm_to_vmem [thread:$0]  (!%p6667_p11), %s11521_s1, 3584, %s110_s19, [#allocation7], %s6594_s25, %s6594_s25, %s6595_s26  }
  0x1f   : > { %p24_p2 = scmp.eq.s32.totalorder %s23_s23, 0  ;;  %p33_p9 = scmp.ne.s32.totalorder %s6587_s11, %s6583_s10 }
  0x20   : > { %p34_p10 = scmp.eq.s32.totalorder %s6591_s12, 0  ;;  %p6342_p12 = scmp.lt.s32.totalorder %s6591_s12, 2 }
  0x21   : > { %s6692_s29 = scalar_select %p24_p2, %s6587_s11, %s26_s22  }
  0x22   : > { %p35_p13 = por %p34_p10, %p33_p9  ;;  %p11852_p0 = scmp.eq.s32.totalorder %s6639_s13, 1 }
  0x23   : > { %s123_s3 = sand.u32 1, %s6587_s11   ;;  %s6319_s4 = sshll.u32 %s6591_s12, 10 }
  0x24   : > { %p6696_p3 = por %p11852_p0, %p33_p9  ;;  %s6307_s5 = sshll.u32 %s123_s3, 6 }
  0x25   : > { %s6705_s8 = scalar_lea.hbm %s11520_s0, %s6319_s4  ;;  %s127_s14 = scalar_lea.vmem [#allocation3], %s6307_s5 }
  0x26   : > { %s11853_s30 = scalar_select %p6696_p3, 1, 0 }
  0x27   : > { %s134_s18 = sshll.u32 %s127_s14, 4  ;;  %p6707_p11 = pnand %p6342_p12, %p35_p13  ;;  %s6711_s18 = int_to_ptr.vmem [resolvable:$true] %s134_s18 }
  0x28   : > { %s6713_s20 = scalar_lea.sflag [#allocation4], %s123_s3  ;;  %s6495_s22 = scalar_lea.hbm %s6705_s8, 1024 }
  0x29   : > { %p6496_p5 = scmp.ne.s32.totalorder %s6705_s8, %s6495_s22  ;;  %p6497_p7 = pneg %p6707_p11 }
  0x2a   : > { %s6500_s27 = scalar_lea.hbm %s11520_s0, 2048  ;;  %p6501_p10 = scmp.lt.s32.totalorder %s6705_s8, %s11520_s0 }
  0x2b   : > { %p6498_p2 = pnand %p6497_p7, %p6496_p5  ;;  %p6502_p12 = scmp.lt.s32.totalorder %s6500_s27, %s6495_s22 }
  0x2d   : > { %p6499_p9 = pneg %p6498_p2  ;;  %p6503_p13 = por %p6502_p12, %p6501_p10 }
  0x2f   : > { %p6504_p0 = pnand %p6503_p13, %p6499_p9 }
  0x31   : > { %6507 = shalt.err (!%p6504_p0)
}
  0x32   : > { %s6508_s3 = scalar_lea.vmem %s6711_s18, 1024  ;;  %s6596_s5 = smov [#allocation3]  }
  0x33   : > { %p6509_p1 = scmp.ne.s32.totalorder %s6711_s18, %s6508_s3  ;;  %s6513_s6 = sshll.u32 %s6596_s5, 4  ;;  %s6514_s6 = int_to_ptr.vmem [resolvable:$false] %s6513_s6 }
  0x34   : > { %s6515_s7 = scalar_lea.vmem %s6514_s6, 2048  ;;  %p6516_p2 = scmp.lt.s32.totalorder %s6711_s18, %s6514_s6 }
  0x35   : > { %p6511_p6 = pnand %p6509_p1, %p6497_p7  ;;  %p6517_p3 = scmp.lt.s32.totalorder %s6515_s7, %s6508_s3 }
  0x37   : > { %p6512_p5 = pneg %p6511_p6  ;;  %p6518_p4 = por %p6517_p3, %p6516_p2 }
  0x39   : > { %p6519_p8 = pnand %p6518_p4, %p6512_p5 }
  0x3b   : > { %6522 = shalt.err (!%p6519_p8)
}
  0x3c   : > { %6336 = dma.hbm_to_vmem [thread:$0]  (!%p6707_p11), %s6705_s8, 1024, %s6711_s18, %s6713_s20, %s6594_s25, %s6594_s25, %s6595_s26  }
  0x3d   : > { %p11855_p1 = scmp.ne.s32.totalorder %s11850_s17, 0 }
  0x3f   : > { %146 = sbr.rel (%p11855_p1) target bundleno = 3653 (0xe45), region = 28 }
  0x44   : > { %s6740_s14 = sand.u32 1, %s6583_s10   ;;  %p11856_p4 = scmp.ne.s32.totalorder %s11848_s15, 0 }
  0x45   : > { %s6311_s22 = sshll.u32 %s6740_s14, 6  ;;  %s149_s23 = scalar_lea.sflag [#allocation4], %s6740_s14 }
  0x46   : > { %s6746_s19 = scalar_lea.vmem [#allocation3], %s6311_s22 }
  0x47   : > { %6566 = dma.done.wait (%p11856_p4), %s149_s23, 1024  }
  0x48   : > { %6568 = vsyncadd (%p11856_p4), %s149_s23, 4294966272  ;;  %p11857_p6 = scmp.eq.s32.totalorder %s6639_s13, 0 }
  0x4a   : > { %6570 = dma.done.wait (%p11857_p6), [#allocation7], 3584   ;;  %p11858_p8 = pmov %p11857_p6 }
  0x4b   : > { %v265_v0 = vlaneseq  ;;  %v6597_v1 = vmov 0.0   ;;  %v263_v7 = vld [vmem:[#allocation6] ss:$8 sm:$0xf]  ;;  %s6598_s15 = smov 32   ;;  %vm211_vm0 = vcmask 1042432  }
  0x4c   : > { %6572 = vsyncadd (%p11858_p8), [#allocation7], 4294963712  ;;  %177 = vst [vmem:[#allocation2] sm:$0x7] %v6597_v1  ;;  %v197_v13 = vld [vmem:[%s6746_s19 + $0x10] sm:$0xff]  ;;  %v198_v17 = vld [vmem:[%s6746_s19 + $0x18] sm:$0xff] }
  0x4d   : > { %189 = vst [vmem:[#allocation2] sm:$0xf8] %v6597_v1  ;;  %190 = vst [vmem:[#allocation2 + $0x10] sm:$0xff] %v6597_v1  ;;  %v266_v2 = vshrl.u32 %v265_v0, 7  ;;  %v214_v16 = vrot.slane %v197_v13, 5  ;;  %v201_v18 = vld [vmem:[%s6746_s19 + $0x30] sm:$0xff] }
  0x4e   : > { %178 = vst [vmem:[#allocation2 + $0x68] sm:$0x7] %v6597_v1  ;;  %179 = vst [vmem:[#allocation2 + $0x40] sm:$0x7] %v6597_v1  ;;  %v202_v19 = vld [vmem:[%s6746_s19 + $0x38] sm:$0xff]  ;;  %v195_v20 = vld [vmem:[%s6746_s19] sm:$0xff] }
  0x4f   : > { %180 = vst [vmem:[#allocation2 + $0x88] sm:$0x7] %v6597_v1  ;;  %181 = vst [vmem:[#allocation2 + $0x20] sm:$0x7] %v6597_v1  ;;  %v6756_v3 = vsub.s32 2, %v266_v2  ;;  %v6758_v4 = vsub.s32 0, %v266_v2 }
  0x50   : > { %182 = vst [vmem:[#allocation2 + $0x8] sm:$0x7] %v6597_v1  ;;  %183 = vst [vmem:[#allocation2 + $0x38] sm:$0x38] %v6597_v1  ;;  %v6760_v5 = vsub.s32 3, %v266_v2  ;;  %v6762_v6 = vsub.s32 1, %v266_v2 }
  0x51   : > { %184 = vst [vmem:[#allocation2 + $0x48] sm:$0x38] %v6597_v1  ;;  %185 = vst [vmem:[#allocation2 + $0x50] sm:$0x38] %v6597_v1  ;;  %v276_v8 = vrot.slane %v263_v7, %v6756_v3  ;;  %v268_v9 = vrot.slane %v263_v7, %v6758_v4  ;;  %v196_v21 = vld [vmem:[%s6746_s19 + $0x8] sm:$0xff]  ;;  %v199_v22 = vld [vmem:[%s6746_s19 + $0x20] sm:$0xff] }
  0x52   : > { %186 = vst [vmem:[#allocation2 + $0x70] sm:$0x38] %v6597_v1  ;;  %187 = vst [vmem:[#allocation2 + $0x80] sm:$0x38] %v6597_v1  ;;  %v280_v10 = vrot.slane %v263_v7, %v6760_v5  ;;  %v272_v11 = vrot.slane %v263_v7, %v6762_v6  ;;  %v200_v23 = vld [vmem:[%s6746_s19 + $0x28] sm:$0xff]  ;;  %v215_v27 = vrot.slane %v198_v17, 5 }
  0x53   : > { %188 = vst [vmem:[#allocation2 + $0x28] sm:$0x38] %v6597_v1  ;;  %191 = vst [vmem:[#allocation2 + $0x38] sm:$0x7] %v6597_v1  ;;  %285 = vrot.lane.b32.xlu1 %v276_v8, %s6598_s15  ;;  %281 = vrot.lane.b32.xlu0 %v268_v9, %s6598_s15  ;;  %v220_v28 = vrot.slane %v201_v18, 5  ;;  %v222_v29 = vrot.slane %v202_v19, 5 }
  0x54   : > { %192 = vst [vmem:[#allocation2 + $0x8] sm:$0xf8] %v6597_v1  ;;  %194 = vst [vmem:[#allocation2 + $0x28] sm:$0x7] %v6597_v1  ;;  %v212_v30 = vrot.slane %v195_v20, 5  ;;  %v213_v31 = vrot.slane %v196_v21, 5 }
  0x55   : > { %11859 = vst [vmem:[#allocation12_spill] sm:$0xff] %v6756_v3  ;;  %11860 = vst [vmem:[#allocation13_spill] sm:$0xff] %v6758_v4  ;;  %v309_v12 = vld [vmem:[#allocation6 + $0x7] ss:$8 sm:$0xf]  ;;  %v216_v32 = vrot.slane %v199_v22, 5  ;;  %v6787_v33 = vsel %vm211_vm0, %v214_v16, %v220_v28  ;;  %v6790_v35 = vsel %vm211_vm0, %v215_v27, %v222_v29 }
  0x56   : > { %11861 = vst [vmem:[#allocation14_spill] sm:$0xff] %v6760_v5  ;;  %11862 = vst [vmem:[#allocation15_spill] sm:$0xff] %v6762_v6  ;;  %v318_v14 = vrot.slane %v309_v12, %v6762_v6  ;;  %v314_v15 = vrot.slane %v309_v12, %v6758_v4  ;;  %v326_v24 = vrot.slane %v309_v12, %v6760_v5  ;;  %v420_v26 = vld [vmem:[#allocation6 + $0x26] ss:$8 sm:$0xf]  ;;  %v218_v34 = vrot.slane %v200_v23, 5 }
  0x57   : > { %287 = vrot.lane.b32.xlu1 %v280_v10, %s6598_s15  ;;  %283 = vrot.lane.b32.xlu0 %v272_v11, %s6598_s15  ;;  %238 = vst [vmem:[#allocation2 + $0x88] sm:$0xf8] %v214_v16  ;;  %v322_v25 = vrot.slane %v309_v12, %v6756_v3  ;;  %239 = vst [vmem:[#allocation2 + $0x20] sm:$0xf8] %v215_v27  ;;  %v6794_v36 = vsel %vm211_vm0, %v212_v30, %v216_v32  ;;  %s6599_s17 = smov 64   ;;  %s6600_s25 = smov 96  }
  0x58   : > { %246 = vst [vmem:[#allocation2 + $0x70] sm:$0x7] %v220_v28  ;;  %242 = vst [vmem:[#allocation2 + $0x58] sm:$0xff] %v6787_v33  ;;  %v429_v37 = vrot.slane %v420_v26, %v6762_v6  ;;  %v425_v38 = vrot.slane %v420_v26, %v6758_v4  ;;  %v6802_v39 = vsel %vm211_vm0, %v213_v31, %v218_v34  ;;  %v531_v42 = vld [vmem:[#allocation6 + $0x45] ss:$8 sm:$0xf] }
  0x59   : > { %247 = vst [vmem:[#allocation2 + $0x80] sm:$0x7] %v222_v29  ;;  %236 = vst [vmem:[#allocation2 + $0x68] sm:$0xf8] %v212_v30  ;;  %v437_v40 = vrot.slane %v420_v26, %v6760_v5  ;;  %v433_v41 = vrot.slane %v420_v26, %v6756_v3  ;;  %v540_v43 = vrot.slane %v531_v42, %v6762_v6  ;;  %vm1000_vm1 = vcmask 523264   ;;  %s176_s26 = scalar_lea.vmem [#allocation8], %s6311_s22 }
  0x5a   : > { %237 = vst [vmem:[#allocation2 + $0x40] sm:$0xf8] %v213_v31  ;;  %244 = vst [vmem:[#allocation2 + $0x48] sm:$0x7] %v216_v32  ;;  %v536_v44 = vrot.slane %v531_v42, %v6758_v4  ;;  %v548_v45 = vrot.slane %v531_v42, %v6760_v5  ;;  %v544_v46 = vrot.slane %v531_v42, %v6756_v3  ;;  %vm373_vm2 = vcmask 1046528   ;;  %s6220_s8 = sshll.u32 %s176_s26, 4  ;;  %s11469_s8 = int_to_ptr.vmem [resolvable:$true] %s6220_s8 }
  0x5b   : > { %329 = vrot.lane.b32.xlu1 %v318_v14, %s6598_s15  ;;  %327 = vrot.lane.b32.xlu0 %v314_v15, %s6598_s15  ;;  %243 = vst [vmem:[#allocation2 + $0x30] sm:$0xff] %v6790_v35  ;;  %240 = vst [vmem:[#allocation2 + $0x60] sm:$0xff] %v6794_v36  ;;  %v642_v47 = vld [vmem:[#allocation6 + $0x64] ss:$8 sm:$0xf]  ;;  %vm484_vm3 = vcmask 1045504  }
  0x5c   : > { %245 = vst [vmem:[#allocation2 + $0x50] sm:$0x7] %v218_v34  ;;  %241 = vst [vmem:[#allocation2 + $0x18] sm:$0xff] %v6802_v39  ;;  %v651_v48 = vrot.slane %v642_v47, %v6762_v6  ;;  %v647_v49 = vrot.slane %v642_v47, %v6758_v4  ;;  %v659_v50 = vrot.slane %v642_v47, %v6760_v5  ;;  %v753_v52 = vld [vmem:[#allocation6 + $0x83] ss:$8 sm:$0xf] }
  0x5d   : > { %v655_v51 = vrot.slane %v642_v47, %v6756_v3  ;;  %v762_v53 = vrot.slane %v753_v52, %v6762_v6  ;;  %v758_v54 = vrot.slane %v753_v52, %v6758_v4  ;;  %v770_v55 = vrot.slane %v753_v52, %v6760_v5  ;;  %v863_v57 = vld [vmem:[#allocation6 + $0xa2] ss:$8 sm:$0xf]  ;;  %v974_v62 = vld [vmem:[#allocation6 + $0x1] ss:$8 sm:$0xf] }
  0x5e   : > { %v766_v56 = vrot.slane %v753_v52, %v6756_v3  ;;  %v872_v58 = vrot.slane %v863_v57, %v6762_v6  ;;  %v868_v59 = vrot.slane %v863_v57, %v6758_v4  ;;  %v880_v60 = vrot.slane %v863_v57, %v6760_v5  ;;  %v1079_v7 = vld [vmem:[#allocation6 + $0x20] ss:$8 sm:$0xf]  ;;  %v1217_v12 = vld [vmem:[#allocation6 + $0x27] ss:$8 sm:$0xf] }
  0x5f   : > { %333 = vrot.lane.b32.xlu1 %v326_v24, %s6598_s15  ;;  %331 = vrot.lane.b32.xlu0 %v322_v25, %s6598_s15  ;;  %v876_v61 = vrot.slane %v863_v57, %v6756_v3  ;;  %v983_v63 = vrot.slane %v974_v62, %v6762_v6  ;;  %v979_v0 = vrot.slane %v974_v62, %v6758_v4  ;;  %v6924_v52 = vld [vmem:[#allocation2] sm:$0xff]  ;;  %vm595_vm4 = vcmask 1044480   ;;  %s6320_s18 = sshll.u32 %s6639_s13, 10  ;;  %s6207_s13 = scalar_lea.sflag [#allocation5], %s6740_s14 }
  0x60   : > { %v991_v1 = vrot.slane %v974_v62, %v6760_v5  ;;  %v987_v2 = vrot.slane %v974_v62, %v6756_v3  ;;  %v1084_v8 = vrot.slane %v1079_v7, %v6758_v4  ;;  %v1088_v9 = vrot.slane %v1079_v7, %v6762_v6  ;;  %s11474_s27 = scalar_lea.hbm %s11522_s2, %s6320_s18  ;;  %s6523_s28 = scalar_lea.vmem %s11469_s8, 1024 }
  0x61   : > { %v1092_v10 = vrot.slane %v1079_v7, %v6756_v3  ;;  %v1096_v11 = vrot.slane %v1079_v7, %v6760_v5  ;;  %v1222_v13 = vrot.slane %v1217_v12, %v6758_v4  ;;  %v1226_v14 = vrot.slane %v1217_v12, %v6762_v6  ;;  %p6524_p3 = scmp.ne.s32.totalorder %s11469_s8, %s6523_s28  ;;  %p12691_p11 = scmp.ne.s32.totalorder %s11853_s30, 0 }
  0x62   : > { %v1230_v15 = vrot.slane %v1217_v12, %v6756_v3  ;;  %v1234_v16 = vrot.slane %v1217_v12, %v6760_v5  ;;  %v6950_v12 = vld [vmem:[#allocation2 + $0x88] sm:$0xff]  ;;  %vm706_vm5 = vcmask 1043456   ;;  %vm927_vm6 = vcmask 1041408   ;;  %s6601_s4 = smov [#allocation8]  }
  0x63   : > { %440 = vrot.lane.b32.xlu1 %v429_v37, %s6598_s15  ;;  %438 = vrot.lane.b32.xlu0 %v425_v38, %s6598_s15  ;;  %vm1049_vm7 = vcmask 785408   ;;  %vm289_vm8 = vcmask 261120   ;;  %p6525_p7 = pnand %p6524_p3, %p12691_p11  ;;  %s6527_s3 = sshll.u32 %s6601_s4, 4  ;;  %s6528_s3 = int_to_ptr.vmem [resolvable:$false] %s6527_s3 }
  0x64   : > { %s6529_s5 = scalar_lea.vmem %s6528_s3, 2048  ;;  %p6530_p10 = scmp.lt.s32.totalorder %s11469_s8, %s6528_s3 }
  0x65   : > { %p6526_p9 = pneg %p6525_p7  ;;  %p6531_p12 = scmp.lt.s32.totalorder %s6529_s5, %s6523_s28 }
  0x67   : > { %444 = vrot.lane.b32.xlu1 %v437_v40, %s6598_s15  ;;  %442 = vrot.lane.b32.xlu0 %v433_v41, %s6598_s15  ;;  %p6532_p13 = por %p6531_p12, %p6530_p10 }
  0x69   : > { %p6533_p0 = pnand %p6532_p13, %p6526_p9 }
  0x6b   : > { %551 = vrot.lane.b32.xlu1 %v540_v43, %s6598_s15  ;;  %549 = vrot.lane.b32.xlu0 %v536_v44, %s6598_s15 }
  0x6f   : > { %555 = vrot.lane.b32.xlu1 %v548_v45, %s6598_s15  ;;  %553 = vrot.lane.b32.xlu0 %v544_v46, %s6598_s15 }
  0x73   : > { %662 = vrot.lane.b32.xlu1 %v651_v48, %s6598_s15  ;;  %660 = vrot.lane.b32.xlu0 %v647_v49, %s6598_s15 }
  0x77   : > { %666 = vrot.lane.b32.xlu1 %v659_v50, %s6598_s15  ;;  %664 = vrot.lane.b32.xlu0 %v655_v51, %s6598_s15 }
  0x7b   : > { %773 = vrot.lane.b32.xlu1 %v762_v53, %s6598_s15  ;;  %771 = vrot.lane.b32.xlu0 %v758_v54, %s6598_s15 }
  0x7f   : > { %777 = vrot.lane.b32.xlu1 %v770_v55, %s6598_s15  ;;  %775 = vrot.lane.b32.xlu0 %v766_v56, %s6598_s15  ;;  %v6928_v56 = vld [vmem:[#allocation2 + $0x20] sm:$0xff] }
  0x83   : > { %883 = vrot.lane.b32.xlu1 %v872_v58, %s6598_s15  ;;  %881 = vrot.lane.b32.xlu0 %v868_v59, %s6598_s15 }
  0x87   : > { %887 = vrot.lane.b32.xlu1 %v880_v60, %s6598_s15  ;;  %885 = vrot.lane.b32.xlu0 %v876_v61, %s6598_s15 }
  0x8b   : > { %994 = vrot.lane.b32.xlu1 %v983_v63, %s6599_s17  ;;  %992 = vrot.lane.b32.xlu0 %v979_v0, %s6599_s17  ;;  %v6938_v63 = vld [vmem:[#allocation2 + $0x68] sm:$0xff]  ;;  %v6941_v0 = vld [vmem:[#allocation2 + $0x40] sm:$0xff] }
  0x8f   : > { %998 = vrot.lane.b32.xlu1 %v991_v1, %s6599_s17  ;;  %996 = vrot.lane.b32.xlu0 %v987_v2, %s6599_s17  ;;  %v6944_v2 = vld [vmem:[#allocation2 + $0x38] sm:$0x3f] }
  0x93   : > { %1097 = vrot.lane.b32.xlu0 %v1084_v8, %s6599_s17  ;;  %1099 = vrot.lane.b32.xlu1 %v1088_v9, %s6599_s17 }
  0x97   : > { %1101 = vrot.lane.b32.xlu0 %v1092_v10, %s6599_s17  ;;  %1103 = vrot.lane.b32.xlu1 %v1096_v11, %s6599_s17 }
  0x9b   : > { %1235 = vrot.lane.b32.xlu0 %v1222_v13, %s6599_s17  ;;  %1237 = vrot.lane.b32.xlu1 %v1226_v14, %s6599_s17 }
  0x9f   : > { %1239 = vrot.lane.b32.xlu0 %v1230_v15, %s6599_s17  ;;  %1241 = vrot.lane.b32.xlu1 %v1234_v16, %s6599_s17 }
  0xc5   : > { %v6868_v17 = vpop.permute.xlu1 %285  ;;  %v6870_v18 = vpop.permute.xlu0 %281 }
  0xc9   : > { %v6872_v19 = vpop.permute.xlu1 %287  ;;  %v6874_v20 = vpop.permute.xlu0 %283 }
  0xcd   : > { %v6876_v21 = vpop.permute.xlu1 %329  ;;  %v6878_v22 = vpop.permute.xlu0 %327 }
  0xd1   : > { %v6880_v23 = vpop.permute.xlu1 %333  ;;  %v6882_v24 = vpop.permute.xlu0 %331 }
  0xd5   : > { %v6884_v25 = vpop.permute.xlu1 %440  ;;  %v6886_v26 = vpop.permute.xlu0 %438 }
  0xd9   : > { %v6888_v27 = vpop.permute.xlu1 %444  ;;  %v6890_v28 = vpop.permute.xlu0 %442 }
  0xdd   : > { %v6892_v29 = vpop.permute.xlu1 %551  ;;  %v6894_v30 = vpop.permute.xlu0 %549 }
  0xe1   : > { %v6896_v31 = vpop.permute.xlu1 %555  ;;  %v6898_v32 = vpop.permute.xlu0 %553 }
  0xe5   : > { %v6900_v34 = vpop.permute.xlu1 %662  ;;  %v6902_v37 = vpop.permute.xlu0 %660 }
  0xe9   : > { %v6904_v38 = vpop.permute.xlu1 %666  ;;  %v6906_v40 = vpop.permute.xlu0 %664 }
  0xed   : > { %v6908_v41 = vpop.permute.xlu1 %773  ;;  %v6910_v42 = vpop.permute.xlu0 %771 }
  0xee   : > { %11863 = vst [vmem:[#allocation16_spill] sm:$0xff] %v6908_v41  ;;  %11864 = vst [vmem:[#allocation17_spill] sm:$0xff] %v6910_v42 }
  0xf1   : > { %v6912_v43 = vpop.permute.xlu1 %777  ;;  %v6914_v44 = vpop.permute.xlu0 %775 }
  0xf2   : > { %11865 = vst [vmem:[#allocation18_spill] sm:$0xff] %v6912_v43  ;;  %11866 = vst [vmem:[#allocation19_spill] sm:$0xff] %v6914_v44 }
  0xf5   : > { %v6916_v45 = vpop.permute.xlu1 %883  ;;  %v6918_v46 = vpop.permute.xlu0 %881 }
  0xf6   : > { %11867 = vst [vmem:[#allocation20_spill] sm:$0xff] %v6916_v45  ;;  %11868 = vst [vmem:[#allocation21_spill] sm:$0xff] %v6918_v46 }
  0xf9   : > { %v6920_v47 = vpop.permute.xlu1 %887  ;;  %v6922_v48 = vpop.permute.xlu0 %885 }
  0xfa   : > { %11869 = vst [vmem:[#allocation22_spill] sm:$0xff] %v6920_v47  ;;  %11870 = vst [vmem:[#allocation23_spill] sm:$0xff] %v6922_v48 }
  0xfd   : > { %v995_v49 = vpop.permute.xlu1 %994  ;;  %v993_v50 = vpop.permute.xlu0 %992 }
  0xfe   : > { %v1014_v53 = vmul.f32 0.0, %v993_v50  ;;  %v1009_v54 = vmul.f32 %v993_v50, %v6924_v52  ;;  %v1001_v60 = vsel %vm1000_vm1, %v993_v50, %v995_v49 }
  0xff   : > { %v1010_v1 = vmul.f32 %v1001_v60, %v6938_v63  ;;  %v1015_v16 = vmul.f32 %v1001_v60, %v6794_v36 }
 0x100   : > { %1039 = vrot.lane.b32.xlu1 %v1014_v53, %s6600_s25  ;;  %1029 = vrot.lane.b32.xlu0 %v1009_v54, %s6600_s25 }
 0x101   : > { %v999_v51 = vpop.permute.xlu1 %998  ;;  %v997_v55 = vpop.permute.xlu0 %996 }
 0x102   : > { %v1018_v57 = vmul.f32 %v999_v51, %v6790_v35  ;;  %v1013_v59 = vmul.f32 %v999_v51, %v6928_v56  ;;  %v1002_v61 = vsel %vm1000_vm1, %v995_v49, %v997_v55  ;;  %v1003_v7 = vsel %vm1000_vm1, %v997_v55, %v999_v51  ;;  %v6956_v49 = vld [vmem:[#allocation2 + $0x80] sm:$0x3f] }
 0x103   : > { %v1011_v8 = vmul.f32 %v1002_v61, %v6941_v0  ;;  %v1012_v13 = vmul.f32 %v1003_v7, %v6950_v12  ;;  %v1017_v60 = vmul.f32 %v1003_v7, %v6787_v33 }
 0x104   : > { %1047 = vrot.lane.b32.xlu1 %v1018_v57, %s6600_s25  ;;  %1037 = vrot.lane.b32.xlu0 %v1013_v59, %s6600_s25  ;;  %v1016_v57 = vmul.f32 %v1002_v61, %v6802_v39 }
 0x105   : > { %v6932_v58 = vpop.permute.xlu1 %1099  ;;  %v1098_v62 = vpop.permute.xlu0 %1097 }
 0x106   : > { %v1118_v10 = vmul.f32 0.0, %v1098_v62  ;;  %v1123_v11 = vmul.f32 %v1098_v62, %v6944_v2  ;;  %v1113_v15 = vmul.f32 %v1098_v62, %v6924_v52  ;;  %v1105_v7 = vsel %vm1000_vm1, %v1098_v62, %v6932_v58 }
 0x107   : > { %v1114_v62 = vmul.f32 %v1105_v7, %v6938_v63 }
 0x108   : > { %1031 = vrot.lane.b32.xlu1 %v1010_v1, %s6600_s25  ;;  %1033 = vrot.lane.b32.xlu0 %v1011_v8, %s6600_s25  ;;  %v1144_v50 = vrot.slane %v1118_v10, 1  ;;  %v1158_v51 = vrot.slane %v1123_v11, 1  ;;  %v1143_v59 = vrot.slane %v1113_v15, 1 }
 0x109   : > { %v1104_v9 = vpop.permute.xlu1 %1103  ;;  %v1102_v14 = vpop.permute.xlu0 %1101 }
 0x10a   : > { %v1122_v54 = vmul.f32 %v1104_v9, %v6790_v35  ;;  %v1127_v55 = vmul.f32 %v1104_v9, %v6956_v49  ;;  %v1117_v1 = vmul.f32 %v1104_v9, %v6928_v56  ;;  %v1159_v10 = vsel %vm373_vm2, %v1144_v50, %v1158_v51 }
 0x10b   : > { %v1145_v61 = vsel %vm373_vm2, %v1143_v59, %v1144_v50 }
 0x10c   : > { %1035 = vrot.lane.b32.xlu1 %v1012_v13, %s6600_s25  ;;  %1041 = vrot.lane.b32.xlu0 %v1015_v16, %s6600_s25  ;;  %v1156_v11 = vrot.slane %v1122_v54, 1  ;;  %v1166_v13 = vrot.slane %v1127_v55, 1  ;;  %v1155_v15 = vrot.slane %v1117_v1, 1  ;;  %v1119_v1 = vmul.f32 %v1105_v7, %v6794_v36 }
 0x10d   : > { %v6960_v53 = vpop.permute.xlu1 %1237  ;;  %v1236_v8 = vpop.permute.xlu0 %1235 }
 0x10e   : > { %v1256_v16 = vmul.f32 0.0, %v1236_v8  ;;  %v1261_v47 = vmul.f32 %v1236_v8, %v6944_v2  ;;  %v1251_v48 = vmul.f32 %v1236_v8, %v6924_v52  ;;  %v1167_v51 = vsel %vm373_vm2, %v1156_v11, %v1166_v13 }
 0x110   : > { %1043 = vrot.lane.b32.xlu1 %v1016_v57, %s6600_s25  ;;  %1045 = vrot.lane.b32.xlu0 %v1017_v60, %s6600_s25  ;;  %v1282_v54 = vrot.slane %v1256_v16, 2  ;;  %v1296_v55 = vrot.slane %v1261_v47, 2  ;;  %v1157_v57 = vsel %vm373_vm2, %v1155_v15, %v1156_v11  ;;  %v1281_v60 = vrot.slane %v1251_v48, 2 }
 0x111   : > { %v6973_v46 = vpop.permute.xlu1 %1241  ;;  %v1106_v47 = vsel %vm1000_vm1, %v6932_v58, %v1102_v14  ;;  %v1147_v15 = vrot.slane %v1119_v1, 1  ;;  %v7002_v58 = vld [vmem:[#allocation2 + $0x50] sm:$0x3f] }
 0x112   : > { %v1255_v50 = vmul.f32 %v6973_v46, %v6928_v56  ;;  %v6985_v59 = vmul.f32 %v6973_v46, %v6790_v35  ;;  %v1297_v48 = vsel %vm484_vm3, %v1282_v54, %v1296_v55  ;;  %v1283_v11 = vsel %vm484_vm3, %v1281_v60, %v1282_v54  ;;  %v7009_v55 = vld [vmem:[#allocation2 + $0x48] sm:$0x3f] }
 0x113   : > { %v1120_v44 = vmul.f32 %v1106_v47, %v6802_v39  ;;  %v1124_v1 = vmul.f32 %v1105_v7, %v7009_v55 }
 0x114   : > { %1178 = vrot.lane.b32.xlu1 %v1159_v10, %s6600_s25  ;;  %1168 = vrot.lane.b32.xlu0 %v1145_v61, %s6600_s25  ;;  %v1107_v10 = vsel %vm1000_vm1, %v1102_v14, %v1104_v9  ;;  %v1293_v13 = vrot.slane %v1255_v50, 2  ;;  %v11532_v16 = vrot.slane %v6985_v59, 2  ;;  %v1146_v61 = vrot.slane %v1114_v62, 1 }
 0x115   : > { %v1116_v45 = vmul.f32 %v1107_v10, %v6950_v12  ;;  %v1121_v9 = vmul.f32 %v1107_v10, %v6787_v33  ;;  %v1125_v14 = vmul.f32 %v1106_v47, %v7002_v58 }
 0x116   : > { %v1295_v54 = vsel %vm484_vm3, %v1293_v13, %v11532_v16  ;;  %v1148_v60 = vsel %vm373_vm2, %v1146_v61, %v1147_v15  ;;  %v1240_v13 = vpop.permute.xlu0 %1239  ;;  %v7018_v16 = vld [vmem:[#allocation2 + $0x70] sm:$0x3f] }
 0x117   : > { %v1152_v50 = vrot.slane %v1116_v45, 1  ;;  %v1153_v62 = vrot.slane %v1121_v9, 1  ;;  %v1162_v61 = vrot.slane %v1125_v14, 1  ;;  %v1245_v45 = vsel %vm1000_vm1, %v1240_v13, %v6973_v46 }
 0x118   : > { %1186 = vrot.lane.b32.xlu1 %v1167_v51, %s6600_s25  ;;  %1176 = vrot.lane.b32.xlu0 %v1157_v57, %s6600_s25  ;;  %v1115_v51 = vmul.f32 %v1106_v47, %v6941_v0  ;;  %v1243_v57 = vsel %vm1000_vm1, %v1236_v8, %v6960_v53  ;;  %v1126_v9 = vmul.f32 %v1107_v10, %v7018_v16 }
 0x119   : > { %v1252_v47 = vmul.f32 %v1243_v57, %v6938_v63  ;;  %v1257_v43 = vmul.f32 %v1243_v57, %v6794_v36  ;;  %v1154_v8 = vsel %vm373_vm2, %v1152_v50, %v1153_v62  ;;  %v1254_v14 = vmul.f32 %v1245_v45, %v6950_v12 }
 0x11a   : > { %v1259_v42 = vmul.f32 %v1245_v45, %v6787_v33 }
 0x11b   : > { %v1285_v50 = vrot.slane %v1257_v43, 2  ;;  %v1290_v43 = vrot.slane %v1254_v14, 2 }
 0x11c   : > { %1316 = vrot.lane.b32.xlu1 %v1297_v48, %s6600_s25  ;;  %1306 = vrot.lane.b32.xlu0 %v1283_v11, %s6600_s25  ;;  %v1149_v48 = vrot.slane %v1115_v51, 1  ;;  %v1150_v11 = vrot.slane %v1120_v44, 1  ;;  %v1160_v44 = vrot.slane %v1124_v1, 1  ;;  %v1244_v51 = vsel %vm1000_vm1, %v6960_v53, %v1240_v13 }
 0x11d   : > { %v1164_v1 = vrot.slane %v1126_v9, 1  ;;  %v1263_v53 = vmul.f32 %v1244_v51, %v7002_v58  ;;  %v1262_v13 = vmul.f32 %v1243_v57, %v7009_v55  ;;  %v1265_v9 = vmul.f32 %v6973_v46, %v6956_v49  ;;  %v1355_v46 = vld [vmem:[#allocation6 + $0x46] ss:$8 sm:$0xf] }
 0x11e   : > { %v1151_v7 = vsel %vm373_vm2, %v1149_v48, %v1150_v11  ;;  %v1258_v48 = vmul.f32 %v1244_v51, %v6802_v39  ;;  %v1161_v10 = vsel %vm373_vm2, %v1147_v15, %v1160_v44  ;;  %v1264_v57 = vmul.f32 %v1245_v45, %v7018_v16 }
 0x11f   : > { %v1300_v44 = vrot.slane %v1263_v53, 2 }
 0x120   : > { %1170 = vrot.lane.b32.xlu1 %v1148_v60, %s6600_s25  ;;  %1314 = vrot.lane.b32.xlu0 %v1295_v54, %s6600_s25  ;;  %v1284_v54 = vrot.slane %v1252_v47, 2  ;;  %v1163_v60 = vsel %vm373_vm2, %v1150_v11, %v1162_v61  ;;  %v1291_v47 = vrot.slane %v1259_v42, 2  ;;  %v1165_v61 = vsel %vm373_vm2, %v1153_v62, %v1164_v1 }
 0x121   : > { %v1288_v41 = vrot.slane %v1258_v48, 2  ;;  %v1302_v14 = vrot.slane %v1264_v57, 2 }
 0x122   : > { %v1286_v11 = vsel %vm484_vm3, %v1284_v54, %v1285_v50  ;;  %v1292_v15 = vsel %vm484_vm3, %v1290_v43, %v1291_v47  ;;  %v1304_v54 = vrot.slane %v1265_v9, 2 }
 0x123   : > { %v1301_v62 = vsel %vm484_vm3, %v1288_v41, %v1300_v44  ;;  %v1303_v45 = vsel %vm484_vm3, %v1291_v47, %v1302_v14 }
 0x124   : > { %1174 = vrot.lane.b32.xlu1 %v1154_v8, %s6600_s25  ;;  %1172 = vrot.lane.b32.xlu0 %v1151_v7, %s6600_s25  ;;  %v1253_v8 = vmul.f32 %v1244_v51, %v6941_v0  ;;  %v1298_v51 = vrot.slane %v1262_v13, 2 }
 0x126   : > { %v1287_v7 = vrot.slane %v1253_v8, 2  ;;  %v11871_v8 = vrot.slane %v6985_v59, 2  ;;  %v1368_v59 = vrot.slane %v1355_v46, %v6756_v3 }
 0x128   : > { %1182 = vrot.lane.b32.xlu1 %v1163_v60, %s6600_s25  ;;  %1180 = vrot.lane.b32.xlu0 %v1161_v10, %s6600_s25  ;;  %v1289_v42 = vsel %vm484_vm3, %v1287_v7, %v1288_v41  ;;  %v1299_v60 = vsel %vm484_vm3, %v1285_v50, %v1298_v51  ;;  %v1305_v48 = vsel %vm484_vm3, %v11871_v8, %v1304_v54 }
 0x129   : > { %v1364_v10 = vrot.slane %v1355_v46, %v6762_v6  ;;  %v1360_v41 = vrot.slane %v1355_v46, %v6758_v4  ;;  %v1372_v50 = vrot.slane %v1355_v46, %v6760_v5 }
 0x12c   : > { %1308 = vrot.lane.b32.xlu1 %v1286_v11, %s6600_s25  ;;  %1184 = vrot.lane.b32.xlu0 %v1165_v61, %s6600_s25 }
 0x130   : > { %1312 = vrot.lane.b32.xlu1 %v1292_v15, %s6600_s25  ;;  %1310 = vrot.lane.b32.xlu0 %v1289_v42, %s6600_s25 }
 0x134   : > { %1320 = vrot.lane.b32.xlu1 %v1301_v62, %s6600_s25  ;;  %1318 = vrot.lane.b32.xlu0 %v1299_v60, %s6600_s25 }
 0x138   : > { %1324 = vrot.lane.b32.xlu1 %v1305_v48, %s6600_s25  ;;  %1322 = vrot.lane.b32.xlu0 %v1303_v45, %s6600_s25 }
 0x13c   : > { %1375 = vrot.lane.b32.xlu1 %v1364_v10, %s6599_s17  ;;  %1373 = vrot.lane.b32.xlu0 %v1360_v41, %s6599_s17 }
 0x140   : > { %1379 = vrot.lane.b32.xlu1 %v1372_v50, %s6599_s17  ;;  %1377 = vrot.lane.b32.xlu0 %v1368_v59, %s6599_s17 }
 0x172   : > { %v7069_v1 = vpop.permute.xlu1 %1039  ;;  %v7071_v53 = vpop.permute.xlu0 %1029 }
 0x173   : > { %11872 = vst [vmem:[#allocation24_spill] sm:$0xff] %v7069_v1  ;;  %11873 = vst [vmem:[#allocation25_spill] sm:$0xff] %v7071_v53 }
 0x176   : > { %v7073_v11 = vpop.permute.xlu1 %1047  ;;  %v7075_v43 = vpop.permute.xlu0 %1037 }
 0x177   : > { %11874 = vst [vmem:[#allocation26_spill] sm:$0xff] %v7073_v11  ;;  %11875 = vst [vmem:[#allocation27_spill] sm:$0xff] %v7075_v43 }
 0x17a   : > { %v7077_v47 = vpop.permute.xlu1 %1031  ;;  %v7079_v13 = vpop.permute.xlu0 %1033 }
 0x17b   : > { %11876 = vst [vmem:[#allocation28_spill] sm:$0xff] %v7077_v47  ;;  %11877 = vst [vmem:[#allocation29_spill] sm:$0xff] %v7079_v13 }
 0x17e   : > { %v7081_v61 = vpop.permute.xlu1 %1035  ;;  %v7083_v7 = vpop.permute.xlu0 %1041 }
 0x17f   : > { %11878 = vst [vmem:[#allocation30_spill] sm:$0xff] %v7081_v61  ;;  %11879 = vst [vmem:[#allocation31_spill] sm:$0xff] %v7083_v7 }
 0x182   : > { %v7085_v15 = vpop.permute.xlu1 %1043  ;;  %v7087_v44 = vpop.permute.xlu0 %1045 }
 0x183   : > { %11880 = vst [vmem:[#allocation32_spill] sm:$0xff] %v7085_v15  ;;  %11881 = vst [vmem:[#allocation33_spill] sm:$0xff] %v7087_v44 }
 0x186   : > { %v7089_v9 = vpop.permute.xlu1 %1178  ;;  %v7091_v42 = vpop.permute.xlu0 %1168 }
 0x187   : > { %11882 = vst [vmem:[#allocation34_spill] sm:$0xff] %v7089_v9  ;;  %11883 = vst [vmem:[#allocation35_spill] sm:$0xff] %v7091_v42 }
 0x18a   : > { %v7093_v51 = vpop.permute.xlu1 %1186  ;;  %v7095_v57 = vpop.permute.xlu0 %1176 }
 0x18b   : > { %11884 = vst [vmem:[#allocation36_spill] sm:$0xff] %v7093_v51  ;;  %11885 = vst [vmem:[#allocation37_spill] sm:$0xff] %v7095_v57 }
 0x18e   : > { %v7097_v62 = vpop.permute.xlu1 %1316  ;;  %v7099_v54 = vpop.permute.xlu0 %1306 }
 0x18f   : > { %11886 = vst [vmem:[#allocation38_spill] sm:$0xff] %v7097_v62  ;;  %11887 = vst [vmem:[#allocation39_spill] sm:$0xff] %v7099_v54 }
 0x192   : > { %v7101_v60 = vpop.permute.xlu1 %1170  ;;  %v7103_v14 = vpop.permute.xlu0 %1314 }
 0x193   : > { %11888 = vst [vmem:[#allocation40_spill] sm:$0xff] %v7101_v60  ;;  %11889 = vst [vmem:[#allocation41_spill] sm:$0xff] %v7103_v14 }
 0x196   : > { %v7105_v46 = vpop.permute.xlu1 %1174  ;;  %v7107_v8 = vpop.permute.xlu0 %1172 }
 0x197   : > { %11890 = vst [vmem:[#allocation42_spill] sm:$0xff] %v7105_v46  ;;  %11891 = vst [vmem:[#allocation43_spill] sm:$0xff] %v7107_v8 }
 0x19a   : > { %v7109_v48 = vpop.permute.xlu1 %1182  ;;  %v7111_v45 = vpop.permute.xlu0 %1180 }
 0x19b   : > { %11892 = vst [vmem:[#allocation44_spill] sm:$0xff] %v7109_v48  ;;  %11893 = vst [vmem:[#allocation45_spill] sm:$0xff] %v7111_v45 }
 0x19e   : > { %v7113_v10 = vpop.permute.xlu1 %1308  ;;  %v7115_v41 = vpop.permute.xlu0 %1184 }
 0x19f   : > { %11894 = vst [vmem:[#allocation46_spill] sm:$0xff] %v7113_v10  ;;  %11895 = vst [vmem:[#allocation47_spill] sm:$0xff] %v7115_v41 }
 0x1a2   : > { %v7117_v50 = vpop.permute.xlu1 %1312  ;;  %v7119_v59 = vpop.permute.xlu0 %1310 }
 0x1a3   : > { %11896 = vst [vmem:[#allocation48_spill] sm:$0xff] %v7117_v50  ;;  %11897 = vst [vmem:[#allocation49_spill] sm:$0xff] %v7119_v59 }
 0x1a6   : > { %v7121_v62 = vpop.permute.xlu1 %1320  ;;  %v7123_v54 = vpop.permute.xlu0 %1318 }
 0x1a7   : > { %11898 = vst [vmem:[#allocation50_spill] sm:$0xff] %v7121_v62  ;;  %11899 = vst [vmem:[#allocation51_spill] sm:$0xff] %v7123_v54 }
 0x1aa   : > { %v7125_v9 = vpop.permute.xlu1 %1324  ;;  %v7127_v14 = vpop.permute.xlu0 %1322 }
 0x1ab   : > { %11900 = vst [vmem:[#allocation52_spill] sm:$0xff] %v7125_v9  ;;  %11901 = vst [vmem:[#allocation53_spill] sm:$0xff] %v7127_v14 }
 0x1ae   : > { %v1376_v51 = vpop.permute.xlu1 %1375  ;;  %v1374_v48 = vpop.permute.xlu0 %1373 }
 0x1af   : > { %v1381_v45 = vsel %vm1000_vm1, %v1374_v48, %v1376_v51  ;;  %v1389_v10 = vmul.f32 %v1374_v48, %v6924_v52  ;;  %v1394_v8 = vmul.f32 0.0, %v1374_v48 }
 0x1b0   : > { %v1390_v41 = vmul.f32 %v1381_v45, %v6938_v63  ;;  %v1395_v50 = vmul.f32 %v1381_v45, %v6794_v36  ;;  %v1400_v43 = vmul.f32 %v1381_v45, %v7009_v55 }
 0x1b1   : > { %v1419_v46 = vrot.slane %v1389_v10, 3  ;;  %v1420_v62 = vrot.slane %v1394_v8, 3 }
 0x1b2   : > { %v1380_v59 = vpop.permute.xlu1 %1379  ;;  %v1378_v54 = vpop.permute.xlu0 %1377  ;;  %v1422_v57 = vrot.slane %v1390_v41, 3  ;;  %v1423_v9 = vrot.slane %v1395_v50, 3 }
 0x1b3   : > { %v1393_v14 = vmul.f32 %v1380_v59, %v6928_v56  ;;  %v1382_v42 = vsel %vm1000_vm1, %v1376_v51, %v1378_v54  ;;  %v1383_v60 = vsel %vm1000_vm1, %v1378_v54, %v1380_v59  ;;  %v1421_v11 = vsel %vm595_vm4, %v1419_v46, %v1420_v62 }
 0x1b4   : > { %v1398_v44 = vmul.f32 %v1380_v59, %v6790_v35  ;;  %v1391_v15 = vmul.f32 %v1382_v42, %v6941_v0  ;;  %v1392_v1 = vmul.f32 %v1383_v60, %v6950_v12  ;;  %v1396_v8 = vmul.f32 %v1382_v42, %v6802_v39  ;;  %1444 = vrot.lane.b32.xlu0 %v1421_v11, %s6600_s25 }
 0x1b5   : > { %v1397_v10 = vmul.f32 %v1383_v60, %v6787_v33  ;;  %v1424_v41 = vsel %vm595_vm4, %v1422_v57, %v1423_v9  ;;  %v1399_v51 = vmul.f32 %v1374_v48, %v6944_v2  ;;  %v1431_v53 = vrot.slane %v1393_v14, 3 }
 0x1b6   : > { %1446 = vrot.lane.b32.xlu1 %v1424_v41, %s6600_s25  ;;  %v1428_v54 = vrot.slane %v1392_v1, 3  ;;  %v1425_v50 = vrot.slane %v1391_v15, 3  ;;  %v1426_v7 = vrot.slane %v1396_v8, 3  ;;  %v1432_v47 = vrot.slane %v1398_v44, 3 }
 0x1b7   : > { %v1429_v46 = vrot.slane %v1397_v10, 3  ;;  %v1401_v11 = vmul.f32 %v1382_v42, %v7002_v58  ;;  %v1434_v57 = vrot.slane %v1399_v51, 3  ;;  %v1402_v1 = vmul.f32 %v1383_v60, %v7018_v16 }
 0x1b8   : > { %v1427_v13 = vsel %vm595_vm4, %v1425_v50, %v1426_v7  ;;  %v1433_v15 = vsel %vm595_vm4, %v1431_v53, %v1432_v47  ;;  %v1436_v48 = vrot.slane %v1400_v43, 3  ;;  %v1403_v14 = vmul.f32 %v1380_v59, %v6956_v49  ;;  %v1493_v53 = vld [vmem:[#allocation6 + $0x65] ss:$8 sm:$0xf] }
 0x1b9   : > { %v1430_v61 = vsel %vm595_vm4, %v1428_v54, %v1429_v46  ;;  %1448 = vrot.lane.b32.xlu0 %v1427_v13, %s6600_s25  ;;  %v1435_v45 = vsel %vm595_vm4, %v1420_v62, %v1434_v57  ;;  %v1438_v8 = vrot.slane %v1401_v11, 3  ;;  %v1440_v13 = vrot.slane %v1402_v1, 3 }
 0x1ba   : > { %1450 = vrot.lane.b32.xlu1 %v1430_v61, %s6600_s25  ;;  %v1437_v44 = vsel %vm595_vm4, %v1423_v9, %v1436_v48  ;;  %v1442_v61 = vrot.slane %v1403_v14, 3  ;;  %v1498_v60 = vrot.slane %v1493_v53, %v6758_v4  ;;  %v1502_v9 = vrot.slane %v1493_v53, %v6762_v6 }
 0x1bb   : > { %v1439_v42 = vsel %vm595_vm4, %v1426_v7, %v1438_v8  ;;  %v1441_v43 = vsel %vm595_vm4, %v1429_v46, %v1440_v13  ;;  %v1506_v7 = vrot.slane %v1493_v53, %v6756_v3  ;;  %v1510_v59 = vrot.slane %v1493_v53, %v6760_v5 }
 0x1bc   : > { %v1443_v62 = vsel %vm595_vm4, %v1432_v47, %v1442_v61 }
 0x1bd   : > { %1452 = vrot.lane.b32.xlu0 %v1433_v15, %s6600_s25 }
 0x1be   : > { %1454 = vrot.lane.b32.xlu1 %v1435_v45, %s6600_s25 }
 0x1c1   : > { %1456 = vrot.lane.b32.xlu0 %v1437_v44, %s6600_s25 }
 0x1c2   : > { %1458 = vrot.lane.b32.xlu1 %v1439_v42, %s6600_s25 }
 0x1c5   : > { %1460 = vrot.lane.b32.xlu0 %v1441_v43, %s6600_s25 }
 0x1c6   : > { %1462 = vrot.lane.b32.xlu1 %v1443_v62, %s6600_s25 }
 0x1c9   : > { %1511 = vrot.lane.b32.xlu0 %v1498_v60, %s6599_s17 }
 0x1ca   : > { %1513 = vrot.lane.b32.xlu1 %v1502_v9, %s6599_s17 }
 0x1cd   : > { %1515 = vrot.lane.b32.xlu0 %v1506_v7, %s6599_s17 }
 0x1ce   : > { %1517 = vrot.lane.b32.xlu1 %v1510_v59, %s6599_s17 }
 0x226   : > { %v7174_v47 = vpop.permute.xlu0 %1444 }
 0x227   : > { %11902 = vst [vmem:[#allocation54_spill] sm:$0xff] %v7174_v47 }
 0x228   : > { %v7176_v10 = vpop.permute.xlu1 %1446 }
 0x229   : > { %11903 = vst [vmem:[#allocation55_spill] sm:$0xff] %v7176_v10 }
 0x22b   : > { %v7178_v41 = vpop.permute.xlu0 %1448 }
 0x22c   : > { %11904 = vst [vmem:[#allocation56_spill] sm:$0xff] %v7178_v41  ;;  %v7180_v51 = vpop.permute.xlu1 %1450 }
 0x22d   : > { %11905 = vst [vmem:[#allocation57_spill] sm:$0xff] %v7180_v51 }
 0x22f   : > { %v7182_v54 = vpop.permute.xlu0 %1452 }
 0x230   : > { %11906 = vst [vmem:[#allocation58_spill] sm:$0xff] %v7182_v54  ;;  %v7184_v46 = vpop.permute.xlu1 %1454 }
 0x231   : > { %11907 = vst [vmem:[#allocation59_spill] sm:$0xff] %v7184_v46 }
 0x233   : > { %v7186_v50 = vpop.permute.xlu0 %1456 }
 0x234   : > { %11908 = vst [vmem:[#allocation60_spill] sm:$0xff] %v7186_v50  ;;  %v7188_v11 = vpop.permute.xlu1 %1458 }
 0x235   : > { %11909 = vst [vmem:[#allocation61_spill] sm:$0xff] %v7188_v11 }
 0x237   : > { %v7190_v57 = vpop.permute.xlu0 %1460 }
 0x238   : > { %11910 = vst [vmem:[#allocation62_spill] sm:$0xff] %v7190_v57  ;;  %v7192_v1 = vpop.permute.xlu1 %1462 }
 0x239   : > { %11911 = vst [vmem:[#allocation63_spill] sm:$0xff] %v7192_v1 }
 0x23b   : > { %v1512_v15 = vpop.permute.xlu0 %1511 }
 0x23c   : > { %v1514_v48 = vpop.permute.xlu1 %1513  ;;  %v1527_v45 = vmul.f32 %v1512_v15, %v6924_v52  ;;  %v1532_v8 = vmul.f32 0.0, %v1512_v15 }
 0x23d   : > { %v1519_v14 = vsel %vm1000_vm1, %v1512_v15, %v1514_v48 }
 0x23e   : > { %v1557_v44 = vrot.slane %v1527_v45, 4  ;;  %v1558_v13 = vrot.slane %v1532_v8, 4  ;;  %v1528_v42 = vmul.f32 %v1519_v14, %v6938_v63  ;;  %v1533_v61 = vmul.f32 %v1519_v14, %v6794_v36 }
 0x23f   : > { %v1516_v53 = vpop.permute.xlu0 %1515  ;;  %v1538_v51 = vmul.f32 %v1519_v14, %v7009_v55 }
 0x240   : > { %v1518_v43 = vpop.permute.xlu1 %1517  ;;  %v1520_v62 = vsel %vm1000_vm1, %v1514_v48, %v1516_v53  ;;  %v1559_v60 = vsel %vm706_vm5, %v1557_v44, %v1558_v13  ;;  %v1560_v9 = vrot.slane %v1528_v42, 4  ;;  %v1561_v7 = vrot.slane %v1533_v61, 4 }
 0x241   : > { %v1521_v59 = vsel %vm1000_vm1, %v1516_v53, %v1518_v43  ;;  %v1529_v1 = vmul.f32 %v1520_v62, %v6941_v0  ;;  %v1534_v45 = vmul.f32 %v1520_v62, %v6802_v39  ;;  %1582 = vrot.lane.b32.xlu0 %v1559_v60, %s6600_s25  ;;  %v1537_v48 = vmul.f32 %v1512_v15, %v6944_v2 }
 0x242   : > { %v1530_v8 = vmul.f32 %v1521_v59, %v6950_v12  ;;  %v1535_v57 = vmul.f32 %v1521_v59, %v6787_v33  ;;  %v1562_v11 = vsel %vm706_vm5, %v1560_v9, %v1561_v7  ;;  %v1531_v61 = vmul.f32 %v1518_v43, %v6928_v56 }
 0x243   : > { %1584 = vrot.lane.b32.xlu1 %v1562_v11, %s6600_s25  ;;  %v1563_v44 = vrot.slane %v1529_v1, 4  ;;  %v1564_v42 = vrot.slane %v1534_v45, 4  ;;  %v1536_v50 = vmul.f32 %v1518_v43, %v6790_v35  ;;  %v1539_v41 = vmul.f32 %v1520_v62, %v7002_v58 }
 0x244   : > { %v1566_v53 = vrot.slane %v1530_v8, 4  ;;  %v1567_v46 = vrot.slane %v1535_v57, 4  ;;  %v1569_v54 = vrot.slane %v1531_v61, 4  ;;  %v1572_v11 = vrot.slane %v1537_v48, 4 }
 0x245   : > { %v1565_v60 = vsel %vm706_vm5, %v1563_v44, %v1564_v42  ;;  %v1570_v1 = vrot.slane %v1536_v50, 4  ;;  %v1540_v15 = vmul.f32 %v1521_v59, %v7018_v16  ;;  %v1574_v45 = vrot.slane %v1538_v51, 4  ;;  %v1631_v51 = vld [vmem:[#allocation6 + $0x84] ss:$8 sm:$0xf] }
 0x246   : > { %v1568_v9 = vsel %vm706_vm5, %v1566_v53, %v1567_v46  ;;  %1586 = vrot.lane.b32.xlu0 %v1565_v60, %s6600_s25  ;;  %v1573_v8 = vsel %vm706_vm5, %v1558_v13, %v1572_v11  ;;  %v1576_v14 = vrot.slane %v1539_v41, 4  ;;  %v1541_v62 = vmul.f32 %v1518_v43, %v6956_v49 }
 0x247   : > { %1588 = vrot.lane.b32.xlu1 %v1568_v9, %s6600_s25  ;;  %v1571_v57 = vsel %vm706_vm5, %v1569_v54, %v1570_v1  ;;  %v1575_v44 = vsel %vm706_vm5, %v1561_v7, %v1574_v45  ;;  %v1578_v48 = vrot.slane %v1540_v15, 4  ;;  %v1636_v41 = vrot.slane %v1631_v51, %v6758_v4 }
 0x248   : > { %v1577_v50 = vsel %vm706_vm5, %v1564_v42, %v1576_v14  ;;  %v1580_v59 = vrot.slane %v1541_v62, 4  ;;  %v1640_v43 = vrot.slane %v1631_v51, %v6762_v6  ;;  %v1644_v7 = vrot.slane %v1631_v51, %v6756_v3 }
 0x249   : > { %v1579_v54 = vsel %vm706_vm5, %v1567_v46, %v1578_v48  ;;  %v1648_v42 = vrot.slane %v1631_v51, %v6760_v5 }
 0x24a   : > { %1590 = vrot.lane.b32.xlu0 %v1571_v57, %s6600_s25  ;;  %v1581_v13 = vsel %vm706_vm5, %v1570_v1, %v1580_v59 }
 0x24b   : > { %1592 = vrot.lane.b32.xlu1 %v1573_v8, %s6600_s25 }
 0x24e   : > { %1594 = vrot.lane.b32.xlu0 %v1575_v44, %s6600_s25  ;;  %v7260_v44 = vld [vmem:[#allocation2 + $0x10] sm:$0xff] }
 0x24f   : > { %1596 = vrot.lane.b32.xlu1 %v1577_v50, %s6600_s25 }
 0x252   : > { %1598 = vrot.lane.b32.xlu0 %v1579_v54, %s6600_s25 }
 0x253   : > { %1600 = vrot.lane.b32.xlu1 %v1581_v13, %s6600_s25 }
 0x256   : > { %1649 = vrot.lane.b32.xlu0 %v1636_v41, %s6599_s17 }
 0x257   : > { %1651 = vrot.lane.b32.xlu1 %v1640_v43, %s6599_s17 }
 0x25a   : > { %1653 = vrot.lane.b32.xlu0 %v1644_v7, %s6599_s17 }
 0x25b   : > { %1655 = vrot.lane.b32.xlu1 %v1648_v42, %s6599_s17 }
 0x2b3   : > { %v7239_v46 = vpop.permute.xlu0 %1582 }
 0x2b4   : > { %11912 = vst [vmem:[#allocation64_spill] sm:$0xff] %v7239_v46 }
 0x2b5   : > { %v7241_v61 = vpop.permute.xlu1 %1584 }
 0x2b6   : > { %11913 = vst [vmem:[#allocation65_spill] sm:$0xff] %v7241_v61 }
 0x2b8   : > { %v7243_v53 = vpop.permute.xlu0 %1586 }
 0x2b9   : > { %11914 = vst [vmem:[#allocation66_spill] sm:$0xff] %v7243_v53  ;;  %v7245_v60 = vpop.permute.xlu1 %1588 }
 0x2ba   : > { %11915 = vst [vmem:[#allocation67_spill] sm:$0xff] %v7245_v60 }
 0x2bc   : > { %v7247_v9 = vpop.permute.xlu0 %1590 }
 0x2bd   : > { %11916 = vst [vmem:[#allocation68_spill] sm:$0xff] %v7247_v9  ;;  %v7249_v11 = vpop.permute.xlu1 %1592 }
 0x2be   : > { %11917 = vst [vmem:[#allocation69_spill] sm:$0xff] %v7249_v11 }
 0x2c0   : > { %v7251_v1 = vpop.permute.xlu0 %1594 }
 0x2c1   : > { %11918 = vst [vmem:[#allocation70_spill] sm:$0xff] %v7251_v1  ;;  %v7253_v15 = vpop.permute.xlu1 %1596 }
 0x2c2   : > { %11919 = vst [vmem:[#allocation71_spill] sm:$0xff] %v7253_v15 }
 0x2c4   : > { %v7255_v57 = vpop.permute.xlu0 %1598 }
 0x2c5   : > { %11920 = vst [vmem:[#allocation72_spill] sm:$0xff] %v7255_v57  ;;  %v7257_v45 = vpop.permute.xlu1 %1600 }
 0x2c6   : > { %11921 = vst [vmem:[#allocation73_spill] sm:$0xff] %v7257_v45 }
 0x2c8   : > { %v1650_v8 = vpop.permute.xlu0 %1649 }
 0x2c9   : > { %v1652_v14 = vpop.permute.xlu1 %1651  ;;  %v1665_v62 = vmul.f32 %v1650_v8, %v6924_v52  ;;  %v1670_v48 = vmul.f32 %v7260_v44, %v1650_v8 }
 0x2ca   : > { %v1657_v50 = vsel %vm1000_vm1, %v1650_v8, %v1652_v14 }
 0x2cb   : > { %v1695_v59 = vrot.slane %v1665_v62, 5  ;;  %v1696_v51 = vrot.slane %v1670_v48, 5  ;;  %v1666_v54 = vmul.f32 %v1657_v50, %v6938_v63  ;;  %v1671_v13 = vmul.f32 %v1657_v50, %v6794_v36 }
 0x2cc   : > { %v1654_v41 = vpop.permute.xlu0 %1653  ;;  %v1676_v60 = vmul.f32 %v1657_v50, %v7009_v55 }
 0x2cd   : > { %v1656_v43 = vpop.permute.xlu1 %1655  ;;  %v1658_v7 = vsel %vm1000_vm1, %v1652_v14, %v1654_v41  ;;  %v1697_v42 = vsel %vm211_vm0, %v1695_v59, %v1696_v51  ;;  %v1698_v45 = vrot.slane %v1666_v54, 5  ;;  %v1699_v57 = vrot.slane %v1671_v13, 5 }
 0x2ce   : > { %v1659_v15 = vsel %vm1000_vm1, %v1654_v41, %v1656_v43  ;;  %v1667_v11 = vmul.f32 %v1658_v7, %v6941_v0  ;;  %v1672_v1 = vmul.f32 %v1658_v7, %v6802_v39  ;;  %1720 = vrot.lane.b32.xlu0 %v1697_v42, %s6600_s25  ;;  %v1675_v14 = vmul.f32 %v1650_v8, %v6944_v2 }
 0x2cf   : > { %v1668_v62 = vmul.f32 %v1659_v15, %v6950_v12  ;;  %v1673_v36 = vmul.f32 %v1659_v15, %v6787_v33  ;;  %v1700_v48 = vsel %vm211_vm0, %v1698_v45, %v1699_v57  ;;  %v1669_v41 = vmul.f32 %v1656_v43, %v6928_v56 }
 0x2d0   : > { %v1701_v9 = vrot.slane %v1667_v11, 5  ;;  %v1702_v59 = vrot.slane %v1672_v1, 5  ;;  %1722 = vrot.lane.b32.xlu1 %v1700_v48, %s6600_s25  ;;  %v1674_v42 = vmul.f32 %v1656_v43, %v6790_v35  ;;  %v1677_v33 = vmul.f32 %v1658_v7, %v7002_v58 }
 0x2d1   : > { %v1704_v54 = vrot.slane %v1668_v62, 5  ;;  %v1705_v13 = vrot.slane %v1673_v36, 5  ;;  %v1710_v11 = vrot.slane %v1675_v14, 5  ;;  %v1707_v1 = vrot.slane %v1669_v41, 5 }
 0x2d2   : > { %v1703_v39 = vsel %vm211_vm0, %v1701_v9, %v1702_v59  ;;  %v1708_v8 = vrot.slane %v1674_v42, 5  ;;  %v1678_v62 = vmul.f32 %v1659_v15, %v7018_v16  ;;  %v1712_v9 = vrot.slane %v1676_v60, 5  ;;  %v1769_v60 = vld [vmem:[#allocation6 + $0xa3] ss:$8 sm:$0xf] }
 0x2d3   : > { %v1706_v45 = vsel %vm211_vm0, %v1704_v54, %v1705_v13  ;;  %1724 = vrot.lane.b32.xlu0 %v1703_v39, %s6600_s25  ;;  %v1714_v48 = vrot.slane %v1677_v33, 5  ;;  %v1711_v35 = vsel %vm211_vm0, %v1696_v51, %v1710_v11  ;;  %v1679_v50 = vmul.f32 %v1656_v43, %v6956_v49 }
 0x2d4   : > { %1726 = vrot.lane.b32.xlu1 %v1706_v45, %s6600_s25  ;;  %v1709_v36 = vsel %vm211_vm0, %v1707_v1, %v1708_v8  ;;  %v1716_v7 = vrot.slane %v1678_v62, 5  ;;  %v1713_v14 = vsel %vm211_vm0, %v1699_v57, %v1712_v9  ;;  %v1774_v43 = vrot.slane %v1769_v60, %v6758_v4 }
 0x2d5   : > { %v1715_v54 = vsel %vm211_vm0, %v1702_v59, %v1714_v48  ;;  %v1718_v15 = vrot.slane %v1679_v50, 5  ;;  %v1778_v57 = vrot.slane %v1769_v60, %v6762_v6  ;;  %v1782_v59 = vrot.slane %v1769_v60, %v6756_v3 }
 0x2d6   : > { %v1717_v41 = vsel %vm211_vm0, %v1705_v13, %v1716_v7  ;;  %v1786_v39 = vrot.slane %v1769_v60, %v6760_v5 }
 0x2d7   : > { %1728 = vrot.lane.b32.xlu0 %v1709_v36, %s6600_s25  ;;  %v1719_v51 = vsel %vm211_vm0, %v1708_v8, %v1718_v15 }
 0x2d8   : > { %1730 = vrot.lane.b32.xlu1 %v1711_v35, %s6600_s25 }
 0x2db   : > { %1732 = vrot.lane.b32.xlu0 %v1713_v14, %s6600_s25 }
 0x2dc   : > { %1734 = vrot.lane.b32.xlu1 %v1715_v54, %s6600_s25 }
 0x2df   : > { %1736 = vrot.lane.b32.xlu0 %v1717_v41, %s6600_s25  ;;  %v7331_v41 = vld [vmem:[#allocation2 + $0x60] sm:$0xff] }
 0x2e0   : > { %1738 = vrot.lane.b32.xlu1 %v1719_v51, %s6600_s25 }
 0x2e3   : > { %1787 = vrot.lane.b32.xlu0 %v1774_v43, %s6599_s17 }
 0x2e4   : > { %1789 = vrot.lane.b32.xlu1 %v1778_v57, %s6599_s17 }
 0x2e7   : > { %1791 = vrot.lane.b32.xlu0 %v1782_v59, %s6599_s17 }
 0x2e8   : > { %1793 = vrot.lane.b32.xlu1 %v1786_v39, %s6599_s17 }
 0x340   : > { %v7307_v13 = vpop.permute.xlu0 %1720 }
 0x341   : > { %11922 = vst [vmem:[#allocation74_spill] sm:$0xff] %v7307_v13 }
 0x342   : > { %v7309_v42 = vpop.permute.xlu1 %1722 }
 0x343   : > { %11923 = vst [vmem:[#allocation75_spill] sm:$0xff] %v7309_v42  ;;  %v7351_v42 = vld [vmem:[#allocation2 + $0x30] sm:$0xff] }
 0x345   : > { %v7311_v33 = vpop.permute.xlu0 %1724 }
 0x346   : > { %11924 = vst [vmem:[#allocation76_spill] sm:$0xff] %v7311_v33  ;;  %v7313_v45 = vpop.permute.xlu1 %1726 }
 0x347   : > { %11925 = vst [vmem:[#allocation77_spill] sm:$0xff] %v7313_v45 }
 0x349   : > { %v7315_v11 = vpop.permute.xlu0 %1728 }
 0x34a   : > { %11926 = vst [vmem:[#allocation78_spill] sm:$0xff] %v7315_v11  ;;  %v7317_v1 = vpop.permute.xlu1 %1730  ;;  %v7343_v11 = vld [vmem:[#allocation2 + $0x58] sm:$0xff] }
 0x34b   : > { %11927 = vst [vmem:[#allocation79_spill] sm:$0xff] %v7317_v1 }
 0x34d   : > { %v7319_v8 = vpop.permute.xlu0 %1732 }
 0x34e   : > { %11928 = vst [vmem:[#allocation80_spill] sm:$0xff] %v7319_v8  ;;  %v7321_v62 = vpop.permute.xlu1 %1734 }
 0x34f   : > { %11929 = vst [vmem:[#allocation81_spill] sm:$0xff] %v7321_v62 }
 0x351   : > { %v7323_v36 = vpop.permute.xlu0 %1736 }
 0x352   : > { %11930 = vst [vmem:[#allocation82_spill] sm:$0xff] %v7323_v36  ;;  %v7325_v9 = vpop.permute.xlu1 %1738 }
 0x353   : > { %11931 = vst [vmem:[#allocation83_spill] sm:$0xff] %v7325_v9 }
 0x355   : > { %v1788_v48 = vpop.permute.xlu0 %1787 }
 0x356   : > { %v1790_v35 = vpop.permute.xlu1 %1789  ;;  %v1803_v50 = vmul.f32 %v1788_v48, %v6924_v52  ;;  %v1808_v7 = vmul.f32 %v7260_v44, %v1788_v48 }
 0x357   : > { %v1795_v14 = vsel %vm1000_vm1, %v1788_v48, %v1790_v35 }
 0x358   : > { %v1833_v54 = vrot.slane %v1803_v50, 6  ;;  %v1834_v15 = vrot.slane %v1808_v7, 6  ;;  %v1804_v60 = vmul.f32 %v1795_v14, %v6938_v63  ;;  %v1809_v51 = vmul.f32 %v7331_v41, %v1795_v14  ;;  %v7338_v7 = vld [vmem:[#allocation2 + $0x18] sm:$0xff] }
 0x359   : > { %v1792_v43 = vpop.permute.xlu0 %1791  ;;  %v1814_v46 = vmul.f32 %v1795_v14, %v7009_v55 }
 0x35a   : > { %v1794_v57 = vpop.permute.xlu1 %1793  ;;  %v1796_v59 = vsel %vm1000_vm1, %v1790_v35, %v1792_v43  ;;  %v1835_v39 = vsel %vm927_vm6, %v1833_v54, %v1834_v15  ;;  %v1836_v9 = vrot.slane %v1804_v60, 6  ;;  %v1837_v36 = vrot.slane %v1809_v51, 6 }
 0x35b   : > { %v1797_v62 = vsel %vm1000_vm1, %v1792_v43, %v1794_v57  ;;  %v1805_v50 = vmul.f32 %v1796_v59, %v6941_v0  ;;  %v1810_v1 = vmul.f32 %v7338_v7, %v1796_v59  ;;  %1858 = vrot.lane.b32.xlu0 %v1835_v39, %s6600_s25  ;;  %v1813_v60 = vmul.f32 %v1788_v48, %v6944_v2 }
 0x35c   : > { %v1806_v8 = vmul.f32 %v1797_v62, %v6950_v12  ;;  %v1811_v35 = vmul.f32 %v7343_v11, %v1797_v62  ;;  %v1838_v54 = vsel %vm927_vm6, %v1836_v9, %v1837_v36  ;;  %v1807_v13 = vmul.f32 %v1794_v57, %v6928_v56 }
 0x35d   : > { %v1839_v51 = vrot.slane %v1805_v50, 6  ;;  %v1840_v43 = vrot.slane %v1810_v1, 6  ;;  %1860 = vrot.lane.b32.xlu1 %v1838_v54, %s6600_s25  ;;  %v1812_v53 = vmul.f32 %v7351_v42, %v1794_v57  ;;  %v1815_v9 = vmul.f32 %v1796_v59, %v7002_v58 }
 0x35e   : > { %v1842_v45 = vrot.slane %v1806_v8, 6  ;;  %v1843_v33 = vrot.slane %v1811_v35, 6  ;;  %v1848_v1 = vrot.slane %v1813_v60, 6  ;;  %v1845_v48 = vrot.slane %v1807_v13, 6 }
 0x35f   : > { %v1841_v39 = vsel %vm927_vm6, %v1839_v51, %v1840_v43  ;;  %v1846_v8 = vrot.slane %v1812_v53, 6  ;;  %v1816_v50 = vmul.f32 %v1797_v62, %v7018_v16  ;;  %v1850_v54 = vrot.slane %v1814_v46, 6  ;;  %v1907_v46 = vld [vmem:[#allocation6 + $0x2] ss:$8 sm:$0xf] }
 0x360   : > { %v1844_v2 = vsel %vm927_vm6, %v1842_v45, %v1843_v33  ;;  %1862 = vrot.lane.b32.xlu0 %v1841_v39, %s6600_s25  ;;  %v1852_v51 = vrot.slane %v1815_v9, 6  ;;  %v1849_v61 = vsel %vm927_vm6, %v1834_v15, %v1848_v1  ;;  %v1817_v14 = vmul.f32 %v1794_v57, %v6956_v49 }
 0x361   : > { %1864 = vrot.lane.b32.xlu1 %v1844_v2, %s6600_s25  ;;  %v1847_v35 = vsel %vm927_vm6, %v1845_v48, %v1846_v8  ;;  %v1854_v45 = vrot.slane %v1816_v50, 6  ;;  %v1851_v13 = vsel %vm927_vm6, %v1837_v36, %v1850_v54  ;;  %v1912_v49 = vrot.slane %v1907_v46, %v6758_v4 }
 0x362   : > { %v1853_v59 = vsel %vm927_vm6, %v1840_v43, %v1852_v51  ;;  %v1856_v53 = vrot.slane %v1817_v14, 6  ;;  %v1920_v36 = vrot.slane %v1907_v46, %v6756_v3  ;;  %v1924_v57 = vrot.slane %v1907_v46, %v6760_v5 }
 0x363   : > { %v1855_v62 = vsel %vm927_vm6, %v1843_v33, %v1854_v45 }
 0x364   : > { %1866 = vrot.lane.b32.xlu0 %v1847_v35, %s6600_s25  ;;  %v1857_v15 = vsel %vm927_vm6, %v1846_v8, %v1856_v53 }
 0x365   : > { %1868 = vrot.lane.b32.xlu1 %v1849_v61, %s6600_s25  ;;  %v1916_v61 = vrot.slane %v1907_v46, %v6762_v6 }
 0x368   : > { %1870 = vrot.lane.b32.xlu0 %v1851_v13, %s6600_s25 }
 0x369   : > { %1872 = vrot.lane.b32.xlu1 %v1853_v59, %s6600_s25 }
 0x36c   : > { %1874 = vrot.lane.b32.xlu0 %v1855_v62, %s6600_s25 }
 0x36d   : > { %1876 = vrot.lane.b32.xlu1 %v1857_v15, %s6600_s25 }
 0x370   : > { %1925 = vrot.lane.b32.xlu0 %v1912_v49, %s6600_s25 }
 0x371   : > { %1927 = vrot.lane.b32.xlu1 %v1916_v61, %s6600_s25 }
 0x374   : > { %1929 = vrot.lane.b32.xlu0 %v1920_v36, %s6600_s25 }
 0x375   : > { %1931 = vrot.lane.b32.xlu1 %v1924_v57, %s6600_s25 }
 0x3cd   : > { %v7381_v33 = vpop.permute.xlu0 %1858 }
 0x3ce   : > { %11932 = vst [vmem:[#allocation84_spill] sm:$0xff] %v7381_v33 }
 0x3cf   : > { %v7383_v60 = vpop.permute.xlu1 %1860 }
 0x3d0   : > { %11933 = vst [vmem:[#allocation85_spill] sm:$0xff] %v7383_v60 }
 0x3d2   : > { %v7385_v43 = vpop.permute.xlu0 %1862 }
 0x3d3   : > { %11934 = vst [vmem:[#allocation86_spill] sm:$0xff] %v7385_v43  ;;  %v7387_v39 = vpop.permute.xlu1 %1864 }
 0x3d4   : > { %11935 = vst [vmem:[#allocation87_spill] sm:$0xff] %v7387_v39 }
 0x3d6   : > { %v7389_v9 = vpop.permute.xlu0 %1866 }
 0x3d7   : > { %11936 = vst [vmem:[#allocation88_spill] sm:$0xff] %v7389_v9  ;;  %v7391_v2 = vpop.permute.xlu1 %1868 }
 0x3d8   : > { %11937 = vst [vmem:[#allocation89_spill] sm:$0xff] %v7391_v2 }
 0x3da   : > { %v7393_v1 = vpop.permute.xlu0 %1870 }
 0x3db   : > { %11938 = vst [vmem:[#allocation90_spill] sm:$0xff] %v7393_v1  ;;  %v7395_v48 = vpop.permute.xlu1 %1872  ;;  %v7478_v1 = vld [vmem:[#allocation2 + $0x20] sm:$0xff] }
 0x3dc   : > { %11939 = vst [vmem:[#allocation91_spill] sm:$0xff] %v7395_v48 }
 0x3de   : > { %v7397_v8 = vpop.permute.xlu0 %1874 }
 0x3df   : > { %11940 = vst [vmem:[#allocation92_spill] sm:$0xff] %v7397_v8  ;;  %v7399_v50 = vpop.permute.xlu1 %1876 }
 0x3e0   : > { %11941 = vst [vmem:[#allocation93_spill] sm:$0xff] %v7399_v50 }
 0x3e2   : > { %v1926_v35 = vpop.permute.xlu0 %1925 }
 0x3e3   : > { %v1928_v54 = vpop.permute.xlu1 %1927  ;;  %v1941_v51 = vmul.f32 %v1926_v35, %v6924_v52 }
 0x3e4   : > { %v1933_v14 = vsel %vm1049_vm7, %v1926_v35, %v1928_v54 }
 0x3e5   : > { %v1942_v45 = vmul.f32 %v1933_v14, %v6938_v63  ;;  %1961 = vrot.lane.b32.xlu0 %v1941_v51, %s6599_s17  ;;  %v1946_v63 = vmul.f32 %v7260_v44, %v1926_v35  ;;  %v1947_v49 = vmul.f32 %v7331_v41, %v1933_v14 }
 0x3e6   : > { %v1930_v13 = vpop.permute.xlu0 %1929 }
 0x3e7   : > { %v1932_v59 = vpop.permute.xlu1 %1931  ;;  %1963 = vrot.lane.b32.xlu1 %v1942_v45, %s6599_s17  ;;  %v1934_v53 = vsel %vm1049_vm7, %v1928_v54, %v1930_v13 }
 0x3e8   : > { %v1935_v46 = vsel %vm1049_vm7, %v1930_v13, %v1932_v59  ;;  %v1943_v62 = vmul.f32 %v1934_v53, %v6941_v0  ;;  %v1945_v52 = vmul.f32 %v1932_v59, %v6928_v56  ;;  %v1948_v61 = vmul.f32 %v7338_v7, %v1934_v53  ;;  %v2010_v0 = vld [vmem:[#allocation6 + $0x21] ss:$8 sm:$0xf] }
 0x3e9   : > { %v1944_v15 = vmul.f32 %v1935_v46, %v6950_v12  ;;  %v1949_v12 = vmul.f32 %v7343_v11, %v1935_v46  ;;  %v1950_v36 = vmul.f32 %v7351_v42, %v1932_v59  ;;  %v2015_v56 = vrot.slane %v2010_v0, %v6758_v4 }
 0x3ea   : > { %1965 = vrot.lane.b32.xlu0 %v1943_v62, %s6599_s17  ;;  %v2019_v57 = vrot.slane %v2010_v0, %v6762_v6  ;;  %v2023_v35 = vrot.slane %v2010_v0, %v6756_v3  ;;  %v2027_v54 = vrot.slane %v2010_v0, %v6760_v5 }
 0x3eb   : > { %1967 = vrot.lane.b32.xlu1 %v1944_v15, %s6599_s17 }
 0x3ee   : > { %1969 = vrot.lane.b32.xlu0 %v1945_v52, %s6599_s17 }
 0x3ef   : > { %1971 = vrot.lane.b32.xlu1 %v1946_v63, %s6599_s17 }
 0x3f2   : > { %1973 = vrot.lane.b32.xlu0 %v1947_v49, %s6599_s17 }
 0x3f3   : > { %1975 = vrot.lane.b32.xlu1 %v1948_v61, %s6599_s17  ;;  %v7452_v61 = vld [vmem:[#allocation2] sm:$0xff] }
 0x3f6   : > { %1977 = vrot.lane.b32.xlu0 %v1949_v12, %s6599_s17 }
 0x3f7   : > { %1979 = vrot.lane.b32.xlu1 %v1950_v36, %s6599_s17 }
 0x3fa   : > { %2028 = vrot.lane.b32.xlu0 %v2015_v56, %s6600_s25 }
 0x3fb   : > { %2030 = vrot.lane.b32.xlu1 %v2019_v57, %s6600_s25 }
 0x3fe   : > { %2032 = vrot.lane.b32.xlu0 %v2023_v35, %s6600_s25  ;;  %v7457_v35 = vld [vmem:[#allocation2 + $0x68] sm:$0xff] }
 0x3ff   : > { %2034 = vrot.lane.b32.xlu1 %v2027_v54, %s6600_s25 }
 0x457   : > { %v7432_v51 = vpop.permute.xlu0 %1961 }
 0x458   : > { %11942 = vst [vmem:[#allocation94_spill] sm:$0xff] %v7432_v51  ;;  %v7464_v51 = vld [vmem:[#allocation2 + $0x40] sm:$0xff] }
 0x459   : > { %v7434_v14 = vpop.permute.xlu1 %1963 }
 0x45a   : > { %11943 = vst [vmem:[#allocation95_spill] sm:$0xff] %v7434_v14  ;;  %v7469_v14 = vld [vmem:[#allocation2 + $0x88] sm:$0xff] }
 0x45c   : > { %v7436_v45 = vpop.permute.xlu0 %1965 }
 0x45d   : > { %11944 = vst [vmem:[#allocation96_spill] sm:$0xff] %v7436_v45  ;;  %v7438_v13 = vpop.permute.xlu1 %1967 }
 0x45e   : > { %11945 = vst [vmem:[#allocation97_spill] sm:$0xff] %v7438_v13 }
 0x460   : > { %v7440_v59 = vpop.permute.xlu0 %1969 }
 0x461   : > { %11946 = vst [vmem:[#allocation98_spill] sm:$0xff] %v7440_v59  ;;  %v7442_v53 = vpop.permute.xlu1 %1971 }
 0x462   : > { %11947 = vst [vmem:[#allocation99_spill] sm:$0xff] %v7442_v53 }
 0x464   : > { %v7444_v46 = vpop.permute.xlu0 %1973 }
 0x465   : > { %11948 = vst [vmem:[#allocation100_spill] sm:$0xff] %v7444_v46  ;;  %v7446_v62 = vpop.permute.xlu1 %1975 }
 0x466   : > { %11949 = vst [vmem:[#allocation101_spill] sm:$0xff] %v7446_v62 }
 0x468   : > { %v7448_v15 = vpop.permute.xlu0 %1977 }
 0x469   : > { %11950 = vst [vmem:[#allocation102_spill] sm:$0xff] %v7448_v15  ;;  %v7450_v52 = vpop.permute.xlu1 %1979 }
 0x46a   : > { %11951 = vst [vmem:[#allocation103_spill] sm:$0xff] %v7450_v52 }
 0x46c   : > { %v2029_v63 = vpop.permute.xlu0 %2028 }
 0x46d   : > { %v2031_v49 = vpop.permute.xlu1 %2030  ;;  %v2044_v0 = vmul.f32 %v7452_v61, %v2029_v63  ;;  %v2049_v12 = vmul.f32 %v7260_v44, %v2029_v63 }
 0x46e   : > { %v2036_v36 = vsel %vm1049_vm7, %v2029_v63, %v2031_v49 }
 0x46f   : > { %v2074_v56 = vrot.slane %v2044_v0, 1  ;;  %v2075_v57 = vrot.slane %v2049_v12, 1  ;;  %v2045_v54 = vmul.f32 %v7457_v35, %v2036_v36  ;;  %v2050_v15 = vmul.f32 %v7331_v41, %v2036_v36 }
 0x470   : > { %v2033_v62 = vpop.permute.xlu0 %2032 }
 0x471   : > { %v2035_v52 = vpop.permute.xlu1 %2034  ;;  %v2037_v53 = vsel %vm1049_vm7, %v2031_v49, %v2033_v62  ;;  %v2076_v46 = vsel %vm373_vm2, %v2074_v56, %v2075_v57  ;;  %v2077_v59 = vrot.slane %v2045_v54, 1  ;;  %v2078_v13 = vrot.slane %v2050_v15, 1  ;;  %v7474_v54 = vld [vmem:[#allocation2 + $0x38] sm:$0x3f] }
 0x472   : > { %v2038_v45 = vsel %vm1049_vm7, %v2033_v62, %v2035_v52  ;;  %v2046_v0 = vmul.f32 %v7464_v51, %v2037_v53  ;;  %v2051_v12 = vmul.f32 %v7338_v7, %v2037_v53  ;;  %2099 = vrot.lane.b32.xlu0 %v2076_v46, %s6599_s17  ;;  %v2054_v62 = vmul.f32 %v7474_v54, %v2029_v63 }
 0x473   : > { %v2047_v50 = vmul.f32 %v7469_v14, %v2038_v45  ;;  %v2052_v49 = vmul.f32 %v7343_v11, %v2038_v45  ;;  %v2079_v56 = vsel %vm373_vm2, %v2077_v59, %v2078_v13  ;;  %v2048_v46 = vmul.f32 %v7478_v1, %v2035_v52 }
 0x474   : > { %v2080_v15 = vrot.slane %v2046_v0, 1  ;;  %v2081_v8 = vrot.slane %v2051_v12, 1  ;;  %2101 = vrot.lane.b32.xlu1 %v2079_v56, %s6599_s17  ;;  %v2053_v39 = vmul.f32 %v7351_v42, %v2035_v52  ;;  %v2055_v59 = vmul.f32 %v2036_v36, %v7009_v55 }
 0x475   : > { %v2083_v48 = vrot.slane %v2047_v50, 1  ;;  %v2084_v2 = vrot.slane %v2052_v49, 1  ;;  %v2056_v43 = vmul.f32 %v2037_v53, %v7002_v58  ;;  %v2089_v0 = vrot.slane %v2054_v62, 1  ;;  %v7492_v58 = vld [vmem:[#allocation2 + $0x80] sm:$0x3f] }
 0x476   : > { %v2082_v9 = vsel %vm373_vm2, %v2080_v15, %v2081_v8  ;;  %v2086_v12 = vrot.slane %v2048_v46, 1  ;;  %v2087_v50 = vrot.slane %v2053_v39, 1  ;;  %v2057_v49 = vmul.f32 %v2038_v45, %v7018_v16 }
 0x477   : > { %v2085_v63 = vsel %vm373_vm2, %v2083_v48, %v2084_v2  ;;  %2103 = vrot.lane.b32.xlu0 %v2082_v9, %s6599_s17  ;;  %v2091_v15 = vrot.slane %v2055_v59, 1  ;;  %v2093_v33 = vrot.slane %v2056_v43, 1  ;;  %v2090_v60 = vsel %vm373_vm2, %v2075_v57, %v2089_v0  ;;  %v2148_v43 = vld [vmem:[#allocation6 + $0x40] ss:$8 sm:$0xf] }
 0x478   : > { %2105 = vrot.lane.b32.xlu1 %v2085_v63, %s6599_s17  ;;  %v2088_v56 = vsel %vm373_vm2, %v2086_v12, %v2087_v50  ;;  %v2058_v55 = vmul.f32 %v7492_v58, %v2035_v52  ;;  %v2095_v9 = vrot.slane %v2057_v49, 1  ;;  %v2153_v52 = vrot.slane %v2148_v43, %v6758_v4 }
 0x479   : > { %v2092_v48 = vsel %vm373_vm2, %v2078_v13, %v2091_v15  ;;  %v2094_v39 = vsel %vm373_vm2, %v2081_v8, %v2093_v33  ;;  %v2161_v33 = vrot.slane %v2148_v43, %v6756_v3  ;;  %v2165_v8 = vrot.slane %v2148_v43, %v6760_v5 }
 0x47a   : > { %v2097_v16 = vrot.slane %v2058_v55, 1  ;;  %v2096_v45 = vsel %vm373_vm2, %v2084_v2, %v2095_v9 }
 0x47b   : > { %2107 = vrot.lane.b32.xlu0 %v2088_v56, %s6599_s17 }
 0x47c   : > { %2109 = vrot.lane.b32.xlu1 %v2090_v60, %s6599_s17  ;;  %v2098_v53 = vsel %vm373_vm2, %v2087_v50, %v2097_v16  ;;  %v2157_v60 = vrot.slane %v2148_v43, %v6762_v6 }
 0x47f   : > { %2111 = vrot.lane.b32.xlu0 %v2092_v48, %s6599_s17 }
 0x480   : > { %2113 = vrot.lane.b32.xlu1 %v2094_v39, %s6599_s17 }
 0x483   : > { %2115 = vrot.lane.b32.xlu0 %v2096_v45, %s6599_s17 }
 0x484   : > { %2117 = vrot.lane.b32.xlu1 %v2098_v53, %s6599_s17 }
 0x487   : > { %2166 = vrot.lane.b32.xlu0 %v2153_v52, %s6600_s25 }
 0x488   : > { %2168 = vrot.lane.b32.xlu1 %v2157_v60, %s6600_s25 }
 0x48b   : > { %2170 = vrot.lane.b32.xlu0 %v2161_v33, %s6600_s25 }
 0x48c   : > { %2172 = vrot.lane.b32.xlu1 %v2165_v8, %s6600_s25 }
 0x4e4   : > { %v7512_v2 = vpop.permute.xlu0 %2099 }
 0x4e5   : > { %11952 = vst [vmem:[#allocation104_spill] sm:$0xff] %v7512_v2 }
 0x4e6   : > { %v7514_v13 = vpop.permute.xlu1 %2101 }
 0x4e7   : > { %11953 = vst [vmem:[#allocation105_spill] sm:$0xff] %v7514_v13 }
 0x4e9   : > { %v7516_v36 = vpop.permute.xlu0 %2103 }
 0x4ea   : > { %11954 = vst [vmem:[#allocation106_spill] sm:$0xff] %v7516_v36  ;;  %v7518_v57 = vpop.permute.xlu1 %2105  ;;  %v7554_v36 = vld [vmem:[#allocation2 + $0x50] sm:$0x3f] }
 0x4eb   : > { %11955 = vst [vmem:[#allocation107_spill] sm:$0xff] %v7518_v57 }
 0x4ed   : > { %v7520_v62 = vpop.permute.xlu0 %2107 }
 0x4ee   : > { %11956 = vst [vmem:[#allocation108_spill] sm:$0xff] %v7520_v62  ;;  %v7522_v46 = vpop.permute.xlu1 %2109  ;;  %v7551_v62 = vld [vmem:[#allocation2 + $0x48] sm:$0x3f] }
 0x4ef   : > { %11957 = vst [vmem:[#allocation109_spill] sm:$0xff] %v7522_v46 }
 0x4f1   : > { %v7524_v59 = vpop.permute.xlu0 %2111 }
 0x4f2   : > { %11958 = vst [vmem:[#allocation110_spill] sm:$0xff] %v7524_v59  ;;  %v7526_v63 = vpop.permute.xlu1 %2113 }
 0x4f3   : > { %11959 = vst [vmem:[#allocation111_spill] sm:$0xff] %v7526_v63 }
 0x4f5   : > { %v7528_v0 = vpop.permute.xlu0 %2115 }
 0x4f6   : > { %11960 = vst [vmem:[#allocation112_spill] sm:$0xff] %v7528_v0  ;;  %v7530_v12 = vpop.permute.xlu1 %2117 }
 0x4f7   : > { %11961 = vst [vmem:[#allocation113_spill] sm:$0xff] %v7530_v12 }
 0x4f9   : > { %v2167_v50 = vpop.permute.xlu0 %2166 }
 0x4fa   : > { %v2169_v49 = vpop.permute.xlu1 %2168  ;;  %v2182_v56 = vmul.f32 %v7452_v61, %v2167_v50  ;;  %v2187_v15 = vmul.f32 %v7260_v44, %v2167_v50 }
 0x4fb   : > { %v2174_v55 = vsel %vm1049_vm7, %v2167_v50, %v2169_v49 }
 0x4fc   : > { %v2212_v9 = vrot.slane %v2182_v56, 2  ;;  %v2213_v48 = vrot.slane %v2187_v15, 2  ;;  %v2183_v39 = vmul.f32 %v7457_v35, %v2174_v55  ;;  %v2188_v16 = vmul.f32 %v7331_v41, %v2174_v55 }
 0x4fd   : > { %v2171_v43 = vpop.permute.xlu0 %2170  ;;  %v2193_v57 = vmul.f32 %v7551_v62, %v2174_v55 }
 0x4fe   : > { %v2173_v45 = vpop.permute.xlu1 %2172  ;;  %v2175_v53 = vsel %vm1049_vm7, %v2169_v49, %v2171_v43  ;;  %v2214_v52 = vsel %vm484_vm3, %v2212_v9, %v2213_v48  ;;  %v2215_v60 = vrot.slane %v2183_v39, 2  ;;  %v2216_v33 = vrot.slane %v2188_v16, 2 }
 0x4ff   : > { %v2176_v8 = vsel %vm1049_vm7, %v2171_v43, %v2173_v45  ;;  %v2184_v12 = vmul.f32 %v7464_v51, %v2175_v53  ;;  %v2189_v0 = vmul.f32 %v7338_v7, %v2175_v53  ;;  %2237 = vrot.lane.b32.xlu0 %v2214_v52, %s6599_s17  ;;  %v2192_v49 = vmul.f32 %v7474_v54, %v2167_v50 }
 0x500   : > { %v2185_v56 = vmul.f32 %v7469_v14, %v2176_v8  ;;  %v2190_v15 = vmul.f32 %v7343_v11, %v2176_v8  ;;  %v2217_v63 = vsel %vm484_vm3, %v2215_v60, %v2216_v33  ;;  %v2186_v43 = vmul.f32 %v7478_v1, %v2173_v45 }
 0x501   : > { %v2218_v46 = vrot.slane %v2184_v12, 2  ;;  %v2219_v9 = vrot.slane %v2189_v0, 2  ;;  %2239 = vrot.lane.b32.xlu1 %v2217_v63, %s6599_s17  ;;  %v2191_v52 = vmul.f32 %v7351_v42, %v2173_v45  ;;  %v2194_v50 = vmul.f32 %v7554_v36, %v2175_v53 }
 0x502   : > { %v2221_v39 = vrot.slane %v2185_v56, 2  ;;  %v2222_v16 = vrot.slane %v2190_v15, 2  ;;  %v2227_v63 = vrot.slane %v2192_v49, 2  ;;  %v2224_v12 = vrot.slane %v2186_v43, 2 }
 0x503   : > { %v2220_v59 = vsel %vm484_vm3, %v2218_v46, %v2219_v9  ;;  %v2225_v60 = vrot.slane %v2191_v52, 2  ;;  %v7560_v46 = vld [vmem:[#allocation2 + $0x70] sm:$0x3f]  ;;  %v2229_v55 = vrot.slane %v2193_v57, 2  ;;  %v2231_v2 = vrot.slane %v2194_v50, 2 }
 0x504   : > { %v2223_v0 = vsel %vm484_vm3, %v2221_v39, %v2222_v16  ;;  %2241 = vrot.lane.b32.xlu0 %v2220_v59, %s6599_s17  ;;  %v2195_v56 = vmul.f32 %v7560_v46, %v2176_v8  ;;  %v2228_v13 = vsel %vm484_vm3, %v2213_v48, %v2227_v63  ;;  %v2196_v53 = vmul.f32 %v7492_v58, %v2173_v45  ;;  %v2286_v57 = vld [vmem:[#allocation6 + $0x47] ss:$8 sm:$0xf] }
 0x505   : > { %2243 = vrot.lane.b32.xlu1 %v2223_v0, %s6599_s17  ;;  %v2226_v15 = vsel %vm484_vm3, %v2224_v12, %v2225_v60  ;;  %v2230_v49 = vsel %vm484_vm3, %v2216_v33, %v2229_v55  ;;  %v2232_v39 = vsel %vm484_vm3, %v2219_v9, %v2231_v2  ;;  %v2291_v45 = vrot.slane %v2286_v57, %v6758_v4 }
 0x506   : > { %v2233_v59 = vrot.slane %v2195_v56, 2  ;;  %v2235_v8 = vrot.slane %v2196_v53, 2  ;;  %v2299_v2 = vrot.slane %v2286_v57, %v6756_v3  ;;  %v2303_v33 = vrot.slane %v2286_v57, %v6760_v5 }
 0x508   : > { %2245 = vrot.lane.b32.xlu0 %v2226_v15, %s6599_s17  ;;  %v2234_v43 = vsel %vm484_vm3, %v2222_v16, %v2233_v59  ;;  %v2236_v48 = vsel %vm484_vm3, %v2225_v60, %v2235_v8 }
 0x509   : > { %2247 = vrot.lane.b32.xlu1 %v2228_v13, %s6599_s17  ;;  %v2295_v13 = vrot.slane %v2286_v57, %v6762_v6 }
 0x50c   : > { %2249 = vrot.lane.b32.xlu0 %v2230_v49, %s6599_s17 }
 0x50d   : > { %2251 = vrot.lane.b32.xlu1 %v2232_v39, %s6599_s17 }
 0x510   : > { %2253 = vrot.lane.b32.xlu0 %v2234_v43, %s6599_s17 }
 0x511   : > { %2255 = vrot.lane.b32.xlu1 %v2236_v48, %s6599_s17 }
 0x514   : > { %2304 = vrot.lane.b32.xlu0 %v2291_v45, %s6600_s25 }
 0x515   : > { %2306 = vrot.lane.b32.xlu1 %v2295_v13, %s6600_s25 }
 0x518   : > { %2308 = vrot.lane.b32.xlu0 %v2299_v2, %s6600_s25 }
 0x519   : > { %2310 = vrot.lane.b32.xlu1 %v2303_v33, %s6600_s25 }
 0x571   : > { %v7584_v9 = vpop.permute.xlu0 %2237 }
 0x572   : > { %11962 = vst [vmem:[#allocation114_spill] sm:$0xff] %v7584_v9 }
 0x573   : > { %v7586_v16 = vpop.permute.xlu1 %2239 }
 0x574   : > { %11963 = vst [vmem:[#allocation115_spill] sm:$0xff] %v7586_v16 }
 0x576   : > { %v7588_v52 = vpop.permute.xlu0 %2241 }
 0x577   : > { %11964 = vst [vmem:[#allocation116_spill] sm:$0xff] %v7588_v52  ;;  %v7590_v50 = vpop.permute.xlu1 %2243 }
 0x578   : > { %11965 = vst [vmem:[#allocation117_spill] sm:$0xff] %v7590_v50 }
 0x57a   : > { %v7592_v0 = vpop.permute.xlu0 %2245 }
 0x57b   : > { %11966 = vst [vmem:[#allocation118_spill] sm:$0xff] %v7592_v0  ;;  %v7594_v63 = vpop.permute.xlu1 %2247 }
 0x57c   : > { %11967 = vst [vmem:[#allocation119_spill] sm:$0xff] %v7594_v63 }
 0x57e   : > { %v7596_v12 = vpop.permute.xlu0 %2249 }
 0x57f   : > { %11968 = vst [vmem:[#allocation120_spill] sm:$0xff] %v7596_v12  ;;  %v7598_v60 = vpop.permute.xlu1 %2251 }
 0x580   : > { %11969 = vst [vmem:[#allocation121_spill] sm:$0xff] %v7598_v60 }
 0x582   : > { %v7600_v56 = vpop.permute.xlu0 %2253 }
 0x583   : > { %11970 = vst [vmem:[#allocation122_spill] sm:$0xff] %v7600_v56  ;;  %v7602_v15 = vpop.permute.xlu1 %2255 }
 0x584   : > { %11971 = vst [vmem:[#allocation123_spill] sm:$0xff] %v7602_v15 }
 0x586   : > { %v2305_v55 = vpop.permute.xlu0 %2304 }
 0x587   : > { %v2307_v53 = vpop.permute.xlu1 %2306  ;;  %v2320_v59 = vmul.f32 %v7452_v61, %v2305_v55  ;;  %v2325_v49 = vmul.f32 %v7260_v44, %v2305_v55 }
 0x588   : > { %v2312_v39 = vsel %vm1049_vm7, %v2305_v55, %v2307_v53 }
 0x589   : > { %v2350_v8 = vrot.slane %v2320_v59, 3  ;;  %v2351_v57 = vrot.slane %v2325_v49, 3  ;;  %v2321_v43 = vmul.f32 %v7457_v35, %v2312_v39  ;;  %v2326_v48 = vmul.f32 %v7331_v41, %v2312_v39 }
 0x58a   : > { %v2309_v45 = vpop.permute.xlu0 %2308  ;;  %v2331_v9 = vmul.f32 %v7551_v62, %v2312_v39 }
 0x58b   : > { %v2311_v13 = vpop.permute.xlu1 %2310  ;;  %v2313_v2 = vsel %vm1049_vm7, %v2307_v53, %v2309_v45  ;;  %v2352_v33 = vsel %vm595_vm4, %v2350_v8, %v2351_v57  ;;  %v2353_v15 = vrot.slane %v2321_v43, 3  ;;  %v2354_v56 = vrot.slane %v2326_v48, 3 }
 0x58c   : > { %v2314_v60 = vsel %vm1049_vm7, %v2309_v45, %v2311_v13  ;;  %v2322_v63 = vmul.f32 %v7464_v51, %v2313_v2  ;;  %v2327_v12 = vmul.f32 %v7338_v7, %v2313_v2  ;;  %2375 = vrot.lane.b32.xlu0 %v2352_v33, %s6599_s17  ;;  %v2330_v53 = vmul.f32 %v7474_v54, %v2305_v55 }
 0x58d   : > { %v2323_v59 = vmul.f32 %v7469_v14, %v2314_v60  ;;  %v2328_v49 = vmul.f32 %v7343_v11, %v2314_v60  ;;  %v2355_v0 = vsel %vm595_vm4, %v2353_v15, %v2354_v56  ;;  %v2324_v45 = vmul.f32 %v7478_v1, %v2311_v13 }
 0x58e   : > { %v2356_v50 = vrot.slane %v2322_v63, 3  ;;  %v2357_v8 = vrot.slane %v2327_v12, 3  ;;  %2377 = vrot.lane.b32.xlu1 %v2355_v0, %s6599_s17  ;;  %v2329_v33 = vmul.f32 %v7351_v42, %v2311_v13  ;;  %v2332_v16 = vmul.f32 %v7554_v36, %v2313_v2 }
 0x58f   : > { %v2359_v43 = vrot.slane %v2323_v59, 3  ;;  %v2360_v48 = vrot.slane %v2328_v49, 3  ;;  %v2365_v63 = vrot.slane %v2330_v53, 3  ;;  %v2362_v12 = vrot.slane %v2324_v45, 3 }
 0x590   : > { %v2358_v52 = vsel %vm595_vm4, %v2356_v50, %v2357_v8  ;;  %v2363_v0 = vrot.slane %v2329_v33, 3  ;;  %v2333_v55 = vmul.f32 %v7560_v46, %v2314_v60  ;;  %v2367_v50 = vrot.slane %v2331_v9, 3  ;;  %v2424_v9 = vld [vmem:[#allocation6 + $0x66] ss:$8 sm:$0xf] }
 0x591   : > { %v2361_v15 = vsel %vm595_vm4, %v2359_v43, %v2360_v48  ;;  %2379 = vrot.lane.b32.xlu0 %v2358_v52, %s6599_s17  ;;  %v2369_v49 = vrot.slane %v2332_v16, 3  ;;  %v2366_v47 = vsel %vm595_vm4, %v2351_v57, %v2365_v63  ;;  %v2334_v39 = vmul.f32 %v7492_v58, %v2311_v13 }
 0x592   : > { %2381 = vrot.lane.b32.xlu1 %v2361_v15, %s6599_s17  ;;  %v2364_v59 = vsel %vm595_vm4, %v2362_v12, %v2363_v0  ;;  %v2371_v52 = vrot.slane %v2333_v55, 3  ;;  %v2368_v2 = vsel %vm595_vm4, %v2354_v56, %v2367_v50  ;;  %v2429_v13 = vrot.slane %v2424_v9, %v6758_v4 }
 0x593   : > { %v2370_v53 = vsel %vm595_vm4, %v2357_v8, %v2369_v49  ;;  %v2373_v60 = vrot.slane %v2334_v39, 3  ;;  %v2437_v56 = vrot.slane %v2424_v9, %v6756_v3  ;;  %v2441_v8 = vrot.slane %v2424_v9, %v6760_v5 }
 0x594   : > { %v2372_v16 = vsel %vm595_vm4, %v2360_v48, %v2371_v52 }
 0x595   : > { %2383 = vrot.lane.b32.xlu0 %v2364_v59, %s6599_s17  ;;  %v2374_v57 = vsel %vm595_vm4, %v2363_v0, %v2373_v60 }
 0x596   : > { %2385 = vrot.lane.b32.xlu1 %v2366_v47, %s6599_s17  ;;  %v2433_v47 = vrot.slane %v2424_v9, %v6762_v6 }
 0x599   : > { %2387 = vrot.lane.b32.xlu0 %v2368_v2, %s6599_s17 }
 0x59a   : > { %2389 = vrot.lane.b32.xlu1 %v2370_v53, %s6599_s17 }
 0x59d   : > { %2391 = vrot.lane.b32.xlu0 %v2372_v16, %s6599_s17 }
 0x59e   : > { %2393 = vrot.lane.b32.xlu1 %v2374_v57, %s6599_s17 }
 0x5a1   : > { %2442 = vrot.lane.b32.xlu0 %v2429_v13, %s6600_s25 }
 0x5a2   : > { %2444 = vrot.lane.b32.xlu1 %v2433_v47, %s6600_s25 }
 0x5a5   : > { %2446 = vrot.lane.b32.xlu0 %v2437_v56, %s6600_s25 }
 0x5a6   : > { %2448 = vrot.lane.b32.xlu1 %v2441_v8, %s6600_s25 }
 0x5fe   : > { %v7650_v43 = vpop.permute.xlu0 %2375 }
 0x5ff   : > { %11972 = vst [vmem:[#allocation124_spill] sm:$0xff] %v7650_v43 }
 0x600   : > { %v7652_v48 = vpop.permute.xlu1 %2377 }
 0x601   : > { %11973 = vst [vmem:[#allocation125_spill] sm:$0xff] %v7652_v48 }
 0x603   : > { %v7654_v45 = vpop.permute.xlu0 %2379 }
 0x604   : > { %11974 = vst [vmem:[#allocation126_spill] sm:$0xff] %v7654_v45  ;;  %v7656_v33 = vpop.permute.xlu1 %2381 }
 0x605   : > { %11975 = vst [vmem:[#allocation127_spill] sm:$0xff] %v7656_v33 }
 0x607   : > { %v7658_v15 = vpop.permute.xlu0 %2383 }
 0x608   : > { %11976 = vst [vmem:[#allocation128_spill] sm:$0xff] %v7658_v15  ;;  %v7660_v63 = vpop.permute.xlu1 %2385 }
 0x609   : > { %11977 = vst [vmem:[#allocation129_spill] sm:$0xff] %v7660_v63 }
 0x60b   : > { %v7662_v12 = vpop.permute.xlu0 %2387 }
 0x60c   : > { %11978 = vst [vmem:[#allocation130_spill] sm:$0xff] %v7662_v12  ;;  %v7664_v0 = vpop.permute.xlu1 %2389 }
 0x60d   : > { %11979 = vst [vmem:[#allocation131_spill] sm:$0xff] %v7664_v0 }
 0x60f   : > { %v7666_v55 = vpop.permute.xlu0 %2391 }
 0x610   : > { %11980 = vst [vmem:[#allocation132_spill] sm:$0xff] %v7666_v55  ;;  %v7668_v59 = vpop.permute.xlu1 %2393 }
 0x611   : > { %11981 = vst [vmem:[#allocation133_spill] sm:$0xff] %v7668_v59 }
 0x613   : > { %v2443_v50 = vpop.permute.xlu0 %2442 }
 0x614   : > { %v2445_v49 = vpop.permute.xlu1 %2444  ;;  %v2458_v39 = vmul.f32 %v7452_v61, %v2443_v50  ;;  %v2463_v52 = vmul.f32 %v7260_v44, %v2443_v50 }
 0x615   : > { %v2450_v2 = vsel %vm1049_vm7, %v2443_v50, %v2445_v49 }
 0x616   : > { %v2488_v53 = vrot.slane %v2458_v39, 4  ;;  %v2489_v60 = vrot.slane %v2463_v52, 4  ;;  %v2459_v9 = vmul.f32 %v7457_v35, %v2450_v2  ;;  %v2464_v16 = vmul.f32 %v7331_v41, %v2450_v2 }
 0x617   : > { %v2447_v57 = vpop.permute.xlu0 %2446  ;;  %v2469_v45 = vmul.f32 %v7551_v62, %v2450_v2 }
 0x618   : > { %v2449_v13 = vpop.permute.xlu1 %2448  ;;  %v2451_v47 = vsel %vm1049_vm7, %v2445_v49, %v2447_v57  ;;  %v2490_v56 = vsel %vm706_vm5, %v2488_v53, %v2489_v60  ;;  %v2491_v8 = vrot.slane %v2459_v9, 4  ;;  %v2492_v59 = vrot.slane %v2464_v16, 4 }
 0x619   : > { %v2452_v55 = vsel %vm1049_vm7, %v2447_v57, %v2449_v13  ;;  %v2460_v0 = vmul.f32 %v7464_v51, %v2451_v47  ;;  %v2465_v63 = vmul.f32 %v7338_v7, %v2451_v47  ;;  %2513 = vrot.lane.b32.xlu0 %v2490_v56, %s6599_s17  ;;  %v2468_v49 = vmul.f32 %v7474_v54, %v2443_v50 }
 0x61a   : > { %v2461_v39 = vmul.f32 %v7469_v14, %v2452_v55  ;;  %v2466_v52 = vmul.f32 %v7343_v11, %v2452_v55  ;;  %v2493_v12 = vsel %vm706_vm5, %v2491_v8, %v2492_v59  ;;  %v2462_v57 = vmul.f32 %v7478_v1, %v2449_v13 }
 0x61b   : > { %v2494_v15 = vrot.slane %v2460_v0, 4  ;;  %v2495_v53 = vrot.slane %v2465_v63, 4  ;;  %2515 = vrot.lane.b32.xlu1 %v2493_v12, %s6599_s17  ;;  %v2467_v56 = vmul.f32 %v7351_v42, %v2449_v13  ;;  %v2470_v43 = vmul.f32 %v7554_v36, %v2451_v47 }
 0x61c   : > { %v2497_v9 = vrot.slane %v2461_v39, 4  ;;  %v2498_v16 = vrot.slane %v2466_v52, 4  ;;  %v2503_v0 = vrot.slane %v2468_v49, 4  ;;  %v2500_v63 = vrot.slane %v2462_v57, 4 }
 0x61d   : > { %v2496_v33 = vsel %vm706_vm5, %v2494_v15, %v2495_v53  ;;  %v2501_v12 = vrot.slane %v2467_v56, 4  ;;  %v2471_v50 = vmul.f32 %v7560_v46, %v2452_v55  ;;  %v2505_v15 = vrot.slane %v2469_v45, 4  ;;  %v2562_v45 = vld [vmem:[#allocation6 + $0x85] ss:$8 sm:$0xf] }
 0x61e   : > { %v2499_v8 = vsel %vm706_vm5, %v2497_v9, %v2498_v16  ;;  %2517 = vrot.lane.b32.xlu0 %v2496_v33, %s6599_s17  ;;  %v2507_v52 = vrot.slane %v2470_v43, 4  ;;  %v2504_v48 = vsel %vm706_vm5, %v2489_v60, %v2503_v0  ;;  %v2472_v2 = vmul.f32 %v7492_v58, %v2449_v13 }
 0x61f   : > { %2519 = vrot.lane.b32.xlu1 %v2499_v8, %s6599_s17  ;;  %v2502_v39 = vsel %vm706_vm5, %v2500_v63, %v2501_v12  ;;  %v2509_v33 = vrot.slane %v2471_v50, 4  ;;  %v2506_v47 = vsel %vm706_vm5, %v2492_v59, %v2505_v15  ;;  %v2567_v13 = vrot.slane %v2562_v45, %v6758_v4 }
 0x620   : > { %v2508_v49 = vsel %vm706_vm5, %v2495_v53, %v2507_v52  ;;  %v2511_v55 = vrot.slane %v2472_v2, 4  ;;  %v2575_v59 = vrot.slane %v2562_v45, %v6756_v3  ;;  %v2579_v53 = vrot.slane %v2562_v45, %v6760_v5 }
 0x621   : > { %v2510_v43 = vsel %vm706_vm5, %v2498_v16, %v2509_v33 }
 0x622   : > { %2521 = vrot.lane.b32.xlu0 %v2502_v39, %s6599_s17  ;;  %v2512_v60 = vsel %vm706_vm5, %v2501_v12, %v2511_v55 }
 0x623   : > { %2523 = vrot.lane.b32.xlu1 %v2504_v48, %s6599_s17  ;;  %v2571_v48 = vrot.slane %v2562_v45, %v6762_v6 }
 0x626   : > { %2525 = vrot.lane.b32.xlu0 %v2506_v47, %s6599_s17 }
 0x627   : > { %2527 = vrot.lane.b32.xlu1 %v2508_v49, %s6599_s17 }
 0x62a   : > { %2529 = vrot.lane.b32.xlu0 %v2510_v43, %s6599_s17 }
 0x62b   : > { %2531 = vrot.lane.b32.xlu1 %v2512_v60, %s6599_s17 }
 0x62e   : > { %2580 = vrot.lane.b32.xlu0 %v2567_v13, %s6600_s25 }
 0x62f   : > { %2582 = vrot.lane.b32.xlu1 %v2571_v48, %s6600_s25 }
 0x632   : > { %2584 = vrot.lane.b32.xlu0 %v2575_v59, %s6600_s25 }
 0x633   : > { %2586 = vrot.lane.b32.xlu1 %v2579_v53, %s6600_s25 }
 0x68b   : > { %v7716_v9 = vpop.permute.xlu0 %2513 }
 0x68c   : > { %11982 = vst [vmem:[#allocation134_spill] sm:$0xff] %v7716_v9 }
 0x68d   : > { %v7718_v16 = vpop.permute.xlu1 %2515 }
 0x68e   : > { %11983 = vst [vmem:[#allocation135_spill] sm:$0xff] %v7718_v16 }
 0x690   : > { %v7720_v57 = vpop.permute.xlu0 %2517 }
 0x691   : > { %11984 = vst [vmem:[#allocation136_spill] sm:$0xff] %v7720_v57  ;;  %v7722_v56 = vpop.permute.xlu1 %2519 }
 0x692   : > { %11985 = vst [vmem:[#allocation137_spill] sm:$0xff] %v7722_v56 }
 0x694   : > { %v7724_v8 = vpop.permute.xlu0 %2521 }
 0x695   : > { %11986 = vst [vmem:[#allocation138_spill] sm:$0xff] %v7724_v8  ;;  %v7726_v0 = vpop.permute.xlu1 %2523 }
 0x696   : > { %11987 = vst [vmem:[#allocation139_spill] sm:$0xff] %v7726_v0 }
 0x698   : > { %v7728_v63 = vpop.permute.xlu0 %2525 }
 0x699   : > { %11988 = vst [vmem:[#allocation140_spill] sm:$0xff] %v7728_v63  ;;  %v7730_v12 = vpop.permute.xlu1 %2527 }
 0x69a   : > { %11989 = vst [vmem:[#allocation141_spill] sm:$0xff] %v7730_v12 }
 0x69c   : > { %v7732_v50 = vpop.permute.xlu0 %2529 }
 0x69d   : > { %11990 = vst [vmem:[#allocation142_spill] sm:$0xff] %v7732_v50  ;;  %v7734_v39 = vpop.permute.xlu1 %2531 }
 0x69e   : > { %11991 = vst [vmem:[#allocation143_spill] sm:$0xff] %v7734_v39 }
 0x6a0   : > { %v2581_v15 = vpop.permute.xlu0 %2580 }
 0x6a1   : > { %v2583_v52 = vpop.permute.xlu1 %2582  ;;  %v2596_v2 = vmul.f32 %v7452_v61, %v2581_v15  ;;  %v2601_v33 = vmul.f32 %v7260_v44, %v2581_v15 }
 0x6a2   : > { %v2588_v47 = vsel %vm1049_vm7, %v2581_v15, %v2583_v52 }
 0x6a3   : > { %v2626_v49 = vrot.slane %v2596_v2, 5  ;;  %v2627_v55 = vrot.slane %v2601_v33, 5  ;;  %v2597_v45 = vmul.f32 %v7457_v35, %v2588_v47  ;;  %v2602_v43 = vmul.f32 %v7331_v41, %v2588_v47 }
 0x6a4   : > { %v2585_v60 = vpop.permute.xlu0 %2584  ;;  %v2607_v56 = vmul.f32 %v7551_v62, %v2588_v47 }
 0x6a5   : > { %v2587_v13 = vpop.permute.xlu1 %2586  ;;  %v2589_v48 = vsel %vm1049_vm7, %v2583_v52, %v2585_v60  ;;  %v2628_v59 = vsel %vm211_vm0, %v2626_v49, %v2627_v55  ;;  %v2629_v53 = vrot.slane %v2597_v45, 5  ;;  %v2630_v39 = vrot.slane %v2602_v43, 5 }
 0x6a6   : > { %v2590_v50 = vsel %vm1049_vm7, %v2585_v60, %v2587_v13  ;;  %v2598_v44 = vmul.f32 %v7464_v51, %v2589_v48  ;;  %v2603_v12 = vmul.f32 %v7338_v7, %v2589_v48  ;;  %2651 = vrot.lane.b32.xlu0 %v2628_v59, %s6599_s17  ;;  %v2606_v52 = vmul.f32 %v7474_v54, %v2581_v15 }
 0x6a7   : > { %v2599_v2 = vmul.f32 %v7469_v14, %v2590_v50  ;;  %v2604_v33 = vmul.f32 %v7343_v11, %v2590_v50  ;;  %v2631_v0 = vsel %vm211_vm0, %v2629_v53, %v2630_v39  ;;  %v2600_v60 = vmul.f32 %v7478_v1, %v2587_v13 }
 0x6a8   : > { %v2632_v63 = vrot.slane %v2598_v44, 5  ;;  %v2633_v49 = vrot.slane %v2603_v12, 5  ;;  %2653 = vrot.lane.b32.xlu1 %v2631_v0, %s6599_s17  ;;  %v2605_v59 = vmul.f32 %v7351_v42, %v2587_v13  ;;  %v2608_v57 = vmul.f32 %v7554_v36, %v2589_v48 }
 0x6a9   : > { %v2635_v45 = vrot.slane %v2599_v2, 5  ;;  %v2636_v43 = vrot.slane %v2604_v33, 5  ;;  %v2641_v15 = vrot.slane %v2606_v52, 5  ;;  %v2638_v12 = vrot.slane %v2600_v60, 5 }
 0x6aa   : > { %v2634_v8 = vsel %vm211_vm0, %v2632_v63, %v2633_v49  ;;  %v2639_v0 = vrot.slane %v2605_v59, 5  ;;  %v2609_v44 = vmul.f32 %v7560_v46, %v2590_v50  ;;  %v2643_v63 = vrot.slane %v2607_v56, 5  ;;  %v2700_v56 = vld [vmem:[#allocation6 + $0xa4] ss:$8 sm:$0xf] }
 0x6ab   : > { %v2637_v53 = vsel %vm211_vm0, %v2635_v45, %v2636_v43  ;;  %2655 = vrot.lane.b32.xlu0 %v2634_v8, %s6599_s17  ;;  %v2645_v33 = vrot.slane %v2608_v57, 5  ;;  %v2642_v9 = vsel %vm211_vm0, %v2627_v55, %v2641_v15  ;;  %v2610_v47 = vmul.f32 %v7492_v58, %v2587_v13 }
 0x6ac   : > { %2657 = vrot.lane.b32.xlu1 %v2637_v53, %s6599_s17  ;;  %v2640_v2 = vsel %vm211_vm0, %v2638_v12, %v2639_v0  ;;  %v2647_v8 = vrot.slane %v2609_v44, 5  ;;  %v2644_v48 = vsel %vm211_vm0, %v2630_v39, %v2643_v63  ;;  %v2705_v13 = vrot.slane %v2700_v56, %v6758_v4 }
 0x6ad   : > { %v2646_v52 = vsel %vm211_vm0, %v2633_v49, %v2645_v33  ;;  %v2649_v50 = vrot.slane %v2610_v47, 5  ;;  %v2713_v39 = vrot.slane %v2700_v56, %v6756_v3  ;;  %v2717_v49 = vrot.slane %v2700_v56, %v6760_v5 }
 0x6ae   : > { %v2648_v57 = vsel %vm211_vm0, %v2636_v43, %v2647_v8  ;;  %v6400_v8 = vld [vmem:[#allocation2 + $0x10] sm:$0xff] }
 0x6af   : > { %2659 = vrot.lane.b32.xlu0 %v2640_v2, %s6599_s17  ;;  %v2650_v55 = vsel %vm211_vm0, %v2639_v0, %v2649_v50 }
 0x6b0   : > { %2661 = vrot.lane.b32.xlu1 %v2642_v9, %s6599_s17  ;;  %v2709_v9 = vrot.slane %v2700_v56, %v6762_v6 }
 0x6b3   : > { %2663 = vrot.lane.b32.xlu0 %v2644_v48, %s6599_s17 }
 0x6b4   : > { %2665 = vrot.lane.b32.xlu1 %v2646_v52, %s6599_s17 }
 0x6b7   : > { %2667 = vrot.lane.b32.xlu0 %v2648_v57, %s6599_s17 }
 0x6b8   : > { %2669 = vrot.lane.b32.xlu1 %v2650_v55, %s6599_s17 }
 0x6bb   : > { %2718 = vrot.lane.b32.xlu0 %v2705_v13, %s6600_s25 }
 0x6bc   : > { %2720 = vrot.lane.b32.xlu1 %v2709_v9, %s6600_s25 }
 0x6bf   : > { %2722 = vrot.lane.b32.xlu0 %v2713_v39, %s6600_s25 }
 0x6c0   : > { %2724 = vrot.lane.b32.xlu1 %v2717_v49, %s6600_s25 }
 0x718   : > { %v7782_v45 = vpop.permute.xlu0 %2651 }
 0x719   : > { %11992 = vst [vmem:[#allocation144_spill] sm:$0xff] %v7782_v45 }
 0x71a   : > { %v7784_v43 = vpop.permute.xlu1 %2653 }
 0x71b   : > { %11993 = vst [vmem:[#allocation145_spill] sm:$0xff] %v7784_v43 }
 0x71d   : > { %v7786_v60 = vpop.permute.xlu0 %2655 }
 0x71e   : > { %11994 = vst [vmem:[#allocation146_spill] sm:$0xff] %v7786_v60  ;;  %v7788_v59 = vpop.permute.xlu1 %2657 }
 0x71f   : > { %11995 = vst [vmem:[#allocation147_spill] sm:$0xff] %v7788_v59 }
 0x721   : > { %v7790_v53 = vpop.permute.xlu0 %2659 }
 0x722   : > { %11996 = vst [vmem:[#allocation148_spill] sm:$0xff] %v7790_v53  ;;  %v7792_v15 = vpop.permute.xlu1 %2661 }
 0x723   : > { %11997 = vst [vmem:[#allocation149_spill] sm:$0xff] %v7792_v15 }
 0x725   : > { %v7794_v12 = vpop.permute.xlu0 %2663 }
 0x726   : > { %11998 = vst [vmem:[#allocation150_spill] sm:$0xff] %v7794_v12  ;;  %v7796_v0 = vpop.permute.xlu1 %2665 }
 0x727   : > { %11999 = vst [vmem:[#allocation151_spill] sm:$0xff] %v7796_v0 }
 0x729   : > { %v7798_v44 = vpop.permute.xlu0 %2667 }
 0x72a   : > { %12000 = vst [vmem:[#allocation152_spill] sm:$0xff] %v7798_v44  ;;  %v7800_v2 = vpop.permute.xlu1 %2669 }
 0x72b   : > { %12001 = vst [vmem:[#allocation153_spill] sm:$0xff] %v7800_v2 }
 0x72d   : > { %v2719_v63 = vpop.permute.xlu0 %2718 }
 0x72e   : > { %v2721_v33 = vpop.permute.xlu1 %2720  ;;  %v2734_v47 = vmul.f32 %v7452_v61, %v2719_v63  ;;  %v2739_v48 = vmul.f32 %v6400_v8, %v2719_v63 }
 0x72f   : > { %v2726_v52 = vsel %vm1049_vm7, %v2719_v63, %v2721_v33 }
 0x730   : > { %v2764_v50 = vrot.slane %v2734_v47, 6  ;;  %v2765_v56 = vrot.slane %v2739_v48, 6  ;;  %v2735_v57 = vmul.f32 %v7457_v35, %v2726_v52  ;;  %v2740_v55 = vmul.f32 %v7331_v41, %v2726_v52 }
 0x731   : > { %v2723_v13 = vpop.permute.xlu0 %2722  ;;  %v2745_v12 = vmul.f32 %v7551_v62, %v2726_v52 }
 0x732   : > { %v2725_v9 = vpop.permute.xlu1 %2724  ;;  %v2727_v39 = vsel %vm1049_vm7, %v2721_v33, %v2723_v13  ;;  %v2766_v49 = vsel %vm927_vm6, %v2764_v50, %v2765_v56  ;;  %v2767_v2 = vrot.slane %v2735_v57, 6  ;;  %v2768_v44 = vrot.slane %v2740_v55, 6 }
 0x733   : > { %v2728_v61 = vsel %vm1049_vm7, %v2723_v13, %v2725_v9  ;;  %v2736_v8 = vmul.f32 %v7464_v51, %v2727_v39  ;;  %v2741_v0 = vmul.f32 %v7338_v7, %v2727_v39  ;;  %2789 = vrot.lane.b32.xlu0 %v2766_v49, %s6599_s17  ;;  %v2744_v33 = vmul.f32 %v7474_v54, %v2719_v63 }
 0x734   : > { %v2737_v47 = vmul.f32 %v7469_v14, %v2728_v61  ;;  %v2742_v41 = vmul.f32 %v7343_v11, %v2728_v61  ;;  %v2769_v48 = vsel %vm927_vm6, %v2767_v2, %v2768_v44  ;;  %v2738_v13 = vmul.f32 %v7478_v1, %v2725_v9 }
 0x735   : > { %v2770_v15 = vrot.slane %v2736_v8, 6  ;;  %v2771_v50 = vrot.slane %v2741_v0, 6  ;;  %2791 = vrot.lane.b32.xlu1 %v2769_v48, %s6599_s17  ;;  %v2743_v49 = vmul.f32 %v7351_v42, %v2725_v9  ;;  %v2746_v11 = vmul.f32 %v7554_v36, %v2727_v39  ;;  %v2838_v39 = vld [vmem:[#allocation6 + $0x3] ss:$8 sm:$0xf] }
 0x736   : > { %v2773_v57 = vrot.slane %v2737_v47, 6  ;;  %v2774_v55 = vrot.slane %v2742_v41, 6  ;;  %v2779_v54 = vrot.slane %v2744_v33, 6  ;;  %v2776_v0 = vrot.slane %v2738_v13, 6 }
 0x737   : > { %v2772_v7 = vsel %vm927_vm6, %v2770_v15, %v2771_v50  ;;  %v2777_v63 = vrot.slane %v2743_v49, 6  ;;  %v2747_v8 = vmul.f32 %v7560_v46, %v2728_v61  ;;  %v2781_v15 = vrot.slane %v2745_v12, 6 }
 0x738   : > { %v2775_v2 = vsel %vm927_vm6, %v2773_v57, %v2774_v55  ;;  %2793 = vrot.lane.b32.xlu0 %v2772_v7, %s6599_s17  ;;  %v2783_v41 = vrot.slane %v2746_v11, 6  ;;  %v2780_v42 = vsel %vm927_vm6, %v2765_v56, %v2779_v54  ;;  %v2748_v52 = vmul.f32 %v7492_v58, %v2725_v9  ;;  %v2919_v11 = vld [vmem:[#allocation6 + $0x22] ss:$8 sm:$0xf] }
 0x739   : > { %2795 = vrot.lane.b32.xlu1 %v2775_v2, %s6599_s17  ;;  %v2778_v47 = vsel %vm927_vm6, %v2776_v0, %v2777_v63  ;;  %v2785_v48 = vrot.slane %v2747_v8, 6  ;;  %v2782_v33 = vsel %vm927_vm6, %v2768_v44, %v2781_v15  ;;  %v2843_v12 = vrot.slane %v2838_v39, %v6758_v4 }
 0x73a   : > { %v2784_v57 = vsel %vm927_vm6, %v2771_v50, %v2783_v41  ;;  %v2787_v61 = vrot.slane %v2748_v52, 6  ;;  %v2847_v56 = vrot.slane %v2838_v39, %v6762_v6  ;;  %v2851_v44 = vrot.slane %v2838_v39, %v6756_v3 }
 0x73b   : > { %v2786_v13 = vsel %vm927_vm6, %v2774_v55, %v2785_v48  ;;  %v2860_v7 = vmul.f32 %v7457_v35, %v2843_v12  ;;  %v2855_v49 = vrot.slane %v2838_v39, %v6760_v5  ;;  %v2924_v54 = vrot.slane %v2919_v11, %v6758_v4 }
 0x73c   : > { %2797 = vrot.lane.b32.xlu0 %v2778_v47, %s6599_s17  ;;  %v2788_v9 = vsel %vm927_vm6, %v2777_v63, %v2787_v61  ;;  %v2861_v50 = vmul.f32 %v7464_v51, %v2847_v56  ;;  %v2862_v2 = vmul.f32 %v7469_v14, %v2851_v44  ;;  %v2928_v0 = vrot.slane %v2919_v11, %v6762_v6  ;;  %v7852_v63 = vld [vmem:[#allocation2 + $0x60] sm:$0xff]  ;;  %v7856_v47 = vld [vmem:[#allocation2 + $0x18] sm:$0xff] }
 0x73d   : > { %2799 = vrot.lane.b32.xlu1 %v2780_v42, %s6599_s17  ;;  %v2863_v55 = vmul.f32 %v7478_v1, %v2855_v49  ;;  %v2864_v8 = vmul.f32 %v7852_v63, %v2843_v12  ;;  %v2865_v15 = vmul.f32 %v7856_v47, %v2847_v56  ;;  %v2941_v41 = vmul.f32 %v7457_v35, %v2924_v54  ;;  %v7869_v12 = vld [vmem:[#allocation2 + $0x58] sm:$0xff] }
 0x73e   : > { %v2945_v42 = vmul.f32 %v7852_v63, %v2924_v54  ;;  %v2932_v52 = vrot.slane %v2919_v11, %v6756_v3  ;;  %v2942_v39 = vmul.f32 %v7464_v51, %v2928_v0  ;;  %v2946_v48 = vmul.f32 %v7856_v47, %v2928_v0 }
 0x73f   : > { %v2866_v56 = vmul.f32 %v7869_v12, %v2851_v44 }
 0x740   : > { %2801 = vrot.lane.b32.xlu0 %v2782_v33, %s6599_s17  ;;  %v2936_v33 = vrot.slane %v2919_v11, %v6760_v5  ;;  %v2969_v11 = vrot.slane %v2946_v48, 1  ;;  %v3028_v48 = vld [vmem:[#allocation6 + $0x41] ss:$8 sm:$0xf] }
 0x741   : > { %2803 = vrot.lane.b32.xlu1 %v2784_v57, %s6599_s17  ;;  %v7866_v57 = vld [vmem:[#allocation2 + $0x30] sm:$0xff] }
 0x742   : > { %v2867_v61 = vmul.f32 %v7866_v57, %v2855_v49  ;;  %v2952_v60 = vmul.f32 %v7492_v58, %v2936_v33 }
 0x744   : > { %2805 = vrot.lane.b32.xlu0 %v2786_v13, %s6599_s17  ;;  %v2965_v13 = vrot.slane %v2941_v41, 1  ;;  %v2949_v41 = vmul.f32 %v7551_v62, %v2924_v54  ;;  %v3033_v54 = vrot.slane %v3028_v48, %v6758_v4 }
 0x745   : > { %2807 = vrot.lane.b32.xlu1 %v2788_v9, %s6599_s17  ;;  %v2966_v9 = vrot.slane %v2945_v42, 1 }
 0x747   : > { %v2967_v44 = vsel %vm373_vm2, %v2965_v13, %v2966_v9  ;;  %v2977_v13 = vrot.slane %v2949_v41, 1 }
 0x748   : > { %2876 = vrot.lane.b32.xlu0 %v2860_v7, %s6598_s15  ;;  %v2943_v7 = vmul.f32 %v7469_v14, %v2932_v52 }
 0x749   : > { %2878 = vrot.lane.b32.xlu1 %v2861_v50, %s6598_s15  ;;  %v2947_v50 = vmul.f32 %v7869_v12, %v2932_v52 }
 0x74a   : > { %v2971_v49 = vrot.slane %v2943_v7, 1 }
 0x74c   : > { %2880 = vrot.lane.b32.xlu0 %v2862_v2, %s6598_s15  ;;  %v2968_v2 = vrot.slane %v2942_v39, 1  ;;  %v2950_v39 = vmul.f32 %v7554_v36, %v2928_v0  ;;  %v2983_v0 = vrot.slane %v2952_v60, 1 }
 0x74d   : > { %2882 = vrot.lane.b32.xlu1 %v2863_v55, %s6598_s15  ;;  %v2944_v55 = vmul.f32 %v7478_v1, %v2936_v33 }
 0x74e   : > { %v2970_v42 = vsel %vm373_vm2, %v2968_v2, %v2969_v11  ;;  %v3037_v2 = vrot.slane %v3028_v48, %v6762_v6 }
 0x74f   : > { %v2974_v53 = vrot.slane %v2944_v55, 1 }
 0x750   : > { %2884 = vrot.lane.b32.xlu0 %v2864_v8, %s6598_s15  ;;  %v2948_v8 = vmul.f32 %v7866_v57, %v2936_v33  ;;  %v3050_v33 = vmul.f32 %v7457_v35, %v3033_v54  ;;  %v3055_v41 = vmul.f32 %v7856_v47, %v3037_v2 }
 0x751   : > { %2886 = vrot.lane.b32.xlu1 %v2865_v15, %s6598_s15  ;;  %v2972_v15 = vrot.slane %v2947_v50, 1  ;;  %v2979_v50 = vrot.slane %v2950_v39, 1 }
 0x752   : > { %v2975_v59 = vrot.slane %v2948_v8, 1  ;;  %v3054_v8 = vmul.f32 %v7852_v63, %v3033_v54  ;;  %v3074_v35 = vrot.slane %v3050_v33, 2  ;;  %v3137_v33 = vld [vmem:[#allocation6 + $0x60] ss:$8 sm:$0xf] }
 0x754   : > { %2888 = vrot.lane.b32.xlu0 %v2866_v56, %s6598_s15  ;;  %v2951_v56 = vmul.f32 %v7560_v46, %v2932_v52  ;;  %v2976_v7 = vsel %vm373_vm2, %v2974_v53, %v2975_v59  ;;  %v2978_v52 = vsel %vm373_vm2, %v2966_v9, %v2977_v13  ;;  %v3051_v53 = vmul.f32 %v7464_v51, %v3037_v2 }
 0x755   : > { %2890 = vrot.lane.b32.xlu1 %v2867_v61, %s6598_s15  ;;  %v2973_v61 = vsel %vm373_vm2, %v2971_v49, %v2972_v15  ;;  %v2980_v49 = vsel %vm373_vm2, %v2969_v11, %v2979_v50  ;;  %v2984_v60 = vsel %vm373_vm2, %v2975_v59, %v2983_v0  ;;  %v3075_v39 = vrot.slane %v3054_v8, 2 }
 0x756   : > { %v2981_v55 = vrot.slane %v2951_v56, 1  ;;  %v3078_v51 = vrot.slane %v3055_v41, 2  ;;  %v3058_v50 = vmul.f32 %v7551_v62, %v3033_v54  ;;  %v3142_v54 = vrot.slane %v3137_v33, %v6758_v4 }
 0x757   : > { %v3076_v59 = vsel %vm484_vm3, %v3074_v35, %v3075_v39 }
 0x758   : > { %2985 = vrot.lane.b32.xlu0 %v2967_v44, %s6598_s15  ;;  %v3041_v44 = vrot.slane %v3028_v48, %v6756_v3  ;;  %v2982_v9 = vsel %vm373_vm2, %v2972_v15, %v2981_v55 }
 0x759   : > { %2987 = vrot.lane.b32.xlu1 %v2970_v42, %s6598_s15  ;;  %v3045_v42 = vrot.slane %v3028_v48, %v6760_v5 }
 0x75a   : > { %v3052_v56 = vmul.f32 %v7469_v14, %v3041_v44  ;;  %v3056_v11 = vmul.f32 %v7869_v12, %v3041_v44  ;;  %v3060_v8 = vmul.f32 %v7560_v46, %v3041_v44  ;;  %v7926_v44 = vld [vmem:[#allocation2 + $0x68] sm:$0xff] }
 0x75b   : > { %v3053_v13 = vmul.f32 %v7478_v1, %v3045_v42  ;;  %v3057_v48 = vmul.f32 %v7866_v57, %v3045_v42  ;;  %v3061_v1 = vmul.f32 %v7492_v58, %v3045_v42  ;;  %v3159_v42 = vmul.f32 %v7926_v44, %v3142_v54 }
 0x75c   : > { %2989 = vrot.lane.b32.xlu0 %v2973_v61, %s6598_s15  ;;  %v3077_v61 = vrot.slane %v3051_v53, 2  ;;  %v3080_v15 = vrot.slane %v3052_v56, 2  ;;  %v3086_v53 = vrot.slane %v3058_v50, 2  ;;  %v3090_v35 = vrot.slane %v3060_v8, 2 }
 0x75d   : > { %2991 = vrot.lane.b32.xlu1 %v2976_v7, %s6598_s15  ;;  %v3081_v7 = vrot.slane %v3056_v11, 2  ;;  %v3083_v0 = vrot.slane %v3053_v13, 2  ;;  %v3084_v55 = vrot.slane %v3057_v48, 2  ;;  %v3163_v56 = vmul.f32 %v7852_v63, %v3142_v54  ;;  %v7932_v13 = vld [vmem:[#allocation2 + $0x40] sm:$0xff] }
 0x75e   : > { %v3079_v14 = vsel %vm484_vm3, %v3077_v61, %v3078_v51  ;;  %v3087_v58 = vsel %vm484_vm3, %v3075_v39, %v3086_v53  ;;  %v3150_v11 = vrot.slane %v3137_v33, %v6756_v3  ;;  %v7945_v53 = vld [vmem:[#allocation2 + $0x20] sm:$0xff] }
 0x75f   : > { %v3085_v41 = vsel %vm484_vm3, %v3083_v0, %v3084_v55  ;;  %v3091_v50 = vsel %vm484_vm3, %v3081_v7, %v3090_v35  ;;  %v3184_v0 = vrot.slane %v3163_v56, 3 }
 0x760   : > { %2993 = vrot.lane.b32.xlu0 %v2978_v52, %s6598_s15  ;;  %v3059_v52 = vmul.f32 %v7554_v36, %v3037_v2  ;;  %v3092_v2 = vrot.slane %v3061_v1, 2  ;;  %v3165_v1 = vmul.f32 %v7869_v12, %v3150_v11 }
 0x761   : > { %2995 = vrot.lane.b32.xlu1 %v2980_v49, %s6598_s15  ;;  %v3082_v49 = vsel %vm484_vm3, %v3080_v15, %v3081_v7  ;;  %v3154_v15 = vrot.slane %v3137_v33, %v6760_v5 }
 0x762   : > { %v3093_v39 = vsel %vm484_vm3, %v3084_v55, %v3092_v2  ;;  %v3167_v2 = vmul.f32 %v7551_v62, %v3142_v54 }
 0x763   : > { %v3166_v55 = vmul.f32 %v7866_v57, %v3154_v15 }
 0x764   : > { %2997 = vrot.lane.b32.xlu0 %v2982_v9, %s6598_s15  ;;  %v3146_v9 = vrot.slane %v3137_v33, %v6762_v6  ;;  %v3162_v33 = vmul.f32 %v7945_v53, %v3154_v15  ;;  %v3195_v54 = vrot.slane %v3167_v2, 3 }
 0x765   : > { %2999 = vrot.lane.b32.xlu1 %v2984_v60, %s6598_s15  ;;  %v3088_v60 = vrot.slane %v3059_v52, 2  ;;  %v7941_v52 = vld [vmem:[#allocation2 + $0x88] sm:$0xff] }
 0x766   : > { %v3160_v48 = vmul.f32 %v7932_v13, %v3146_v9  ;;  %v3168_v56 = vmul.f32 %v7554_v36, %v3146_v9 }
 0x767   : > { %v3089_v61 = vsel %vm484_vm3, %v3078_v51, %v3088_v60  ;;  %v3161_v51 = vmul.f32 %v7941_v52, %v3150_v11  ;;  %v3190_v60 = vrot.slane %v3165_v1, 3 }
 0x768   : > { %3094 = vrot.lane.b32.xlu0 %v3076_v59, %s6598_s15  ;;  %v3164_v59 = vmul.f32 %v7856_v47, %v3146_v9  ;;  %v3186_v8 = vrot.slane %v3160_v48, 3  ;;  %v7956_v48 = vld [vmem:[#allocation2 + $0x80] sm:$0x3f]  ;;  %v3197_v1 = vrot.slane %v3168_v56, 3 }
 0x769   : > { %3096 = vrot.lane.b32.xlu1 %v3079_v14, %s6598_s15  ;;  %v3183_v14 = vrot.slane %v3159_v42, 3  ;;  %v3193_v42 = vrot.slane %v3166_v55, 3 }
 0x76b   : > { %v3185_v7 = vsel %vm595_vm4, %v3183_v14, %v3184_v0 }
 0x76c   : > { %3098 = vrot.lane.b32.xlu0 %v3082_v49, %s6598_s15  ;;  %v3187_v49 = vrot.slane %v3164_v59, 3  ;;  %v3170_v59 = vmul.f32 %v7956_v48, %v3154_v15 }
 0x76d   : > { %3100 = vrot.lane.b32.xlu1 %v3085_v41, %s6598_s15  ;;  %v3189_v41 = vrot.slane %v3161_v51, 3 }
 0x76e   : > { %v3188_v35 = vsel %vm595_vm4, %v3186_v8, %v3187_v49  ;;  %v3201_v8 = vrot.slane %v3170_v59, 3 }
 0x770   : > { %3102 = vrot.lane.b32.xlu0 %v3087_v58, %s6598_s15  ;;  %v3192_v58 = vrot.slane %v3162_v33, 3  ;;  %v3202_v56 = vsel %vm595_vm4, %v3193_v42, %v3201_v8 }
 0x771   : > { %3104 = vrot.lane.b32.xlu1 %v3089_v61, %s6598_s15  ;;  %v3246_v61 = vld [vmem:[#allocation6 + $0x67] ss:$8 sm:$0xf] }
 0x772   : > { %v3251_v14 = vrot.slane %v3246_v61, %v6758_v4  ;;  %v3194_v51 = vsel %vm595_vm4, %v3192_v58, %v3193_v42  ;;  %v3255_v9 = vrot.slane %v3246_v61, %v6762_v6  ;;  %v3263_v58 = vrot.slane %v3246_v61, %v6760_v5 }
 0x774   : > { %3106 = vrot.lane.b32.xlu0 %v3091_v50, %s6598_s15  ;;  %v3191_v50 = vsel %vm595_vm4, %v3189_v41, %v3190_v60  ;;  %v3268_v15 = vmul.f32 %v7926_v44, %v3251_v14  ;;  %v3272_v55 = vmul.f32 %v7852_v63, %v3251_v14  ;;  %v3198_v41 = vsel %vm595_vm4, %v3187_v49, %v3197_v1 }
 0x775   : > { %3108 = vrot.lane.b32.xlu1 %v3093_v39, %s6598_s15  ;;  %v3169_v39 = vmul.f32 %v7560_v46, %v3150_v11  ;;  %v3196_v11 = vsel %vm595_vm4, %v3184_v0, %v3195_v54  ;;  %v3269_v2 = vmul.f32 %v7932_v13, %v3255_v9  ;;  %v3271_v1 = vmul.f32 %v7945_v53, %v3263_v58 }
 0x776   : > { %v3292_v59 = vrot.slane %v3268_v15, 4 }
 0x777   : > { %v3199_v33 = vrot.slane %v3169_v39, 3  ;;  %v3293_v39 = vrot.slane %v3272_v55, 4  ;;  %v3295_v54 = vrot.slane %v3269_v2, 4  ;;  %v3301_v15 = vrot.slane %v3271_v1, 4 }
 0x778   : > { %3203 = vrot.lane.b32.xlu0 %v3185_v7, %s6598_s15  ;;  %v3259_v7 = vrot.slane %v3246_v61, %v6756_v3  ;;  %v3275_v61 = vmul.f32 %v7866_v57, %v3263_v58  ;;  %v3355_v2 = vld [vmem:[#allocation6 + $0x86] ss:$8 sm:$0xf] }
 0x779   : > { %3205 = vrot.lane.b32.xlu1 %v3188_v35, %s6598_s15  ;;  %v3273_v35 = vmul.f32 %v7856_v47, %v3255_v9  ;;  %v3200_v0 = vsel %vm595_vm4, %v3190_v60, %v3199_v33  ;;  %v3294_v60 = vsel %vm706_vm5, %v3292_v59, %v3293_v39  ;;  %v3276_v33 = vmul.f32 %v7551_v62, %v3251_v14 }
 0x77a   : > { %v3274_v49 = vmul.f32 %v7869_v12, %v3259_v7  ;;  %v3302_v55 = vrot.slane %v3275_v61, 4  ;;  %v3360_v62 = vrot.slane %v3355_v2, %v6758_v4 }
 0x77b   : > { %v3304_v59 = vrot.slane %v3276_v33, 4 }
 0x77c   : > { %3207 = vrot.lane.b32.xlu0 %v3191_v50, %s6598_s15  ;;  %v3270_v50 = vmul.f32 %v7941_v52, %v3259_v7  ;;  %v3299_v8 = vrot.slane %v3274_v49, 4  ;;  %v3303_v14 = vsel %vm706_vm5, %v3301_v15, %v3302_v55  ;;  %v3364_v49 = vrot.slane %v3355_v2, %v6762_v6 }
 0x77d   : > { %3209 = vrot.lane.b32.xlu1 %v3194_v51, %s6598_s15  ;;  %v3296_v51 = vrot.slane %v3273_v35, 4  ;;  %v3279_v35 = vmul.f32 %v7956_v48, %v3263_v58  ;;  %v3381_v58 = vmul.f32 %v7852_v63, %v3360_v62 }
 0x77e   : > { %v3298_v42 = vrot.slane %v3270_v50, 4  ;;  %v3378_v61 = vmul.f32 %v7932_v13, %v3364_v49 }
 0x77f   : > { %v3402_v15 = vrot.slane %v3381_v58, 5 }
 0x780   : > { %3211 = vrot.lane.b32.xlu0 %v3196_v11, %s6598_s15  ;;  %v3297_v11 = vsel %vm706_vm5, %v3295_v54, %v3296_v51  ;;  %v3368_v54 = vrot.slane %v3355_v2, %v6756_v3 }
 0x781   : > { %3213 = vrot.lane.b32.xlu1 %v3198_v41, %s6598_s15  ;;  %v3277_v41 = vmul.f32 %v7554_v36, %v3255_v9  ;;  %v3310_v36 = vrot.slane %v3279_v35, 4  ;;  %v3404_v35 = vrot.slane %v3378_v61, 5 }
 0x783   : > { %v3306_v50 = vrot.slane %v3277_v41, 4  ;;  %v3311_v33 = vsel %vm706_vm5, %v3302_v55, %v3310_v36  ;;  %v3379_v41 = vmul.f32 %v7941_v52, %v3368_v54 }
 0x784   : > { %3215 = vrot.lane.b32.xlu0 %v3200_v0, %s6598_s15  ;;  %v3278_v0 = vmul.f32 %v7560_v46, %v3259_v7  ;;  %v3305_v46 = vsel %vm706_vm5, %v3293_v39, %v3304_v59  ;;  %v3377_v7 = vmul.f32 %v7926_v44, %v3360_v62 }
 0x785   : > { %3217 = vrot.lane.b32.xlu1 %v3202_v56, %s6598_s15  ;;  %v3300_v56 = vsel %vm706_vm5, %v3298_v42, %v3299_v8  ;;  %v3307_v1 = vsel %vm706_vm5, %v3296_v51, %v3306_v50  ;;  %v3372_v42 = vrot.slane %v3355_v2, %v6760_v5  ;;  %v3383_v51 = vmul.f32 %v7869_v12, %v3368_v54 }
 0x786   : > { %v3308_v9 = vrot.slane %v3278_v0, 4  ;;  %v3407_v55 = vrot.slane %v3379_v41, 5 }
 0x787   : > { %v3384_v2 = vmul.f32 %v7866_v57, %v3372_v42  ;;  %v3408_v59 = vrot.slane %v3383_v51, 5  ;;  %v3388_v61 = vmul.f32 %v7956_v48, %v3372_v42 }
 0x788   : > { %3312 = vrot.lane.b32.xlu0 %v3294_v60, %s6598_s15  ;;  %v3382_v60 = vmul.f32 %v7856_v47, %v3364_v49  ;;  %v3309_v39 = vsel %vm706_vm5, %v3299_v8, %v3308_v9 }
 0x789   : > { %3314 = vrot.lane.b32.xlu1 %v3297_v11, %s6598_s15  ;;  %v3401_v11 = vrot.slane %v3377_v7, 5  ;;  %v8022_v7 = vld [vmem:[#allocation2 + $0x50] sm:$0x3f] }
 0x78a   : > { %v3405_v0 = vrot.slane %v3382_v60, 5  ;;  %v3386_v58 = vmul.f32 %v8022_v7, %v3364_v49  ;;  %v8027_v60 = vld [vmem:[#allocation2 + $0x70] sm:$0x3f] }
 0x78b   : > { %v3403_v8 = vsel %vm211_vm0, %v3401_v11, %v3402_v15 }
 0x78c   : > { %3316 = vrot.lane.b32.xlu0 %v3300_v56, %s6598_s15  ;;  %v3380_v56 = vmul.f32 %v7945_v53, %v3372_v42  ;;  %v3406_v36 = vsel %vm211_vm0, %v3404_v35, %v3405_v0  ;;  %v3415_v51 = vrot.slane %v3386_v58, 5  ;;  %v3419_v35 = vrot.slane %v3388_v61, 5 }
 0x78d   : > { %3318 = vrot.lane.b32.xlu1 %v3303_v14, %s6598_s15  ;;  %v8018_v14 = vld [vmem:[#allocation2 + $0x48] sm:$0x3f] }
 0x78e   : > { %v3385_v50 = vmul.f32 %v8018_v14, %v3360_v62  ;;  %v3410_v9 = vrot.slane %v3380_v56, 5  ;;  %v3409_v62 = vsel %vm211_vm0, %v3407_v55, %v3408_v59  ;;  %v3416_v55 = vsel %vm211_vm0, %v3405_v0, %v3415_v51 }
 0x790   : > { %3320 = vrot.lane.b32.xlu0 %v3305_v46, %s6598_s15  ;;  %v3411_v46 = vrot.slane %v3384_v2, 5 }
 0x791   : > { %3322 = vrot.lane.b32.xlu1 %v3307_v1, %s6598_s15  ;;  %v3464_v1 = vld [vmem:[#allocation6 + $0xa5] ss:$8 sm:$0xf] }
 0x792   : > { %v3469_v11 = vrot.slane %v3464_v1, %v6758_v4  ;;  %v3412_v41 = vsel %vm211_vm0, %v3410_v9, %v3411_v46  ;;  %v3473_v49 = vrot.slane %v3464_v1, %v6762_v6  ;;  %v3481_v9 = vrot.slane %v3464_v1, %v6760_v5 }
 0x793   : > { %v3420_v58 = vsel %vm211_vm0, %v3411_v46, %v3419_v35 }
 0x794   : > { %3324 = vrot.lane.b32.xlu0 %v3309_v39, %s6598_s15  ;;  %v3413_v39 = vrot.slane %v3385_v50, 5  ;;  %v3486_v56 = vmul.f32 %v7926_v44, %v3469_v11  ;;  %v3490_v2 = vmul.f32 %v7852_v63, %v3469_v11  ;;  %v3487_v50 = vmul.f32 %v7932_v13, %v3473_v49 }
 0x795   : > { %3326 = vrot.lane.b32.xlu1 %v3311_v33, %s6598_s15  ;;  %v3387_v33 = vmul.f32 %v8027_v60, %v3368_v54  ;;  %v3489_v51 = vmul.f32 %v7945_v53, %v3481_v9 }
 0x796   : > { %v3414_v54 = vsel %vm211_vm0, %v3402_v15, %v3413_v39  ;;  %v3510_v61 = vrot.slane %v3486_v56, 6  ;;  %v3513_v39 = vrot.slane %v3487_v50, 6  ;;  %v3495_v50 = vmul.f32 %v8022_v7, %v3473_v49 }
 0x797   : > { %v3417_v42 = vrot.slane %v3387_v33, 5  ;;  %v3511_v33 = vrot.slane %v3490_v2, 6  ;;  %v3519_v2 = vrot.slane %v3489_v51, 6 }
 0x798   : > { %3421 = vrot.lane.b32.xlu0 %v3403_v8, %s6598_s15  ;;  %v3477_v8 = vrot.slane %v3464_v1, %v6756_v3  ;;  %v3493_v1 = vmul.f32 %v7866_v57, %v3481_v9 }
 0x799   : > { %3423 = vrot.lane.b32.xlu1 %v3406_v36, %s6598_s15  ;;  %v3491_v36 = vmul.f32 %v7856_v47, %v3473_v49  ;;  %v3418_v15 = vsel %vm211_vm0, %v3408_v59, %v3417_v42  ;;  %v3512_v59 = vsel %vm927_vm6, %v3510_v61, %v3511_v33 }
 0x79a   : > { %v3492_v0 = vmul.f32 %v7869_v12, %v3477_v8  ;;  %v3496_v61 = vmul.f32 %v8027_v60, %v3477_v8 }
 0x79c   : > { %3425 = vrot.lane.b32.xlu0 %v3409_v62, %s6598_s15  ;;  %v3488_v62 = vmul.f32 %v7941_v52, %v3477_v8  ;;  %v3517_v42 = vrot.slane %v3492_v0, 6  ;;  %v3524_v0 = vrot.slane %v3495_v50, 6 }
 0x79d   : > { %3427 = vrot.lane.b32.xlu1 %v3412_v41, %s6598_s15  ;;  %v3514_v41 = vrot.slane %v3491_v36, 6 }
 0x79e   : > { %v3516_v35 = vrot.slane %v3488_v62, 6 }
 0x79f   : > { %v3515_v56 = vsel %vm927_vm6, %v3513_v39, %v3514_v41  ;;  %v3497_v39 = vmul.f32 %v7956_v48, %v3481_v9  ;;  %v3525_v8 = vsel %vm927_vm6, %v3514_v41, %v3524_v0 }
 0x7a0   : > { %3429 = vrot.lane.b32.xlu0 %v3414_v54, %s6598_s15  ;;  %v3494_v54 = vmul.f32 %v8018_v14, %v3469_v11 }
 0x7a1   : > { %3431 = vrot.lane.b32.xlu1 %v3416_v55, %s6598_s15  ;;  %v3520_v55 = vrot.slane %v3493_v1, 6  ;;  %v3526_v1 = vrot.slane %v3496_v61, 6 }
 0x7a3   : > { %v3521_v11 = vsel %vm927_vm6, %v3519_v2, %v3520_v55  ;;  %v3527_v9 = vsel %vm927_vm6, %v3517_v42, %v3526_v1 }
 0x7a4   : > { %3433 = vrot.lane.b32.xlu0 %v3418_v15, %s6598_s15  ;;  %v3522_v15 = vrot.slane %v3494_v54, 6 }
 0x7a5   : > { %3435 = vrot.lane.b32.xlu1 %v3420_v58, %s6598_s15  ;;  %v8055_v46 = vpop.permute.xlu0 %2789  ;;  %v3518_v58 = vsel %vm927_vm6, %v3516_v35, %v3517_v42  ;;  %v3528_v35 = vrot.slane %v3497_v39, 6 }
 0x7a6   : > { %12002 = vst [vmem:[#allocation154_spill] sm:$0xff] %v8055_v46  ;;  %v3523_v49 = vsel %vm927_vm6, %v3511_v33, %v3522_v15 }
 0x7a7   : > { %v8061_v36 = vpop.permute.xlu1 %2791  ;;  %v3529_v50 = vsel %vm927_vm6, %v3520_v55, %v3528_v35 }
 0x7a8   : > { %12003 = vst [vmem:[#allocation155_spill] sm:$0xff] %v8061_v36  ;;  %3530 = vrot.lane.b32.xlu0 %v3512_v59, %s6598_s15 }
 0x7a9   : > { %3532 = vrot.lane.b32.xlu1 %v3515_v56, %s6598_s15  ;;  %v3576_v56 = vld [vmem:[#allocation6 + $0x4] ss:$8 sm:$0xf] }
 0x7aa   : > { %v8067_v62 = vpop.permute.xlu0 %2793  ;;  %v3581_v41 = vrot.slane %v3576_v56, %v6758_v4  ;;  %v3589_v42 = vrot.slane %v3576_v56, %v6756_v3  ;;  %v3593_v55 = vrot.slane %v3576_v56, %v6760_v5 }
 0x7ab   : > { %12004 = vst [vmem:[#allocation156_spill] sm:$0xff] %v8067_v62  ;;  %v8071_v51 = vpop.permute.xlu1 %2795 }
 0x7ac   : > { %12005 = vst [vmem:[#allocation157_spill] sm:$0xff] %v8071_v51  ;;  %3534 = vrot.lane.b32.xlu0 %v3518_v58, %s6598_s15  ;;  %v3585_v58 = vrot.slane %v3576_v56, %v6762_v6 }
 0x7ad   : > { %3536 = vrot.lane.b32.xlu1 %v3521_v11, %s6598_s15  ;;  %v3631_v11 = vld [vmem:[#allocation6 + $0x23] ss:$8 sm:$0xf] }
 0x7ae   : > { %v8076_v59 = vpop.permute.xlu0 %2797  ;;  %v3640_v1 = vrot.slane %v3631_v11, %v6762_v6  ;;  %v3648_v56 = vrot.slane %v3631_v11, %v6760_v5 }
 0x7af   : > { %12006 = vst [vmem:[#allocation158_spill] sm:$0xff] %v8076_v59  ;;  %v8079_v54 = vpop.permute.xlu1 %2799 }
 0x7b0   : > { %12007 = vst [vmem:[#allocation159_spill] sm:$0xff] %v8079_v54  ;;  %3538 = vrot.lane.b32.xlu0 %v3523_v49, %s6598_s15  ;;  %v3636_v49 = vrot.slane %v3631_v11, %v6758_v4 }
 0x7b1   : > { %3540 = vrot.lane.b32.xlu1 %v3525_v8, %s6598_s15 }
 0x7b2   : > { %v8084_v2 = vpop.permute.xlu0 %2801 }
 0x7b3   : > { %12008 = vst [vmem:[#allocation160_spill] sm:$0xff] %v8084_v2  ;;  %v8087_v33 = vpop.permute.xlu1 %2803 }
 0x7b4   : > { %12009 = vst [vmem:[#allocation161_spill] sm:$0xff] %v8087_v33  ;;  %3542 = vrot.lane.b32.xlu0 %v3527_v9, %s6598_s15  ;;  %v3644_v9 = vrot.slane %v3631_v11, %v6756_v3 }
 0x7b5   : > { %3544 = vrot.lane.b32.xlu1 %v3529_v50, %s6598_s15  ;;  %v3741_v50 = vld [vmem:[#allocation6 + $0x42] ss:$8 sm:$0xf] }
 0x7b6   : > { %v8093_v15 = vpop.permute.xlu0 %2805  ;;  %v3754_v11 = vrot.slane %v3741_v50, %v6756_v3 }
 0x7b7   : > { %12010 = vst [vmem:[#allocation162_spill] sm:$0xff] %v8093_v15  ;;  %v8095_v61 = vpop.permute.xlu1 %2807 }
 0x7b8   : > { %12011 = vst [vmem:[#allocation163_spill] sm:$0xff] %v8095_v61  ;;  %3594 = vrot.lane.b32.xlu0 %v3581_v41, %s6598_s15 }
 0x7b9   : > { %3596 = vrot.lane.b32.xlu1 %v3585_v58, %s6598_s15 }
 0x7ba   : > { %v8101_v0 = vpop.permute.xlu0 %2876 }
 0x7bb   : > { %12012 = vst [vmem:[#allocation164_spill] sm:$0xff] %v8101_v0  ;;  %v8103_v39 = vpop.permute.xlu1 %2878 }
 0x7bc   : > { %12013 = vst [vmem:[#allocation165_spill] sm:$0xff] %v8103_v39  ;;  %3598 = vrot.lane.b32.xlu0 %v3589_v42, %s6598_s15  ;;  %v3746_v42 = vrot.slane %v3741_v50, %v6758_v4 }
 0x7bd   : > { %3600 = vrot.lane.b32.xlu1 %v3593_v55, %s6598_s15  ;;  %v3750_v55 = vrot.slane %v3741_v50, %v6762_v6 }
 0x7be   : > { %v8109_v8 = vpop.permute.xlu0 %2880 }
 0x7bf   : > { %12014 = vst [vmem:[#allocation166_spill] sm:$0xff] %v8109_v8  ;;  %v8111_v35 = vpop.permute.xlu1 %2882 }
 0x7c0   : > { %12015 = vst [vmem:[#allocation167_spill] sm:$0xff] %v8111_v35  ;;  %3649 = vrot.lane.b32.xlu0 %v3636_v49, %s6598_s15 }
 0x7c1   : > { %3651 = vrot.lane.b32.xlu1 %v3640_v1, %s6598_s15  ;;  %v3758_v1 = vrot.slane %v3741_v50, %v6760_v5 }
 0x7c2   : > { %v8117_v41 = vpop.permute.xlu0 %2884 }
 0x7c3   : > { %12016 = vst [vmem:[#allocation168_spill] sm:$0xff] %v8117_v41  ;;  %v8119_v58 = vpop.permute.xlu1 %2886  ;;  %v3851_v41 = vld [vmem:[#allocation6 + $0x61] ss:$8 sm:$0xf] }
 0x7c4   : > { %12017 = vst [vmem:[#allocation169_spill] sm:$0xff] %v8119_v58  ;;  %3653 = vrot.lane.b32.xlu0 %v3644_v9, %s6598_s15  ;;  %v3864_v50 = vrot.slane %v3851_v41, %v6756_v3 }
 0x7c5   : > { %3655 = vrot.lane.b32.xlu1 %v3648_v56, %s6598_s15  ;;  %v3856_v56 = vrot.slane %v3851_v41, %v6758_v4 }
 0x7c6   : > { %v8125_v49 = vpop.permute.xlu0 %2888 }
 0x7c7   : > { %12018 = vst [vmem:[#allocation170_spill] sm:$0xff] %v8125_v49  ;;  %v8127_v35 = vpop.permute.xlu1 %2890 }
 0x7c8   : > { %12019 = vst [vmem:[#allocation171_spill] sm:$0xff] %v8127_v35  ;;  %3759 = vrot.lane.b32.xlu0 %v3746_v42, %s6598_s15  ;;  %v3860_v35 = vrot.slane %v3851_v41, %v6762_v6 }
 0x7c9   : > { %3761 = vrot.lane.b32.xlu1 %v3750_v55, %s6598_s15  ;;  %v3868_v55 = vrot.slane %v3851_v41, %v6760_v5 }
 0x7ca   : > { %v8133_v9 = vpop.permute.xlu0 %2985 }
 0x7cb   : > { %12020 = vst [vmem:[#allocation172_spill] sm:$0xff] %v8133_v9  ;;  %v8135_v58 = vpop.permute.xlu1 %2987  ;;  %v3961_v9 = vld [vmem:[#allocation6 + $0x80] ss:$8 sm:$0xf] }
 0x7cc   : > { %12021 = vst [vmem:[#allocation173_spill] sm:$0xff] %v8135_v58  ;;  %3763 = vrot.lane.b32.xlu0 %v3754_v11, %s6598_s15  ;;  %v3978_v41 = vrot.slane %v3961_v9, %v6760_v5 }
 0x7cd   : > { %3765 = vrot.lane.b32.xlu1 %v3758_v1, %s6598_s15  ;;  %v3966_v1 = vrot.slane %v3961_v9, %v6758_v4 }
 0x7ce   : > { %v8141_v42 = vpop.permute.xlu0 %2989 }
 0x7cf   : > { %12022 = vst [vmem:[#allocation174_spill] sm:$0xff] %v8141_v42  ;;  %v8143_v49 = vpop.permute.xlu1 %2991 }
 0x7d0   : > { %12023 = vst [vmem:[#allocation175_spill] sm:$0xff] %v8143_v49  ;;  %3869 = vrot.lane.b32.xlu0 %v3856_v56, %s6598_s15  ;;  %v3970_v49 = vrot.slane %v3961_v9, %v6762_v6 }
 0x7d1   : > { %3871 = vrot.lane.b32.xlu1 %v3860_v35, %s6598_s15  ;;  %v3974_v35 = vrot.slane %v3961_v9, %v6756_v3 }
 0x7d2   : > { %v8149_v11 = vpop.permute.xlu0 %2993 }
 0x7d3   : > { %12024 = vst [vmem:[#allocation176_spill] sm:$0xff] %v8149_v11  ;;  %v8151_v58 = vpop.permute.xlu1 %2995  ;;  %v4071_v11 = vld [vmem:[#allocation6 + $0x87] ss:$8 sm:$0xf] }
 0x7d4   : > { %12025 = vst [vmem:[#allocation177_spill] sm:$0xff] %v8151_v58  ;;  %3873 = vrot.lane.b32.xlu0 %v3864_v50, %s6598_s15  ;;  %v4088_v9 = vrot.slane %v4071_v11, %v6760_v5 }
 0x7d5   : > { %3875 = vrot.lane.b32.xlu1 %v3868_v55, %s6598_s15  ;;  %v4076_v55 = vrot.slane %v4071_v11, %v6758_v4 }
 0x7d6   : > { %v8157_v56 = vpop.permute.xlu0 %2997 }
 0x7d7   : > { %12026 = vst [vmem:[#allocation178_spill] sm:$0xff] %v8157_v56  ;;  %v8159_v42 = vpop.permute.xlu1 %2999 }
 0x7d8   : > { %12027 = vst [vmem:[#allocation179_spill] sm:$0xff] %v8159_v42  ;;  %3979 = vrot.lane.b32.xlu0 %v3966_v1, %s6598_s15  ;;  %v4080_v42 = vrot.slane %v4071_v11, %v6762_v6 }
 0x7d9   : > { %3981 = vrot.lane.b32.xlu1 %v3970_v49, %s6598_s15  ;;  %v4084_v49 = vrot.slane %v4071_v11, %v6756_v3 }
 0x7da   : > { %v8165_v50 = vpop.permute.xlu0 %3094 }
 0x7db   : > { %12028 = vst [vmem:[#allocation180_spill] sm:$0xff] %v8165_v50  ;;  %v8167_v58 = vpop.permute.xlu1 %3096  ;;  %v4181_v50 = vld [vmem:[#allocation6 + $0xa6] ss:$8 sm:$0xf] }
 0x7dc   : > { %12029 = vst [vmem:[#allocation181_spill] sm:$0xff] %v8167_v58  ;;  %3983 = vrot.lane.b32.xlu0 %v3974_v35, %s6598_s15  ;;  %v4198_v11 = vrot.slane %v4181_v50, %v6760_v5 }
 0x7dd   : > { %3985 = vrot.lane.b32.xlu1 %v3978_v41, %s6598_s15  ;;  %v4186_v41 = vrot.slane %v4181_v50, %v6758_v4 }
 0x7de   : > { %v8173_v1 = vpop.permute.xlu0 %3098 }
 0x7df   : > { %12030 = vst [vmem:[#allocation182_spill] sm:$0xff] %v8173_v1  ;;  %v8175_v56 = vpop.permute.xlu1 %3100 }
 0x7e0   : > { %12031 = vst [vmem:[#allocation183_spill] sm:$0xff] %v8175_v56  ;;  %4089 = vrot.lane.b32.xlu0 %v4076_v55, %s6598_s15  ;;  %v4190_v56 = vrot.slane %v4181_v50, %v6762_v6 }
 0x7e1   : > { %4091 = vrot.lane.b32.xlu1 %v4080_v42, %s6598_s15  ;;  %v4194_v42 = vrot.slane %v4181_v50, %v6756_v3 }
 0x7e2   : > { %v8181_v35 = vpop.permute.xlu0 %3102 }
 0x7e3   : > { %12032 = vst [vmem:[#allocation184_spill] sm:$0xff] %v8181_v35  ;;  %v8183_v58 = vpop.permute.xlu1 %3104  ;;  %v4291_v35 = vld [vmem:[#allocation6 + $0x5] ss:$8 sm:$0xf] }
 0x7e4   : > { %12033 = vst [vmem:[#allocation185_spill] sm:$0xff] %v8183_v58  ;;  %4093 = vrot.lane.b32.xlu0 %v4084_v49, %s6598_s15  ;;  %v4308_v50 = vrot.slane %v4291_v35, %v6760_v5 }
 0x7e5   : > { %4095 = vrot.lane.b32.xlu1 %v4088_v9, %s6598_s15  ;;  %v4296_v9 = vrot.slane %v4291_v35, %v6758_v4 }
 0x7e6   : > { %v8189_v55 = vpop.permute.xlu0 %3106 }
 0x7e7   : > { %12034 = vst [vmem:[#allocation186_spill] sm:$0xff] %v8189_v55  ;;  %v8191_v1 = vpop.permute.xlu1 %3108 }
 0x7e8   : > { %12035 = vst [vmem:[#allocation187_spill] sm:$0xff] %v8191_v1  ;;  %4199 = vrot.lane.b32.xlu0 %v4186_v41, %s6598_s15  ;;  %v4300_v1 = vrot.slane %v4291_v35, %v6762_v6 }
 0x7e9   : > { %4201 = vrot.lane.b32.xlu1 %v4190_v56, %s6598_s15  ;;  %v4304_v56 = vrot.slane %v4291_v35, %v6756_v3 }
 0x7ea   : > { %v8197_v49 = vpop.permute.xlu0 %3203 }
 0x7eb   : > { %12036 = vst [vmem:[#allocation188_spill] sm:$0xff] %v8197_v49  ;;  %v8199_v58 = vpop.permute.xlu1 %3205 }
 0x7ec   : > { %12037 = vst [vmem:[#allocation189_spill] sm:$0xff] %v8199_v58  ;;  %4203 = vrot.lane.b32.xlu0 %v4194_v42, %s6598_s15 }
 0x7ed   : > { %4205 = vrot.lane.b32.xlu1 %v4198_v11, %s6598_s15 }
 0x7ee   : > { %v8205_v41 = vpop.permute.xlu0 %3207 }
 0x7ef   : > { %12038 = vst [vmem:[#allocation190_spill] sm:$0xff] %v8205_v41  ;;  %v8207_v55 = vpop.permute.xlu1 %3209 }
 0x7f0   : > { %12039 = vst [vmem:[#allocation191_spill] sm:$0xff] %v8207_v55  ;;  %4309 = vrot.lane.b32.xlu0 %v4296_v9, %s6599_s17 }
 0x7f1   : > { %4311 = vrot.lane.b32.xlu1 %v4300_v1, %s6599_s17 }
 0x7f2   : > { %v8213_v49 = vpop.permute.xlu0 %3211 }
 0x7f3   : > { %12040 = vst [vmem:[#allocation192_spill] sm:$0xff] %v8213_v49  ;;  %v8215_v42 = vpop.permute.xlu1 %3213 }
 0x7f4   : > { %12041 = vst [vmem:[#allocation193_spill] sm:$0xff] %v8215_v42  ;;  %4313 = vrot.lane.b32.xlu0 %v4304_v56, %s6599_s17 }
 0x7f5   : > { %4315 = vrot.lane.b32.xlu1 %v4308_v50, %s6599_s17 }
 0x7f6   : > { %v8219_v11 = vpop.permute.xlu0 %3215 }
 0x7f7   : > { %12042 = vst [vmem:[#allocation194_spill] sm:$0xff] %v8219_v11  ;;  %v8221_v41 = vpop.permute.xlu1 %3217 }
 0x7f8   : > { %12043 = vst [vmem:[#allocation195_spill] sm:$0xff] %v8221_v41 }
 0x7fa   : > { %v8223_v55 = vpop.permute.xlu0 %3312 }
 0x7fb   : > { %12044 = vst [vmem:[#allocation196_spill] sm:$0xff] %v8223_v55  ;;  %v8225_v9 = vpop.permute.xlu1 %3314 }
 0x7fc   : > { %12045 = vst [vmem:[#allocation197_spill] sm:$0xff] %v8225_v9 }
 0x7fe   : > { %v8227_v58 = vpop.permute.xlu0 %3316 }
 0x7ff   : > { %12046 = vst [vmem:[#allocation198_spill] sm:$0xff] %v8227_v58  ;;  %v8229_v1 = vpop.permute.xlu1 %3318 }
 0x800   : > { %12047 = vst [vmem:[#allocation199_spill] sm:$0xff] %v8229_v1 }
 0x802   : > { %v8231_v35 = vpop.permute.xlu0 %3320 }
 0x803   : > { %12048 = vst [vmem:[#allocation200_spill] sm:$0xff] %v8231_v35  ;;  %v8233_v49 = vpop.permute.xlu1 %3322 }
 0x804   : > { %12049 = vst [vmem:[#allocation201_spill] sm:$0xff] %v8233_v49 }
 0x806   : > { %v8235_v42 = vpop.permute.xlu0 %3324 }
 0x807   : > { %12050 = vst [vmem:[#allocation202_spill] sm:$0xff] %v8235_v42  ;;  %v8237_v56 = vpop.permute.xlu1 %3326 }
 0x808   : > { %12051 = vst [vmem:[#allocation203_spill] sm:$0xff] %v8237_v56 }
 0x80a   : > { %v8239_v50 = vpop.permute.xlu0 %3421 }
 0x80b   : > { %12052 = vst [vmem:[#allocation204_spill] sm:$0xff] %v8239_v50  ;;  %v8241_v11 = vpop.permute.xlu1 %3423 }
 0x80c   : > { %12053 = vst [vmem:[#allocation205_spill] sm:$0xff] %v8241_v11 }
 0x80e   : > { %v8243_v41 = vpop.permute.xlu0 %3425 }
 0x80f   : > { %12054 = vst [vmem:[#allocation206_spill] sm:$0xff] %v8243_v41  ;;  %v8245_v55 = vpop.permute.xlu1 %3427 }
 0x810   : > { %12055 = vst [vmem:[#allocation207_spill] sm:$0xff] %v8245_v55 }
 0x812   : > { %v8247_v9 = vpop.permute.xlu0 %3429 }
 0x813   : > { %12056 = vst [vmem:[#allocation208_spill] sm:$0xff] %v8247_v9  ;;  %v8249_v58 = vpop.permute.xlu1 %3431 }
 0x814   : > { %12057 = vst [vmem:[#allocation209_spill] sm:$0xff] %v8249_v58 }
 0x816   : > { %v8251_v1 = vpop.permute.xlu0 %3433 }
 0x817   : > { %12058 = vst [vmem:[#allocation210_spill] sm:$0xff] %v8251_v1  ;;  %v8253_v35 = vpop.permute.xlu1 %3435 }
 0x818   : > { %12059 = vst [vmem:[#allocation211_spill] sm:$0xff] %v8253_v35 }
 0x81a   : > { %v8255_v49 = vpop.permute.xlu0 %3530 }
 0x81b   : > { %12060 = vst [vmem:[#allocation212_spill] sm:$0xff] %v8255_v49  ;;  %v8257_v42 = vpop.permute.xlu1 %3532 }
 0x81c   : > { %12061 = vst [vmem:[#allocation213_spill] sm:$0xff] %v8257_v42 }
 0x81e   : > { %v8259_v56 = vpop.permute.xlu0 %3534 }
 0x81f   : > { %12062 = vst [vmem:[#allocation214_spill] sm:$0xff] %v8259_v56  ;;  %v8261_v50 = vpop.permute.xlu1 %3536 }
 0x820   : > { %12063 = vst [vmem:[#allocation215_spill] sm:$0xff] %v8261_v50 }
 0x822   : > { %v8263_v11 = vpop.permute.xlu0 %3538 }
 0x823   : > { %12064 = vst [vmem:[#allocation216_spill] sm:$0xff] %v8263_v11  ;;  %v8265_v41 = vpop.permute.xlu1 %3540 }
 0x824   : > { %12065 = vst [vmem:[#allocation217_spill] sm:$0xff] %v8265_v41 }
 0x826   : > { %v8267_v55 = vpop.permute.xlu0 %3542 }
 0x827   : > { %12066 = vst [vmem:[#allocation218_spill] sm:$0xff] %v8267_v55  ;;  %v8269_v9 = vpop.permute.xlu1 %3544 }
 0x828   : > { %12067 = vst [vmem:[#allocation219_spill] sm:$0xff] %v8269_v9 }
 0x82a   : > { %v8271_v58 = vpop.permute.xlu0 %3594 }
 0x82b   : > { %12068 = vst [vmem:[#allocation220_spill] sm:$0xff] %v8271_v58  ;;  %v8273_v1 = vpop.permute.xlu1 %3596 }
 0x82c   : > { %12069 = vst [vmem:[#allocation221_spill] sm:$0xff] %v8273_v1 }
 0x82e   : > { %v8275_v35 = vpop.permute.xlu0 %3598 }
 0x82f   : > { %12070 = vst [vmem:[#allocation222_spill] sm:$0xff] %v8275_v35  ;;  %v8277_v49 = vpop.permute.xlu1 %3600 }
 0x830   : > { %12071 = vst [vmem:[#allocation223_spill] sm:$0xff] %v8277_v49 }
 0x832   : > { %v8279_v42 = vpop.permute.xlu0 %3649 }
 0x833   : > { %12072 = vst [vmem:[#allocation224_spill] sm:$0xff] %v8279_v42  ;;  %v8281_v56 = vpop.permute.xlu1 %3651 }
 0x834   : > { %12073 = vst [vmem:[#allocation225_spill] sm:$0xff] %v8281_v56 }
 0x836   : > { %v8283_v50 = vpop.permute.xlu0 %3653 }
 0x837   : > { %12074 = vst [vmem:[#allocation226_spill] sm:$0xff] %v8283_v50  ;;  %v8285_v11 = vpop.permute.xlu1 %3655 }
 0x838   : > { %12075 = vst [vmem:[#allocation227_spill] sm:$0xff] %v8285_v11 }
 0x83a   : > { %v8287_v41 = vpop.permute.xlu0 %3759 }
 0x83b   : > { %12076 = vst [vmem:[#allocation228_spill] sm:$0xff] %v8287_v41  ;;  %v8289_v55 = vpop.permute.xlu1 %3761 }
 0x83c   : > { %12077 = vst [vmem:[#allocation229_spill] sm:$0xff] %v8289_v55 }
 0x83e   : > { %v8291_v9 = vpop.permute.xlu0 %3763 }
 0x83f   : > { %12078 = vst [vmem:[#allocation230_spill] sm:$0xff] %v8291_v9  ;;  %v8293_v58 = vpop.permute.xlu1 %3765 }
 0x840   : > { %12079 = vst [vmem:[#allocation231_spill] sm:$0xff] %v8293_v58 }
 0x842   : > { %v8295_v1 = vpop.permute.xlu0 %3869 }
 0x843   : > { %12080 = vst [vmem:[#allocation232_spill] sm:$0xff] %v8295_v1  ;;  %v8297_v35 = vpop.permute.xlu1 %3871 }
 0x844   : > { %12081 = vst [vmem:[#allocation233_spill] sm:$0xff] %v8297_v35 }
 0x846   : > { %v8299_v49 = vpop.permute.xlu0 %3873 }
 0x847   : > { %12082 = vst [vmem:[#allocation234_spill] sm:$0xff] %v8299_v49  ;;  %v8301_v42 = vpop.permute.xlu1 %3875 }
 0x848   : > { %12083 = vst [vmem:[#allocation235_spill] sm:$0xff] %v8301_v42 }
 0x84a   : > { %v8303_v56 = vpop.permute.xlu0 %3979 }
 0x84b   : > { %12084 = vst [vmem:[#allocation236_spill] sm:$0xff] %v8303_v56  ;;  %v8305_v50 = vpop.permute.xlu1 %3981 }
 0x84c   : > { %12085 = vst [vmem:[#allocation237_spill] sm:$0xff] %v8305_v50 }
 0x84e   : > { %v8307_v11 = vpop.permute.xlu0 %3983 }
 0x84f   : > { %12086 = vst [vmem:[#allocation238_spill] sm:$0xff] %v8307_v11  ;;  %v8309_v41 = vpop.permute.xlu1 %3985 }
 0x850   : > { %12087 = vst [vmem:[#allocation239_spill] sm:$0xff] %v8309_v41 }
 0x852   : > { %v8311_v55 = vpop.permute.xlu0 %4089 }
 0x853   : > { %12088 = vst [vmem:[#allocation240_spill] sm:$0xff] %v8311_v55  ;;  %v8313_v9 = vpop.permute.xlu1 %4091 }
 0x854   : > { %12089 = vst [vmem:[#allocation241_spill] sm:$0xff] %v8313_v9 }
 0x856   : > { %v8317_v1 = vpop.permute.xlu0 %4093 }
 0x857   : > { %v8315_v58 = vpop.permute.xlu1 %4095  ;;  %12091 = vst [vmem:[#allocation243_spill] sm:$0xff] %v8317_v1  ;;  %v8337_v1 = vld [vmem:[#allocation2 + $0x8] sm:$0xff] }
 0x858   : > { %12090 = vst [vmem:[#allocation242_spill] sm:$0xff] %v8315_v58 }
 0x85a   : > { %v8321_v49 = vpop.permute.xlu0 %4199 }
 0x85b   : > { %v8319_v35 = vpop.permute.xlu1 %4201  ;;  %12093 = vst [vmem:[#allocation245_spill] sm:$0xff] %v8321_v49 }
 0x85c   : > { %12092 = vst [vmem:[#allocation244_spill] sm:$0xff] %v8319_v35 }
 0x85e   : > { %v8325_v56 = vpop.permute.xlu0 %4203 }
 0x85f   : > { %v8323_v42 = vpop.permute.xlu1 %4205  ;;  %12095 = vst [vmem:[#allocation247_spill] sm:$0xff] %v8325_v56 }
 0x860   : > { %12094 = vst [vmem:[#allocation246_spill] sm:$0xff] %v8323_v42 }
 0x862   : > { %v4310_v11 = vpop.permute.xlu0 %4309 }
 0x863   : > { %v4312_v50 = vpop.permute.xlu1 %4311  ;;  %v4325_v9 = vmul.f32 %v7926_v44, %v4310_v11 }
 0x864   : > { %v4317_v41 = vsel %vm1000_vm1, %v4310_v11, %v4312_v50 }
 0x865   : > { %v4326_v58 = vmul.f32 %v7932_v13, %v4317_v41  ;;  %4345 = vrot.lane.b32.xlu0 %v4325_v9, %s6600_s25  ;;  %v4330_v9 = vmul.f32 %v7852_v63, %v4310_v11 }
 0x866   : > { %v4314_v55 = vpop.permute.xlu0 %4313 }
 0x867   : > { %v4316_v8 = vpop.permute.xlu1 %4315  ;;  %v4318_v35 = vsel %vm1000_vm1, %v4312_v50, %v4314_v55  ;;  %4347 = vrot.lane.b32.xlu1 %v4326_v58, %s6600_s25  ;;  %v4331_v58 = vmul.f32 %v7856_v47, %v4317_v41 }
 0x868   : > { %v4319_v49 = vsel %vm1000_vm1, %v4314_v55, %v4316_v8  ;;  %v4327_v56 = vmul.f32 %v7941_v52, %v4318_v35  ;;  %v4329_v0 = vmul.f32 %v4316_v8, %v8337_v1  ;;  %v4332_v55 = vmul.f32 %v7869_v12, %v4318_v35 }
 0x869   : > { %v4328_v42 = vmul.f32 %v7945_v53, %v4319_v49  ;;  %v4333_v50 = vmul.f32 %v7866_v57, %v4319_v49 }
 0x86a   : > { %4349 = vrot.lane.b32.xlu0 %v4327_v56, %s6600_s25  ;;  %v4394_v56 = vld [vmem:[#allocation6 + $0x24] ss:$8 sm:$0xf] }
 0x86b   : > { %4351 = vrot.lane.b32.xlu1 %v4328_v42, %s6600_s25  ;;  %v8349_v42 = vld [vmem:[#allocation2 + $0x10] sm:$0xff]  ;;  %v4403_v41 = vrot.slane %v4394_v56, %v6762_v6  ;;  %v4407_v11 = vrot.slane %v4394_v56, %v6756_v3  ;;  %v4411_v49 = vrot.slane %v4394_v56, %v6760_v5 }
 0x86c   : > { %v4334_v39 = vmul.f32 %v8349_v42, %v4316_v8 }
 0x86e   : > { %4353 = vrot.lane.b32.xlu0 %v4329_v0, %s6600_s25  ;;  %v4399_v0 = vrot.slane %v4394_v56, %v6758_v4 }
 0x86f   : > { %4355 = vrot.lane.b32.xlu1 %v4330_v9, %s6600_s25 }
 0x872   : > { %4357 = vrot.lane.b32.xlu0 %v4331_v58, %s6600_s25 }
 0x873   : > { %4359 = vrot.lane.b32.xlu1 %v4332_v55, %s6600_s25 }
 0x876   : > { %4361 = vrot.lane.b32.xlu0 %v4333_v50, %s6600_s25 }
 0x877   : > { %4363 = vrot.lane.b32.xlu1 %v4334_v39, %s6600_s25 }
 0x87a   : > { %4412 = vrot.lane.b32.xlu0 %v4399_v0, %s6599_s17 }
 0x87b   : > { %4414 = vrot.lane.b32.xlu1 %v4403_v41, %s6599_s17 }
 0x87e   : > { %4416 = vrot.lane.b32.xlu0 %v4407_v11, %s6599_s17 }
 0x87f   : > { %4418 = vrot.lane.b32.xlu1 %v4411_v49, %s6599_s17 }
 0x8d7   : > { %v8362_v8 = vpop.permute.xlu0 %4345 }
 0x8d8   : > { %12096 = vst [vmem:[#allocation248_spill] sm:$0xff] %v8362_v8 }
 0x8d9   : > { %v8364_v35 = vpop.permute.xlu1 %4347 }
 0x8da   : > { %12097 = vst [vmem:[#allocation249_spill] sm:$0xff] %v8364_v35 }
 0x8dc   : > { %v8366_v9 = vpop.permute.xlu0 %4349 }
 0x8dd   : > { %12098 = vst [vmem:[#allocation250_spill] sm:$0xff] %v8366_v9  ;;  %v8368_v39 = vpop.permute.xlu1 %4351 }
 0x8de   : > { %12099 = vst [vmem:[#allocation251_spill] sm:$0xff] %v8368_v39 }
 0x8e0   : > { %v8370_v58 = vpop.permute.xlu0 %4353 }
 0x8e1   : > { %12100 = vst [vmem:[#allocation252_spill] sm:$0xff] %v8370_v58  ;;  %v8372_v55 = vpop.permute.xlu1 %4355 }
 0x8e2   : > { %12101 = vst [vmem:[#allocation253_spill] sm:$0xff] %v8372_v55 }
 0x8e4   : > { %v8374_v50 = vpop.permute.xlu0 %4357 }
 0x8e5   : > { %12102 = vst [vmem:[#allocation254_spill] sm:$0xff] %v8374_v50  ;;  %v8376_v0 = vpop.permute.xlu1 %4359 }
 0x8e6   : > { %12103 = vst [vmem:[#allocation255_spill] sm:$0xff] %v8376_v0 }
 0x8e8   : > { %v8378_v56 = vpop.permute.xlu0 %4361 }
 0x8e9   : > { %12104 = vst [vmem:[#allocation256_spill] sm:$0xff] %v8378_v56  ;;  %v8380_v41 = vpop.permute.xlu1 %4363 }
 0x8ea   : > { %12105 = vst [vmem:[#allocation257_spill] sm:$0xff] %v8380_v41 }
 0x8ec   : > { %v4413_v11 = vpop.permute.xlu0 %4412 }
 0x8ed   : > { %v4415_v49 = vpop.permute.xlu1 %4414  ;;  %v4428_v8 = vmul.f32 %v7926_v44, %v4413_v11  ;;  %v4433_v9 = vmul.f32 %v7852_v63, %v4413_v11 }
 0x8ee   : > { %v4420_v39 = vsel %vm1000_vm1, %v4413_v11, %v4415_v49 }
 0x8ef   : > { %v4458_v35 = vrot.slane %v4428_v8, 1  ;;  %v4459_v58 = vrot.slane %v4433_v9, 1  ;;  %v4429_v55 = vmul.f32 %v7932_v13, %v4420_v39  ;;  %v4434_v50 = vmul.f32 %v7856_v47, %v4420_v39 }
 0x8f0   : > { %v4417_v61 = vpop.permute.xlu0 %4416  ;;  %v4439_v51 = vmul.f32 %v8022_v7, %v4420_v39 }
 0x8f1   : > { %v4419_v0 = vpop.permute.xlu1 %4418  ;;  %v4421_v56 = vsel %vm1000_vm1, %v4415_v49, %v4417_v61  ;;  %v4460_v41 = vsel %vm373_vm2, %v4458_v35, %v4459_v58  ;;  %v4461_v15 = vrot.slane %v4429_v55, 1  ;;  %v4462_v33 = vrot.slane %v4434_v50, 1 }
 0x8f2   : > { %v4422_v54 = vsel %vm1000_vm1, %v4417_v61, %v4419_v0  ;;  %v4430_v63 = vmul.f32 %v7941_v52, %v4421_v56  ;;  %v4435_v2 = vmul.f32 %v7869_v12, %v4421_v56  ;;  %4483 = vrot.lane.b32.xlu0 %v4460_v41, %s6600_s25  ;;  %v4438_v49 = vmul.f32 %v8018_v14, %v4413_v11 }
 0x8f3   : > { %v4431_v8 = vmul.f32 %v7945_v53, %v4422_v54  ;;  %v4436_v47 = vmul.f32 %v7866_v57, %v4422_v54  ;;  %v4463_v9 = vsel %vm373_vm2, %v4461_v15, %v4462_v33  ;;  %v4432_v50 = vmul.f32 %v4419_v0, %v8337_v1 }
 0x8f4   : > { %v4464_v59 = vrot.slane %v4430_v63, 1  ;;  %v4465_v35 = vrot.slane %v4435_v2, 1  ;;  %4485 = vrot.lane.b32.xlu1 %v4463_v9, %s6600_s25  ;;  %v4437_v41 = vmul.f32 %v8349_v42, %v4419_v0  ;;  %v4440_v57 = vmul.f32 %v8027_v60, %v4421_v56 }
 0x8f5   : > { %v4467_v55 = vrot.slane %v4431_v8, 1  ;;  %v4468_v61 = vrot.slane %v4436_v47, 1  ;;  %v4473_v11 = vrot.slane %v4438_v49, 1  ;;  %v4470_v2 = vrot.slane %v4432_v50, 1  ;;  %v8406_v8 = vld [vmem:[#allocation2 + $0x28] sm:$0x3f] }
 0x8f6   : > { %v4466_v12 = vsel %vm373_vm2, %v4464_v59, %v4465_v35  ;;  %v4471_v63 = vrot.slane %v4437_v41, 1  ;;  %v4441_v47 = vmul.f32 %v7956_v48, %v4422_v54  ;;  %v4475_v9 = vrot.slane %v4439_v51, 1  ;;  %v4532_v51 = vld [vmem:[#allocation6 + $0x43] ss:$8 sm:$0xf] }
 0x8f7   : > { %v4469_v15 = vsel %vm373_vm2, %v4467_v55, %v4468_v61  ;;  %4487 = vrot.lane.b32.xlu0 %v4466_v12, %s6600_s25  ;;  %v4477_v62 = vrot.slane %v4440_v57, 1  ;;  %v4474_v39 = vsel %vm373_vm2, %v4459_v58, %v4473_v11  ;;  %v4442_v56 = vmul.f32 %v4419_v0, %v8406_v8 }
 0x8f8   : > { %4489 = vrot.lane.b32.xlu1 %v4469_v15, %s6600_s25  ;;  %v4472_v59 = vsel %vm373_vm2, %v4470_v2, %v4471_v63  ;;  %v4479_v49 = vrot.slane %v4441_v47, 1  ;;  %v4476_v55 = vsel %vm373_vm2, %v4462_v33, %v4475_v9  ;;  %v4537_v0 = vrot.slane %v4532_v51, %v6758_v4 }
 0x8f9   : > { %v4478_v50 = vsel %vm373_vm2, %v4465_v35, %v4477_v62  ;;  %v4481_v54 = vrot.slane %v4442_v56, 1  ;;  %v4541_v33 = vrot.slane %v4532_v51, %v6762_v6  ;;  %v4545_v62 = vrot.slane %v4532_v51, %v6756_v3 }
 0x8fa   : > { %v4480_v12 = vsel %vm373_vm2, %v4468_v61, %v4479_v49  ;;  %v4549_v35 = vrot.slane %v4532_v51, %v6760_v5 }
 0x8fb   : > { %4491 = vrot.lane.b32.xlu0 %v4472_v59, %s6600_s25  ;;  %v4482_v58 = vsel %vm373_vm2, %v4471_v63, %v4481_v54 }
 0x8fc   : > { %4493 = vrot.lane.b32.xlu1 %v4474_v39, %s6600_s25 }
 0x8ff   : > { %4495 = vrot.lane.b32.xlu0 %v4476_v55, %s6600_s25  ;;  %v8451_v55 = vld [vmem:[#allocation2 + $0x60] sm:$0xff] }
 0x900   : > { %4497 = vrot.lane.b32.xlu1 %v4478_v50, %s6600_s25 }
 0x903   : > { %4499 = vrot.lane.b32.xlu0 %v4480_v12, %s6600_s25 }
 0x904   : > { %4501 = vrot.lane.b32.xlu1 %v4482_v58, %s6600_s25 }
 0x907   : > { %4550 = vrot.lane.b32.xlu0 %v4537_v0, %s6599_s17  ;;  %v8456_v0 = vld [vmem:[#allocation2 + $0x18] sm:$0xff] }
 0x908   : > { %4552 = vrot.lane.b32.xlu1 %v4541_v33, %s6599_s17 }
 0x90b   : > { %4554 = vrot.lane.b32.xlu0 %v4545_v62, %s6599_s17 }
 0x90c   : > { %4556 = vrot.lane.b32.xlu1 %v4549_v35, %s6599_s17 }
 0x964   : > { %v8430_v61 = vpop.permute.xlu0 %4483 }
 0x965   : > { %12106 = vst [vmem:[#allocation258_spill] sm:$0xff] %v8430_v61 }
 0x966   : > { %v8432_v41 = vpop.permute.xlu1 %4485 }
 0x967   : > { %12107 = vst [vmem:[#allocation259_spill] sm:$0xff] %v8432_v41 }
 0x969   : > { %v8434_v57 = vpop.permute.xlu0 %4487 }
 0x96a   : > { %12108 = vst [vmem:[#allocation260_spill] sm:$0xff] %v8434_v57  ;;  %v8436_v15 = vpop.permute.xlu1 %4489 }
 0x96b   : > { %12109 = vst [vmem:[#allocation261_spill] sm:$0xff] %v8436_v15 }
 0x96d   : > { %v8438_v11 = vpop.permute.xlu0 %4491 }
 0x96e   : > { %12110 = vst [vmem:[#allocation262_spill] sm:$0xff] %v8438_v11  ;;  %v8440_v2 = vpop.permute.xlu1 %4493  ;;  %v8468_v11 = vld [vmem:[#allocation2 + $0x30] sm:$0xff] }
 0x96f   : > { %12111 = vst [vmem:[#allocation263_spill] sm:$0xff] %v8440_v2 }
 0x971   : > { %v8442_v63 = vpop.permute.xlu0 %4495 }
 0x972   : > { %12112 = vst [vmem:[#allocation264_spill] sm:$0xff] %v8442_v63  ;;  %v8444_v47 = vpop.permute.xlu1 %4497 }
 0x973   : > { %12113 = vst [vmem:[#allocation265_spill] sm:$0xff] %v8444_v47 }
 0x975   : > { %v8446_v59 = vpop.permute.xlu0 %4499 }
 0x976   : > { %12114 = vst [vmem:[#allocation266_spill] sm:$0xff] %v8446_v59  ;;  %v8448_v9 = vpop.permute.xlu1 %4501 }
 0x977   : > { %12115 = vst [vmem:[#allocation267_spill] sm:$0xff] %v8448_v9 }
 0x979   : > { %v4551_v39 = vpop.permute.xlu0 %4550 }
 0x97a   : > { %v4553_v56 = vpop.permute.xlu1 %4552  ;;  %v4566_v49 = vmul.f32 %v7926_v44, %v4551_v39  ;;  %v4571_v50 = vmul.f32 %v8451_v55, %v4551_v39 }
 0x97b   : > { %v4558_v54 = vsel %vm1000_vm1, %v4551_v39, %v4553_v56 }
 0x97c   : > { %v4596_v51 = vrot.slane %v4566_v49, 2  ;;  %v4597_v12 = vrot.slane %v4571_v50, 2  ;;  %v4567_v58 = vmul.f32 %v7932_v13, %v4558_v54  ;;  %v4572_v33 = vmul.f32 %v8456_v0, %v4558_v54  ;;  %v8463_v49 = vld [vmem:[#allocation2 + $0x58] sm:$0xff] }
 0x97d   : > { %v4555_v62 = vpop.permute.xlu0 %4554  ;;  %v4577_v61 = vmul.f32 %v8022_v7, %v4558_v54 }
 0x97e   : > { %v4557_v35 = vpop.permute.xlu1 %4556  ;;  %v4559_v9 = vsel %vm1000_vm1, %v4553_v56, %v4555_v62  ;;  %v4598_v44 = vsel %vm484_vm3, %v4596_v51, %v4597_v12  ;;  %v4599_v59 = vrot.slane %v4567_v58, 2  ;;  %v4600_v47 = vrot.slane %v4572_v33, 2 }
 0x97f   : > { %v4560_v2 = vsel %vm1000_vm1, %v4555_v62, %v4557_v35  ;;  %v4568_v63 = vmul.f32 %v7941_v52, %v4559_v9  ;;  %v4573_v13 = vmul.f32 %v8463_v49, %v4559_v9  ;;  %4621 = vrot.lane.b32.xlu0 %v4598_v44, %s6600_s25  ;;  %v4576_v58 = vmul.f32 %v8018_v14, %v4551_v39 }
 0x980   : > { %v4569_v50 = vmul.f32 %v7945_v53, %v4560_v2  ;;  %v4574_v56 = vmul.f32 %v8468_v11, %v4560_v2  ;;  %v4601_v51 = vsel %vm484_vm3, %v4599_v59, %v4600_v47  ;;  %v4570_v57 = vmul.f32 %v4557_v35, %v8337_v1 }
 0x981   : > { %v4602_v33 = vrot.slane %v4568_v63, 2  ;;  %v4603_v62 = vrot.slane %v4573_v13, 2  ;;  %4623 = vrot.lane.b32.xlu1 %v4601_v51, %s6600_s25  ;;  %v4575_v53 = vmul.f32 %v8349_v42, %v4557_v35  ;;  %v4578_v41 = vmul.f32 %v8027_v60, %v4559_v9 }
 0x982   : > { %v4605_v52 = vrot.slane %v4569_v50, 2  ;;  %v4606_v15 = vrot.slane %v4574_v56, 2  ;;  %v4611_v63 = vrot.slane %v4576_v58, 2  ;;  %v4608_v39 = vrot.slane %v4570_v57, 2 }
 0x983   : > { %v4604_v44 = vsel %vm484_vm3, %v4602_v33, %v4603_v62  ;;  %v4609_v13 = vrot.slane %v4575_v53, 2  ;;  %v4579_v50 = vmul.f32 %v7956_v48, %v4560_v2  ;;  %v4613_v51 = vrot.slane %v4577_v61, 2  ;;  %v4670_v61 = vld [vmem:[#allocation6 + $0x62] ss:$8 sm:$0xf] }
 0x984   : > { %v4607_v59 = vsel %vm484_vm3, %v4605_v52, %v4606_v15  ;;  %4625 = vrot.lane.b32.xlu0 %v4604_v44, %s6600_s25  ;;  %v4615_v33 = vrot.slane %v4578_v41, 2  ;;  %v4612_v46 = vsel %vm484_vm3, %v4597_v12, %v4611_v63  ;;  %v4580_v9 = vmul.f32 %v4557_v35, %v8406_v8 }
 0x985   : > { %4627 = vrot.lane.b32.xlu1 %v4607_v59, %s6600_s25  ;;  %v4610_v56 = vsel %vm484_vm3, %v4608_v39, %v4609_v13  ;;  %v4617_v54 = vrot.slane %v4579_v50, 2  ;;  %v4614_v57 = vsel %vm484_vm3, %v4600_v47, %v4613_v51  ;;  %v4675_v12 = vrot.slane %v4670_v61, %v6758_v4 }
 0x986   : > { %v4616_v58 = vsel %vm484_vm3, %v4603_v62, %v4615_v33  ;;  %v4619_v48 = vrot.slane %v4580_v9, 2  ;;  %v4683_v47 = vrot.slane %v4670_v61, %v6756_v3  ;;  %v4687_v35 = vrot.slane %v4670_v61, %v6760_v5  ;;  %v8524_v33 = vld [vmem:[#allocation2 + $0x68] sm:$0xff] }
 0x987   : > { %v4618_v41 = vsel %vm484_vm3, %v4606_v15, %v4617_v54 }
 0x988   : > { %4629 = vrot.lane.b32.xlu0 %v4610_v56, %s6600_s25  ;;  %v4620_v2 = vsel %vm484_vm3, %v4609_v13, %v4619_v48 }
 0x989   : > { %4631 = vrot.lane.b32.xlu1 %v4612_v46, %s6600_s25  ;;  %v4679_v46 = vrot.slane %v4670_v61, %v6762_v6  ;;  %v8529_v61 = vld [vmem:[#allocation2 + $0x40] sm:$0xff] }
 0x98c   : > { %4633 = vrot.lane.b32.xlu0 %v4614_v57, %s6600_s25 }
 0x98d   : > { %4635 = vrot.lane.b32.xlu1 %v4616_v58, %s6600_s25 }
 0x990   : > { %4637 = vrot.lane.b32.xlu0 %v4618_v41, %s6600_s25 }
 0x991   : > { %4639 = vrot.lane.b32.xlu1 %v4620_v2, %s6600_s25 }
 0x994   : > { %4688 = vrot.lane.b32.xlu0 %v4675_v12, %s6599_s17 }
 0x995   : > { %4690 = vrot.lane.b32.xlu1 %v4679_v46, %s6599_s17 }
 0x998   : > { %4692 = vrot.lane.b32.xlu0 %v4683_v47, %s6599_s17 }
 0x999   : > { %4694 = vrot.lane.b32.xlu1 %v4687_v35, %s6599_s17 }
 0x9f1   : > { %v8504_v15 = vpop.permute.xlu0 %4621 }
 0x9f2   : > { %12116 = vst [vmem:[#allocation268_spill] sm:$0xff] %v8504_v15 }
 0x9f3   : > { %v8506_v62 = vpop.permute.xlu1 %4623 }
 0x9f4   : > { %12117 = vst [vmem:[#allocation269_spill] sm:$0xff] %v8506_v62 }
 0x9f6   : > { %v8508_v52 = vpop.permute.xlu0 %4625 }
 0x9f7   : > { %12118 = vst [vmem:[#allocation270_spill] sm:$0xff] %v8508_v52  ;;  %v8510_v44 = vpop.permute.xlu1 %4627 }
 0x9f8   : > { %12119 = vst [vmem:[#allocation271_spill] sm:$0xff] %v8510_v44  ;;  %v8541_v44 = vld [vmem:[#allocation2 + $0x20] sm:$0xff] }
 0x9fa   : > { %v8512_v53 = vpop.permute.xlu0 %4629 }
 0x9fb   : > { %12120 = vst [vmem:[#allocation272_spill] sm:$0xff] %v8512_v53  ;;  %v8514_v59 = vpop.permute.xlu1 %4631 }
 0x9fc   : > { %12121 = vst [vmem:[#allocation273_spill] sm:$0xff] %v8514_v59 }
 0x9fe   : > { %v8516_v63 = vpop.permute.xlu0 %4633 }
 0x9ff   : > { %12122 = vst [vmem:[#allocation274_spill] sm:$0xff] %v8516_v63  ;;  %v8518_v39 = vpop.permute.xlu1 %4635 }
 0xa00   : > { %12123 = vst [vmem:[#allocation275_spill] sm:$0xff] %v8518_v39  ;;  %v8536_v39 = vld [vmem:[#allocation2 + $0x88] sm:$0xff] }
 0xa02   : > { %v8520_v13 = vpop.permute.xlu0 %4637 }
 0xa03   : > { %12124 = vst [vmem:[#allocation276_spill] sm:$0xff] %v8520_v13  ;;  %v8522_v50 = vpop.permute.xlu1 %4639 }
 0xa04   : > { %12125 = vst [vmem:[#allocation277_spill] sm:$0xff] %v8522_v50 }
 0xa06   : > { %v4689_v56 = vpop.permute.xlu0 %4688 }
 0xa07   : > { %v4691_v51 = vpop.permute.xlu1 %4690  ;;  %v4704_v9 = vmul.f32 %v8524_v33, %v4689_v56  ;;  %v4709_v54 = vmul.f32 %v8451_v55, %v4689_v56 }
 0xa08   : > { %v4696_v57 = vsel %vm1000_vm1, %v4689_v56, %v4691_v51 }
 0xa09   : > { %v4734_v58 = vrot.slane %v4704_v9, 3  ;;  %v4735_v48 = vrot.slane %v4709_v54, 3  ;;  %v4705_v41 = vmul.f32 %v8529_v61, %v4696_v57  ;;  %v4710_v2 = vmul.f32 %v8456_v0, %v4696_v57 }
 0xa0a   : > { %v4693_v12 = vpop.permute.xlu0 %4692  ;;  %v4715_v36 = vmul.f32 %v8022_v7, %v4696_v57 }
 0xa0b   : > { %v4695_v46 = vpop.permute.xlu1 %4694  ;;  %v4697_v47 = vsel %vm1000_vm1, %v4691_v51, %v4693_v12  ;;  %v4736_v35 = vsel %vm595_vm4, %v4734_v58, %v4735_v48  ;;  %v4737_v50 = vrot.slane %v4705_v41, 3  ;;  %v4738_v53 = vrot.slane %v4710_v2, 3 }
 0xa0c   : > { %v4698_v13 = vsel %vm1000_vm1, %v4693_v12, %v4695_v46  ;;  %v4706_v9 = vmul.f32 %v8536_v39, %v4697_v47  ;;  %v4711_v54 = vmul.f32 %v8463_v49, %v4697_v47  ;;  %4759 = vrot.lane.b32.xlu0 %v4736_v35, %s6600_s25  ;;  %v4714_v41 = vmul.f32 %v8018_v14, %v4689_v56 }
 0xa0d   : > { %v4707_v52 = vmul.f32 %v8541_v44, %v4698_v13  ;;  %v4712_v51 = vmul.f32 %v8468_v11, %v4698_v13  ;;  %v4739_v58 = vsel %vm595_vm4, %v4737_v50, %v4738_v53  ;;  %v4708_v15 = vmul.f32 %v4695_v46, %v8337_v1 }
 0xa0e   : > { %v4740_v2 = vrot.slane %v4706_v9, 3  ;;  %v4741_v12 = vrot.slane %v4711_v54, 3  ;;  %4761 = vrot.lane.b32.xlu1 %v4739_v58, %s6600_s25  ;;  %v4713_v62 = vmul.f32 %v8349_v42, %v4695_v46  ;;  %v4716_v45 = vmul.f32 %v8027_v60, %v4697_v47  ;;  %v8556_v9 = vld [vmem:[#allocation2 + $0x80] sm:$0x3f] }
 0xa0f   : > { %v4743_v59 = vrot.slane %v4707_v52, 3  ;;  %v4744_v63 = vrot.slane %v4712_v51, 3  ;;  %v4749_v14 = vrot.slane %v4714_v41, 3  ;;  %v4746_v56 = vrot.slane %v4708_v15, 3 }
 0xa10   : > { %v4742_v35 = vsel %vm595_vm4, %v4740_v2, %v4741_v12  ;;  %v4747_v52 = vrot.slane %v4713_v62, 3  ;;  %v4717_v54 = vmul.f32 %v8556_v9, %v4698_v13  ;;  %v4751_v58 = vrot.slane %v4715_v36, 3  ;;  %v4808_v36 = vld [vmem:[#allocation6 + $0x81] ss:$8 sm:$0xf] }
 0xa11   : > { %v4745_v50 = vsel %vm595_vm4, %v4743_v59, %v4744_v63  ;;  %4763 = vrot.lane.b32.xlu0 %v4742_v35, %s6600_s25  ;;  %v4753_v2 = vrot.slane %v4716_v45, 3  ;;  %v4750_v7 = vsel %vm595_vm4, %v4735_v48, %v4749_v14  ;;  %v4718_v60 = vmul.f32 %v4695_v46, %v8406_v8 }
 0xa12   : > { %4765 = vrot.lane.b32.xlu1 %v4745_v50, %s6600_s25  ;;  %v4748_v51 = vsel %vm595_vm4, %v4746_v56, %v4747_v52  ;;  %v4755_v15 = vrot.slane %v4717_v54, 3  ;;  %v4752_v59 = vsel %vm595_vm4, %v4738_v53, %v4751_v58  ;;  %v4813_v48 = vrot.slane %v4808_v36, %v6758_v4 }
 0xa13   : > { %v4754_v62 = vsel %vm595_vm4, %v4741_v12, %v4753_v2  ;;  %v4757_v13 = vrot.slane %v4718_v60, 3  ;;  %v4817_v53 = vrot.slane %v4808_v36, %v6762_v6  ;;  %v4821_v46 = vrot.slane %v4808_v36, %v6756_v3 }
 0xa14   : > { %v4756_v45 = vsel %vm595_vm4, %v4744_v63, %v4755_v15  ;;  %v4825_v47 = vrot.slane %v4808_v36, %v6760_v5 }
 0xa15   : > { %4767 = vrot.lane.b32.xlu0 %v4748_v51, %s6600_s25  ;;  %v4758_v57 = vsel %vm595_vm4, %v4747_v52, %v4757_v13 }
 0xa16   : > { %4769 = vrot.lane.b32.xlu1 %v4750_v7, %s6600_s25 }
 0xa19   : > { %4771 = vrot.lane.b32.xlu0 %v4752_v59, %s6600_s25 }
 0xa1a   : > { %4773 = vrot.lane.b32.xlu1 %v4754_v62, %s6600_s25 }
 0xa1d   : > { %4775 = vrot.lane.b32.xlu0 %v4756_v45, %s6600_s25 }
 0xa1e   : > { %4777 = vrot.lane.b32.xlu1 %v4758_v57, %s6600_s25 }
 0xa21   : > { %4826 = vrot.lane.b32.xlu0 %v4813_v48, %s6599_s17 }
 0xa22   : > { %4828 = vrot.lane.b32.xlu1 %v4817_v53, %s6599_s17 }
 0xa25   : > { %4830 = vrot.lane.b32.xlu0 %v4821_v46, %s6599_s17 }
 0xa26   : > { %4832 = vrot.lane.b32.xlu1 %v4825_v47, %s6599_s17 }
 0xa7e   : > { %v8580_v63 = vpop.permute.xlu0 %4759 }
 0xa7f   : > { %12126 = vst [vmem:[#allocation278_spill] sm:$0xff] %v8580_v63  ;;  %v8614_v63 = vld [vmem:[#allocation2 + $0x48] sm:$0x3f] }
 0xa80   : > { %v8582_v41 = vpop.permute.xlu1 %4761 }
 0xa81   : > { %12127 = vst [vmem:[#allocation279_spill] sm:$0xff] %v8582_v41 }
 0xa83   : > { %v8584_v12 = vpop.permute.xlu0 %4763 }
 0xa84   : > { %12128 = vst [vmem:[#allocation280_spill] sm:$0xff] %v8584_v12  ;;  %v8586_v35 = vpop.permute.xlu1 %4765 }
 0xa85   : > { %12129 = vst [vmem:[#allocation281_spill] sm:$0xff] %v8586_v35 }
 0xa87   : > { %v8588_v50 = vpop.permute.xlu0 %4767 }
 0xa88   : > { %12130 = vst [vmem:[#allocation282_spill] sm:$0xff] %v8588_v50  ;;  %v8590_v14 = vpop.permute.xlu1 %4769 }
 0xa89   : > { %12131 = vst [vmem:[#allocation283_spill] sm:$0xff] %v8590_v14  ;;  %v8624_v14 = vld [vmem:[#allocation2 + $0x70] sm:$0x3f] }
 0xa8b   : > { %v8592_v56 = vpop.permute.xlu0 %4771 }
 0xa8c   : > { %12132 = vst [vmem:[#allocation284_spill] sm:$0xff] %v8592_v56  ;;  %v8594_v52 = vpop.permute.xlu1 %4773 }
 0xa8d   : > { %12133 = vst [vmem:[#allocation285_spill] sm:$0xff] %v8594_v52  ;;  %v8621_v52 = vld [vmem:[#allocation2 + $0x50] sm:$0x3f] }
 0xa8f   : > { %v8596_v54 = vpop.permute.xlu0 %4775 }
 0xa90   : > { %12134 = vst [vmem:[#allocation286_spill] sm:$0xff] %v8596_v54  ;;  %v8598_v51 = vpop.permute.xlu1 %4777 }
 0xa91   : > { %12135 = vst [vmem:[#allocation287_spill] sm:$0xff] %v8598_v51 }
 0xa93   : > { %v4827_v58 = vpop.permute.xlu0 %4826 }
 0xa94   : > { %v4829_v2 = vpop.permute.xlu1 %4828  ;;  %v4842_v7 = vmul.f32 %v8524_v33, %v4827_v58  ;;  %v4847_v60 = vmul.f32 %v8451_v55, %v4827_v58 }
 0xa95   : > { %v4834_v15 = vsel %vm1000_vm1, %v4827_v58, %v4829_v2 }
 0xa96   : > { %v4872_v59 = vrot.slane %v4842_v7, 4  ;;  %v4873_v62 = vrot.slane %v4847_v60, 4  ;;  %v4843_v13 = vmul.f32 %v8529_v61, %v4834_v15  ;;  %v4848_v36 = vmul.f32 %v8456_v0, %v4834_v15 }
 0xa97   : > { %v4831_v45 = vpop.permute.xlu0 %4830 }
 0xa98   : > { %v4833_v57 = vpop.permute.xlu1 %4832  ;;  %v4835_v48 = vsel %vm1000_vm1, %v4829_v2, %v4831_v45  ;;  %v4874_v53 = vsel %vm706_vm5, %v4872_v59, %v4873_v62  ;;  %v4875_v46 = vrot.slane %v4843_v13, 4  ;;  %v4876_v47 = vrot.slane %v4848_v36, 4 }
 0xa99   : > { %v4836_v51 = vsel %vm1000_vm1, %v4831_v45, %v4833_v57  ;;  %v4844_v50 = vmul.f32 %v8536_v39, %v4835_v48  ;;  %v4849_v35 = vmul.f32 %v8463_v49, %v4835_v48  ;;  %4897 = vrot.lane.b32.xlu0 %v4874_v53, %s6600_s25  ;;  %v4852_v2 = vmul.f32 %v8614_v63, %v4827_v58 }
 0xa9a   : > { %v4845_v7 = vmul.f32 %v8541_v44, %v4836_v51  ;;  %v4850_v60 = vmul.f32 %v8468_v11, %v4836_v51  ;;  %v4877_v12 = vsel %vm706_vm5, %v4875_v46, %v4876_v47  ;;  %v4846_v41 = vmul.f32 %v4833_v57, %v8337_v1 }
 0xa9b   : > { %v4878_v59 = vrot.slane %v4844_v50, 4  ;;  %v4879_v13 = vrot.slane %v4849_v35, 4  ;;  %4899 = vrot.lane.b32.xlu1 %v4877_v12, %s6600_s25  ;;  %v4851_v54 = vmul.f32 %v8349_v42, %v4833_v57  ;;  %v4853_v46 = vmul.f32 %v8621_v52, %v4834_v15 }
 0xa9c   : > { %v4881_v36 = vrot.slane %v4845_v7, 4  ;;  %v4882_v45 = vrot.slane %v4850_v60, 4  ;;  %v4854_v58 = vmul.f32 %v8624_v14, %v4835_v48  ;;  %v4887_v12 = vrot.slane %v4852_v2, 4 }
 0xa9d   : > { %v4880_v53 = vsel %vm706_vm5, %v4878_v59, %v4879_v13  ;;  %v4884_v50 = vrot.slane %v4846_v41, 4  ;;  %v4885_v7 = vrot.slane %v4851_v54, 4  ;;  %v4855_v60 = vmul.f32 %v8556_v9, %v4836_v51  ;;  %v4946_v51 = vld [vmem:[#allocation6 + $0xa0] ss:$8 sm:$0xf] }
 0xa9e   : > { %v4883_v35 = vsel %vm706_vm5, %v4881_v36, %v4882_v45  ;;  %4901 = vrot.lane.b32.xlu0 %v4880_v53, %s6600_s25  ;;  %v4889_v56 = vrot.slane %v4853_v46, 4  ;;  %v4891_v43 = vrot.slane %v4854_v58, 4  ;;  %v4888_v15 = vsel %vm706_vm5, %v4873_v62, %v4887_v12 }
 0xa9f   : > { %4903 = vrot.lane.b32.xlu1 %v4883_v35, %s6600_s25  ;;  %v4886_v59 = vsel %vm706_vm5, %v4884_v50, %v4885_v7  ;;  %v4856_v48 = vmul.f32 %v4833_v57, %v8406_v8  ;;  %v4893_v36 = vrot.slane %v4855_v60, 4  ;;  %v4951_v57 = vrot.slane %v4946_v51, %v6758_v4 }
 0xaa0   : > { %v4890_v41 = vsel %vm706_vm5, %v4876_v47, %v4889_v56  ;;  %v4892_v2 = vsel %vm706_vm5, %v4879_v13, %v4891_v43  ;;  %v4955_v56 = vrot.slane %v4946_v51, %v6762_v6  ;;  %v4959_v43 = vrot.slane %v4946_v51, %v6756_v3 }
 0xaa1   : > { %v4895_v54 = vrot.slane %v4856_v48, 4  ;;  %v4894_v53 = vsel %vm706_vm5, %v4882_v45, %v4893_v36  ;;  %v4963_v47 = vrot.slane %v4946_v51, %v6760_v5 }
 0xaa2   : > { %4905 = vrot.lane.b32.xlu0 %v4886_v59, %s6600_s25 }
 0xaa3   : > { %4907 = vrot.lane.b32.xlu1 %v4888_v15, %s6600_s25  ;;  %v4896_v62 = vsel %vm706_vm5, %v4885_v7, %v4895_v54 }
 0xaa6   : > { %4909 = vrot.lane.b32.xlu0 %v4890_v41, %s6600_s25 }
 0xaa7   : > { %4911 = vrot.lane.b32.xlu1 %v4892_v2, %s6600_s25 }
 0xaaa   : > { %4913 = vrot.lane.b32.xlu0 %v4894_v53, %s6600_s25 }
 0xaab   : > { %4915 = vrot.lane.b32.xlu1 %v4896_v62, %s6600_s25 }
 0xaae   : > { %4964 = vrot.lane.b32.xlu0 %v4951_v57, %s6599_s17 }
 0xaaf   : > { %4966 = vrot.lane.b32.xlu1 %v4955_v56, %s6599_s17 }
 0xab2   : > { %4968 = vrot.lane.b32.xlu0 %v4959_v43, %s6599_s17 }
 0xab3   : > { %4970 = vrot.lane.b32.xlu1 %v4963_v47, %s6599_s17 }
 0xb0b   : > { %v8652_v13 = vpop.permute.xlu0 %4897 }
 0xb0c   : > { %12136 = vst [vmem:[#allocation288_spill] sm:$0xff] %v8652_v13 }
 0xb0d   : > { %v8654_v45 = vpop.permute.xlu1 %4899 }
 0xb0e   : > { %12137 = vst [vmem:[#allocation289_spill] sm:$0xff] %v8654_v45 }
 0xb10   : > { %v8656_v46 = vpop.permute.xlu0 %4901 }
 0xb11   : > { %12138 = vst [vmem:[#allocation290_spill] sm:$0xff] %v8656_v46  ;;  %v8658_v58 = vpop.permute.xlu1 %4903 }
 0xb12   : > { %12139 = vst [vmem:[#allocation291_spill] sm:$0xff] %v8658_v58 }
 0xb14   : > { %v8660_v35 = vpop.permute.xlu0 %4905 }
 0xb15   : > { %12140 = vst [vmem:[#allocation292_spill] sm:$0xff] %v8660_v35  ;;  %v8662_v12 = vpop.permute.xlu1 %4907 }
 0xb16   : > { %12141 = vst [vmem:[#allocation293_spill] sm:$0xff] %v8662_v12 }
 0xb18   : > { %v8664_v50 = vpop.permute.xlu0 %4909 }
 0xb19   : > { %12142 = vst [vmem:[#allocation294_spill] sm:$0xff] %v8664_v50  ;;  %v8666_v7 = vpop.permute.xlu1 %4911 }
 0xb1a   : > { %12143 = vst [vmem:[#allocation295_spill] sm:$0xff] %v8666_v7 }
 0xb1c   : > { %v8668_v60 = vpop.permute.xlu0 %4913 }
 0xb1d   : > { %12144 = vst [vmem:[#allocation296_spill] sm:$0xff] %v8668_v60  ;;  %v8670_v59 = vpop.permute.xlu1 %4915 }
 0xb1e   : > { %12145 = vst [vmem:[#allocation297_spill] sm:$0xff] %v8670_v59 }
 0xb20   : > { %v4965_v15 = vpop.permute.xlu0 %4964 }
 0xb21   : > { %v4967_v48 = vpop.permute.xlu1 %4966  ;;  %v4980_v36 = vmul.f32 %v8524_v33, %v4965_v15  ;;  %v4985_v41 = vmul.f32 %v8451_v55, %v4965_v15 }
 0xb22   : > { %v4972_v2 = vsel %vm1000_vm1, %v4965_v15, %v4967_v48 }
 0xb23   : > { %v5010_v54 = vrot.slane %v4980_v36, 5  ;;  %v5011_v51 = vrot.slane %v4985_v41, 5  ;;  %v4981_v53 = vmul.f32 %v8529_v61, %v4972_v2  ;;  %v4986_v62 = vmul.f32 %v8456_v0, %v4972_v2 }
 0xb24   : > { %v4969_v57 = vpop.permute.xlu0 %4968  ;;  %v4991_v12 = vmul.f32 %v8621_v52, %v4972_v2 }
 0xb25   : > { %v4971_v56 = vpop.permute.xlu1 %4970  ;;  %v4973_v43 = vsel %vm1000_vm1, %v4967_v48, %v4969_v57  ;;  %v5012_v47 = vsel %vm211_vm0, %v5010_v54, %v5011_v51  ;;  %v5013_v59 = vrot.slane %v4981_v53, 5  ;;  %v5014_v35 = vrot.slane %v4986_v62, 5 }
 0xb26   : > { %v4974_v58 = vsel %vm1000_vm1, %v4969_v57, %v4971_v56  ;;  %v4982_v46 = vmul.f32 %v8536_v39, %v4973_v43  ;;  %v4987_v13 = vmul.f32 %v8463_v49, %v4973_v43  ;;  %5035 = vrot.lane.b32.xlu0 %v5012_v47, %s6600_s25  ;;  %v4990_v48 = vmul.f32 %v8614_v63, %v4965_v15 }
 0xb27   : > { %v4983_v36 = vmul.f32 %v8541_v44, %v4974_v58  ;;  %v4988_v41 = vmul.f32 %v8468_v11, %v4974_v58  ;;  %v5015_v45 = vsel %vm211_vm0, %v5013_v59, %v5014_v35  ;;  %v4984_v57 = vmul.f32 %v4971_v56, %v8337_v1 }
 0xb28   : > { %v5016_v60 = vrot.slane %v4982_v46, 5  ;;  %v5017_v54 = vrot.slane %v4987_v13, 5  ;;  %5037 = vrot.lane.b32.xlu1 %v5015_v45, %s6600_s25  ;;  %v4989_v47 = vmul.f32 %v8349_v42, %v4971_v56  ;;  %v4992_v50 = vmul.f32 %v8624_v14, %v4973_v43 }
 0xb29   : > { %v5019_v53 = vrot.slane %v4983_v36, 5  ;;  %v5020_v62 = vrot.slane %v4988_v41, 5  ;;  %v5025_v46 = vrot.slane %v4990_v48, 5  ;;  %v5022_v13 = vrot.slane %v4984_v57, 5 }
 0xb2a   : > { %v5018_v7 = vsel %vm211_vm0, %v5016_v60, %v5017_v54  ;;  %v5023_v45 = vrot.slane %v4989_v47, 5  ;;  %v4993_v15 = vmul.f32 %v8556_v9, %v4974_v58  ;;  %v5027_v60 = vrot.slane %v4991_v12, 5  ;;  %v5084_v12 = vld [vmem:[#allocation6 + $0xa7] ss:$8 sm:$0xf] }
 0xb2b   : > { %v5021_v59 = vsel %vm211_vm0, %v5019_v53, %v5020_v62  ;;  %5039 = vrot.lane.b32.xlu0 %v5018_v7, %s6600_s25  ;;  %v5029_v41 = vrot.slane %v4992_v50, 5  ;;  %v5026_v16 = vsel %vm211_vm0, %v5011_v51, %v5025_v46  ;;  %v4994_v2 = vmul.f32 %v4971_v56, %v8406_v8 }
 0xb2c   : > { %5041 = vrot.lane.b32.xlu1 %v5021_v59, %s6600_s25  ;;  %v5024_v36 = vsel %vm211_vm0, %v5022_v13, %v5023_v45  ;;  %v5031_v7 = vrot.slane %v4993_v15, 5  ;;  %v5028_v43 = vsel %vm211_vm0, %v5014_v35, %v5027_v60  ;;  %v5089_v56 = vrot.slane %v5084_v12, %v6758_v4 }
 0xb2d   : > { %v5030_v48 = vsel %vm211_vm0, %v5017_v54, %v5029_v41  ;;  %v5033_v58 = vrot.slane %v4994_v2, 5  ;;  %v5097_v35 = vrot.slane %v5084_v12, %v6756_v3  ;;  %v5101_v54 = vrot.slane %v5084_v12, %v6760_v5 }
 0xb2e   : > { %v5032_v50 = vsel %vm211_vm0, %v5020_v62, %v5031_v7 }
 0xb2f   : > { %5043 = vrot.lane.b32.xlu0 %v5024_v36, %s6600_s25  ;;  %v5034_v51 = vsel %vm211_vm0, %v5023_v45, %v5033_v58 }
 0xb30   : > { %5045 = vrot.lane.b32.xlu1 %v5026_v16, %s6600_s25  ;;  %v5093_v16 = vrot.slane %v5084_v12, %v6762_v6 }
 0xb33   : > { %5047 = vrot.lane.b32.xlu0 %v5028_v43, %s6600_s25 }
 0xb34   : > { %5049 = vrot.lane.b32.xlu1 %v5030_v48, %s6600_s25 }
 0xb37   : > { %5051 = vrot.lane.b32.xlu0 %v5032_v50, %s6600_s25 }
 0xb38   : > { %5053 = vrot.lane.b32.xlu1 %v5034_v51, %s6600_s25 }
 0xb3b   : > { %5102 = vrot.lane.b32.xlu0 %v5089_v56, %s6599_s17 }
 0xb3c   : > { %5104 = vrot.lane.b32.xlu1 %v5093_v16, %s6599_s17 }
 0xb3f   : > { %5106 = vrot.lane.b32.xlu0 %v5097_v35, %s6599_s17 }
 0xb40   : > { %5108 = vrot.lane.b32.xlu1 %v5101_v54, %s6599_s17 }
 0xb98   : > { %v8718_v53 = vpop.permute.xlu0 %5035 }
 0xb99   : > { %12146 = vst [vmem:[#allocation298_spill] sm:$0xff] %v8718_v53 }
 0xb9a   : > { %v8720_v62 = vpop.permute.xlu1 %5037 }
 0xb9b   : > { %12147 = vst [vmem:[#allocation299_spill] sm:$0xff] %v8720_v62 }
 0xb9d   : > { %v8722_v57 = vpop.permute.xlu0 %5039 }
 0xb9e   : > { %12148 = vst [vmem:[#allocation300_spill] sm:$0xff] %v8722_v57  ;;  %v8724_v47 = vpop.permute.xlu1 %5041 }
 0xb9f   : > { %12149 = vst [vmem:[#allocation301_spill] sm:$0xff] %v8724_v47 }
 0xba1   : > { %v8726_v59 = vpop.permute.xlu0 %5043 }
 0xba2   : > { %12150 = vst [vmem:[#allocation302_spill] sm:$0xff] %v8726_v59  ;;  %v8728_v46 = vpop.permute.xlu1 %5045 }
 0xba3   : > { %12151 = vst [vmem:[#allocation303_spill] sm:$0xff] %v8728_v46 }
 0xba5   : > { %v8730_v13 = vpop.permute.xlu0 %5047 }
 0xba6   : > { %12152 = vst [vmem:[#allocation304_spill] sm:$0xff] %v8730_v13  ;;  %v8732_v45 = vpop.permute.xlu1 %5049  ;;  %v446_v13 = vsel %vm289_vm8, %v6886_v26, %v6884_v25 }
 0xba7   : > { %12153 = vst [vmem:[#allocation305_spill] sm:$0xff] %v8732_v45 }
 0xba9   : > { %v8734_v15 = vpop.permute.xlu0 %5051 }
 0xbaa   : > { %12154 = vst [vmem:[#allocation306_spill] sm:$0xff] %v8734_v15  ;;  %v8736_v36 = vpop.permute.xlu1 %5053 }
 0xbab   : > { %12155 = vst [vmem:[#allocation307_spill] sm:$0xff] %v8736_v36 }
 0xbad   : > { %v5103_v60 = vpop.permute.xlu0 %5102 }
 0xbae   : > { %v5105_v41 = vpop.permute.xlu1 %5104  ;;  %v5118_v2 = vmul.f32 %v8524_v33, %v5103_v60  ;;  %v5123_v7 = vmul.f32 %v8451_v55, %v5103_v60 }
 0xbaf   : > { %v5110_v43 = vsel %vm1000_vm1, %v5103_v60, %v5105_v41 }
 0xbb0   : > { %v5148_v48 = vrot.slane %v5118_v2, 6  ;;  %v5149_v58 = vrot.slane %v5123_v7, 6  ;;  %v5119_v12 = vmul.f32 %v8529_v61, %v5110_v43  ;;  %v5124_v50 = vmul.f32 %v8456_v0, %v5110_v43 }
 0xbb1   : > { %v5107_v51 = vpop.permute.xlu0 %5106  ;;  %v5129_v45 = vmul.f32 %v8621_v52, %v5110_v43 }
 0xbb2   : > { %v5109_v56 = vpop.permute.xlu1 %5108  ;;  %v5111_v16 = vsel %vm1000_vm1, %v5105_v41, %v5107_v51  ;;  %v5150_v35 = vsel %vm927_vm6, %v5148_v48, %v5149_v58  ;;  %v5151_v54 = vrot.slane %v5119_v12, 6  ;;  %v5152_v36 = vrot.slane %v5124_v50, 6 }
 0xbb3   : > { %v5112_v59 = vsel %vm1000_vm1, %v5107_v51, %v5109_v56  ;;  %v5120_v47 = vmul.f32 %v8536_v39, %v5111_v16  ;;  %v5125_v57 = vmul.f32 %v8463_v49, %v5111_v16  ;;  %5173 = vrot.lane.b32.xlu0 %v5150_v35, %s6600_s25  ;;  %v5128_v41 = vmul.f32 %v8614_v63, %v5103_v60 }
 0xbb4   : > { %v5121_v2 = vmul.f32 %v8541_v44, %v5112_v59  ;;  %v5126_v7 = vmul.f32 %v8468_v11, %v5112_v59  ;;  %v5153_v53 = vsel %vm927_vm6, %v5151_v54, %v5152_v36  ;;  %v5122_v51 = vmul.f32 %v5109_v56, %v8337_v1 }
 0xbb5   : > { %v5154_v62 = vrot.slane %v5120_v47, 6  ;;  %v5155_v48 = vrot.slane %v5125_v57, 6  ;;  %5175 = vrot.lane.b32.xlu1 %v5153_v53, %s6600_s25  ;;  %v5127_v35 = vmul.f32 %v8349_v42, %v5109_v56  ;;  %v5130_v46 = vmul.f32 %v8624_v14, %v5111_v16 }
 0xbb6   : > { %v5157_v12 = vrot.slane %v5121_v2, 6  ;;  %v5158_v50 = vrot.slane %v5126_v7, 6  ;;  %v5163_v47 = vrot.slane %v5128_v41, 6  ;;  %v5160_v57 = vrot.slane %v5122_v51, 6 }
 0xbb7   : > { %v5156_v15 = vsel %vm927_vm6, %v5154_v62, %v5155_v48  ;;  %v5161_v53 = vrot.slane %v5127_v35, 6  ;;  %v5131_v60 = vmul.f32 %v8556_v9, %v5112_v59  ;;  %v5165_v62 = vrot.slane %v5129_v45, 6  ;;  %v5222_v45 = vld [vmem:[#allocation6 + $0x6] ss:$8 sm:$0xf] }
 0xbb8   : > { %v5159_v54 = vsel %vm927_vm6, %v5157_v12, %v5158_v50  ;;  %5177 = vrot.lane.b32.xlu0 %v5156_v15, %s6600_s25  ;;  %v5167_v2 = vrot.slane %v5130_v46, 6  ;;  %v5164_v7 = vsel %vm927_vm6, %v5149_v58, %v5163_v47  ;;  %v5132_v43 = vmul.f32 %v5109_v56, %v8406_v8 }
 0xbb9   : > { %5179 = vrot.lane.b32.xlu1 %v5159_v54, %s6600_s25  ;;  %v5162_v1 = vsel %vm927_vm6, %v5160_v57, %v5161_v53  ;;  %v5169_v15 = vrot.slane %v5131_v60, 6  ;;  %v5166_v16 = vsel %vm927_vm6, %v5152_v36, %v5165_v62  ;;  %v5227_v8 = vrot.slane %v5222_v45, %v6758_v4  ;;  %v8795_v57 = vld [vmem:[#allocation2 + $0x38] sm:$0x3f] }
 0xbba   : > { %v5168_v41 = vsel %vm927_vm6, %v5155_v48, %v5167_v2  ;;  %v5171_v59 = vrot.slane %v5132_v43, 6  ;;  %v5231_v36 = vrot.slane %v5222_v45, %v6762_v6  ;;  %v5235_v56 = vrot.slane %v5222_v45, %v6756_v3 }
 0xbbb   : > { %v5170_v46 = vsel %vm927_vm6, %v5158_v50, %v5169_v15  ;;  %v5239_v48 = vrot.slane %v5222_v45, %v6760_v5  ;;  %v335_v12 = vsel %vm289_vm8, %v6878_v22, %v6876_v21  ;;  %v8787_v50 = vld [vmem:[#allocation2] sm:$0xff]  ;;  %v348_v35 = vmul.f32 %v8349_v42, %v6878_v22 }
 0xbbc   : > { %5181 = vrot.lane.b32.xlu0 %v5162_v1, %s6600_s25  ;;  %v5172_v58 = vsel %vm927_vm6, %v5161_v53, %v5171_v59  ;;  %v343_v51 = vmul.f32 %v8787_v50, %v6878_v22  ;;  %v344_v54 = vmul.f32 %v8524_v33, %v335_v12  ;;  %v349_v47 = vmul.f32 %v8451_v55, %v335_v12 }
 0xbbd   : > { %5183 = vrot.lane.b32.xlu1 %v5164_v7, %s6600_s25  ;;  %v353_v53 = vmul.f32 %v8795_v57, %v6878_v22  ;;  %v354_v60 = vmul.f32 %v8614_v63, %v335_v12  ;;  %v298_v1 = vmul.f32 %v8787_v50, %v6870_v18  ;;  %v303_v62 = vmul.f32 %v8349_v42, %v6870_v18 }
 0xbbe   : > { %v292_v2 = vsel %vm289_vm8, %v6868_v17, %v6872_v19  ;;  %v290_v7 = vsel %vm289_vm8, %v6870_v18, %v6874_v20  ;;  %v291_v22 = vsel %vm289_vm8, %v6874_v20, %v6868_v17  ;;  %v374_v43 = vrot.slane %v343_v51, 1 }
 0xbbf   : > { %v375_v15 = vrot.slane %v348_v35, 1  ;;  %v352_v42 = vmul.f32 %v8468_v11, %v6880_v23  ;;  %v377_v59 = vrot.slane %v344_v54, 1  ;;  %v378_v45 = vrot.slane %v349_v47, 1 }
 0xbc0   : > { %5185 = vrot.lane.b32.xlu0 %v5166_v16, %s6600_s25  ;;  %v347_v16 = vmul.f32 %v8541_v44, %v6880_v23  ;;  %v391_v18 = vrot.slane %v354_v60, 1  ;;  %v302_v17 = vmul.f32 %v8541_v44, %v6872_v19  ;;  %v307_v20 = vmul.f32 %v8468_v11, %v6872_v19 }
 0xbc1   : > { %5187 = vrot.lane.b32.xlu1 %v5168_v41, %s6600_s25  ;;  %v336_v41 = vsel %vm289_vm8, %v6876_v21, %v6882_v24  ;;  %v337_v21 = vsel %vm289_vm8, %v6882_v24, %v6880_v23  ;;  %v299_v12 = vmul.f32 %v8524_v33, %v290_v7  ;;  %v300_v51 = vmul.f32 %v8529_v61, %v291_v22 }
 0xbc2   : > { %v386_v35 = vrot.slane %v347_v16, 1  ;;  %v387_v19 = vrot.slane %v352_v42, 1  ;;  %v376_v54 = vsel %vm373_vm2, %v374_v43, %v375_v15  ;;  %v379_v47 = vsel %vm373_vm2, %v377_v59, %v378_v45 }
 0xbc3   : > { %v392_v60 = vsel %vm373_vm2, %v378_v45, %v391_v18  ;;  %v351_v24 = vmul.f32 %v8463_v49, %v337_v21  ;;  %v355_v16 = vmul.f32 %v8621_v52, %v336_v41  ;;  %v356_v42 = vmul.f32 %v8624_v14, %v337_v21 }
 0xbc4   : > { %5189 = vrot.lane.b32.xlu0 %v5170_v46, %s6600_s25  ;;  %v389_v46 = vrot.slane %v353_v53, 1  ;;  %v304_v59 = vmul.f32 %v8451_v55, %v290_v7  ;;  %v8852_v45 = vadd.f32 %v376_v54, %v298_v1  ;;  %v410_v18 = vadd.f32 %v379_v47, %v299_v12  ;;  %v8863_v12 = vld [vmem:[#allocation2 + $0x10] sm:$0xff] }
 0xbc5   : > { %5191 = vrot.lane.b32.xlu1 %v5172_v58, %s6600_s25  ;;  %v8821_v58 = vmul.f32 %v8536_v39, %v292_v2  ;;  %v455_v3 = vmul.f32 %v8524_v33, %v446_v13  ;;  %v460_v6 = vmul.f32 %v8451_v55, %v446_v13  ;;  %v395_v1 = vrot.slane %v356_v42, 1 }
 0xbc6   : > { %v390_v53 = vsel %vm373_vm2, %v375_v15, %v389_v46  ;;  %v305_v15 = vmul.f32 %v8456_v0, %v291_v22  ;;  %12156 = vst [vmem:[#allocation308_spill] sm:$0xff] %v8852_v45  ;;  %v388_v46 = vsel %vm373_vm2, %v386_v35, %v387_v19  ;;  %v393_v22 = vrot.slane %v355_v16, 1 }
 0xbc7   : > { %v413_v4 = vadd.f32 %v388_v46, %v302_v17  ;;  %v454_v35 = vmul.f32 %v8787_v50, %v6886_v26  ;;  %v464_v54 = vmul.f32 %v8795_v57, %v6886_v26  ;;  %v465_v17 = vmul.f32 %v8614_v63, %v446_v13 }
 0xbc8   : > { %5240 = vrot.lane.b32.xlu0 %v5227_v8, %s6600_s25  ;;  %v357_v8 = vmul.f32 %v8556_v9, %v6880_v23  ;;  %v346_v23 = vmul.f32 %v8536_v39, %v337_v21  ;;  %v488_v47 = vrot.slane %v455_v3, 2 }
 0xbc9   : > { %5242 = vrot.lane.b32.xlu1 %v5231_v36, %s6600_s25  ;;  %v8830_v36 = vmul.f32 %v8463_v49, %v292_v2  ;;  %v485_v42 = vrot.slane %v454_v35, 2  ;;  %v500_v46 = vrot.slane %v464_v54, 2  ;;  %v557_v35 = vsel %vm289_vm8, %v6894_v30, %v6892_v29 }
 0xbca   : > { %v397_v2 = vrot.slane %v357_v8, 1  ;;  %v8855_v8 = vadd.f32 %v390_v53, %v303_v62  ;;  %v459_v62 = vmul.f32 %v8863_v12, %v6886_v26  ;;  %v489_v53 = vrot.slane %v460_v6, 2 }
 0xbcb   : > { %v468_v26 = vmul.f32 %v8556_v9, %v6888_v27 }
 0xbcc   : > { %5244 = vrot.lane.b32.xlu0 %v5235_v56, %s6600_s25  ;;  %v345_v56 = vmul.f32 %v8529_v61, %v336_v41  ;;  %12157 = vst [vmem:[#allocation309_spill] sm:$0xff] %v8855_v8  ;;  %v398_v21 = vsel %vm373_vm2, %v387_v19, %v397_v2  ;;  %v447_v19 = vsel %vm289_vm8, %v6884_v25, %v6890_v28 }
 0xbcd   : > { %5246 = vrot.lane.b32.xlu1 %v5239_v48, %s6600_s25  ;;  %v350_v48 = vmul.f32 %v8456_v0, %v336_v41  ;;  %v415_v41 = vadd.f32 %v392_v60, %v304_v59  ;;  %v458_v60 = vmul.f32 %v8541_v44, %v6888_v27  ;;  %v418_v2 = vadd.f32 %v398_v21, %v307_v20 }
 0xbce   : > { %v380_v43 = vrot.slane %v345_v56, 1  ;;  %v383_v56 = vrot.slane %v346_v23, 1  ;;  %v448_v25 = vsel %vm289_vm8, %v6890_v28, %v6888_v27  ;;  %v456_v3 = vmul.f32 %v8529_v61, %v447_v19 }
 0xbcf   : > { %v381_v5 = vrot.slane %v350_v48, 1  ;;  %v384_v48 = vrot.slane %v351_v24, 1  ;;  %v463_v24 = vmul.f32 %v8468_v11, %v6888_v27  ;;  %v461_v6 = vmul.f32 %v8456_v0, %v447_v19 }
 0xbd0   : > { %v490_v59 = vsel %vm484_vm3, %v488_v47, %v489_v53  ;;  %v502_v21 = vrot.slane %v465_v17, 2  ;;  %v462_v27 = vmul.f32 %v8463_v49, %v448_v25  ;;  %v466_v8 = vmul.f32 %v8621_v52, %v447_v19 }
 0xbd1   : > { %v382_v7 = vsel %vm373_vm2, %v380_v43, %v381_v5  ;;  %v385_v23 = vsel %vm373_vm2, %v383_v56, %v384_v48  ;;  %v394_v16 = vsel %vm373_vm2, %v381_v5, %v393_v22  ;;  %v396_v13 = vsel %vm373_vm2, %v384_v48, %v395_v1 }
 0xbd2   : > { %v411_v20 = vadd.f32 %v382_v7, %v300_v51  ;;  %v486_v43 = vrot.slane %v459_v62, 2  ;;  %v497_v56 = vrot.slane %v458_v60, 2  ;;  %v498_v10 = vrot.slane %v463_v24, 2 }
 0xbd3   : > { %v508_v5 = vrot.slane %v468_v26, 2  ;;  %v457_v22 = vmul.f32 %v8536_v39, %v448_v25  ;;  %v412_v28 = vadd.f32 %v385_v23, %v8821_v58  ;;  %v491_v45 = vrot.slane %v456_v3, 2 }
 0xbd4   : > { %v492_v48 = vrot.slane %v461_v6, 2  ;;  %v416_v51 = vadd.f32 %v394_v16, %v305_v15  ;;  %v417_v7 = vadd.f32 %v396_v13, %v8830_v36  ;;  %v467_v1 = vmul.f32 %v8624_v14, %v448_v25 }
 0xbd5   : > { %v8898_v62 = vsel %vm484_vm3, %v485_v42, %v486_v43  ;;  %v8901_v54 = vsel %vm484_vm3, %v486_v43, %v500_v46  ;;  %v503_v58 = vsel %vm484_vm3, %v489_v53, %v502_v21  ;;  %v521_v19 = vadd.f32 %v490_v59, %v410_v18 }
 0xbd6   : > { %v499_v17 = vsel %vm484_vm3, %v497_v56, %v498_v10  ;;  %v509_v15 = vsel %vm484_vm3, %v498_v10, %v508_v5  ;;  %v494_v36 = vrot.slane %v457_v22, 2  ;;  %v495_v47 = vrot.slane %v462_v27, 2 }
 0xbd7   : > { %v493_v60 = vsel %vm484_vm3, %v491_v45, %v492_v48  ;;  %v504_v23 = vrot.slane %v466_v8, 2  ;;  %v566_v24 = vmul.f32 %v8524_v33, %v557_v35  ;;  %v571_v26 = vmul.f32 %v8451_v55, %v557_v35 }
 0xbd8   : > { %v506_v16 = vrot.slane %v467_v1, 2  ;;  %v576_v25 = vmul.f32 %v8614_v63, %v557_v35  ;;  %v569_v53 = vmul.f32 %v8541_v44, %v6896_v31  ;;  %v574_v18 = vmul.f32 %v8468_v11, %v6896_v31 }
 0xbd9   : > { %v526_v3 = vadd.f32 %v503_v58, %v415_v41  ;;  %v524_v10 = vadd.f32 %v499_v17, %v413_v4  ;;  %v529_v6 = vadd.f32 %v509_v15, %v418_v2  ;;  %v579_v45 = vmul.f32 %v8556_v9, %v6896_v31 }
 0xbda   : > { %v496_v8 = vsel %vm484_vm3, %v494_v36, %v495_v47  ;;  %v8919_v55 = vmul.f32 %v8787_v50, %v6894_v30  ;;  %v558_v13 = vsel %vm289_vm8, %v6892_v29, %v6898_v32  ;;  %v559_v11 = vsel %vm289_vm8, %v6898_v32, %v6896_v31 }
 0xbdb   : > { %v505_v4 = vsel %vm484_vm3, %v492_v48, %v504_v23  ;;  %v522_v41 = vadd.f32 %v493_v60, %v411_v20  ;;  %v599_v2 = vrot.slane %v566_v24, 3  ;;  %v600_v42 = vrot.slane %v571_v26, 3  ;;  %v8951_v60 = vld [vmem:[#allocation2 + $0x60] sm:$0xff] }
 0xbdc   : > { %v507_v43 = vsel %vm484_vm3, %v495_v47, %v506_v16  ;;  %v613_v59 = vrot.slane %v576_v25, 3  ;;  %v608_v46 = vrot.slane %v569_v53, 3  ;;  %v609_v21 = vrot.slane %v574_v18, 3 }
 0xbdd   : > { %v619_v56 = vrot.slane %v579_v45, 3  ;;  %v567_v5 = vmul.f32 %v8529_v61, %v558_v13  ;;  %v568_v22 = vmul.f32 %v8536_v39, %v559_v11  ;;  %v572_v29 = vmul.f32 %v8456_v0, %v558_v13 }
 0xbde   : > { %v523_v27 = vadd.f32 %v496_v8, %v412_v28  ;;  %v527_v1 = vadd.f32 %v505_v4, %v416_v51  ;;  %v8934_v31 = vmul.f32 %v8863_v12, %v6894_v30  ;;  %v573_v32 = vmul.f32 %v8463_v49, %v559_v11 }
 0xbdf   : > { %v528_v20 = vadd.f32 %v507_v43, %v417_v7  ;;  %v8939_v48 = vmul.f32 %v8795_v57, %v6894_v30  ;;  %v601_v35 = vsel %vm595_vm4, %v599_v2, %v600_v42  ;;  %v668_v58 = vsel %vm289_vm8, %v6902_v37, %v6900_v34 }
 0xbe0   : > { %v614_v0 = vsel %vm595_vm4, %v600_v42, %v613_v59  ;;  %v610_v28 = vsel %vm595_vm4, %v608_v46, %v609_v21  ;;  %v577_v51 = vmul.f32 %v8621_v52, %v558_v13  ;;  %v578_v17 = vmul.f32 %v8624_v14, %v559_v11  ;;  %v8961_v42 = vld [vmem:[#allocation2 + $0x30] sm:$0xff] }
 0xbe1   : > { %v620_v49 = vsel %vm595_vm4, %v609_v21, %v619_v56  ;;  %v602_v7 = vrot.slane %v567_v5, 3  ;;  %v603_v15 = vrot.slane %v572_v29, 3  ;;  %v605_v30 = vrot.slane %v568_v22, 3 }
 0xbe2   : > { %v606_v36 = vrot.slane %v573_v32, 3  ;;  %v677_v47 = vmul.f32 %v8524_v33, %v668_v58  ;;  %v682_v23 = vmul.f32 %v8951_v60, %v668_v58  ;;  %v687_v24 = vmul.f32 %v8614_v63, %v668_v58 }
 0xbe3   : > { %v596_v26 = vrot.slane %v8919_v55, 3  ;;  %v597_v16 = vrot.slane %v8934_v31, 3  ;;  %v632_v53 = vadd.f32 %v601_v35, %v521_v19  ;;  %v637_v18 = vadd.f32 %v614_v0, %v526_v3 }
 0xbe4   : > { %v635_v45 = vadd.f32 %v610_v28, %v524_v10  ;;  %v615_v8 = vrot.slane %v577_v51, 3  ;;  %v617_v13 = vrot.slane %v578_v17, 3  ;;  %v640_v11 = vadd.f32 %v620_v49, %v529_v6  ;;  %v8991_v49 = vld [vmem:[#allocation2 + $0x18] sm:$0xff] }
 0xbe5   : > { %v604_v4 = vsel %vm595_vm4, %v602_v7, %v603_v15  ;;  %v680_v2 = vmul.f32 %v8541_v44, %v6904_v38  ;;  %v685_v43 = vmul.f32 %v8961_v42, %v6904_v38  ;;  %v607_v59 = vsel %vm595_vm4, %v605_v30, %v606_v36 }
 0xbe6   : > { %v710_v46 = vrot.slane %v677_v47, 4  ;;  %v711_v21 = vrot.slane %v682_v23, 4  ;;  %v724_v19 = vrot.slane %v687_v24, 4  ;;  %v8968_v3 = vmul.f32 %v8787_v50, %v6902_v37  ;;  %v12160_v24 = vld [vmem:[#allocation18_spill] sm:$0xff] }
 0xbe7   : > { %v8972_v10 = vmul.f32 %v8863_v12, %v6902_v37  ;;  %v690_v6 = vmul.f32 %v8556_v9, %v6904_v38  ;;  %v669_v56 = vsel %vm289_vm8, %v6900_v34, %v6906_v40  ;;  %v616_v5 = vsel %vm595_vm4, %v603_v15, %v615_v8 }
 0xbe8   : > { %v618_v22 = vsel %vm595_vm4, %v606_v36, %v617_v13  ;;  %v633_v29 = vadd.f32 %v604_v4, %v522_v41  ;;  %v670_v32 = vsel %vm289_vm8, %v6906_v40, %v6904_v38  ;;  %v634_v35 = vadd.f32 %v607_v59, %v523_v27  ;;  %v8995_v40 = vld [vmem:[#allocation2 + $0x58] sm:$0xff]  ;;  %v12158_v13 = vld [vmem:[#allocation16_spill] sm:$0xff] }
 0xbe9   : > { %v8986_v58 = vmul.f32 %v8795_v57, %v6902_v37  ;;  %v719_v0 = vrot.slane %v680_v2, 4  ;;  %v720_v28 = vrot.slane %v685_v43, 4  ;;  %v712_v51 = vsel %vm706_vm5, %v710_v46, %v711_v21  ;;  %v12159_v4 = vld [vmem:[#allocation17_spill] sm:$0xff] }
 0xbea   : > { %v725_v34 = vsel %vm706_vm5, %v711_v21, %v724_v19  ;;  %v678_v17 = vmul.f32 %v8529_v61, %v669_v56  ;;  %v683_v41 = vmul.f32 %v8991_v49, %v669_v56  ;;  %v730_v7 = vrot.slane %v690_v6, 4 }
 0xbeb   : > { %v679_v38 = vmul.f32 %v8536_v39, %v670_v32  ;;  %v684_v37 = vmul.f32 %v8995_v40, %v670_v32  ;;  %v688_v27 = vmul.f32 %v8621_v52, %v669_v56  ;;  %v638_v15 = vadd.f32 %v616_v5, %v527_v1 }
 0xbec   : > { %v639_v30 = vadd.f32 %v618_v22, %v528_v20  ;;  %v707_v36 = vrot.slane %v8968_v3, 4  ;;  %v689_v47 = vmul.f32 %v8624_v14, %v670_v32  ;;  %v708_v23 = vrot.slane %v8972_v10, 4 }
 0xbed   : > { %v721_v8 = vsel %vm706_vm5, %v719_v0, %v720_v28  ;;  %v779_v2 = vsel %vm289_vm8, %v12159_v4, %v12158_v13  ;;  %v743_v43 = vadd.f32 %v712_v51, %v632_v53  ;;  %v748_v59 = vadd.f32 %v725_v34, %v637_v18  ;;  %v12161_v18 = vld [vmem:[#allocation19_spill] sm:$0xff] }
 0xbee   : > { %v713_v46 = vrot.slane %v678_v17, 4  ;;  %v714_v21 = vrot.slane %v683_v41, 4  ;;  %v731_v1 = vsel %vm706_vm5, %v720_v28, %v730_v7  ;;  %v716_v20 = vrot.slane %v679_v38, 4 }
 0xbef   : > { %v717_v19 = vrot.slane %v684_v37, 4  ;;  %v726_v6 = vrot.slane %v688_v27, 4  ;;  %v746_v56 = vadd.f32 %v721_v8, %v635_v45  ;;  %v728_v5 = vrot.slane %v689_v47, 4 }
 0xbf0   : > { %v788_v22 = vmul.f32 %v8524_v33, %v779_v2  ;;  %v793_v32 = vmul.f32 %v8951_v60, %v779_v2  ;;  %v798_v0 = vmul.f32 %v8614_v63, %v779_v2  ;;  %v791_v25 = vmul.f32 %v8541_v44, %v12160_v24 }
 0xbf1   : > { %v796_v53 = vmul.f32 %v8961_v42, %v12160_v24  ;;  %v780_v28 = vsel %vm289_vm8, %v12158_v13, %v12161_v18  ;;  %v751_v51 = vadd.f32 %v731_v1, %v640_v11  ;;  %v715_v45 = vsel %vm706_vm5, %v713_v46, %v714_v21 }
 0xbf2   : > { %v9021_v33 = vmul.f32 %v8787_v50, %v12159_v4  ;;  %v801_v34 = vmul.f32 %v8556_v9, %v12160_v24  ;;  %v718_v17 = vsel %vm706_vm5, %v716_v20, %v717_v19  ;;  %v727_v44 = vsel %vm706_vm5, %v714_v21, %v726_v6 }
 0xbf3   : > { %v9029_v41 = vmul.f32 %v8863_v12, %v12159_v4  ;;  %v781_v11 = vsel %vm289_vm8, %v12161_v18, %v12160_v24  ;;  %v729_v7 = vsel %vm706_vm5, %v717_v19, %v728_v5  ;;  %v820_v38 = vrot.slane %v788_v22, 5  ;;  %v12163_v18 = vld [vmem:[#allocation21_spill] sm:$0xff] }
 0xbf4   : > { %v789_v37 = vmul.f32 %v8529_v61, %v780_v28  ;;  %v794_v27 = vmul.f32 %v8991_v49, %v780_v28  ;;  %v821_v9 = vrot.slane %v793_v32, 5  ;;  %v834_v47 = vrot.slane %v798_v0, 5 }
 0xbf5   : > { %v829_v8 = vrot.slane %v791_v25, 5  ;;  %v830_v13 = vrot.slane %v796_v53, 5  ;;  %v840_v2 = vrot.slane %v801_v34, 5  ;;  %v790_v46 = vmul.f32 %v8536_v39, %v781_v11  ;;  %v12162_v53 = vld [vmem:[#allocation20_spill] sm:$0xff] }
 0xbf6   : > { %v795_v21 = vmul.f32 %v8995_v40, %v781_v11  ;;  %v799_v1 = vmul.f32 %v8621_v52, %v780_v28  ;;  %v744_v20 = vadd.f32 %v715_v45, %v633_v29  ;;  %v745_v24 = vadd.f32 %v718_v17, %v634_v35 }
 0xbf7   : > { %v9042_v19 = vmul.f32 %v8795_v57, %v12159_v4  ;;  %v800_v61 = vmul.f32 %v8624_v14, %v781_v11  ;;  %v749_v6 = vadd.f32 %v727_v44, %v638_v15  ;;  %v750_v5 = vadd.f32 %v729_v7, %v639_v30  ;;  %v9056_v7 = vld [vmem:[#allocation2 + $0x68] sm:$0xff] }
 0xbf8   : > { %v823_v22 = vrot.slane %v789_v37, 5  ;;  %v824_v25 = vrot.slane %v794_v27, 5  ;;  %v822_v32 = vsel %vm211_vm0, %v820_v38, %v821_v9  ;;  %v835_v39 = vsel %vm211_vm0, %v821_v9, %v834_v47 }
 0xbf9   : > { %v831_v0 = vsel %vm211_vm0, %v829_v8, %v830_v13  ;;  %v889_v29 = vsel %vm289_vm8, %v12163_v18, %v12162_v53  ;;  %v841_v35 = vsel %vm211_vm0, %v830_v13, %v840_v2  ;;  %v826_v4 = vrot.slane %v790_v46, 5  ;;  %v12164_v46 = vld [vmem:[#allocation23_spill] sm:$0xff] }
 0xbfa   : > { %v827_v28 = vrot.slane %v795_v21, 5  ;;  %v836_v45 = vrot.slane %v799_v1, 5  ;;  %v838_v17 = vrot.slane %v800_v61, 5  ;;  %v853_v44 = vadd.f32 %v822_v32, %v743_v43  ;;  %v12166_v1 = vld [vmem:[#allocation22_spill] sm:$0xff] }
 0xbfb   : > { %v825_v11 = vsel %vm211_vm0, %v823_v22, %v824_v25  ;;  %v898_v38 = vmul.f32 %v9056_v7, %v889_v29  ;;  %v903_v37 = vmul.f32 %v8951_v60, %v889_v29  ;;  %v9060_v27 = vadd.f32 %v835_v39, %v748_v59 }
 0xbfc   : > { %v9062_v9 = vadd.f32 %v831_v0, %v746_v56  ;;  %v9064_v47 = vadd.f32 %v841_v35, %v751_v51  ;;  %v9068_v8 = vmul.f32 %v8787_v50, %v12163_v18  ;;  %v828_v43 = vsel %vm211_vm0, %v826_v4, %v827_v28  ;;  %v6435_v35 = vld [vmem:[#allocation2 + $0x80] sm:$0x3f] }
 0xbfd   : > { %v837_v13 = vsel %vm211_vm0, %v824_v25, %v836_v45  ;;  %v9074_v2 = vmul.f32 %v8863_v12, %v12163_v18  ;;  %v890_v59 = vsel %vm289_vm8, %v12162_v53, %v12164_v46  ;;  %v839_v51 = vsel %vm211_vm0, %v827_v28, %v838_v17  ;;  %v9088_v12 = vld [vmem:[#allocation2 + $0x20] sm:$0xff]  ;;  %v9102_v45 = vld [vmem:[#allocation2 + $0x88] sm:$0xff] }
 0xbfe   : > { %v9082_v21 = vadd.f32 %v825_v11, %v744_v20  ;;  %v908_v50 = vmul.f32 %v8614_v63, %v889_v29  ;;  %v891_v61 = vsel %vm289_vm8, %v12164_v46, %v12166_v1  ;;  %v931_v22 = vrot.slane %v898_v38, 6  ;;  %v9097_v29 = vld [vmem:[#allocation2 + $0x40] sm:$0xff] }
 0xbff   : > { %v932_v25 = vrot.slane %v903_v37, 6  ;;  %v901_v32 = vmul.f32 %v9088_v12, %v12166_v1  ;;  %v906_v39 = vmul.f32 %v8961_v42, %v12166_v1  ;;  %v855_v20 = vadd.f32 %v828_v43, %v745_v24 }
 0xc00   : > { %v859_v53 = vadd.f32 %v837_v13, %v749_v6  ;;  %v911_v63 = vmul.f32 %v6435_v35, %v12166_v1  ;;  %v899_v4 = vmul.f32 %v9097_v29, %v890_v59  ;;  %v9100_v28 = vadd.f32 %v839_v51, %v750_v5 }
 0xc01   : > { %v900_v17 = vmul.f32 %v9102_v45, %v891_v61  ;;  %v904_v11 = vmul.f32 %v8991_v49, %v890_v59  ;;  %v905_v38 = vmul.f32 %v8995_v40, %v891_v61  ;;  %v907_v24 = vmul.f32 %v8795_v57, %v12163_v18 }
 0xc02   : > { %v928_v6 = vrot.slane %v9068_v8, 6  ;;  %v945_v37 = vrot.slane %v908_v50, 6  ;;  %v909_v43 = vmul.f32 %v8621_v52, %v890_v59  ;;  %v929_v5 = vrot.slane %v9074_v2, 6  ;;  %v12170_v2 = vld [vmem:[#allocation308_spill] sm:$0xff] }
 0xc03   : > { %v933_v46 = vsel %vm927_vm6, %v931_v22, %v932_v25  ;;  %v940_v51 = vrot.slane %v901_v32, 6  ;;  %v941_v1 = vrot.slane %v906_v39, 6  ;;  %v951_v34 = vrot.slane %v911_v63, 6 }
 0xc04   : > { %v910_v15 = vmul.f32 %v8624_v14, %v891_v61  ;;  %v934_v30 = vrot.slane %v899_v4, 6  ;;  %v598_v52 = vsel %vm595_vm4, %v596_v26, %v597_v16  ;;  %v935_v57 = vrot.slane %v904_v11, 6  ;;  %v12176_v11 = vld [vmem:[#allocation309_spill] sm:$0xff] }
 0xc05   : > { %v937_v18 = vrot.slane %v900_v17, 6  ;;  %v938_v8 = vrot.slane %v905_v38, 6  ;;  %v520_v59 = vadd.f32 %v8898_v62, %v12170_v2  ;;  %v943_v50 = vrot.slane %v907_v24, 6 }
 0xc06   : > { %v946_v22 = vsel %vm927_vm6, %v932_v25, %v945_v37  ;;  %v947_v32 = vrot.slane %v909_v43, 6  ;;  %v709_v14 = vsel %vm706_vm5, %v707_v36, %v708_v23  ;;  %v964_v55 = vadd.f32 %v933_v46, %v853_v44 }
 0xc07   : > { %v942_v26 = vsel %vm927_vm6, %v940_v51, %v941_v1  ;;  %v631_v39 = vadd.f32 %v598_v52, %v520_v59  ;;  %v12172_v63 = vrot.slane %v8939_v48, 3  ;;  %v952_v4 = vsel %vm927_vm6, %v941_v1, %v951_v34  ;;  %v12183_v59 = vld [vmem:[#allocation25_spill] sm:$0xff] }
 0xc08   : > { %v949_v17 = vrot.slane %v910_v15, 6  ;;  %v12174_v3 = vrot.slane %v9029_v41, 5  ;;  %v12175_v36 = vrot.slane %v9021_v33, 5  ;;  %v525_v38 = vadd.f32 %v8901_v54, %v12176_v11 }
 0xc09   : > { %v612_v62 = vsel %vm595_vm4, %v597_v16, %v12172_v63  ;;  %v936_v48 = vsel %vm927_vm6, %v934_v30, %v935_v57  ;;  %v939_v31 = vsel %vm927_vm6, %v937_v18, %v938_v8  ;;  %v742_v24 = vadd.f32 %v709_v14, %v631_v39  ;;  %v12186_v14 = vld [vmem:[#allocation27_spill] sm:$0xff]  ;;  %v12189_v63 = vld [vmem:[#allocation24_spill] sm:$0xff] }
 0xc0a   : > { %v819_v44 = vsel %vm211_vm0, %v12175_v36, %v12174_v3  ;;  %v12177_v16 = vrot.slane %v8986_v58, 4  ;;  %v969_v34 = vadd.f32 %v946_v22, %v9060_v27  ;;  %v948_v33 = vsel %vm927_vm6, %v935_v57, %v947_v32  ;;  %v12184_v22 = vld [vmem:[#allocation29_spill] sm:$0xff]  ;;  %v12185_v32 = vld [vmem:[#allocation30_spill] sm:$0xff]  ;;  %v12188_v39 = vld [vmem:[#allocation31_spill] sm:$0xff] }
 0xc0b   : > { %v930_v37 = vsel %vm927_vm6, %v928_v6, %v929_v5  ;;  %v636_v43 = vadd.f32 %v612_v62, %v525_v38  ;;  %v967_v54 = vadd.f32 %v942_v26, %v9062_v9  ;;  %v972_v30 = vadd.f32 %v952_v4, %v9064_v47  ;;  %v12182_v9 = vld [vmem:[#allocation28_spill] sm:$0xff]  ;;  %v12191_v4 = vld [vmem:[#allocation33_spill] sm:$0xff]  ;;  %v12193_v36 = vld [vmem:[#allocation26_spill] sm:$0xff] }
 0xc0c   : > { %v723_v15 = vsel %vm706_vm5, %v708_v23, %v12177_v16  ;;  %v852_v51 = vadd.f32 %v819_v44, %v742_v24  ;;  %v12179_v58 = vrot.slane %v9042_v19, 5  ;;  %v12180_v10 = vmov %v12174_v3 }
 0xc0d   : > { %v950_v27 = vsel %vm927_vm6, %v938_v8, %v949_v17  ;;  %v965_v6 = vadd.f32 %v936_v48, %v9082_v21  ;;  %v966_v52 = vadd.f32 %v939_v31, %v855_v20  ;;  %v747_v57 = vadd.f32 %v723_v15, %v636_v43  ;;  %v12194_v43 = vld [vmem:[#allocation40_spill] sm:$0xff] }
 0xc0e   : > { %v833_v23 = vsel %vm211_vm0, %v12180_v10, %v12179_v58  ;;  %v970_v18 = vadd.f32 %v948_v33, %v859_v53  ;;  %v963_v2 = vadd.f32 %v930_v37, %v852_v51  ;;  %v1050_v47 = vsel %vm1049_vm7, %v12183_v59, %v12182_v9  ;;  %v12195_v51 = vld [vmem:[#allocation35_spill] sm:$0xff] }
 0xc0f   : > { %v944_v19 = vsel %vm927_vm6, %v929_v5, %v943_v50  ;;  %v1051_v41 = vsel %vm1049_vm7, %v12182_v9, %v12184_v22  ;;  %v1052_v8 = vsel %vm1049_vm7, %v12184_v22, %v12185_v32  ;;  %v1053_v21 = vsel %vm1049_vm7, %v12185_v32, %v12186_v14  ;;  %v12190_v50 = vld [vmem:[#allocation32_spill] sm:$0xff]  ;;  %v12202_v32 = vld [vmem:[#allocation34_spill] sm:$0xff] }
 0xc10   : > { %v857_v20 = vadd.f32 %v833_v23, %v747_v57  ;;  %v971_v26 = vadd.f32 %v950_v27, %v9100_v28  ;;  %v1054_v5 = vsel %vm1049_vm7, %v12189_v63, %v12188_v39  ;;  %v1055_v62 = vsel %vm1049_vm7, %v12188_v39, %v12190_v50  ;;  %v12198_v27 = vld [vmem:[#allocation43_spill] sm:$0xff]  ;;  %v12204_v39 = vld [vmem:[#allocation46_spill] sm:$0xff] }
 0xc11   : > { %v1056_v17 = vsel %vm1049_vm7, %v12190_v50, %v12191_v4  ;;  %v1077_v44 = vadd.f32 %v12193_v36, %v972_v30  ;;  %v1072_v11 = vadd.f32 %v12186_v14, %v967_v54  ;;  %v1068_v38 = vadd.f32 %v1050_v47, %v963_v2  ;;  %v12196_v30 = vld [vmem:[#allocation37_spill] sm:$0xff]  ;;  %v12197_v54 = vld [vmem:[#allocation42_spill] sm:$0xff]  ;;  %v12205_v63 = vld [vmem:[#allocation39_spill] sm:$0xff] }
 0xc12   : > { %v968_v28 = vadd.f32 %v944_v19, %v857_v20  ;;  %v1069_v48 = vadd.f32 %v1051_v41, %v964_v55  ;;  %v1070_v31 = vadd.f32 %v1052_v8, %v965_v6  ;;  %v1071_v24 = vadd.f32 %v1053_v21, %v966_v52  ;;  %v12200_v19 = vld [vmem:[#allocation41_spill] sm:$0xff]  ;;  %v12203_v20 = vld [vmem:[#allocation44_spill] sm:$0xff] }
 0xc13   : > { %v1057_v16 = vsel %vm1049_vm7, %v12191_v4, %v12193_v36  ;;  %v1074_v33 = vadd.f32 %v1055_v62, %v969_v34  ;;  %v1075_v37 = vadd.f32 %v1056_v17, %v970_v18  ;;  %v1188_v58 = vsel %vm1049_vm7, %v12195_v51, %v12194_v43  ;;  %v12199_v18 = vld [vmem:[#allocation36_spill] sm:$0xff]  ;;  %v12201_v41 = vld [vmem:[#allocation45_spill] sm:$0xff]  ;;  %v12206_v4 = vld [vmem:[#allocation47_spill] sm:$0xff] }
 0xc14   : > { %v1073_v15 = vadd.f32 %v1054_v5, %v968_v28  ;;  %v1210_v23 = vadd.f32 %v12196_v30, %v1072_v11  ;;  %v1191_v55 = vsel %vm1049_vm7, %v12197_v54, %v12196_v30  ;;  %v1189_v6 = vsel %vm1049_vm7, %v12194_v43, %v12198_v27  ;;  %v12207_v28 = vld [vmem:[#allocation48_spill] sm:$0xff]  ;;  %v12208_v51 = vld [vmem:[#allocation49_spill] sm:$0xff] }
 0xc15   : > { %v1076_v34 = vadd.f32 %v1057_v16, %v971_v26  ;;  %v1215_v2 = vadd.f32 %v12199_v18, %v1077_v44  ;;  %v1190_v9 = vsel %vm1049_vm7, %v12198_v27, %v12197_v54  ;;  %v1206_v47 = vadd.f32 %v1188_v58, %v1068_v38  ;;  %v12210_v27 = vld [vmem:[#allocation38_spill] sm:$0xff] }
 0xc16   : > { %v1348_v22 = vadd.f32 %v12200_v19, %v1210_v23  ;;  %v1192_v8 = vsel %vm1049_vm7, %v12202_v32, %v12201_v41  ;;  %v1207_v21 = vadd.f32 %v1189_v6, %v1069_v48  ;;  %v1193_v26 = vsel %vm1049_vm7, %v12201_v41, %v12203_v20  ;;  %v12216_v41 = vld [vmem:[#allocation56_spill] sm:$0xff] }
 0xc17   : > { %v1326_v5 = vsel %vm1049_vm7, %v12205_v63, %v12204_v39  ;;  %v1208_v62 = vadd.f32 %v1190_v9, %v1070_v31  ;;  %v1194_v17 = vsel %vm1049_vm7, %v12203_v20, %v12206_v4  ;;  %v1195_v36 = vsel %vm1049_vm7, %v12206_v4, %v12199_v18  ;;  %v12214_v9 = vld [vmem:[#allocation55_spill] sm:$0xff] }
 0xc18   : > { %v1211_v38 = vadd.f32 %v1192_v8, %v1073_v15  ;;  %v1329_v48 = vsel %vm1049_vm7, %v12207_v28, %v12200_v19  ;;  %v1212_v16 = vadd.f32 %v1193_v26, %v1074_v33  ;;  %v1344_v43 = vadd.f32 %v1326_v5, %v1206_v47  ;;  %v12211_v33 = vld [vmem:[#allocation50_spill] sm:$0xff]  ;;  %v9281_v8 = vld [vmem:[#allocation2 + $0x8] sm:$0xff] }
 0xc19   : > { %v1327_v58 = vsel %vm1049_vm7, %v12204_v39, %v12208_v51  ;;  %v1213_v30 = vadd.f32 %v1194_v17, %v1075_v37  ;;  %v1214_v23 = vadd.f32 %v1195_v36, %v1076_v34  ;;  %v1328_v54 = vsel %vm1049_vm7, %v12208_v51, %v12207_v28  ;;  %v12213_v37 = vld [vmem:[#allocation52_spill] sm:$0xff]  ;;  %v12215_v47 = vld [vmem:[#allocation54_spill] sm:$0xff]  ;;  %v12217_v39 = vld [vmem:[#allocation57_spill] sm:$0xff] }
 0xc1a   : > { %v1345_v18 = vadd.f32 %v1327_v58, %v1207_v21  ;;  %v1464_v19 = vsel %vm1049_vm7, %v12215_v47, %v12214_v9  ;;  %v1465_v32 = vsel %vm1049_vm7, %v12214_v9, %v12216_v41  ;;  %v1346_v20 = vadd.f32 %v1328_v54, %v1208_v62  ;;  %v12224_v54 = vld [vmem:[#allocation63_spill] sm:$0xff] }
 0xc1b   : > { %v1466_v21 = vsel %vm1049_vm7, %v12216_v41, %v12217_v39  ;;  %v1482_v36 = vadd.f32 %v1464_v19, %v1344_v43 }
 0xc1c   : > { %v1483_v28 = vadd.f32 %v1465_v32, %v1345_v18  ;;  %v1484_v51 = vadd.f32 %v1466_v21, %v1346_v20 }
 0xc25   : > { %v9079_v56 = vpop.permute.xlu0 %5173 }
 0xc26   : > { %12165 = vst [vmem:[#allocation16_spill] sm:$0xff] %v9079_v56 }
 0xc27   : > { %v9094_v0 = vpop.permute.xlu1 %5175 }
 0xc28   : > { %12167 = vst [vmem:[#allocation17_spill] sm:$0xff] %v9094_v0 }
 0xc2a   : > { %v9111_v13 = vpop.permute.xlu0 %5177 }
 0xc2b   : > { %12168 = vst [vmem:[#allocation18_spill] sm:$0xff] %v9111_v13  ;;  %v9115_v35 = vpop.permute.xlu1 %5179 }
 0xc2c   : > { %12169 = vst [vmem:[#allocation19_spill] sm:$0xff] %v9115_v35 }
 0xc2e   : > { %v9131_v61 = vpop.permute.xlu0 %5181 }
 0xc2f   : > { %12171 = vst [vmem:[#allocation20_spill] sm:$0xff] %v9131_v61  ;;  %v9139_v25 = vpop.permute.xlu1 %5183 }
 0xc30   : > { %12173 = vst [vmem:[#allocation21_spill] sm:$0xff] %v9139_v25 }
 0xc32   : > { %v9159_v46 = vpop.permute.xlu0 %5185 }
 0xc33   : > { %12178 = vst [vmem:[#allocation23_spill] sm:$0xff] %v9159_v46  ;;  %v9168_v1 = vpop.permute.xlu1 %5187 }
 0xc34   : > { %12181 = vst [vmem:[#allocation22_spill] sm:$0xff] %v9168_v1 }
 0xc36   : > { %v9185_v53 = vpop.permute.xlu0 %5189 }
 0xc37   : > { %12187 = vst [vmem:[#allocation308_spill] sm:$0xff] %v9185_v53  ;;  %v9197_v3 = vpop.permute.xlu1 %5191 }
 0xc38   : > { %12192 = vst [vmem:[#allocation309_spill] sm:$0xff] %v9197_v3 }
 0xc3a   : > { %v5241_v10 = vpop.permute.xlu0 %5240 }
 0xc3b   : > { %v5243_v52 = vpop.permute.xlu1 %5242  ;;  %v5256_v57 = vmul.f32 %v9056_v7, %v5241_v10  ;;  %v1209_v7 = vadd.f32 %v1191_v55, %v1071_v24  ;;  %v12209_v55 = vld [vmem:[#allocation51_spill] sm:$0xff]  ;;  %v5261_v63 = vmul.f32 %v8951_v60, %v5241_v10  ;;  %v12220_v60 = vld [vmem:[#allocation60_spill] sm:$0xff] }
 0xc3c   : > { %v5248_v59 = vsel %vm1049_vm7, %v5241_v10, %v5243_v52  ;;  %v1330_v6 = vsel %vm1049_vm7, %v12210_v27, %v12209_v55  ;;  %v12221_v10 = vld [vmem:[#allocation59_spill] sm:$0xff]  ;;  %v12225_v27 = vld [vmem:[#allocation65_spill] sm:$0xff] }
 0xc3d   : > { %v5257_v14 = vmul.f32 %v9097_v29, %v5248_v59  ;;  %5276 = vrot.lane.b32.xlu0 %v5256_v57, %s6599_s17  ;;  %v12212_v57 = vld [vmem:[#allocation53_spill] sm:$0xff]  ;;  %v1349_v26 = vadd.f32 %v1330_v6, %v1211_v38  ;;  %v5262_v43 = vmul.f32 %v8991_v49, %v5248_v59  ;;  %v12226_v6 = vld [vmem:[#allocation64_spill] sm:$0xff]  ;;  %v12228_v49 = vld [vmem:[#allocation67_spill] sm:$0xff] }
 0xc3e   : > { %v5245_v50 = vpop.permute.xlu0 %5244  ;;  %v1333_v34 = vsel %vm1049_vm7, %v12212_v57, %v12213_v37  ;;  %v12219_v38 = vld [vmem:[#allocation13_spill] sm:$0xff] }
 0xc3f   : > { %v9238_v44 = vpop.permute.xlu1 %5246  ;;  %5278 = vrot.lane.b32.xlu1 %v5257_v14, %s6599_s17  ;;  %v9242_v11 = vsel %vm1049_vm7, %v5243_v52, %v5245_v50  ;;  %v1331_v52 = vsel %vm1049_vm7, %v12209_v55, %v12211_v33  ;;  %v1352_v17 = vadd.f32 %v1333_v34, %v1214_v23 }
 0xc40   : > { %v9249_v31 = vsel %vm1049_vm7, %v5245_v50, %v9238_v44  ;;  %v5258_v24 = vmul.f32 %v9102_v45, %v9242_v11  ;;  %v1347_v45 = vadd.f32 %v1329_v48, %v1209_v7  ;;  %v5260_v14 = vmul.f32 %v9281_v8, %v9238_v44  ;;  %v9285_v7 = vld [vmem:[#allocation6 + $0x25] ss:$8 sm:$0xf] }
 0xc41   : > { %v5259_v15 = vmul.f32 %v9088_v12, %v9249_v31  ;;  %v1332_v12 = vsel %vm1049_vm7, %v12211_v33, %v12212_v57  ;;  %v1350_v5 = vadd.f32 %v1331_v52, %v1212_v16  ;;  %v1353_v50 = vadd.f32 %v12213_v37, %v1215_v2  ;;  %v12218_v48 = vld [vmem:[#allocation58_spill] sm:$0xff]  ;;  %v12222_v16 = vld [vmem:[#allocation61_spill] sm:$0xff] }
 0xc42   : > { %5280 = vrot.lane.b32.xlu0 %v5258_v24, %s6599_s17  ;;  %v1351_v4 = vadd.f32 %v1332_v12, %v1213_v30  ;;  %v1467_v62 = vsel %vm1049_vm7, %v12217_v39, %v12218_v48  ;;  %v5330_v24 = vrot.slane %v9285_v7, %v12219_v38  ;;  %v1468_v2 = vsel %vm1049_vm7, %v12221_v10, %v12220_v60  ;;  %v12223_v30 = vld [vmem:[#allocation62_spill] sm:$0xff] }
 0xc43   : > { %5282 = vrot.lane.b32.xlu1 %v5259_v15, %s6599_s17  ;;  %v1469_v58 = vsel %vm1049_vm7, %v12220_v60, %v12222_v16  ;;  %v1486_v15 = vadd.f32 %v12218_v48, %v1348_v22  ;;  %v1470_v23 = vsel %vm1049_vm7, %v12222_v16, %v12223_v30  ;;  %v1471_v55 = vsel %vm1049_vm7, %v12223_v30, %v12224_v54  ;;  %v12227_v57 = vld [vmem:[#allocation66_spill] sm:$0xff]  ;;  %v12229_v22 = vld [vmem:[#allocation15_spill] sm:$0xff] }
 0xc44   : > { %v1602_v33 = vsel %vm1049_vm7, %v12226_v6, %v12225_v27  ;;  %v1485_v52 = vadd.f32 %v1467_v62, %v1347_v45  ;;  %v1603_v12 = vsel %vm1049_vm7, %v12225_v27, %v12227_v57  ;;  %v1604_v59 = vsel %vm1049_vm7, %v12227_v57, %v12228_v49  ;;  %v12230_v45 = vld [vmem:[#allocation12_spill] sm:$0xff]  ;;  %v12234_v48 = vld [vmem:[#allocation71_spill] sm:$0xff]  ;;  %v12239_v16 = vld [vmem:[#allocation74_spill] sm:$0xff] }
 0xc45   : > { %v5334_v37 = vrot.slane %v9285_v7, %v12229_v22  ;;  %v1487_v34 = vadd.f32 %v1468_v2, %v1349_v26  ;;  %v1488_v18 = vadd.f32 %v1469_v58, %v1350_v5  ;;  %v1491_v9 = vadd.f32 %v12224_v54, %v1353_v50  ;;  %v9332_v39 = vld [vmem:[#allocation6 + $0x44] ss:$8 sm:$0xf] }
 0xc46   : > { %5284 = vrot.lane.b32.xlu0 %v5260_v14, %s6599_s17  ;;  %v5338_v47 = vrot.slane %v9285_v7, %v12230_v45  ;;  %v1489_v19 = vadd.f32 %v1470_v23, %v1351_v4  ;;  %v1490_v41 = vadd.f32 %v1471_v55, %v1352_v17  ;;  %v1620_v32 = vadd.f32 %v1602_v33, %v1482_v36  ;;  %v12231_v14 = vld [vmem:[#allocation68_spill] sm:$0xff]  ;;  %v12232_v26 = vld [vmem:[#allocation70_spill] sm:$0xff]  ;;  %v12233_v5 = vld [vmem:[#allocation69_spill] sm:$0xff] }
 0xc47   : > { %5286 = vrot.lane.b32.xlu1 %v5261_v63, %s6599_s17  ;;  %v1605_v20 = vsel %vm1049_vm7, %v12228_v49, %v12231_v14  ;;  %v1621_v21 = vadd.f32 %v1603_v12, %v1483_v28  ;;  %v1622_v63 = vadd.f32 %v1604_v59, %v1484_v51  ;;  %v1606_v50 = vsel %vm1049_vm7, %v12233_v5, %v12232_v26  ;;  %v12235_v17 = vld [vmem:[#allocation72_spill] sm:$0xff]  ;;  %v12237_v28 = vld [vmem:[#allocation14_spill] sm:$0xff]  ;;  %v12238_v2 = vld [vmem:[#allocation75_spill] sm:$0xff] }
 0xc48   : > { %v1607_v62 = vsel %vm1049_vm7, %v12232_v26, %v12234_v48  ;;  %v1624_v4 = vadd.f32 %v12231_v14, %v1486_v15  ;;  %v1608_v36 = vsel %vm1049_vm7, %v12234_v48, %v12235_v17  ;;  %v5342_v51 = vrot.slane %v9285_v7, %v12237_v28  ;;  %v12241_v27 = vld [vmem:[#allocation77_spill] sm:$0xff]  ;;  %v12243_v12 = vld [vmem:[#allocation80_spill] sm:$0xff]  ;;  %v12244_v49 = vld [vmem:[#allocation79_spill] sm:$0xff] }
 0xc49   : > { %v1623_v10 = vadd.f32 %v1605_v20, %v1485_v52  ;;  %v1740_v58 = vsel %vm1049_vm7, %v12239_v16, %v12238_v2  ;;  %v5468_v30 = vrot.slane %v9332_v39, %v12219_v38  ;;  %v1625_v23 = vadd.f32 %v1606_v50, %v1487_v34  ;;  %v12242_v52 = vld [vmem:[#allocation78_spill] sm:$0xff]  ;;  %v12245_v34 = vld [vmem:[#allocation81_spill] sm:$0xff]  ;;  %v12247_v5 = vld [vmem:[#allocation83_spill] sm:$0xff] }
 0xc4a   : > { %5288 = vrot.lane.b32.xlu0 %v5262_v43, %s6599_s17  ;;  %v12240_v43 = vld [vmem:[#allocation76_spill] sm:$0xff]  ;;  %v1626_v54 = vadd.f32 %v1607_v62, %v1488_v18  ;;  %v1627_v6 = vadd.f32 %v1608_v36, %v1489_v19  ;;  %v1743_v57 = vsel %vm1049_vm7, %v12241_v27, %v12242_v52  ;;  %v1744_v59 = vsel %vm1049_vm7, %v12244_v49, %v12243_v12  ;;  %v12246_v14 = vld [vmem:[#allocation82_spill] sm:$0xff]  ;;  %v12248_v48 = vld [vmem:[#allocation85_spill] sm:$0xff] }
 0xc4b   : > { %5343 = vrot.lane.b32.xlu1 %v5330_v24, %s6600_s25  ;;  %v12236_v24 = vld [vmem:[#allocation73_spill] sm:$0xff]  ;;  %v1741_v15 = vsel %vm1049_vm7, %v12238_v2, %v12240_v43  ;;  %v1742_v7 = vsel %vm1049_vm7, %v12240_v43, %v12241_v27  ;;  %v1745_v18 = vsel %vm1049_vm7, %v12243_v12, %v12245_v34  ;;  %v1746_v20 = vsel %vm1049_vm7, %v12245_v34, %v12246_v14  ;;  %v12249_v62 = vld [vmem:[#allocation84_spill] sm:$0xff]  ;;  %v12253_v43 = vld [vmem:[#allocation90_spill] sm:$0xff] }
 0xc4c   : > { %v1609_v60 = vsel %vm1049_vm7, %v12235_v17, %v12236_v24  ;;  %v1629_v55 = vadd.f32 %v12236_v24, %v1491_v9  ;;  %v5472_v9 = vrot.slane %v9332_v39, %v12229_v22  ;;  %v1760_v19 = vadd.f32 %v1742_v7, %v1622_v63  ;;  %v12250_v24 = vld [vmem:[#allocation86_spill] sm:$0xff]  ;;  %v12252_v16 = vld [vmem:[#allocation88_spill] sm:$0xff]  ;;  %v12255_v27 = vld [vmem:[#allocation91_spill] sm:$0xff] }
 0xc4d   : > { %v1628_v33 = vadd.f32 %v1609_v60, %v1490_v41  ;;  %v1762_v41 = vadd.f32 %v12242_v52, %v1624_v4  ;;  %v1763_v26 = vadd.f32 %v1744_v59, %v1625_v23  ;;  %v1747_v50 = vsel %vm1049_vm7, %v12246_v14, %v12247_v5  ;;  %v9388_v4 = vld [vmem:[#allocation6 + $0x63] ss:$8 sm:$0xf] }
 0xc4e   : > { %5345 = vrot.lane.b32.xlu0 %v5334_v37, %s6600_s25  ;;  %v1758_v37 = vadd.f32 %v1740_v58, %v1620_v32  ;;  %v5476_v32 = vrot.slane %v9332_v39, %v12230_v45  ;;  %v1878_v63 = vsel %vm1049_vm7, %v12249_v62, %v12248_v48  ;;  %v1764_v17 = vadd.f32 %v1745_v18, %v1626_v54  ;;  %v12256_v49 = vld [vmem:[#allocation92_spill] sm:$0xff]  ;;  %v12258_v18 = vld [vmem:[#allocation95_spill] sm:$0xff] }
 0xc4f   : > { %5347 = vrot.lane.b32.xlu1 %v5338_v47, %s6600_s25  ;;  %v1759_v47 = vadd.f32 %v1741_v15, %v1621_v21  ;;  %v1761_v21 = vadd.f32 %v1743_v57, %v1623_v10  ;;  %v1767_v36 = vadd.f32 %v12247_v5, %v1629_v55  ;;  %v1879_v60 = vsel %vm1049_vm7, %v12248_v48, %v12250_v24  ;;  %v12254_v15 = vld [vmem:[#allocation89_spill] sm:$0xff] }
 0xc50   : > { %v1765_v2 = vadd.f32 %v1746_v20, %v1627_v6  ;;  %v5480_v23 = vrot.slane %v9332_v39, %v12237_v28  ;;  %v1766_v54 = vadd.f32 %v1747_v50, %v1628_v33  ;;  %v1896_v55 = vadd.f32 %v1878_v63, %v1758_v37  ;;  %v12257_v37 = vld [vmem:[#allocation93_spill] sm:$0xff]  ;;  %v12262_v50 = vld [vmem:[#allocation98_spill] sm:$0xff] }
 0xc51   : > { %v1883_v7 = vsel %vm1049_vm7, %v12253_v43, %v12255_v27  ;;  %v5606_v6 = vrot.slane %v9388_v4, %v12219_v38  ;;  %v1897_v52 = vadd.f32 %v1879_v60, %v1759_v47  ;;  %v1900_v12 = vadd.f32 %v12252_v16, %v1762_v41  ;;  %v12264_v60 = vld [vmem:[#allocation99_spill] sm:$0xff] }
 0xc52   : > { %5349 = vrot.lane.b32.xlu0 %v5342_v51, %s6600_s25  ;;  %v12251_v51 = vld [vmem:[#allocation87_spill] sm:$0xff]  ;;  %v1884_v59 = vsel %vm1049_vm7, %v12255_v27, %v12256_v49  ;;  %v1885_v34 = vsel %vm1049_vm7, %v12256_v49, %v12257_v37  ;;  %v1902_v20 = vadd.f32 %v1883_v7, %v1764_v17  ;;  %v5614_v62 = vrot.slane %v9388_v4, %v12230_v45  ;;  %v12268_v27 = vld [vmem:[#allocation105_spill] sm:$0xff]  ;;  %v12269_v7 = vld [vmem:[#allocation104_spill] sm:$0xff] }
 0xc53   : > { %5481 = vrot.lane.b32.xlu1 %v5468_v30, %s6600_s25  ;;  %v1880_v10 = vsel %vm1049_vm7, %v12250_v24, %v12251_v51  ;;  %v1881_v58 = vsel %vm1049_vm7, %v12251_v51, %v12252_v16  ;;  %v1882_v30 = vsel %vm1049_vm7, %v12254_v15, %v12253_v43  ;;  %v1903_v5 = vadd.f32 %v1884_v59, %v1765_v2  ;;  %v12263_v24 = vld [vmem:[#allocation100_spill] sm:$0xff]  ;;  %v12266_v43 = vld [vmem:[#allocation102_spill] sm:$0xff] }
 0xc54   : > { %v1898_v57 = vadd.f32 %v1880_v10, %v1760_v19  ;;  %v1899_v39 = vadd.f32 %v1881_v58, %v1761_v21  ;;  %v1901_v33 = vadd.f32 %v1882_v30, %v1763_v26  ;;  %v12261_v19 = vld [vmem:[#allocation97_spill] sm:$0xff]  ;;  %v5610_v21 = vrot.slane %v9388_v4, %v12229_v22  ;;  %v12267_v30 = vld [vmem:[#allocation103_spill] sm:$0xff]  ;;  %v12270_v59 = vld [vmem:[#allocation106_spill] sm:$0xff] }
 0xc55   : > { %v1905_v26 = vadd.f32 %v12257_v37, %v1767_v36  ;;  %v1984_v48 = vsel %vm1000_vm1, %v12261_v19, %v12262_v50  ;;  %v1904_v63 = vadd.f32 %v1885_v34, %v1766_v54  ;;  %v1985_v51 = vsel %vm1000_vm1, %v12264_v60, %v12263_v24  ;;  %v12265_v10 = vld [vmem:[#allocation101_spill] sm:$0xff]  ;;  %v12278_v60 = vld [vmem:[#allocation115_spill] sm:$0xff] }
 0xc56   : > { %5483 = vrot.lane.b32.xlu0 %v5472_v9, %s6600_s25  ;;  %v12259_v9 = vld [vmem:[#allocation94_spill] sm:$0xff]  ;;  %v1986_v36 = vsel %vm1000_vm1, %v12263_v24, %v12265_v10  ;;  %v1987_v15 = vsel %vm1000_vm1, %v12265_v10, %v12266_v43  ;;  %v2002_v54 = vadd.f32 %v1984_v48, %v1899_v39  ;;  %v2120_v37 = vsel %vm1000_vm1, %v12268_v27, %v12270_v59  ;;  %v12277_v48 = vld [vmem:[#allocation113_spill] sm:$0xff] }
 0xc57   : > { %5485 = vrot.lane.b32.xlu1 %v5476_v32, %s6600_s25  ;;  %v1981_v14 = vsel %vm1000_vm1, %v12259_v9, %v12258_v18  ;;  %v12260_v32 = vld [vmem:[#allocation96_spill] sm:$0xff]  ;;  %v2005_v49 = vadd.f32 %v1986_v36, %v1902_v20  ;;  %v2008_v39 = vadd.f32 %v12267_v30, %v1905_v26  ;;  %v2006_v34 = vadd.f32 %v1987_v15, %v1903_v5  ;;  %v12271_v9 = vld [vmem:[#allocation107_spill] sm:$0xff] }
 0xc58   : > { %v1982_v47 = vsel %vm1000_vm1, %v12258_v18, %v12260_v32  ;;  %v1983_v41 = vsel %vm1000_vm1, %v12260_v32, %v12261_v19  ;;  %v1999_v17 = vadd.f32 %v1981_v14, %v1896_v55  ;;  %v9444_v2 = vld [vmem:[#allocation6 + $0x82] ss:$8 sm:$0xf]  ;;  %v2003_v55 = vadd.f32 %v12262_v50, %v1900_v12 }
 0xc59   : > { %v2000_v16 = vadd.f32 %v1982_v47, %v1897_v52  ;;  %v2001_v58 = vadd.f32 %v1983_v41, %v1898_v57  ;;  %v5618_v52 = vrot.slane %v9388_v4, %v12237_v28  ;;  %v2004_v57 = vadd.f32 %v1985_v51, %v1901_v33  ;;  %v12272_v33 = vld [vmem:[#allocation108_spill] sm:$0xff]  ;;  %v12273_v32 = vld [vmem:[#allocation110_spill] sm:$0xff]  ;;  %v12274_v47 = vld [vmem:[#allocation109_spill] sm:$0xff] }
 0xc5a   : > { %5487 = vrot.lane.b32.xlu0 %v5480_v23, %s6600_s25  ;;  %v1988_v23 = vsel %vm1000_vm1, %v12266_v43, %v12267_v30  ;;  %v5744_v12 = vrot.slane %v9444_v2, %v12219_v38  ;;  %v2121_v14 = vsel %vm1000_vm1, %v12270_v59, %v12271_v9  ;;  %v2122_v20 = vsel %vm1000_vm1, %v12271_v9, %v12272_v33  ;;  %v12275_v41 = vld [vmem:[#allocation111_spill] sm:$0xff]  ;;  %v12276_v5 = vld [vmem:[#allocation112_spill] sm:$0xff]  ;;  %v12279_v51 = vld [vmem:[#allocation114_spill] sm:$0xff] }
 0xc5b   : > { %5619 = vrot.lane.b32.xlu1 %v5606_v6, %s6600_s25  ;;  %v2119_v6 = vsel %vm1000_vm1, %v12269_v7, %v12268_v27  ;;  %v2007_v18 = vadd.f32 %v1988_v23, %v1904_v63  ;;  %v2123_v19 = vsel %vm1000_vm1, %v12274_v47, %v12273_v32  ;;  %v2138_v26 = vadd.f32 %v2120_v37, %v2000_v16  ;;  %v12280_v30 = vld [vmem:[#allocation116_spill] sm:$0xff]  ;;  %v12282_v37 = vld [vmem:[#allocation118_spill] sm:$0xff]  ;;  %v12287_v47 = vld [vmem:[#allocation123_spill] sm:$0xff] }
 0xc5c   : > { %v2137_v4 = vadd.f32 %v2119_v6, %v1999_v17  ;;  %v2125_v50 = vsel %vm1000_vm1, %v12275_v41, %v12276_v5  ;;  %v5748_v63 = vrot.slane %v9444_v2, %v12229_v22  ;;  %v2139_v17 = vadd.f32 %v2121_v14, %v2001_v58  ;;  %v9497_v27 = vld [vmem:[#allocation6 + $0xa1] ss:$8 sm:$0xf] }
 0xc5d   : > { %v2141_v24 = vadd.f32 %v12272_v33, %v2003_v55  ;;  %v2257_v10 = vsel %vm1000_vm1, %v12279_v51, %v12278_v60  ;;  %v5752_v36 = vrot.slane %v9444_v2, %v12230_v45  ;;  %v2140_v16 = vadd.f32 %v2122_v20, %v2002_v54  ;;  %v12281_v6 = vld [vmem:[#allocation117_spill] sm:$0xff]  ;;  %v12286_v14 = vld [vmem:[#allocation122_spill] sm:$0xff] }
 0xc5e   : > { %5621 = vrot.lane.b32.xlu0 %v5610_v21, %s6600_s25  ;;  %v2124_v21 = vsel %vm1000_vm1, %v12273_v32, %v12275_v41  ;;  %v2142_v43 = vadd.f32 %v2123_v19, %v2004_v57  ;;  %v2258_v23 = vsel %vm1000_vm1, %v12278_v60, %v12280_v30  ;;  %v2146_v58 = vadd.f32 %v12277_v48, %v2008_v39  ;;  %v12283_v57 = vld [vmem:[#allocation120_spill] sm:$0xff]  ;;  %v12288_v19 = vld [vmem:[#allocation125_spill] sm:$0xff] }
 0xc5f   : > { %5623 = vrot.lane.b32.xlu1 %v5614_v62, %s6600_s25  ;;  %v2126_v62 = vsel %vm1000_vm1, %v12276_v5, %v12277_v48  ;;  %v2143_v15 = vadd.f32 %v2124_v21, %v2005_v49  ;;  %v2144_v55 = vadd.f32 %v2125_v50, %v2006_v34  ;;  %v2275_v59 = vadd.f32 %v2257_v10, %v2137_v4  ;;  %v12284_v49 = vld [vmem:[#allocation119_spill] sm:$0xff]  ;;  %v12289_v41 = vld [vmem:[#allocation124_spill] sm:$0xff]  ;;  %v12290_v50 = vld [vmem:[#allocation126_spill] sm:$0xff] }
 0xc60   : > { %v2145_v7 = vadd.f32 %v2126_v62, %v2007_v18  ;;  %v2260_v54 = vsel %vm1000_vm1, %v12281_v6, %v12282_v37  ;;  %v5756_v39 = vrot.slane %v9444_v2, %v12237_v28  ;;  %v2276_v34 = vadd.f32 %v2258_v23, %v2138_v26  ;;  %v12285_v18 = vld [vmem:[#allocation121_spill] sm:$0xff]  ;;  %v12291_v62 = vld [vmem:[#allocation127_spill] sm:$0xff] }
 0xc61   : > { %v2262_v9 = vsel %vm1000_vm1, %v12283_v57, %v12285_v18  ;;  %v2263_v4 = vsel %vm1000_vm1, %v12285_v18, %v12286_v14  ;;  %v5882_v33 = vrot.slane %v9497_v27, %v12219_v38  ;;  %v2279_v32 = vadd.f32 %v12282_v37, %v2141_v24 }
 0xc62   : > { %5625 = vrot.lane.b32.xlu0 %v5618_v52, %s6600_s25  ;;  %v2259_v52 = vsel %vm1000_vm1, %v12280_v30, %v12281_v6  ;;  %v2264_v2 = vsel %vm1000_vm1, %v12286_v14, %v12287_v47  ;;  %v2395_v21 = vsel %vm1000_vm1, %v12289_v41, %v12288_v19  ;;  %v2278_v26 = vadd.f32 %v2260_v54, %v2140_v16  ;;  %v12292_v16 = vld [vmem:[#allocation128_spill] sm:$0xff] }
 0xc63   : > { %5757 = vrot.lane.b32.xlu1 %v5744_v12, %s6600_s25  ;;  %v2261_v12 = vsel %vm1000_vm1, %v12284_v49, %v12283_v57  ;;  %v2277_v20 = vadd.f32 %v2259_v52, %v2139_v17  ;;  %v2396_v48 = vsel %vm1000_vm1, %v12288_v19, %v12290_v50  ;;  %v2281_v17 = vadd.f32 %v2262_v9, %v2143_v15  ;;  %v12295_v52 = vld [vmem:[#allocation131_spill] sm:$0xff]  ;;  %v12296_v54 = vld [vmem:[#allocation132_spill] sm:$0xff]  ;;  %v12297_v49 = vld [vmem:[#allocation133_spill] sm:$0xff] }
 0xc64   : > { %v2280_v5 = vadd.f32 %v2261_v12, %v2142_v43  ;;  %v2284_v24 = vadd.f32 %v12287_v47, %v2146_v58  ;;  %v2282_v60 = vadd.f32 %v2263_v4, %v2144_v55  ;;  %v5886_v51 = vrot.slane %v9497_v27, %v12229_v22  ;;  %v12293_v58 = vld [vmem:[#allocation130_spill] sm:$0xff]  ;;  %v12294_v55 = vld [vmem:[#allocation129_spill] sm:$0xff]  ;;  %v12300_v14 = vld [vmem:[#allocation136_spill] sm:$0xff] }
 0xc65   : > { %v2283_v10 = vadd.f32 %v2264_v2, %v2145_v7  ;;  %v2398_v43 = vsel %vm1000_vm1, %v12291_v62, %v12292_v16  ;;  %v5890_v30 = vrot.slane %v9497_v27, %v12230_v45  ;;  %v2414_v15 = vadd.f32 %v2396_v48, %v2276_v34  ;;  %v12299_v34 = vld [vmem:[#allocation134_spill] sm:$0xff] }
 0xc66   : > { %5759 = vrot.lane.b32.xlu0 %v5748_v63, %s6600_s25  ;;  %v2397_v63 = vsel %vm1000_vm1, %v12290_v50, %v12291_v62  ;;  %v2399_v6 = vsel %vm1000_vm1, %v12294_v55, %v12293_v58  ;;  %v2400_v7 = vsel %vm1000_vm1, %v12293_v58, %v12295_v52  ;;  %v2417_v37 = vadd.f32 %v12292_v16, %v2279_v32  ;;  %v12302_v48 = vld [vmem:[#allocation138_spill] sm:$0xff]  ;;  %v12303_v16 = vld [vmem:[#allocation140_spill] sm:$0xff] }
 0xc67   : > { %5761 = vrot.lane.b32.xlu1 %v5752_v36, %s6600_s25  ;;  %v2413_v36 = vadd.f32 %v2395_v21, %v2275_v59  ;;  %v2415_v23 = vadd.f32 %v2397_v63, %v2277_v20  ;;  %v9550_v59 = vld [vmem:[#allocation6 + $0xc0] ss:$8 sm:$0xf]  ;;  %v2401_v57 = vsel %vm1000_vm1, %v12295_v52, %v12296_v54  ;;  %v2402_v12 = vsel %vm1000_vm1, %v12296_v54, %v12297_v49 }
 0xc68   : > { %v2416_v9 = vadd.f32 %v2398_v43, %v2278_v26  ;;  %v5894_v32 = vrot.slane %v9497_v27, %v12237_v28  ;;  %v2418_v47 = vadd.f32 %v2399_v6, %v2280_v5  ;;  %v2419_v2 = vadd.f32 %v2400_v7, %v2281_v17  ;;  %v12304_v27 = vld [vmem:[#allocation139_spill] sm:$0xff]  ;;  %v12305_v17 = vld [vmem:[#allocation141_spill] sm:$0xff]  ;;  %v12306_v43 = vld [vmem:[#allocation142_spill] sm:$0xff] }
 0xc69   : > { %v2422_v19 = vadd.f32 %v12297_v49, %v2284_v24  ;;  %v6020_v41 = vrot.slane %v9550_v59, %v12219_v38  ;;  %v2420_v21 = vadd.f32 %v2401_v57, %v2282_v60  ;;  %v2421_v26 = vadd.f32 %v2402_v12, %v2283_v10  ;;  %v12307_v60 = vld [vmem:[#allocation143_spill] sm:$0xff]  ;;  %v12310_v6 = vld [vmem:[#allocation146_spill] sm:$0xff] }
 0xc6a   : > { %5763 = vrot.lane.b32.xlu0 %v5756_v39, %s6600_s25  ;;  %v12298_v39 = vld [vmem:[#allocation135_spill] sm:$0xff]  ;;  %v2537_v5 = vsel %vm1000_vm1, %v12304_v27, %v12303_v16  ;;  %v2538_v24 = vsel %vm1000_vm1, %v12303_v16, %v12305_v17  ;;  %v2539_v38 = vsel %vm1000_vm1, %v12305_v17, %v12306_v43  ;;  %v2540_v10 = vsel %vm1000_vm1, %v12306_v43, %v12307_v60  ;;  %v12320_v27 = vld [vmem:[#allocation156_spill] sm:$0xff] }
 0xc6b   : > { %5895 = vrot.lane.b32.xlu1 %v5882_v33, %s6600_s25  ;;  %v2533_v18 = vsel %vm1000_vm1, %v12299_v34, %v12298_v39  ;;  %v2534_v4 = vsel %vm1000_vm1, %v12298_v39, %v12300_v14  ;;  %v12301_v33 = vld [vmem:[#allocation137_spill] sm:$0xff]  ;;  %v2555_v55 = vadd.f32 %v12302_v48, %v2417_v37  ;;  %v6028_v7 = vrot.slane %v9550_v59, %v12230_v45  ;;  %v12311_v12 = vld [vmem:[#allocation147_spill] sm:$0xff] }
 0xc6c   : > { %v2535_v20 = vsel %vm1000_vm1, %v12300_v14, %v12301_v33  ;;  %v2551_v50 = vadd.f32 %v2533_v18, %v2413_v36  ;;  %v2536_v62 = vsel %vm1000_vm1, %v12301_v33, %v12302_v48  ;;  %v2552_v63 = vadd.f32 %v2534_v4, %v2414_v15  ;;  %v12308_v36 = vld [vmem:[#allocation145_spill] sm:$0xff]  ;;  %v12312_v18 = vld [vmem:[#allocation148_spill] sm:$0xff]  ;;  %v12313_v4 = vld [vmem:[#allocation150_spill] sm:$0xff] }
 0xc6d   : > { %v2554_v58 = vadd.f32 %v2536_v62, %v2416_v9  ;;  %v2672_v52 = vsel %vm1000_vm1, %v12308_v36, %v12310_v6  ;;  %v2556_v54 = vadd.f32 %v2537_v5, %v2418_v47  ;;  %v2557_v57 = vadd.f32 %v2538_v24, %v2419_v2  ;;  %v12314_v33 = vld [vmem:[#allocation149_spill] sm:$0xff]  ;;  %v12318_v62 = vld [vmem:[#allocation155_spill] sm:$0xff] }
 0xc6e   : > { %5897 = vrot.lane.b32.xlu0 %v5886_v51, %s6600_s25  ;;  %v2553_v51 = vadd.f32 %v2535_v20, %v2415_v23  ;;  %v6024_v23 = vrot.slane %v9550_v59, %v12229_v22  ;;  %v2560_v49 = vadd.f32 %v12307_v60, %v2422_v19  ;;  %v2673_v22 = vsel %vm1000_vm1, %v12310_v6, %v12311_v12  ;;  %v12315_v20 = vld [vmem:[#allocation151_spill] sm:$0xff] }
 0xc6f   : > { %5899 = vrot.lane.b32.xlu1 %v5890_v30, %s6600_s25  ;;  %v12309_v30 = vld [vmem:[#allocation144_spill] sm:$0xff]  ;;  %v2558_v39 = vadd.f32 %v2539_v38, %v2420_v21  ;;  %v2559_v34 = vadd.f32 %v2540_v10, %v2421_v26  ;;  %v2674_v9 = vsel %vm1000_vm1, %v12311_v12, %v12312_v18  ;;  %v2690_v14 = vadd.f32 %v2672_v52, %v2552_v63  ;;  %v12317_v26 = vld [vmem:[#allocation153_spill] sm:$0xff]  ;;  %v12319_v63 = vld [vmem:[#allocation154_spill] sm:$0xff] }
 0xc70   : > { %v2671_v15 = vsel %vm1000_vm1, %v12309_v30, %v12308_v36  ;;  %v2675_v45 = vsel %vm1000_vm1, %v12314_v33, %v12313_v4  ;;  %v6032_v47 = vrot.slane %v9550_v59, %v12237_v28  ;;  %v2691_v2 = vadd.f32 %v2673_v22, %v2553_v51  ;;  %v12321_v59 = vld [vmem:[#allocation157_spill] sm:$0xff]  ;;  %v12322_v10 = vld [vmem:[#allocation158_spill] sm:$0xff]  ;;  %v12323_v30 = vld [vmem:[#allocation160_spill] sm:$0xff] }
 0xc71   : > { %v2689_v37 = vadd.f32 %v2671_v15, %v2551_v50  ;;  %v2693_v19 = vadd.f32 %v12312_v18, %v2555_v55  ;;  %v2692_v48 = vadd.f32 %v2674_v9, %v2554_v58  ;;  %v2809_v16 = vsel %vm1000_vm1, %v12319_v63, %v12318_v62  ;;  %v12324_v15 = vld [vmem:[#allocation159_spill] sm:$0xff]  ;;  %v12325_v52 = vld [vmem:[#allocation161_spill] sm:$0xff]  ;;  %v9662_v9 = vld [vmem:[#allocation2 + $0x10] sm:$0xff] }
 0xc72   : > { %5901 = vrot.lane.b32.xlu0 %v5894_v32, %s6600_s25  ;;  %v2676_v32 = vsel %vm1000_vm1, %v12313_v4, %v12315_v20  ;;  %v2810_v28 = vsel %vm1000_vm1, %v12318_v62, %v12320_v27  ;;  %v2811_v51 = vsel %vm1000_vm1, %v12320_v27, %v12321_v59  ;;  %v2694_v5 = vadd.f32 %v2675_v45, %v2556_v54  ;;  %v12330_v45 = vld [vmem:[#allocation166_spill] sm:$0xff]  ;;  %v12335_v62 = vld [vmem:[#allocation171_spill] sm:$0xff] }
 0xc73   : > { %6033 = vrot.lane.b32.xlu1 %v6020_v41, %s6600_s25  ;;  %v12316_v41 = vld [vmem:[#allocation152_spill] sm:$0xff]  ;;  %v2695_v17 = vadd.f32 %v2676_v32, %v2557_v57  ;;  %v2698_v24 = vadd.f32 %v12317_v26, %v2560_v49  ;;  %v5263_v43 = vmul.f32 %v8995_v40, %v9242_v11  ;;  %v2812_v36 = vsel %vm1000_vm1, %v12321_v59, %v12322_v10  ;;  %v12326_v11 = vld [vmem:[#allocation162_spill] sm:$0xff]  ;;  %v12327_v57 = vld [vmem:[#allocation163_spill] sm:$0xff] }
 0xc74   : > { %v2677_v21 = vsel %vm1000_vm1, %v12315_v20, %v12316_v41  ;;  %v2678_v50 = vsel %vm1000_vm1, %v12316_v41, %v12317_v26  ;;  %v2827_v58 = vadd.f32 %v2809_v16, %v2689_v37  ;;  %v2828_v55 = vadd.f32 %v2810_v28, %v2690_v14  ;;  %v12329_v37 = vld [vmem:[#allocation164_spill] sm:$0xff]  ;;  %v12331_v32 = vld [vmem:[#allocation167_spill] sm:$0xff]  ;;  %v12336_v59 = vld [vmem:[#allocation173_spill] sm:$0xff] }
 0xc75   : > { %v2696_v38 = vadd.f32 %v2677_v21, %v2558_v39  ;;  %v2697_v60 = vadd.f32 %v2678_v50, %v2559_v34  ;;  %v2829_v6 = vadd.f32 %v2811_v51, %v2691_v2  ;;  %v2831_v40 = vadd.f32 %v12322_v10, %v2693_v19  ;;  %v12328_v34 = vld [vmem:[#allocation165_spill] sm:$0xff]  ;;  %v12333_v41 = vld [vmem:[#allocation168_spill] sm:$0xff]  ;;  %v12334_v50 = vld [vmem:[#allocation170_spill] sm:$0xff] }
 0xc76   : > { %6035 = vrot.lane.b32.xlu0 %v6024_v23, %s6600_s25  ;;  %v2813_v23 = vsel %vm1000_vm1, %v12324_v15, %v12323_v30  ;;  %v2815_v54 = vsel %vm1000_vm1, %v12325_v52, %v12326_v11  ;;  %v2816_v49 = vsel %vm1000_vm1, %v12326_v11, %v12327_v57  ;;  %v5264_v12 = vmul.f32 %v8961_v42, %v9249_v31  ;;  %v12332_v19 = vld [vmem:[#allocation169_spill] sm:$0xff]  ;;  %v12337_v51 = vld [vmem:[#allocation172_spill] sm:$0xff]  ;;  %v12343_v11 = vld [vmem:[#allocation179_spill] sm:$0xff] }
 0xc77   : > { %6037 = vrot.lane.b32.xlu1 %v6028_v7, %s6600_s25  ;;  %v2814_v7 = vsel %vm1000_vm1, %v12323_v30, %v12325_v52  ;;  %v2830_v22 = vadd.f32 %v2812_v36, %v2692_v48  ;;  %v2832_v39 = vadd.f32 %v2813_v23, %v2694_v5  ;;  %v2892_v18 = vsel %vm289_vm8, %v12329_v37, %v12328_v34  ;;  %v12340_v23 = vld [vmem:[#allocation177_spill] sm:$0xff] }
 0xc78   : > { %v5265_v14 = vmul.f32 %v9662_v9, %v9238_v44  ;;  %v2833_v4 = vadd.f32 %v2814_v7, %v2695_v17  ;;  %v2836_v33 = vadd.f32 %v12327_v57, %v2698_v24  ;;  %v2893_v20 = vsel %vm289_vm8, %v12328_v34, %v12330_v45  ;;  %v12342_v7 = vld [vmem:[#allocation178_spill] sm:$0xff] }
 0xc79   : > { %v2894_v42 = vsel %vm289_vm8, %v12330_v45, %v12331_v32  ;;  %v2834_v31 = vadd.f32 %v2815_v54, %v2696_v38  ;;  %v2908_v2 = vadd.f32 %v12329_v37, %v2827_v58  ;;  %v2895_v44 = vsel %vm289_vm8, %v12333_v41, %v12332_v19  ;;  %v12341_v58 = vld [vmem:[#allocation176_spill] sm:$0xff] }
 0xc7a   : > { %6039 = vrot.lane.b32.xlu0 %v6032_v47, %s6600_s25  ;;  %v2835_v47 = vadd.f32 %v2816_v49, %v2697_v60  ;;  %v2909_v21 = vadd.f32 %v2892_v18, %v2828_v55  ;;  %v2912_v26 = vadd.f32 %v12331_v32, %v2831_v40  ;;  %v2896_v48 = vsel %vm289_vm8, %v12332_v19, %v12334_v50  ;;  %v12339_v60 = vld [vmem:[#allocation175_spill] sm:$0xff] }
 0xc7b   : > { %5290 = vrot.lane.b32.xlu1 %v5263_v43, %s6599_s17  ;;  %v2897_v63 = vsel %vm289_vm8, %v12334_v50, %v12335_v62  ;;  %v2910_v16 = vadd.f32 %v2893_v20, %v2829_v6  ;;  %v2911_v27 = vadd.f32 %v2894_v42, %v2830_v22  ;;  %v2913_v28 = vadd.f32 %v12333_v41, %v2832_v39  ;;  %v12338_v43 = vld [vmem:[#allocation174_spill] sm:$0xff]  ;;  %v12344_v22 = vld [vmem:[#allocation181_spill] sm:$0xff]  ;;  %v12345_v39 = vld [vmem:[#allocation180_spill] sm:$0xff] }
 0xc7c   : > { %v3001_v5 = vsel %vm289_vm8, %v12337_v51, %v12336_v59  ;;  %v2914_v17 = vadd.f32 %v2895_v44, %v2833_v4  ;;  %v2917_v24 = vadd.f32 %v12335_v62, %v2836_v33  ;;  %v3002_v38 = vsel %vm289_vm8, %v12336_v59, %v12338_v43  ;;  %v12347_v33 = vld [vmem:[#allocation183_spill] sm:$0xff]  ;;  %v12350_v44 = vld [vmem:[#allocation186_spill] sm:$0xff] }
 0xc7d   : > { %v3003_v10 = vsel %vm289_vm8, %v12338_v43, %v12339_v60  ;;  %v2915_v36 = vadd.f32 %v2896_v48, %v2834_v31  ;;  %v2916_v30 = vadd.f32 %v2897_v63, %v2835_v47  ;;  %v3017_v15 = vadd.f32 %v12337_v51, %v2908_v2  ;;  %v12348_v31 = vld [vmem:[#allocation185_spill] sm:$0xff]  ;;  %v12349_v47 = vld [vmem:[#allocation184_spill] sm:$0xff] }
 0xc7e   : > { %5292 = vrot.lane.b32.xlu0 %v5264_v12, %s6599_s17  ;;  %v3004_v55 = vsel %vm289_vm8, %v12341_v58, %v12340_v23  ;;  %v3018_v6 = vadd.f32 %v3001_v5, %v2909_v21  ;;  %v3021_v52 = vadd.f32 %v12339_v60, %v2912_v26  ;;  %v3005_v40 = vsel %vm289_vm8, %v12340_v23, %v12342_v7  ;;  %v12351_v26 = vld [vmem:[#allocation187_spill] sm:$0xff]  ;;  %v12354_v5 = vld [vmem:[#allocation190_spill] sm:$0xff] }
 0xc7f   : > { %5294 = vrot.lane.b32.xlu1 %v5265_v14, %s6599_s17  ;;  %v3006_v54 = vsel %vm289_vm8, %v12342_v7, %v12343_v11  ;;  %v3019_v57 = vadd.f32 %v3002_v38, %v2910_v16  ;;  %v3020_v49 = vadd.f32 %v3003_v10, %v2911_v27  ;;  %v3022_v12 = vadd.f32 %v12341_v58, %v2913_v28  ;;  %v12346_v14 = vld [vmem:[#allocation182_spill] sm:$0xff]  ;;  %v12352_v16 = vld [vmem:[#allocation189_spill] sm:$0xff]  ;;  %v12353_v27 = vld [vmem:[#allocation188_spill] sm:$0xff] }
 0xc80   : > { %v3110_v34 = vsel %vm289_vm8, %v12345_v39, %v12344_v22  ;;  %v3023_v37 = vadd.f32 %v3004_v55, %v2914_v17  ;;  %v3026_v18 = vadd.f32 %v12343_v11, %v2917_v24  ;;  %v3111_v4 = vsel %vm289_vm8, %v12344_v22, %v12346_v14  ;;  %v12355_v24 = vld [vmem:[#allocation191_spill] sm:$0xff]  ;;  %v12358_v55 = vld [vmem:[#allocation194_spill] sm:$0xff] }
 0xc81   : > { %v3112_v45 = vsel %vm289_vm8, %v12346_v14, %v12347_v33  ;;  %v3024_v20 = vadd.f32 %v3005_v40, %v2915_v36  ;;  %v3025_v32 = vadd.f32 %v3006_v54, %v2916_v30  ;;  %v3126_v42 = vadd.f32 %v12345_v39, %v3017_v15  ;;  %v12356_v36 = vld [vmem:[#allocation193_spill] sm:$0xff]  ;;  %v12357_v30 = vld [vmem:[#allocation192_spill] sm:$0xff] }
 0xc82   : > { %v3113_v2 = vsel %vm289_vm8, %v12349_v47, %v12348_v31  ;;  %v3127_v19 = vadd.f32 %v3110_v34, %v3018_v6  ;;  %v3130_v41 = vadd.f32 %v12347_v33, %v3021_v52  ;;  %v3114_v21 = vsel %vm289_vm8, %v12348_v31, %v12350_v44  ;;  %v12359_v52 = vld [vmem:[#allocation195_spill] sm:$0xff]  ;;  %v12362_v34 = vld [vmem:[#allocation198_spill] sm:$0xff] }
 0xc83   : > { %v3115_v50 = vsel %vm289_vm8, %v12350_v44, %v12351_v26  ;;  %v3128_v48 = vadd.f32 %v3111_v4, %v3019_v57  ;;  %v3129_v62 = vadd.f32 %v3112_v45, %v3020_v49  ;;  %v3131_v63 = vadd.f32 %v12349_v47, %v3022_v12  ;;  %v12360_v57 = vld [vmem:[#allocation197_spill] sm:$0xff]  ;;  %v12361_v49 = vld [vmem:[#allocation196_spill] sm:$0xff] }
 0xc84   : > { %v3219_v28 = vsel %vm289_vm8, %v12353_v27, %v12352_v16  ;;  %v3132_v59 = vadd.f32 %v3113_v2, %v3023_v37  ;;  %v3135_v51 = vadd.f32 %v12351_v26, %v3026_v18  ;;  %v3220_v17 = vsel %vm289_vm8, %v12352_v16, %v12354_v5  ;;  %v12363_v18 = vld [vmem:[#allocation199_spill] sm:$0xff]  ;;  %v12366_v2 = vld [vmem:[#allocation202_spill] sm:$0xff] }
 0xc85   : > { %v3221_v43 = vsel %vm289_vm8, %v12354_v5, %v12355_v24  ;;  %v3133_v38 = vadd.f32 %v3114_v21, %v3024_v20  ;;  %v3134_v60 = vadd.f32 %v3115_v50, %v3025_v32  ;;  %v3235_v10 = vadd.f32 %v12353_v27, %v3126_v42  ;;  %v12364_v20 = vld [vmem:[#allocation201_spill] sm:$0xff]  ;;  %v12365_v32 = vld [vmem:[#allocation200_spill] sm:$0xff]  ;;  %v12370_v27 = vld [vmem:[#allocation206_spill] sm:$0xff] }
 0xc86   : > { %v3222_v15 = vsel %vm289_vm8, %v12357_v30, %v12356_v36  ;;  %v3236_v23 = vadd.f32 %v3219_v28, %v3127_v19  ;;  %v3239_v58 = vadd.f32 %v12355_v24, %v3130_v41  ;;  %v3223_v6 = vsel %vm289_vm8, %v12356_v36, %v12358_v55  ;;  %v12367_v41 = vld [vmem:[#allocation203_spill] sm:$0xff]  ;;  %v12372_v5 = vld [vmem:[#allocation209_spill] sm:$0xff] }
 0xc87   : > { %v3224_v7 = vsel %vm289_vm8, %v12358_v55, %v12359_v52  ;;  %v3237_v40 = vadd.f32 %v3220_v17, %v3128_v48  ;;  %v3238_v11 = vadd.f32 %v3221_v43, %v3129_v62  ;;  %v3240_v54 = vadd.f32 %v12357_v30, %v3131_v63  ;;  %v12368_v48 = vld [vmem:[#allocation205_spill] sm:$0xff]  ;;  %v12369_v62 = vld [vmem:[#allocation204_spill] sm:$0xff] }
 0xc88   : > { %v3328_v12 = vsel %vm289_vm8, %v12361_v49, %v12360_v57  ;;  %v3241_v22 = vadd.f32 %v3222_v15, %v3132_v59  ;;  %v3244_v39 = vadd.f32 %v12359_v52, %v3135_v51  ;;  %v3329_v37 = vsel %vm289_vm8, %v12360_v57, %v12362_v34  ;;  %v12371_v59 = vld [vmem:[#allocation207_spill] sm:$0xff]  ;;  %v12373_v17 = vld [vmem:[#allocation208_spill] sm:$0xff]  ;;  %v12376_v57 = vld [vmem:[#allocation213_spill] sm:$0xff] }
 0xc89   : > { %v3330_v14 = vsel %vm289_vm8, %v12362_v34, %v12363_v18  ;;  %v3242_v4 = vadd.f32 %v3223_v6, %v3133_v38  ;;  %v3243_v33 = vadd.f32 %v3224_v7, %v3134_v60  ;;  %v3344_v45 = vadd.f32 %v12361_v49, %v3235_v10  ;;  %v12374_v10 = vld [vmem:[#allocation210_spill] sm:$0xff]  ;;  %v12377_v49 = vld [vmem:[#allocation212_spill] sm:$0xff] }
 0xc8a   : > { %v3331_v42 = vsel %vm289_vm8, %v12365_v32, %v12364_v20  ;;  %v3345_v31 = vadd.f32 %v3328_v12, %v3236_v23  ;;  %v3348_v47 = vadd.f32 %v12363_v18, %v3239_v58  ;;  %v3332_v19 = vsel %vm289_vm8, %v12364_v20, %v12366_v2  ;;  %v12375_v58 = vld [vmem:[#allocation211_spill] sm:$0xff]  ;;  %v12380_v18 = vld [vmem:[#allocation214_spill] sm:$0xff]  ;;  %v12383_v20 = vld [vmem:[#allocation216_spill] sm:$0xff] }
 0xc8b   : > { %v3333_v44 = vsel %vm289_vm8, %v12366_v2, %v12367_v41  ;;  %v3346_v21 = vadd.f32 %v3329_v37, %v3237_v40  ;;  %v3347_v26 = vadd.f32 %v3330_v14, %v3238_v11  ;;  %v3349_v50 = vadd.f32 %v12365_v32, %v3240_v54 }
 0xc8c   : > { %v3437_v63 = vsel %vm289_vm8, %v12369_v62, %v12368_v48  ;;  %v3350_v16 = vadd.f32 %v3331_v42, %v3241_v22  ;;  %v3438_v28 = vsel %vm289_vm8, %v12368_v48, %v12370_v27  ;;  %v3439_v51 = vsel %vm289_vm8, %v12370_v27, %v12371_v59  ;;  %v12378_v22 = vld [vmem:[#allocation221_spill] sm:$0xff]  ;;  %v12384_v42 = vld [vmem:[#allocation218_spill] sm:$0xff] }
 0xc8d   : > { %v3440_v24 = vsel %vm289_vm8, %v12373_v17, %v12372_v5  ;;  %v3353_v43 = vadd.f32 %v12367_v41, %v3244_v39  ;;  %v3351_v38 = vadd.f32 %v3332_v19, %v3242_v4  ;;  %v3352_v60 = vadd.f32 %v3333_v44, %v3243_v33  ;;  %v12379_v39 = vld [vmem:[#allocation220_spill] sm:$0xff]  ;;  %v12381_v4 = vld [vmem:[#allocation215_spill] sm:$0xff]  ;;  %v9823_v44 = vld [vmem:[#allocation2 + $0x60] sm:$0xff] }
 0xc8e   : > { %v3441_v36 = vsel %vm289_vm8, %v12372_v5, %v12374_v10  ;;  %v3453_v30 = vadd.f32 %v12369_v62, %v3344_v45  ;;  %v3454_v15 = vadd.f32 %v3437_v63, %v3345_v31  ;;  %v3457_v23 = vadd.f32 %v12371_v59, %v3348_v47  ;;  %v12382_v45 = vld [vmem:[#allocation217_spill] sm:$0xff]  ;;  %v12385_v47 = vld [vmem:[#allocation219_spill] sm:$0xff] }
 0xc8f   : > { %v3442_v55 = vsel %vm289_vm8, %v12374_v10, %v12375_v58  ;;  %v3455_v6 = vadd.f32 %v3438_v28, %v3346_v21  ;;  %v3456_v52 = vadd.f32 %v3439_v51, %v3347_v26  ;;  %v3458_v7 = vadd.f32 %v12373_v17, %v3349_v50  ;;  %v9819_v19 = vld [vmem:[#allocation2 + $0x68] sm:$0xff]  ;;  %v9829_v62 = vld [vmem:[#allocation2 + $0x18] sm:$0xff] }
 0xc90   : > { %v3459_v40 = vadd.f32 %v3440_v24, %v3350_v16  ;;  %v3462_v11 = vadd.f32 %v12375_v58, %v3353_v43  ;;  %v3460_v54 = vadd.f32 %v3441_v36, %v3351_v38  ;;  %v3546_v12 = vsel %vm289_vm8, %v12377_v49, %v12376_v57  ;;  %v12386_v38 = vld [vmem:[#allocation222_spill] sm:$0xff]  ;;  %v12387_v10 = vld [vmem:[#allocation223_spill] sm:$0xff] }
 0xc91   : > { %v3602_v34 = vsel %vm289_vm8, %v12379_v39, %v12378_v22  ;;  %v3461_v37 = vadd.f32 %v3442_v55, %v3352_v60  ;;  %v3547_v14 = vsel %vm289_vm8, %v12376_v57, %v12380_v18  ;;  %v3548_v33 = vsel %vm289_vm8, %v12380_v18, %v12381_v4  ;;  %v12389_v55 = vld [vmem:[#allocation225_spill] sm:$0xff]  ;;  %v9868_v57 = vld [vmem:[#allocation2 + $0x88] sm:$0xff] }
 0xc92   : > { %v3549_v32 = vsel %vm289_vm8, %v12383_v20, %v12382_v45  ;;  %v3550_v31 = vsel %vm289_vm8, %v12382_v45, %v12384_v42  ;;  %v3551_v2 = vsel %vm289_vm8, %v12384_v42, %v12385_v47  ;;  %v3610_v41 = vmul.f32 %v9819_v19, %v12379_v39  ;;  %v9878_v18 = vld [vmem:[#allocation2 + $0x58] sm:$0xff]  ;;  %v9884_v45 = vld [vmem:[#allocation2 + $0x28] sm:$0x3f] }
 0xc93   : > { %v3615_v21 = vmul.f32 %v9823_v44, %v12379_v39  ;;  %v3562_v26 = vadd.f32 %v12377_v49, %v3453_v30  ;;  %v3563_v50 = vadd.f32 %v3546_v12, %v3454_v15  ;;  %v3611_v48 = vmul.f32 %v9097_v29, %v3602_v34  ;;  %v9871_v12 = vld [vmem:[#allocation2 + $0x20] sm:$0xff]  ;;  %v12391_v39 = vld [vmem:[#allocation227_spill] sm:$0xff] }
 0xc94   : > { %v3616_v63 = vmul.f32 %v9829_v62, %v3602_v34  ;;  %v3566_v16 = vadd.f32 %v12381_v4, %v3457_v23  ;;  %v3564_v27 = vadd.f32 %v3547_v14, %v3455_v6  ;;  %v3565_v28 = vadd.f32 %v3548_v33, %v3456_v52  ;;  %v12390_v6 = vld [vmem:[#allocation224_spill] sm:$0xff] }
 0xc95   : > { %v3567_v59 = vadd.f32 %v12383_v20, %v3458_v7  ;;  %v3568_v51 = vadd.f32 %v3549_v32, %v3459_v40  ;;  %v3571_v5 = vadd.f32 %v12385_v47, %v3462_v11  ;;  %v9835_v17 = vadd.f32 %v3550_v31, %v3460_v54  ;;  %v9864_v11 = vld [vmem:[#allocation2 + $0x48] sm:$0x3f]  ;;  %v9881_v4 = vld [vmem:[#allocation2 + $0x30] sm:$0xff]  ;;  %v12392_v32 = vld [vmem:[#allocation226_spill] sm:$0xff] }
 0xc96   : > { %v9837_v24 = vadd.f32 %v3551_v2, %v3461_v37  ;;  %v9839_v43 = vadd.f32 %v3610_v41, %v3562_v26  ;;  %v3603_v60 = vsel %vm289_vm8, %v12378_v22, %v12386_v38  ;;  %v3604_v36 = vsel %vm289_vm8, %v12386_v38, %v12387_v10  ;;  %v9891_v31 = vld [vmem:[#allocation2 + $0x40] sm:$0xff]  ;;  %v9895_v41 = vld [vmem:[#allocation2 + $0x50] sm:$0x3f] }
 0xc97   : > { %v9841_v29 = vadd.f32 %v3615_v21, %v3567_v59  ;;  %v9849_v30 = vadd.f32 %v3611_v48, %v3563_v50  ;;  %v9851_v15 = vadd.f32 %v3616_v63, %v3568_v51  ;;  %v3614_v23 = vmul.f32 %v9281_v8, %v12387_v10 }
 0xc98   : > { %v3619_v58 = vmul.f32 %v9662_v9, %v12387_v10  ;;  %v3657_v52 = vsel %vm289_vm8, %v12390_v6, %v12389_v55  ;;  %v3665_v7 = vmul.f32 %v9819_v19, %v12390_v6  ;;  %v3670_v40 = vmul.f32 %v9823_v44, %v12390_v6 }
 0xc99   : > { %12388 = vst [vmem:[#allocation28_spill] sm:$0xff] %v9851_v15  ;;  %v3675_v54 = vmul.f32 %v9864_v11, %v12390_v6  ;;  %v3612_v49 = vmul.f32 %v9868_v57, %v3603_v60  ;;  %v3613_v22 = vmul.f32 %v9871_v12, %v3604_v36  ;;  %v3669_v34 = vmul.f32 %v9281_v8, %v12391_v39 }
 0xc9a   : > { %v3674_v37 = vmul.f32 %v9662_v9, %v12391_v39  ;;  %v3617_v14 = vmul.f32 %v9878_v18, %v3603_v60  ;;  %v3618_v33 = vmul.f32 %v9881_v4, %v3604_v36  ;;  %v3679_v20 = vmul.f32 %v9884_v45, %v12391_v39 }
 0xc9b   : > { %v3658_v42 = vsel %vm289_vm8, %v12389_v55, %v12392_v32  ;;  %v3666_v47 = vmul.f32 %v9891_v31, %v3657_v52  ;;  %v3671_v2 = vmul.f32 %v9829_v62, %v3657_v52  ;;  %v3676_v21 = vmul.f32 %v9895_v41, %v3657_v52  ;;  %v9905_v52 = vld [vmem:[#allocation2 + $0x70] sm:$0x3f] }
 0xc9c   : > { %v3659_v26 = vsel %vm289_vm8, %v12392_v32, %v12391_v39  ;;  %v3624_v50 = vadd.f32 %v3614_v23, %v3566_v16  ;;  %v3695_v48 = vrot.slane %v3665_v7, 1  ;;  %v3696_v63 = vrot.slane %v3670_v40, 1 }
 0xc9d   : > { %v3710_v59 = vrot.slane %v3675_v54, 1  ;;  %v3707_v51 = vrot.slane %v3669_v34, 1  ;;  %v3708_v38 = vrot.slane %v3674_v37, 1  ;;  %v3667_v60 = vmul.f32 %v9868_v57, %v3658_v42  ;;  %v9909_v37 = vld [vmem:[#allocation2 + $0x80] sm:$0x3f] }
 0xc9e   : > { %v3672_v10 = vmul.f32 %v9878_v18, %v3658_v42  ;;  %v3718_v36 = vrot.slane %v3679_v20, 1  ;;  %v3668_v55 = vmul.f32 %v9871_v12, %v3659_v26  ;;  %v3673_v6 = vmul.f32 %v9881_v4, %v3659_v26 }
 0xc9f   : > { %v3677_v3 = vmul.f32 %v9905_v52, %v3658_v42  ;;  %v3629_v39 = vadd.f32 %v3619_v58, %v3571_v5  ;;  %v3698_v16 = vrot.slane %v3666_v47, 1  ;;  %v3699_v23 = vrot.slane %v3671_v2, 1 }
 0xca0   : > { %v3712_v7 = vrot.slane %v3676_v21, 1  ;;  %v3622_v40 = vadd.f32 %v3612_v49, %v3564_v27  ;;  %v3623_v54 = vadd.f32 %v3613_v22, %v3565_v28  ;;  %v3697_v34 = vsel %vm373_vm2, %v3695_v48, %v3696_v63 }
 0xca1   : > { %v3678_v20 = vmul.f32 %v9909_v37, %v3659_v26  ;;  %v3711_v32 = vsel %vm373_vm2, %v3696_v63, %v3710_v59  ;;  %v3709_v61 = vsel %vm373_vm2, %v3707_v51, %v3708_v38  ;;  %v3701_v35 = vrot.slane %v3667_v60, 1  ;;  %v12399_v63 = vld [vmem:[#allocation231_spill] sm:$0xff] }
 0xca2   : > { %v3702_v13 = vrot.slane %v3672_v10, 1  ;;  %v3719_v42 = vsel %vm373_vm2, %v3708_v38, %v3718_v36  ;;  %v3704_v5 = vrot.slane %v3668_v55, 1  ;;  %v3705_v58 = vrot.slane %v3673_v6, 1 }
 0xca3   : > { %v3714_v47 = vrot.slane %v3677_v3, 1  ;;  %v3627_v27 = vadd.f32 %v3617_v14, %v9835_v17  ;;  %v3628_v28 = vadd.f32 %v3618_v33, %v9837_v24  ;;  %v9918_v49 = vsel %vm373_vm2, %v3698_v16, %v3699_v23  ;;  %v12397_v24 = vld [vmem:[#allocation230_spill] sm:$0xff]  ;;  %v12398_v14 = vld [vmem:[#allocation229_spill] sm:$0xff] }
 0xca4   : > { %v9921_v22 = vsel %vm373_vm2, %v3699_v23, %v3712_v7  ;;  %v9924_v2 = vadd.f32 %v3697_v34, %v9839_v43  ;;  %v9927_v21 = vadd.f32 %v3711_v32, %v9841_v29  ;;  %v9929_v26 = vadd.f32 %v3709_v61, %v3624_v50  ;;  %v12400_v61 = vld [vmem:[#allocation228_spill] sm:$0xff] }
 0xca5   : > { %12393 = vst [vmem:[#allocation25_spill] sm:$0xff] %v9921_v22  ;;  %v3716_v48 = vrot.slane %v3678_v20, 1  ;;  %v9931_v3 = vadd.f32 %v3719_v42, %v3629_v39  ;;  %v3703_v17 = vsel %vm373_vm2, %v3701_v35, %v3702_v13  ;;  %v3768_v33 = vsel %vm289_vm8, %v12398_v14, %v12397_v24 }
 0xca6   : > { %12394 = vst [vmem:[#allocation29_spill] sm:$0xff] %v9927_v21  ;;  %12395 = vst [vmem:[#allocation30_spill] sm:$0xff] %v9929_v26  ;;  %v3769_v59 = vsel %vm289_vm8, %v12397_v24, %v12399_v63  ;;  %v3706_v43 = vsel %vm373_vm2, %v3704_v5, %v3705_v58  ;;  %v3715_v29 = vsel %vm373_vm2, %v3702_v13, %v3714_v47 }
 0xca7   : > { %12396 = vst [vmem:[#allocation27_spill] sm:$0xff] %v9931_v3  ;;  %v3767_v50 = vsel %vm289_vm8, %v12400_v61, %v12398_v14  ;;  %v3775_v51 = vmul.f32 %v9819_v19, %v12400_v61  ;;  %v3780_v35 = vmul.f32 %v9823_v44, %v12400_v61  ;;  %v3785_v38 = vmul.f32 %v9864_v11, %v12400_v61  ;;  %v12423_v3 = vld [vmem:[#allocation236_spill] sm:$0xff] }
 0xca8   : > { %v3779_v60 = vmul.f32 %v9281_v8, %v12399_v63  ;;  %v3784_v10 = vmul.f32 %v9662_v9, %v12399_v63  ;;  %v3777_v13 = vmul.f32 %v9868_v57, %v3768_v33  ;;  %v3778_v36 = vmul.f32 %v9871_v12, %v3769_v59 }
 0xca9   : > { %v3782_v55 = vmul.f32 %v9878_v18, %v3768_v33  ;;  %v3783_v6 = vmul.f32 %v9881_v4, %v3769_v59  ;;  %v3717_v39 = vsel %vm373_vm2, %v3705_v58, %v3716_v48  ;;  %v3789_v16 = vmul.f32 %v9884_v45, %v12399_v63 }
 0xcaa   : > { %v3787_v23 = vmul.f32 %v9905_v52, %v3768_v33  ;;  %v3788_v8 = vmul.f32 %v9909_v37, %v3769_v59  ;;  %v9967_v34 = vmul.f32 %v9891_v31, %v3767_v50  ;;  %v9970_v20 = vmul.f32 %v9829_v62, %v3767_v50 }
 0xcab   : > { %v9973_v32 = vmul.f32 %v9895_v41, %v3767_v50  ;;  %v3805_v42 = vrot.slane %v3775_v51, 2  ;;  %v3806_v5 = vrot.slane %v3780_v35, 2  ;;  %v3820_v58 = vrot.slane %v3785_v38, 2 }
 0xcac   : > { %v3817_v47 = vrot.slane %v3779_v60, 2  ;;  %v3818_v48 = vrot.slane %v3784_v10, 2  ;;  %v3811_v14 = vrot.slane %v3777_v13, 2  ;;  %v3812_v33 = vrot.slane %v3782_v55, 2  ;;  %v12405_v10 = vld [vmem:[#allocation233_spill] sm:$0xff]  ;;  %v12406_v13 = vld [vmem:[#allocation232_spill] sm:$0xff] }
 0xcad   : > { %12402 = vst [vmem:[#allocation24_spill] sm:$0xff] %v9973_v32  ;;  %v3814_v63 = vrot.slane %v3778_v36, 2  ;;  %v3815_v59 = vrot.slane %v3783_v6, 2  ;;  %v3732_v61 = vadd.f32 %v3703_v17, %v3622_v40  ;;  %v3824_v56 = vrot.slane %v3787_v23, 2  ;;  %v12412_v23 = vld [vmem:[#allocation234_spill] sm:$0xff] }
 0xcae   : > { %v3826_v0 = vrot.slane %v3788_v8, 2  ;;  %v3733_v53 = vadd.f32 %v3706_v43, %v3623_v54  ;;  %v3737_v1 = vadd.f32 %v3715_v29, %v3627_v27  ;;  %v3738_v25 = vadd.f32 %v3717_v39, %v3628_v28 }
 0xcaf   : > { %v9964_v7 = vpop.permute.xlu0 %5276  ;;  %v9981_v35 = vsel %vm484_vm3, %v3805_v42, %v3806_v5  ;;  %v3877_v40 = vsel %vm289_vm8, %v12406_v13, %v12405_v10  ;;  %v9991_v54 = vsel %vm484_vm3, %v3806_v5, %v3820_v58  ;;  %v9994_v27 = vsel %vm484_vm3, %v3817_v47, %v3818_v48 }
 0xcb0   : > { %12401 = vst [vmem:[#allocation31_spill] sm:$0xff] %v9964_v7  ;;  %v3828_v7 = vrot.slane %v3789_v16, 2  ;;  %12408 = vst [vmem:[#allocation40_spill] sm:$0xff] %v9991_v54  ;;  %v3813_v28 = vsel %vm484_vm3, %v3811_v14, %v3812_v33  ;;  %v3816_v43 = vsel %vm484_vm3, %v3814_v63, %v3815_v59  ;;  %v3825_v36 = vsel %vm484_vm3, %v3812_v33, %v3824_v56 }
 0xcb1   : > { %v9975_v24 = vpop.permute.xlu1 %5278  ;;  %12409 = vst [vmem:[#allocation35_spill] sm:$0xff] %v9994_v27  ;;  %v3827_v55 = vsel %vm484_vm3, %v3815_v59, %v3826_v0  ;;  %v10005_v6 = vmul.f32 %v9819_v19, %v12406_v13  ;;  %v10008_v39 = vmul.f32 %v9891_v31, %v3877_v40  ;;  %v10012_v16 = vmul.f32 %v9823_v44, %v12406_v13  ;;  %v10042_v59 = vld [vmem:[#allocation2 + $0x8] sm:$0xff] }
 0xcb2   : > { %12403 = vst [vmem:[#allocation32_spill] sm:$0xff] %v9975_v24  ;;  %v9999_v29 = vsel %vm484_vm3, %v3818_v48, %v3828_v7  ;;  %v3878_v8 = vsel %vm289_vm8, %v12405_v10, %v12412_v23  ;;  %v12413_v7 = vld [vmem:[#allocation235_spill] sm:$0xff]  ;;  %v10022_v42 = vadd.f32 %v3813_v28, %v3732_v61  ;;  %v10024_v5 = vadd.f32 %v3816_v43, %v3733_v53 }
 0xcb3   : > { %12410 = vst [vmem:[#allocation37_spill] sm:$0xff] %v9999_v29  ;;  %12411 = vst [vmem:[#allocation42_spill] sm:$0xff] %v10008_v39  ;;  %v3879_v56 = vsel %vm289_vm8, %v12412_v23, %v12413_v7  ;;  %v10027_v58 = vmul.f32 %v9829_v62, %v3877_v40  ;;  %v10031_v47 = vmul.f32 %v9864_v11, %v12406_v13  ;;  %v12422_v29 = vld [vmem:[#allocation237_spill] sm:$0xff] }
 0xcb4   : > { %v9978_v51 = vpop.permute.xlu0 %5280  ;;  %v10035_v14 = vadd.f32 %v3825_v36, %v3737_v1  ;;  %v10037_v33 = vadd.f32 %v3827_v55, %v3738_v25  ;;  %v10040_v63 = vmul.f32 %v9895_v41, %v3877_v40  ;;  %v10046_v53 = vmul.f32 %v10042_v59, %v12413_v7 }
 0xcb5   : > { %12404 = vst [vmem:[#allocation33_spill] sm:$0xff] %v9978_v51  ;;  %v9988_v17 = vpop.permute.xlu1 %5282  ;;  %12415 = vst [vmem:[#allocation36_spill] sm:$0xff] %v10031_v47  ;;  %v3887_v10 = vmul.f32 %v9868_v57, %v3878_v8  ;;  %v3888_v13 = vmul.f32 %v9871_v12, %v3879_v56  ;;  %v3892_v1 = vmul.f32 %v9878_v18, %v3878_v8 }
 0xcb6   : > { %12407 = vst [vmem:[#allocation26_spill] sm:$0xff] %v9988_v17  ;;  %12417 = vst [vmem:[#allocation45_spill] sm:$0xff] %v10040_v63  ;;  %v3893_v40 = vmul.f32 %v9881_v4, %v3879_v56  ;;  %v3897_v43 = vmul.f32 %v9905_v52, %v3878_v8  ;;  %v10062_v60 = vmul.f32 %v9662_v9, %v12413_v7 }
 0xcb7   : > { %12418 = vst [vmem:[#allocation34_spill] sm:$0xff] %v10046_v53  ;;  %v10066_v50 = vmul.f32 %v9884_v45, %v12413_v7  ;;  %v3898_v23 = vmul.f32 %v9909_v37, %v3879_v56  ;;  %v3921_v55 = vrot.slane %v3887_v10, 3  ;;  %v3924_v17 = vrot.slane %v3888_v13, 3 }
 0xcb8   : > { %v10020_v0 = vpop.permute.xlu0 %5284  ;;  %12420 = vst [vmem:[#allocation46_spill] sm:$0xff] %v10062_v60  ;;  %v3925_v51 = vrot.slane %v3893_v40, 3  ;;  %v3934_v24 = vrot.slane %v3897_v43, 3  ;;  %v3987_v63 = vsel %vm289_vm8, %v12423_v3, %v12422_v29  ;;  %v10084_v10 = vmul.f32 %v9819_v19, %v12423_v3 }
 0xcb9   : > { %12414 = vst [vmem:[#allocation43_spill] sm:$0xff] %v10020_v0  ;;  %v10033_v48 = vpop.permute.xlu1 %5286  ;;  %12421 = vst [vmem:[#allocation39_spill] sm:$0xff] %v10066_v50  ;;  %v3922_v0 = vrot.slane %v3892_v1, 3  ;;  %v3936_v43 = vrot.slane %v3898_v23, 3 }
 0xcba   : > { %12416 = vst [vmem:[#allocation41_spill] sm:$0xff] %v10033_v48  ;;  %v3926_v54 = vsel %vm595_vm4, %v3924_v17, %v3925_v51  ;;  %v10118_v17 = vmul.f32 %v9829_v62, %v3987_v63 }
 0xcbb   : > { %v3923_v50 = vsel %vm595_vm4, %v3921_v55, %v3922_v0  ;;  %v10111_v55 = vmul.f32 %v9891_v31, %v3987_v63  ;;  %v10136_v23 = vadd.f32 %v3926_v54, %v10024_v5 }
 0xcbc   : > { %v10056_v36 = vpop.permute.xlu0 %5288  ;;  %12425 = vst [vmem:[#allocation48_spill] sm:$0xff] %v10118_v17 }
 0xcbd   : > { %12419 = vst [vmem:[#allocation44_spill] sm:$0xff] %v10056_v36  ;;  %v5344_v38 = vpop.permute.xlu1 %5343  ;;  %12424 = vst [vmem:[#allocation47_spill] sm:$0xff] %v10111_v55 }
 0xcbe   : > { %v5359_v8 = vmul.f32 %v9819_v19, %v5344_v38  ;;  %v10072_v25 = vmul.f32 %v9823_v44, %v5344_v38  ;;  %12428 = vst [vmem:[#allocation38_spill] sm:$0xff] %v10136_v23  ;;  %v5369_v5 = vmul.f32 %v9864_v11, %v5344_v38 }
 0xcc0   : > { %v5389_v48 = vrot.slane %v5359_v8, 1  ;;  %v11805_v7 = vrot.slane %v10072_v25, 1  ;;  %v5346_v46 = vpop.permute.xlu0 %5345 }
 0xcc1   : > { %v5348_v47 = vpop.permute.xlu1 %5347  ;;  %v5351_v56 = vsel %vm1049_vm7, %v5344_v38, %v5346_v46 }
 0xcc2   : > { %v5352_v13 = vsel %vm1049_vm7, %v5346_v46, %v5348_v47  ;;  %v5360_v1 = vmul.f32 %v9891_v31, %v5351_v56  ;;  %v10089_v40 = vmul.f32 %v9829_v62, %v5351_v56  ;;  %v5391_v28 = vsel %vm373_vm2, %v5389_v48, %v11805_v7 }
 0xcc3   : > { %v5361_v8 = vmul.f32 %v9868_v57, %v5352_v13  ;;  %v10093_v61 = vmul.f32 %v9878_v18, %v5352_v13  ;;  %v3935_v46 = vsel %vm595_vm4, %v3922_v0, %v3934_v24  ;;  %5414 = vrot.lane.b32.xlu0 %v5391_v28, %s6599_s17  ;;  %v10115_v24 = vmul.f32 %v9823_v44, %v12423_v3 }
 0xcc4   : > { %v5392_v21 = vrot.slane %v5360_v1, 1  ;;  %v10102_v32 = vpop.permute.xlu0 %5349  ;;  %v3937_v28 = vsel %vm595_vm4, %v3925_v51, %v3936_v43  ;;  %v10124_v1 = vmul.f32 %v9864_v11, %v12423_v3  ;;  %v10133_v7 = vadd.f32 %v3923_v50, %v10022_v42 }
 0xcc5   : > { %v5395_v22 = vrot.slane %v5361_v8, 1  ;;  %v10106_v53 = vpop.permute.xlu1 %5481  ;;  %v5353_v48 = vsel %vm1049_vm7, %v5348_v47, %v10102_v32  ;;  %v5363_v47 = vmul.f32 %v10042_v59, %v10102_v32  ;;  %v10130_v8 = vmul.f32 %v9662_v9, %v10102_v32 }
 0xcc6   : > { %v5362_v0 = vmul.f32 %v9871_v12, %v5353_v48  ;;  %12426 = vst [vmem:[#allocation49_spill] sm:$0xff] %v10124_v1  ;;  %12427 = vst [vmem:[#allocation51_spill] sm:$0xff] %v10133_v7  ;;  %v10139_v15 = vadd.f32 %v3935_v46, %v10035_v14  ;;  %v10142_v51 = vmul.f32 %v9881_v4, %v5353_v48  ;;  %v12430_v60 = vrot.slane %v10093_v61, 1 }
 0xcc7   : > { %v5401_v3 = vrot.slane %v5363_v47, 1  ;;  %v11808_v43 = vrot.slane %v10130_v8, 1  ;;  %v12431_v26 = vrot.slane %v10089_v40, 1  ;;  %v10154_v54 = vadd.f32 %v3937_v28, %v10037_v33 }
 0xcc8   : > { %12429 = vst [vmem:[#allocation50_spill] sm:$0xff] %v10139_v15  ;;  %v5397_v27 = vsel %vm373_vm2, %v5395_v22, %v12430_v60  ;;  %v5370_v14 = vmul.f32 %v9895_v41, %v5351_v56  ;;  %v5398_v46 = vrot.slane %v5362_v0, 1  ;;  %v10161_v22 = vmul.f32 %v9895_v41, %v3987_v63  ;;  %v12437_v56 = vld [vmem:[#allocation238_spill] sm:$0xff] }
 0xcc9   : > { %v5394_v50 = vsel %vm373_vm2, %v5392_v21, %v12431_v26  ;;  %v10151_v42 = vpop.permute.xlu1 %5485  ;;  %12432 = vst [vmem:[#allocation53_spill] sm:$0xff] %v10154_v54  ;;  %5418 = vrot.lane.b32.xlu0 %v5397_v27, %s6599_s17  ;;  %v12434_v26 = vld [vmem:[#allocation239_spill] sm:$0xff]  ;;  %v3988_v27 = vsel %vm289_vm8, %v12422_v29, %v12437_v56  ;;  %v5403_v63 = vsel %vm373_vm2, %v5401_v3, %v11808_v43  ;;  %v5399_v0 = vrot.slane %v10142_v51, 1  ;;  %v5484_v43 = vpop.permute.xlu0 %5483 }
 0xcca   : > { %5416 = vrot.lane.b32.xlu1 %v5394_v50, %s6599_s17  ;;  %12433 = vst [vmem:[#allocation52_spill] sm:$0xff] %v10161_v22  ;;  %v10167_v33 = vmul.f32 %v10042_v59, %v12434_v26  ;;  %v10171_v38 = vmul.f32 %v9662_v9, %v12434_v26  ;;  %v3989_v60 = vsel %vm289_vm8, %v12437_v56, %v12434_v26  ;;  %v5404_v54 = vrot.slane %v5369_v5, 1 }
 0xccb   : > { %v5371_v29 = vmul.f32 %v9905_v52, %v5352_v13  ;;  %v5406_v15 = vrot.slane %v5370_v14, 1  ;;  %v5400_v51 = vsel %vm373_vm2, %v5398_v46, %v5399_v0  ;;  %v10194_v28 = vmul.f32 %v9884_v45, %v12434_v26 }
 0xccc   : > { %12435 = vst [vmem:[#allocation55_spill] sm:$0xff] %v10167_v33  ;;  %12436 = vst [vmem:[#allocation54_spill] sm:$0xff] %v10171_v38  ;;  %v3997_v56 = vmul.f32 %v9868_v57, %v3988_v27  ;;  %v3998_v13 = vmul.f32 %v9871_v12, %v3989_v60  ;;  %v4002_v14 = vmul.f32 %v9878_v18, %v3988_v27  ;;  %v12439_v22 = vrot.slane %v10089_v40, 1 }
 0xccd   : > { %v10186_v21 = vpop.permute.xlu1 %5619  ;;  %5422 = vrot.lane.b32.xlu0 %v5403_v63, %s6599_s17  ;;  %12438 = vst [vmem:[#allocation56_spill] sm:$0xff] %v10194_v28  ;;  %v4003_v46 = vmul.f32 %v9881_v4, %v3989_v60  ;;  %v4007_v63 = vmul.f32 %v9905_v52, %v3988_v27  ;;  %v4008_v3 = vmul.f32 %v9909_v37, %v3989_v60  ;;  %v12440_v27 = vrot.slane %v10072_v25, 1 }
 0xcce   : > { %5420 = vrot.lane.b32.xlu1 %v5400_v51, %s6599_s17  ;;  %v5497_v26 = vmul.f32 %v9819_v19, %v10106_v53  ;;  %v5372_v50 = vmul.f32 %v9909_v37, %v5353_v48  ;;  %v5408_v51 = vrot.slane %v5371_v29, 1  ;;  %v10212_v5 = vmul.f32 %v9823_v44, %v10106_v53 }
 0xccf   : > { %v5407_v1 = vsel %vm373_vm2, %v12439_v22, %v5406_v15  ;;  %v5405_v60 = vsel %vm373_vm2, %v12440_v27, %v5404_v54  ;;  %v4031_v23 = vrot.slane %v3997_v56, 4  ;;  %v5373_v48 = vmul.f32 %v9884_v45, %v10102_v32  ;;  %v12441_v22 = vld [vmem:[#allocation241_spill] sm:$0xff]  ;;  %v12442_v54 = vld [vmem:[#allocation240_spill] sm:$0xff] }
 0xcd0   : > { %v5489_v29 = vsel %vm1049_vm7, %v10106_v53, %v5484_v43  ;;  %v10226_v33 = vsel %vm1049_vm7, %v5484_v43, %v10151_v42  ;;  %v4032_v15 = vrot.slane %v4002_v14, 4  ;;  %v4034_v40 = vrot.slane %v3998_v13, 4 }
 0xcd1   : > { %v10208_v47 = vpop.permute.xlu1 %5623  ;;  %5426 = vrot.lane.b32.xlu0 %v5407_v1, %s6599_s17  ;;  %v4035_v25 = vrot.slane %v4003_v46, 4  ;;  %v4097_v56 = vsel %vm289_vm8, %v12442_v54, %v12441_v22  ;;  %v4044_v27 = vrot.slane %v4007_v63, 4  ;;  %v10235_v32 = vmul.f32 %v9819_v19, %v12442_v54 }
 0xcd2   : > { %5424 = vrot.lane.b32.xlu1 %v5405_v60, %s6599_s17  ;;  %v5527_v38 = vrot.slane %v5497_v26, 2  ;;  %v5410_v7 = vrot.slane %v5372_v50, 1  ;;  %v5498_v1 = vmul.f32 %v9891_v31, %v5489_v29  ;;  %v5499_v14 = vmul.f32 %v9868_v57, %v10226_v33  ;;  %v12458_v60 = vld [vmem:[#allocation242_spill] sm:$0xff] }
 0xcd3   : > { %v10244_v13 = vmul.f32 %v9878_v18, %v10226_v33  ;;  %v12444_v46 = vrot.slane %v10093_v61, 1  ;;  %v5412_v55 = vrot.slane %v5373_v48, 1  ;;  %v10251_v50 = vmul.f32 %v9829_v62, %v5489_v29 }
 0xcd4   : > { %v5411_v26 = vsel %vm373_vm2, %v5399_v0, %v5410_v7  ;;  %v10259_v17 = vsel %vm706_vm5, %v4034_v40, %v4035_v25  ;;  %v4046_v39 = vrot.slane %v4008_v3, 4  ;;  %v10262_v61 = vmul.f32 %v9891_v31, %v4097_v56 }
 0xcd5   : > { %v10237_v43 = vpop.permute.xlu1 %5757  ;;  %v5409_v63 = vsel %vm373_vm2, %v12444_v46, %v5408_v51  ;;  %12446 = vst [vmem:[#allocation13_spill] sm:$0xff] %v10259_v17  ;;  %v10264_v51 = vpop.permute.xlu0 %5487  ;;  %5430 = vrot.lane.b32.xlu0 %v5411_v26, %s6599_s17  ;;  %v10269_v48 = vmul.f32 %v9823_v44, %v12442_v54  ;;  %v10272_v7 = vmul.f32 %v9829_v62, %v4097_v56  ;;  %v5530_v46 = vrot.slane %v5498_v1, 2 }
 0xcd6   : > { %12443 = vst [vmem:[#allocation57_spill] sm:$0xff] %v10237_v43  ;;  %5428 = vrot.lane.b32.xlu1 %v5409_v63, %s6599_s17  ;;  %v10256_v43 = vsel %vm706_vm5, %v4031_v23, %v4032_v15  ;;  %12447 = vst [vmem:[#allocation60_spill] sm:$0xff] %v10262_v61  ;;  %v10276_v23 = vmul.f32 %v9864_v11, %v12442_v54  ;;  %v5491_v0 = vsel %vm1049_vm7, %v10151_v42, %v10264_v51 }
 0xcd7   : > { %12445 = vst [vmem:[#allocation58_spill] sm:$0xff] %v10256_v43  ;;  %12448 = vst [vmem:[#allocation59_spill] sm:$0xff] %v10269_v48  ;;  %v10284_v40 = vsel %vm706_vm5, %v4032_v15, %v4044_v27  ;;  %v5533_v63 = vrot.slane %v5499_v14, 2  ;;  %v5501_v17 = vmul.f32 %v10042_v59, %v10264_v51  ;;  %v12453_v54 = vrot.slane %v10212_v5, 2 }
 0xcd8   : > { %12449 = vst [vmem:[#allocation61_spill] sm:$0xff] %v10272_v7  ;;  %12450 = vst [vmem:[#allocation62_spill] sm:$0xff] %v10276_v23  ;;  %v12454_v42 = vrot.slane %v10130_v8, 1  ;;  %v5500_v27 = vmul.f32 %v9871_v12, %v5491_v0  ;;  %v10299_v1 = vmul.f32 %v9881_v4, %v5491_v0  ;;  %v10303_v14 = vmul.f32 %v9662_v9, %v10264_v51 }
 0xcd9   : > { %v10281_v3 = vpop.permute.xlu1 %5761  ;;  %12452 = vst [vmem:[#allocation65_spill] sm:$0xff] %v10284_v40  ;;  %v5529_v43 = vsel %vm484_vm3, %v5527_v38, %v12453_v54  ;;  %v10308_v38 = vsel %vm706_vm5, %v4035_v25, %v4046_v39  ;;  %v10320_v26 = vmul.f32 %v10042_v59, %v12458_v60  ;;  %v12461_v25 = vrot.slane %v10244_v13, 2 }
 0xcda   : > { %12451 = vst [vmem:[#allocation63_spill] sm:$0xff] %v10281_v3  ;;  %v5413_v3 = vsel %vm373_vm2, %v12454_v42, %v5412_v55  ;;  %5552 = vrot.lane.b32.xlu0 %v5529_v43, %s6599_s17  ;;  %12455 = vst [vmem:[#allocation64_spill] sm:$0xff] %v10308_v38  ;;  %v10311_v55 = vmul.f32 %v9895_v41, %v4097_v56  ;;  %v12460_v43 = vld [vmem:[#allocation243_spill] sm:$0xff]  ;;  %v5507_v8 = vmul.f32 %v9864_v11, %v10106_v53 }
 0xcdb   : > { %5432 = vrot.lane.b32.xlu1 %v5413_v3, %s6599_s17  ;;  %12459 = vst [vmem:[#allocation15_spill] sm:$0xff] %v10320_v26  ;;  %v4098_v39 = vsel %vm289_vm8, %v12441_v22, %v12460_v43  ;;  %v5535_v56 = vsel %vm484_vm3, %v5533_v63, %v12461_v25  ;;  %v4099_v3 = vsel %vm289_vm8, %v12460_v43, %v12458_v60  ;;  %v12462_v54 = vrot.slane %v10251_v50, 2 }
 0xcdc   : > { %12456 = vst [vmem:[#allocation66_spill] sm:$0xff] %v10311_v55  ;;  %v5508_v15 = vmul.f32 %v9895_v41, %v5489_v29  ;;  %v5539_v40 = vrot.slane %v5501_v17, 2  ;;  %v5536_v63 = vrot.slane %v5500_v27, 2  ;;  %v5537_v25 = vrot.slane %v10299_v1, 2  ;;  %v12466_v1 = vld [vmem:[#allocation244_spill] sm:$0xff] }
 0xcdd   : > { %v10315_v42 = vpop.permute.xlu1 %5895  ;;  %v5532_v38 = vsel %vm484_vm3, %v5530_v46, %v12462_v54  ;;  %v10345_v29 = vmul.f32 %v9662_v9, %v12458_v60  ;;  %v10349_v17 = vmul.f32 %v9884_v45, %v12458_v60  ;;  %v10355_v27 = vmul.f32 %v9868_v57, %v4098_v39 }
 0xcde   : > { %12457 = vst [vmem:[#allocation67_spill] sm:$0xff] %v10315_v42  ;;  %5556 = vrot.lane.b32.xlu0 %v5535_v56, %s6599_s17  ;;  %v10366_v60 = vmul.f32 %v9871_v12, %v4099_v3  ;;  %v10369_v22 = vmul.f32 %v9878_v18, %v4098_v39  ;;  %v5542_v54 = vrot.slane %v5507_v8, 2  ;;  %v5509_v28 = vmul.f32 %v9905_v52, %v10226_v33 }
 0xcdf   : > { %5554 = vrot.lane.b32.xlu1 %v5532_v38, %s6599_s17  ;;  %12463 = vst [vmem:[#allocation12_spill] sm:$0xff] %v10345_v29  ;;  %12464 = vst [vmem:[#allocation68_spill] sm:$0xff] %v10349_v17  ;;  %v12467_v38 = vld [vmem:[#allocation245_spill] sm:$0xff]  ;;  %v5544_v55 = vrot.slane %v5508_v15, 2  ;;  %v12469_v23 = vrot.slane %v10303_v14, 2  ;;  %v5538_v42 = vsel %vm484_vm3, %v5536_v63, %v5537_v25  ;;  %v10380_v26 = vmul.f32 %v9881_v4, %v4099_v3 }
 0xce0   : > { %v4207_v56 = vsel %vm289_vm8, %v12467_v38, %v12466_v1  ;;  %v10362_v53 = vmul.f32 %v9819_v19, %v12467_v38  ;;  %12468 = vst [vmem:[#allocation69_spill] sm:$0xff] %v10366_v60  ;;  %v5510_v7 = vmul.f32 %v9909_v37, %v5491_v0  ;;  %v10388_v15 = vmul.f32 %v9905_v52, %v4098_v39 }
 0xce1   : > { %v10351_v46 = vpop.permute.xlu1 %5899  ;;  %12470 = vst [vmem:[#allocation71_spill] sm:$0xff] %v10380_v26  ;;  %v10395_v8 = vmul.f32 %v9891_v31, %v4207_v56  ;;  %v5635_v39 = vmul.f32 %v9819_v19, %v10186_v21  ;;  %v5546_v43 = vrot.slane %v5509_v28, 2  ;;  %v12475_v61 = vrot.slane %v10251_v50, 2 }
 0xce2   : > { %12465 = vst [vmem:[#allocation70_spill] sm:$0xff] %v10351_v46  ;;  %v5541_v46 = vsel %vm484_vm3, %v5539_v40, %v12469_v23  ;;  %12472 = vst [vmem:[#allocation73_spill] sm:$0xff] %v10388_v15  ;;  %v10391_v23 = vmul.f32 %v9909_v37, %v4099_v3  ;;  %v10407_v3 = vmul.f32 %v9823_v44, %v10186_v21  ;;  %v12476_v63 = vrot.slane %v10212_v5, 2 }
 0xce3   : > { %5560 = vrot.lane.b32.xlu0 %v5541_v46, %s6599_s17  ;;  %5558 = vrot.lane.b32.xlu1 %v5538_v42, %s6599_s17  ;;  %v10401_v42 = vmul.f32 %v9823_v44, %v12467_v38  ;;  %v5622_v46 = vpop.permute.xlu0 %5621  ;;  %v5545_v40 = vsel %vm484_vm3, %v12475_v61, %v5544_v55  ;;  %v5548_v50 = vrot.slane %v5510_v7, 2  ;;  %v4245_v7 = vrot.slane %v10362_v53, 6 }
 0xce4   : > { %12473 = vst [vmem:[#allocation14_spill] sm:$0xff] %v10391_v23  ;;  %v5543_v0 = vsel %vm484_vm3, %v12476_v63, %v5542_v54  ;;  %v5627_v17 = vsel %vm1049_vm7, %v10186_v21, %v5622_v46  ;;  %v10421_v28 = vsel %vm1049_vm7, %v5622_v46, %v10208_v47  ;;  %v10431_v54 = vmul.f32 %v9829_v62, %v4207_v56 }
 0xce5   : > { %v10385_v33 = vpop.permute.xlu1 %6033  ;;  %12474 = vst [vmem:[#allocation75_spill] sm:$0xff] %v10401_v42  ;;  %v10435_v63 = vmul.f32 %v9864_v11, %v12467_v38  ;;  %v5636_v5 = vmul.f32 %v9891_v31, %v5627_v17  ;;  %v10447_v55 = vmul.f32 %v9878_v18, %v10421_v28  ;;  %v10450_v38 = vmul.f32 %v9829_v62, %v5627_v17 }
 0xce6   : > { %12471 = vst [vmem:[#allocation72_spill] sm:$0xff] %v10385_v33  ;;  %v5511_v33 = vmul.f32 %v9884_v45, %v10264_v51  ;;  %v5637_v51 = vmul.f32 %v9868_v57, %v10421_v28  ;;  %v5549_v53 = vsel %vm484_vm3, %v5537_v25, %v5548_v50  ;;  %v12483_v25 = vld [vmem:[#allocation247_spill] sm:$0xff]  ;;  %v12485_v23 = vrot.slane %v10407_v3, 3 }
 0xce7   : > { %5564 = vrot.lane.b32.xlu0 %v5545_v40, %s6599_s17  ;;  %5562 = vrot.lane.b32.xlu1 %v5543_v0, %s6599_s17  ;;  %12478 = vst [vmem:[#allocation76_spill] sm:$0xff] %v10435_v63  ;;  %v10438_v40 = vmul.f32 %v9895_v41, %v4207_v56  ;;  %v5665_v0 = vrot.slane %v5635_v39, 3  ;;  %v10452_v56 = vpop.permute.xlu0 %5625  ;;  %v12480_v39 = vrot.slane %v10244_v13, 2  ;;  %v4208_v13 = vsel %vm289_vm8, %v12466_v1, %v12483_v25 }
 0xce8   : > { %v5639_v50 = vmul.f32 %v10042_v59, %v10452_v56  ;;  %v5671_v15 = vrot.slane %v5637_v51, 3  ;;  %v5669_v29 = vrot.slane %v10450_v38, 3  ;;  %v10496_v51 = vld [vmem:[#allocation2 + $0x10] sm:$0xff] }
 0xce9   : > { %v10425_v61 = vpop.permute.xlu1 %6037  ;;  %12479 = vst [vmem:[#allocation77_spill] sm:$0xff] %v10438_v40  ;;  %v5547_v46 = vsel %vm484_vm3, %v12480_v39, %v5546_v43  ;;  %v12481_v40 = vld [vmem:[#allocation246_spill] sm:$0xff]  ;;  %v10479_v39 = vmul.f32 %v9662_v9, %v10452_v56  ;;  %v5667_v1 = vsel %vm595_vm4, %v5665_v0, %v12485_v23  ;;  %v12486_v9 = vrot.slane %v10303_v14, 2 }
 0xcea   : > { %12477 = vst [vmem:[#allocation74_spill] sm:$0xff] %v10425_v61  ;;  %v5550_v61 = vrot.slane %v5511_v33, 2  ;;  %v10462_v63 = vmul.f32 %v10042_v59, %v12481_v40  ;;  %v5629_v33 = vsel %vm1049_vm7, %v10208_v47, %v10452_v56  ;;  %v4209_v43 = vsel %vm289_vm8, %v12483_v25, %v12481_v40 }
 0xceb   : > { %5568 = vrot.lane.b32.xlu0 %v5549_v53, %s6599_s17  ;;  %5566 = vrot.lane.b32.xlu1 %v5547_v46, %s6599_s17  ;;  %v5668_v53 = vrot.slane %v5636_v5, 3  ;;  %v5638_v25 = vmul.f32 %v9871_v12, %v5629_v33  ;;  %v10490_v60 = vmul.f32 %v9881_v4, %v5629_v33  ;;  %v10500_v46 = vmul.f32 %v10496_v51, %v12481_v40 }
 0xcec   : > { %12482 = vst [vmem:[#allocation78_spill] sm:$0xff] %v10462_v63  ;;  %v5551_v26 = vsel %vm484_vm3, %v12486_v9, %v5550_v61  ;;  %v10503_v23 = vmul.f32 %v9868_v57, %v4208_v13  ;;  %v10514_v61 = vmul.f32 %v9884_v45, %v12481_v40  ;;  %v10517_v0 = vmul.f32 %v9878_v18, %v4208_v13 }
 0xced   : > { %v10481_v47 = vpop.permute.xlu1 %5290  ;;  %v5677_v38 = vrot.slane %v5639_v50, 3  ;;  %v5646_v40 = vmul.f32 %v9895_v41, %v5627_v17  ;;  %v5675_v50 = vrot.slane %v10490_v60, 3  ;;  %v10533_v9 = vmul.f32 %v9881_v4, %v4209_v43 }
 0xcee   : > { %12484 = vst [vmem:[#allocation80_spill] sm:$0xff] %v10481_v47  ;;  %v10510_v14 = vsel %vm1000_vm1, %v10056_v36, %v10481_v47  ;;  %12488 = vst [vmem:[#allocation81_spill] sm:$0xff] %v10514_v61  ;;  %v5670_v36 = vsel %vm595_vm4, %v5668_v53, %v5669_v29  ;;  %v5674_v61 = vrot.slane %v5638_v25, 3  ;;  %v10536_v5 = vmul.f32 %v9905_v52, %v4208_v13 }
 0xcef   : > { %5690 = vrot.lane.b32.xlu0 %v5667_v1, %s6599_s17  ;;  %5570 = vrot.lane.b32.xlu1 %v5551_v26, %s6599_s17  ;;  %12487 = vst [vmem:[#allocation79_spill] sm:$0xff] %v10510_v14  ;;  %v10522_v1 = vmul.f32 %v9871_v12, %v4209_v43  ;;  %v5645_v26 = vmul.f32 %v9864_v11, %v10186_v21  ;;  %v12489_v14 = vrot.slane %v10447_v55, 3  ;;  %v4251_v21 = vrot.slane %v10503_v23, 6 }
 0xcf0   : > { %12490 = vst [vmem:[#allocation82_spill] sm:$0xff] %v10536_v5  ;;  %v10539_v63 = vmul.f32 %v9909_v37, %v4209_v43  ;;  %v12493_v60 = vrot.slane %v10005_v6, 3  ;;  %v12494_v13 = vrot.slane %v10115_v24, 4  ;;  %v12495_v25 = vrot.slane %v10084_v10, 4 }
 0xcf1   : > { %v5673_v47 = vsel %vm595_vm4, %v5671_v15, %v12489_v14  ;;  %v12492_v15 = vrot.slane %v10012_v16, 3  ;;  %v12496_v23 = vrot.slane %v10479_v39, 3  ;;  %v12498_v14 = vrot.slane %v10235_v32, 5 }
 0xcf2   : > { %12491 = vst [vmem:[#allocation83_spill] sm:$0xff] %v10539_v63  ;;  %v4027_v43 = vsel %vm706_vm5, %v12495_v25, %v12494_v13  ;;  %v12499_v6 = vrot.slane %v10401_v42, 6  ;;  %v3840_v10 = vadd.f32 %v9981_v35, %v9924_v2  ;;  %v5680_v13 = vrot.slane %v5645_v26, 3 }
 0xcf3   : > { %5694 = vrot.lane.b32.xlu0 %v5673_v47, %s6599_s17  ;;  %5692 = vrot.lane.b32.xlu1 %v5670_v36, %s6599_s17  ;;  %v3917_v53 = vsel %vm595_vm4, %v12493_v60, %v12492_v15  ;;  %v5679_v47 = vsel %vm595_vm4, %v5677_v38, %v12496_v23  ;;  %v12497_v36 = vrot.slane %v10269_v48, 5  ;;  %v5647_v60 = vmul.f32 %v9905_v52, %v10421_v28  ;;  %v12503_v28 = vld [vmem:[#allocation42_spill] sm:$0xff] }
 0xcf4   : > { %v10568_v15 = vsel %vm927_vm6, %v4245_v7, %v12499_v6  ;;  %v5682_v38 = vrot.slane %v5646_v40, 3  ;;  %v5648_v25 = vmul.f32 %v9909_v37, %v5629_v33  ;;  %v5676_v32 = vsel %vm595_vm4, %v5674_v61, %v5675_v50  ;;  %v5760_v33 = vpop.permute.xlu0 %5759  ;;  %v12505_v61 = vld [vmem:[#allocation48_spill] sm:$0xff] }
 0xcf5   : > { %v10563_v17 = vsel %vm211_vm0, %v12498_v14, %v12497_v36  ;;  %v3731_v36 = vadd.f32 %v9918_v49, %v9849_v30  ;;  %v12500_v7 = vrot.slane %v9970_v20, 2  ;;  %v12501_v14 = vrot.slane %v9967_v34, 2  ;;  %v12507_v30 = vld [vmem:[#allocation47_spill] sm:$0xff]  ;;  %v12509_v34 = vld [vmem:[#allocation57_spill] sm:$0xff] }
 0xcf6   : > { %v12502_v35 = vrot.slane %v10027_v58, 3  ;;  %v12504_v26 = vrot.slane %v12503_v28, 3  ;;  %v12506_v6 = vrot.slane %v12505_v61, 4  ;;  %v12508_v49 = vrot.slane %v12507_v30, 4  ;;  %v12516_v61 = vld [vmem:[#allocation60_spill] sm:$0xff] }
 0xcf7   : > { %v3810_v2 = vsel %vm484_vm3, %v12501_v14, %v12500_v7  ;;  %5698 = vrot.lane.b32.xlu0 %v5679_v47, %s6599_s17  ;;  %5696 = vrot.lane.b32.xlu1 %v5676_v32, %s6599_s17  ;;  %v5773_v7 = vmul.f32 %v9819_v19, %v12509_v34  ;;  %v10602_v14 = vmul.f32 %v9823_v44, %v12509_v34  ;;  %v12511_v32 = vld [vmem:[#allocation51_spill] sm:$0xff]  ;;  %v5684_v5 = vrot.slane %v5647_v60, 3 }
 0xcf8   : > { %v3920_v40 = vsel %vm595_vm4, %v12504_v26, %v12502_v35  ;;  %v10596_v23 = vsel %vm706_vm5, %v12508_v49, %v12506_v6  ;;  %v12510_v35 = vld [vmem:[#allocation63_spill] sm:$0xff]  ;;  %v3950_v47 = vadd.f32 %v3917_v53, %v3840_v10  ;;  %v12512_v26 = vld [vmem:[#allocation58_spill] sm:$0xff]  ;;  %v5649_v6 = vmul.f32 %v9884_v45, %v10452_v56  ;;  %v12514_v53 = vld [vmem:[#allocation61_spill] sm:$0xff] }
 0xcf9   : > { %v10606_v28 = vsel %vm1049_vm7, %v5760_v33, %v12510_v35  ;;  %v4062_v63 = vadd.f32 %v12512_v26, %v12511_v32  ;;  %v5765_v30 = vsel %vm1049_vm7, %v12509_v34, %v5760_v33  ;;  %v5683_v19 = vsel %vm595_vm4, %v5669_v29, %v5682_v38 }
 0xcfa   : > { %v12513_v44 = vrot.slane %v10407_v3, 3  ;;  %v5686_v42 = vrot.slane %v5648_v25, 3  ;;  %v11846_v48 = vrot.slane %v10533_v9, 6  ;;  %v12515_v10 = vrot.slane %v12514_v53, 5 }
 0xcfb   : > { %v12517_v32 = vrot.slane %v12516_v61, 5  ;;  %v12518_v45 = vrot.slane %v10369_v22, 5  ;;  %v12519_v56 = vrot.slane %v10355_v27, 5  ;;  %v5775_v3 = vmul.f32 %v9868_v57, %v10606_v28  ;;  %5702 = vrot.lane.b32.xlu0 %v5683_v19, %s6599_s17 }
 0xcfc   : > { %v5681_v49 = vsel %vm595_vm4, %v12513_v44, %v5680_v13  ;;  %v3841_v13 = vadd.f32 %v3810_v2, %v3731_v36  ;;  %v5803_v38 = vrot.slane %v5773_v7, 4  ;;  %v11845_v25 = vrot.slane %v10602_v14, 4  ;;  %v12523_v44 = vld [vmem:[#allocation30_spill] sm:$0xff]  ;;  %v12524_v36 = vld [vmem:[#allocation35_spill] sm:$0xff] }
 0xcfd   : > { %v10624_v60 = vsel %vm211_vm0, %v12517_v32, %v12515_v10  ;;  %v4143_v29 = vsel %vm211_vm0, %v12519_v56, %v12518_v45  ;;  %5700 = vrot.lane.b32.xlu1 %v5681_v49, %s6599_s17  ;;  %v10638_v33 = vmul.f32 %v9878_v18, %v10606_v28  ;;  %v12520_v61 = vrot.slane %v10431_v54, 6  ;;  %v10656_v10 = vpop.permute.xlu0 %5763 }
 0xcfe   : > { %v12521_v27 = vrot.slane %v10395_v8, 6  ;;  %v12522_v57 = vrot.slane %v10517_v0, 6  ;;  %v3844_v2 = vadd.f32 %v12524_v36, %v12523_v44  ;;  %v5774_v7 = vmul.f32 %v9891_v31, %v5765_v30 }
 0xcff   : > { %v5688_v49 = vrot.slane %v5649_v6, 3  ;;  %v10654_v18 = vmul.f32 %v9829_v62, %v5765_v30  ;;  %v5687_v8 = vsel %vm595_vm4, %v5675_v50, %v5686_v42  ;;  %v12525_v32 = vrot.slane %v10447_v55, 3 }
 0xd00   : > { %v10645_v26 = vsel %vm927_vm6, %v12521_v27, %v12520_v61  ;;  %v4253_v19 = vsel %vm927_vm6, %v4251_v21, %v12522_v57  ;;  %v4060_v56 = vadd.f32 %v4027_v43, %v3950_v47  ;;  %v12526_v61 = vld [vmem:[#allocation46_spill] sm:$0xff]  ;;  %v5809_v31 = vrot.slane %v5775_v3, 4  ;;  %5706 = vrot.lane.b32.xlu0 %v5687_v8, %s6599_s17  ;;  %v12532_v3 = vld [vmem:[#allocation55_spill] sm:$0xff] }
 0xd01   : > { %v5685_v45 = vsel %vm595_vm4, %v12525_v32, %v5684_v5  ;;  %v12527_v21 = vrot.slane %v12526_v61, 3  ;;  %v12528_v27 = vld [vmem:[#allocation34_spill] sm:$0xff]  ;;  %v5767_v62 = vsel %vm1049_vm7, %v12510_v35, %v10656_v10  ;;  %v5810_v42 = vrot.slane %v10638_v33, 4 }
 0xd02   : > { %v12529_v57 = vrot.slane %v12528_v27, 3  ;;  %5704 = vrot.lane.b32.xlu1 %v5685_v45, %s6599_s17  ;;  %v5777_v55 = vmul.f32 %v10042_v59, %v10656_v10  ;;  %v10677_v5 = vmul.f32 %v10496_v51, %v10656_v10  ;;  %v5805_v50 = vsel %vm706_vm5, %v5803_v38, %v11845_v25  ;;  %v12530_v35 = vld [vmem:[#allocation54_spill] sm:$0xff]  ;;  %v12537_v25 = vld [vmem:[#allocation71_spill] sm:$0xff] }
 0xd03   : > { %v3951_v43 = vadd.f32 %v3920_v40, %v3841_v13  ;;  %v4172_v47 = vadd.f32 %v4143_v29, %v4062_v63  ;;  %v12531_v6 = vrot.slane %v12530_v35, 4  ;;  %v12533_v36 = vrot.slane %v12532_v3, 4  ;;  %v12535_v29 = vld [vmem:[#allocation38_spill] sm:$0xff]  ;;  %v12536_v13 = vld [vmem:[#allocation13_spill] sm:$0xff] }
 0xd04   : > { %v3929_v44 = vsel %vm595_vm4, %v12529_v57, %v12527_v21  ;;  %v5806_v32 = vrot.slane %v5774_v7, 4  ;;  %v5807_v45 = vrot.slane %v10654_v18, 4  ;;  %v5776_v21 = vmul.f32 %v9871_v12, %v5767_v62  ;;  %v12539_v7 = vld [vmem:[#allocation69_spill] sm:$0xff]  ;;  %5828 = vrot.lane.b32.xlu0 %v5805_v50, %s6599_s17 }
 0xd05   : > { %v4039_v8 = vsel %vm706_vm5, %v12533_v36, %v12531_v6  ;;  %v10690_v27 = vmul.f32 %v9881_v4, %v5767_v62  ;;  %v12534_v57 = vrot.slane %v10479_v39, 3  ;;  %v4258_v63 = vrot.slane %v10500_v46, 6 }
 0xd06   : > { %v3954_v40 = vadd.f32 %v3929_v44, %v3844_v2  ;;  %v4063_v3 = vadd.f32 %v12536_v13, %v12535_v29  ;;  %v12538_v6 = vrot.slane %v12537_v25, 5  ;;  %v12540_v36 = vrot.slane %v12539_v7, 5  ;;  %v12541_v44 = vld [vmem:[#allocation12_spill] sm:$0xff]  ;;  %v12543_v29 = vld [vmem:[#allocation15_spill] sm:$0xff] }
 0xd07   : > { %v5689_v38 = vsel %vm595_vm4, %v12534_v57, %v5688_v49  ;;  %v4170_v12 = vadd.f32 %v10563_v17, %v4060_v56  ;;  %v5815_v4 = vrot.slane %v5777_v55, 4  ;;  %v5816_v39 = vrot.slane %v10677_v5, 4 }
 0xd08   : > { %v4146_v18 = vsel %vm211_vm0, %v12540_v36, %v12538_v6  ;;  %5708 = vrot.lane.b32.xlu1 %v5689_v38, %s6599_s17  ;;  %v5811_v2 = vsel %vm706_vm5, %v5809_v31, %v5810_v42  ;;  %v10710_v49 = vadd.f32 %v4253_v19, %v4172_v47  ;;  %v12542_v57 = vrot.slane %v12541_v44, 5  ;;  %v12546_v38 = vld [vmem:[#allocation76_spill] sm:$0xff] }
 0xd09   : > { %v12544_v13 = vrot.slane %v12543_v29, 5  ;;  %v12545_v50 = vrot.slane %v10522_v1, 6  ;;  %v5783_v56 = vmul.f32 %v9864_v11, %v12509_v34  ;;  %v5784_v55 = vmul.f32 %v9895_v41, %v5765_v30  ;;  %5832 = vrot.lane.b32.xlu0 %v5811_v2, %s6599_s17  ;;  %v12547_v11 = vld [vmem:[#allocation78_spill] sm:$0xff]  ;;  %v12549_v30 = vld [vmem:[#allocation28_spill] sm:$0xff] }
 0xd0a   : > { %v5808_v19 = vsel %vm706_vm5, %v5806_v32, %v5807_v45  ;;  %v5812_v31 = vrot.slane %v5776_v21, 4  ;;  %v5813_v47 = vrot.slane %v10690_v27, 4  ;;  %v4260_v7 = vrot.slane %v12546_v38, 6  ;;  %v12550_v32 = vld [vmem:[#allocation25_spill] sm:$0xff]  ;;  %v12556_v2 = vld [vmem:[#allocation36_spill] sm:$0xff] }
 0xd0b   : > { %v4149_v6 = vsel %vm211_vm0, %v12544_v13, %v12542_v57  ;;  %v4256_v17 = vsel %vm927_vm6, %v12545_v50, %v11846_v48  ;;  %v4061_v36 = vadd.f32 %v10596_v23, %v3951_v43  ;;  %v4064_v57 = vadd.f32 %v4039_v8, %v3954_v40  ;;  %v12551_v43 = vld [vmem:[#allocation24_spill] sm:$0xff]  ;;  %v10837_v48 = vld [vmem:[#allocation2 + $0x18] sm:$0xff] }
 0xd0c   : > { %v4173_v29 = vadd.f32 %v4146_v18, %v4063_v3  ;;  %5830 = vrot.lane.b32.xlu1 %v5808_v19, %s6599_s17  ;;  %v10732_v1 = vadd.f32 %v10568_v15, %v4170_v12  ;;  %v12548_v41 = vrot.slane %v12547_v11, 6  ;;  %v3736_v21 = vadd.f32 %v12550_v32, %v12549_v30  ;;  %v12554_v3 = vld [vmem:[#allocation29_spill] sm:$0xff]  ;;  %v12555_v18 = vld [vmem:[#allocation40_spill] sm:$0xff] }
 0xd0d   : > { %v5817_v23 = vsel %vm706_vm5, %v5815_v4, %v5816_v39  ;;  %v12552_v8 = vrot.slane %v12551_v43, 2  ;;  %v12553_v40 = vrot.slane %v9970_v20, 2  ;;  %v3845_v12 = vadd.f32 %v12555_v18, %v12554_v3  ;;  %v12559_v32 = vld [vmem:[#allocation77_spill] sm:$0xff] }
 0xd0e   : > { %v4259_v34 = vsel %vm927_vm6, %v12548_v41, %v4258_v63  ;;  %v12557_v13 = vrot.slane %v12556_v2, 3  ;;  %v12558_v50 = vrot.slane %v10012_v16, 3  ;;  %v5785_v11 = vmul.f32 %v9905_v52, %v10606_v28  ;;  %v5898_v16 = vpop.permute.xlu0 %5897  ;;  %5836 = vrot.lane.b32.xlu0 %v5817_v23, %s6599_s17  ;;  %v10768_v28 = vld [vmem:[#allocation2 + $0x68] sm:$0xff] }
 0xd0f   : > { %v3823_v15 = vsel %vm484_vm3, %v12553_v40, %v12552_v8  ;;  %v5818_v41 = vrot.slane %v5783_v56, 4  ;;  %v5820_v4 = vrot.slane %v5784_v55, 4  ;;  %v5786_v30 = vmul.f32 %v9909_v37, %v5767_v62  ;;  %v12560_v37 = vld [vmem:[#allocation67_spill] sm:$0xff]  ;;  %v10772_v56 = vld [vmem:[#allocation2 + $0x60] sm:$0xff] }
 0xd10   : > { %v3931_v19 = vsel %vm595_vm4, %v12558_v50, %v12557_v13  ;;  %v5814_v20 = vsel %vm706_vm5, %v5812_v31, %v5813_v47  ;;  %v4262_v43 = vrot.slane %v12559_v32, 6  ;;  %v4171_v8 = vadd.f32 %v10624_v60, %v4061_v36  ;;  %v12561_v60 = vld [vmem:[#allocation70_spill] sm:$0xff]  ;;  %v10787_v23 = vld [vmem:[#allocation2 + $0x28] sm:$0x3f] }
 0xd11   : > { %v4174_v40 = vadd.f32 %v4149_v6, %v4064_v57  ;;  %v10764_v3 = vadd.f32 %v4256_v17, %v4173_v29  ;;  %5834 = vrot.lane.b32.xlu1 %v5814_v20, %s6599_s17  ;;  %v3846_v52 = vadd.f32 %v3823_v15, %v3736_v21  ;;  %v5911_v62 = vmul.f32 %v10768_v28, %v12560_v37  ;;  %v12562_v17 = vld [vmem:[#allocation45_spill] sm:$0xff] }
 0xd12   : > { %v10776_v55 = vmul.f32 %v10772_v56, %v12560_v37  ;;  %v10780_v6 = vsel %vm1049_vm7, %v5898_v16, %v12561_v60  ;;  %v12563_v31 = vrot.slane %v12562_v17, 3  ;;  %v12564_v36 = vrot.slane %v10027_v58, 3  ;;  %v12566_v20 = vld [vmem:[#allocation81_spill] sm:$0xff] }
 0xd13   : > { %v3955_v29 = vadd.f32 %v3931_v19, %v3845_v12  ;;  %v5822_v21 = vrot.slane %v5785_v11, 4  ;;  %v5787_v15 = vmul.f32 %v10787_v23, %v10656_v10  ;;  %v10793_v18 = vsel %vm1049_vm7, %v12560_v37, %v5898_v16  ;;  %v12567_v19 = vld [vmem:[#allocation49_spill] sm:$0xff]  ;;  %v10808_v16 = vld [vmem:[#allocation2 + $0x88] sm:$0xff] }
 0xd14   : > { %v3933_v57 = vsel %vm595_vm4, %v12564_v36, %v12563_v31  ;;  %v5821_v2 = vsel %vm706_vm5, %v5807_v45, %v5820_v4  ;;  %v12565_v13 = vrot.slane %v10602_v14, 4  ;;  %v5824_v58 = vrot.slane %v5786_v30, 4  ;;  %v10817_v4 = vld [vmem:[#allocation2 + $0x58] sm:$0xff]  ;;  %v12572_v36 = vld [vmem:[#allocation48_spill] sm:$0xff] }
 0xd15   : > { %v4268_v32 = vrot.slane %v12566_v20, 6  ;;  %v10801_v12 = vadd.f32 %v10645_v26, %v4171_v8  ;;  %v12568_v11 = vrot.slane %v12567_v19, 4  ;;  %v12569_v10 = vrot.slane %v10115_v24, 4  ;;  %5840 = vrot.lane.b32.xlu0 %v5821_v2, %s6599_s17  ;;  %v12570_v8 = vld [vmem:[#allocation52_spill] sm:$0xff]  ;;  %v12574_v20 = vld [vmem:[#allocation62_spill] sm:$0xff] }
 0xd16   : > { %v5819_v50 = vsel %vm706_vm5, %v12565_v13, %v5818_v41  ;;  %v5913_v45 = vmul.f32 %v10808_v16, %v10780_v6  ;;  %v10814_v14 = vadd.f32 %v4259_v34, %v4174_v40  ;;  %v5941_v41 = vrot.slane %v5911_v62, 5  ;;  %v12576_v34 = vld [vmem:[#allocation59_spill] sm:$0xff]  ;;  %v10833_v19 = vld [vmem:[#allocation2 + $0x40] sm:$0xff] }
 0xd17   : > { %v4041_v17 = vsel %vm706_vm5, %v12569_v10, %v12568_v11  ;;  %5838 = vrot.lane.b32.xlu1 %v5819_v50, %s6599_s17  ;;  %v11847_v26 = vrot.slane %v10776_v55, 5  ;;  %v10821_v24 = vmul.f32 %v10817_v4, %v10780_v6  ;;  %v3956_v30 = vadd.f32 %v3933_v57, %v3846_v52  ;;  %v10843_v57 = vpop.permute.xlu0 %5901 }
 0xd18   : > { %v12571_v31 = vrot.slane %v12570_v8, 4  ;;  %v12573_v13 = vrot.slane %v12572_v36, 4  ;;  %v12575_v50 = vrot.slane %v12574_v20, 5  ;;  %v12577_v40 = vrot.slane %v12576_v34, 5 }
 0xd19   : > { %v5912_v11 = vmul.f32 %v10833_v19, %v10793_v18  ;;  %v5826_v10 = vrot.slane %v5787_v15, 4  ;;  %v10841_v52 = vmul.f32 %v10837_v48, %v10793_v18  ;;  %v5825_v8 = vsel %vm706_vm5, %v5813_v47, %v5824_v58  ;;  %v12581_v47 = vld [vmem:[#allocation75_spill] sm:$0xff] }
 0xd1a   : > { %v4043_v2 = vsel %vm706_vm5, %v12573_v13, %v12571_v31  ;;  %v4151_v62 = vsel %vm211_vm0, %v12577_v40, %v12575_v50  ;;  %v5823_v31 = vsel %vm706_vm5, %v5810_v42, %v5822_v21  ;;  %v4065_v36 = vadd.f32 %v4041_v17, %v3955_v29  ;;  %v12578_v13 = vld [vmem:[#allocation66_spill] sm:$0xff]  ;;  %5844 = vrot.lane.b32.xlu0 %v5825_v8, %s6599_s17  ;;  %v12584_v17 = vld [vmem:[#allocation27_spill] sm:$0xff] }
 0xd1b   : > { %v12579_v20 = vrot.slane %v12578_v13, 5  ;;  %v12580_v15 = vrot.slane %v12514_v53, 5  ;;  %v5947_v34 = vrot.slane %v5913_v45, 5  ;;  %v5905_v40 = vsel %vm1049_vm7, %v12561_v60, %v10843_v57  ;;  %5842 = vrot.lane.b32.xlu1 %v5823_v31, %s6599_s17  ;;  %v10882_v13 = vld [vmem:[#allocation2 + $0x20] sm:$0xff] }
 0xd1c   : > { %v5948_v33 = vrot.slane %v10821_v24, 5  ;;  %v5915_v42 = vmul.f32 %v10042_v59, %v10843_v57  ;;  %v10866_v27 = vmul.f32 %v10496_v51, %v10843_v57  ;;  %v5943_v53 = vsel %vm211_vm0, %v5941_v41, %v11847_v26  ;;  %v12585_v59 = vld [vmem:[#allocation37_spill] sm:$0xff] }
 0xd1d   : > { %v4153_v50 = vsel %vm211_vm0, %v12580_v15, %v12579_v20  ;;  %v12582_v60 = vrot.slane %v12581_v47, 6  ;;  %v12583_v21 = vrot.slane %v10431_v54, 6  ;;  %v3849_v45 = vadd.f32 %v12585_v59, %v12584_v17  ;;  %v10885_v20 = vld [vmem:[#allocation2 + $0x30] sm:$0xff]  ;;  %v12587_v47 = vld [vmem:[#allocation39_spill] sm:$0xff] }
 0xd1e   : > { %v5944_v8 = vrot.slane %v5912_v11, 5  ;;  %v5945_v31 = vrot.slane %v10841_v52, 5  ;;  %v5914_v41 = vmul.f32 %v10882_v13, %v5905_v40  ;;  %v10888_v38 = vmul.f32 %v10885_v20, %v5905_v40  ;;  %5966 = vrot.lane.b32.xlu0 %v5943_v53, %s6599_s17 }
 0xd1f   : > { %v4261_v29 = vsel %vm927_vm6, %v12582_v60, %v4260_v7  ;;  %v4263_v58 = vsel %vm927_vm6, %v12583_v21, %v4262_v43  ;;  %v5827_v54 = vsel %vm706_vm5, %v5816_v39, %v5826_v10  ;;  %v12586_v7 = vld [vmem:[#allocation82_spill] sm:$0xff]  ;;  %v4066_v15 = vadd.f32 %v4043_v2, %v3956_v30  ;;  %v12590_v21 = vld [vmem:[#allocation56_spill] sm:$0xff] }
 0xd20   : > { %v4264_v43 = vrot.slane %v12586_v7, 6  ;;  %v12588_v11 = vrot.slane %v12587_v47, 3  ;;  %v12589_v52 = vrot.slane %v12526_v61, 3  ;;  %v12591_v17 = vrot.slane %v12590_v21, 4  ;;  %5846 = vrot.lane.b32.xlu1 %v5827_v54, %s6599_s17  ;;  %v12593_v2 = vld [vmem:[#allocation68_spill] sm:$0xff]  ;;  %v12596_v47 = vld [vmem:[#allocation73_spill] sm:$0xff] }
 0xd21   : > { %v12592_v59 = vrot.slane %v12530_v35, 4  ;;  %v4175_v5 = vadd.f32 %v4151_v62, %v4065_v36  ;;  %v5953_v39 = vrot.slane %v5915_v42, 5  ;;  %v5954_v30 = vrot.slane %v10866_v27, 5  ;;  %v10923_v42 = vld [vmem:[#allocation2 + $0x48] sm:$0x3f] }
 0xd22   : > { %v3939_v60 = vsel %vm595_vm4, %v12589_v52, %v12588_v11  ;;  %v5949_v61 = vsel %vm211_vm0, %v5947_v34, %v5948_v33  ;;  %v12594_v10 = vrot.slane %v12593_v2, 5  ;;  %v12595_v7 = vrot.slane %v12541_v44, 5  ;;  %v10927_v11 = vld [vmem:[#allocation2 + $0x50] sm:$0x3f] }
 0xd23   : > { %v4049_v26 = vsel %vm706_vm5, %v12592_v59, %v12591_v17  ;;  %v4269_v53 = vsel %vm927_vm6, %v4258_v63, %v4268_v32  ;;  %v12597_v54 = vrot.slane %v12596_v47, 5  ;;  %v12598_v62 = vrot.slane %v10369_v22, 5  ;;  %v12599_v32 = vld [vmem:[#allocation83_spill] sm:$0xff]  ;;  %v12600_v17 = vld [vmem:[#allocation50_spill] sm:$0xff]  ;;  %v12601_v59 = vld [vmem:[#allocation65_spill] sm:$0xff]  ;;  %5970 = vrot.lane.b32.xlu0 %v5949_v61, %s6599_s17 }
 0xd24   : > { %v4159_v35 = vsel %vm211_vm0, %v12595_v7, %v12594_v10  ;;  %v5921_v34 = vmul.f32 %v10923_v42, %v12560_v37  ;;  %v5922_v44 = vmul.f32 %v10927_v11, %v10793_v18  ;;  %v5946_v46 = vsel %vm211_vm0, %v5944_v8, %v5945_v31  ;;  %v12602_v10 = vld [vmem:[#allocation53_spill] sm:$0xff]  ;;  %v12603_v7 = vld [vmem:[#allocation64_spill] sm:$0xff]  ;;  %v12604_v8 = vld [vmem:[#allocation14_spill] sm:$0xff] }
 0xd25   : > { %v4155_v36 = vsel %vm211_vm0, %v12598_v62, %v12597_v54  ;;  %v5950_v52 = vrot.slane %v5914_v41, 5  ;;  %v5951_v63 = vrot.slane %v10888_v38, 5  ;;  %v4266_v21 = vrot.slane %v12599_v32, 6  ;;  %5968 = vrot.lane.b32.xlu1 %v5946_v46, %s6599_s17  ;;  %v10953_v46 = vld [vmem:[#allocation2 + $0x70] sm:$0x3f] }
 0xd26   : > { %v3959_v22 = vadd.f32 %v3939_v60, %v3849_v45  ;;  %v4067_v2 = vadd.f32 %v12601_v59, %v12600_v17  ;;  %v4068_v47 = vadd.f32 %v12603_v7, %v12602_v10  ;;  %v4176_v37 = vadd.f32 %v4153_v50, %v4066_v15 }
 0xd27   : > { %v10940_v18 = vadd.f32 %v4261_v29, %v4175_v5  ;;  %v12605_v41 = vrot.slane %v12604_v8, 5  ;;  %v12606_v38 = vrot.slane %v12537_v25, 5  ;;  %v5955_v45 = vsel %vm211_vm0, %v5953_v39, %v5954_v30  ;;  %v10957_v25 = vld [vmem:[#allocation2 + $0x80] sm:$0x3f] }
 0xd28   : > { %v4069_v60 = vadd.f32 %v4049_v26, %v3959_v22  ;;  %v4177_v62 = vadd.f32 %v4155_v36, %v4067_v2  ;;  %v12607_v32 = vrot.slane %v10517_v0, 6  ;;  %v5923_v50 = vmul.f32 %v10953_v46, %v10780_v6  ;;  %5974 = vrot.lane.b32.xlu0 %v5955_v45, %s6599_s17  ;;  %v12612_v22 = vld [vmem:[#allocation248_spill] sm:$0xff]  ;;  %v12615_v45 = vld [vmem:[#allocation251_spill] sm:$0xff] }
 0xd29   : > { %v4157_v54 = vsel %vm211_vm0, %v12606_v38, %v12605_v41  ;;  %v5956_v29 = vrot.slane %v5921_v34, 5  ;;  %v5958_v15 = vrot.slane %v5922_v44, 5  ;;  %v5924_v5 = vmul.f32 %v10957_v25, %v5905_v40  ;;  %v12609_v34 = vld [vmem:[#allocation72_spill] sm:$0xff] }
 0xd2a   : > { %v4265_v61 = vsel %vm927_vm6, %v12607_v32, %v4264_v43  ;;  %v5952_v17 = vsel %vm211_vm0, %v5950_v52, %v5951_v63  ;;  %v4286_v39 = vadd.f32 %v4263_v58, %v4176_v37  ;;  %v4178_v26 = vadd.f32 %v4157_v54, %v4068_v47  ;;  %v6036_v43 = vpop.permute.xlu0 %6035  ;;  %v12610_v52 = vld [vmem:[#allocation74_spill] sm:$0xff] }
 0xd2b   : > { %v12608_v36 = vrot.slane %v10533_v9, 6  ;;  %5972 = vrot.lane.b32.xlu1 %v5952_v17, %s6599_s17  ;;  %v4179_v6 = vadd.f32 %v4159_v35, %v4069_v60  ;;  %v6049_v44 = vmul.f32 %v10768_v28, %v12609_v34  ;;  %v10970_v40 = vmul.f32 %v10772_v56, %v12609_v34  ;;  %v12611_v9 = vld [vmem:[#allocation249_spill] sm:$0xff]  ;;  %v12614_v54 = vld [vmem:[#allocation250_spill] sm:$0xff]  ;;  %v12616_v60 = vld [vmem:[#allocation252_spill] sm:$0xff] }
 0xd2c   : > { %v10974_v58 = vsel %vm1049_vm7, %v6036_v43, %v12610_v52  ;;  %v10979_v59 = vadd.f32 %v4265_v61, %v4177_v62  ;;  %v5960_v2 = vrot.slane %v5923_v50, 5  ;;  %v5925_v35 = vmul.f32 %v10787_v23, %v10843_v57 }
 0xd2d   : > { %v4267_v0 = vsel %vm927_vm6, %v12608_v36, %v4266_v21  ;;  %v4365_v21 = vsel %vm1049_vm7, %v12612_v22, %v12611_v9  ;;  %v6041_v28 = vsel %vm1049_vm7, %v12609_v34, %v6036_v43  ;;  %v5959_v56 = vsel %vm211_vm0, %v5945_v31, %v5958_v15  ;;  %v12617_v15 = vld [vmem:[#allocation254_spill] sm:$0xff] }
 0xd2e   : > { %v12613_v10 = vrot.slane %v10776_v55, 5  ;;  %v5962_v47 = vrot.slane %v5924_v5, 5  ;;  %v4289_v37 = vadd.f32 %v4269_v53, %v4179_v6  ;;  %v10989_v8 = vadd.f32 %v4267_v0, %v4178_v26  ;;  %5978 = vrot.lane.b32.xlu0 %v5959_v56, %s6599_s17  ;;  %v12618_v5 = vld [vmem:[#allocation253_spill] sm:$0xff]  ;;  %v12619_v26 = vld [vmem:[#allocation255_spill] sm:$0xff] }
 0xd2f   : > { %v6051_v41 = vmul.f32 %v10808_v16, %v10974_v58  ;;  %v4383_v57 = vadd.f32 %v4365_v21, %v10732_v1  ;;  %v6079_v38 = vrot.slane %v6049_v44, 6  ;;  %v6080_v31 = vrot.slane %v10970_v40, 6 }
 0xd30   : > { %v5957_v7 = vsel %vm211_vm0, %v12613_v10, %v5956_v29  ;;  %v10999_v55 = vmul.f32 %v10817_v4, %v10974_v58  ;;  %v4366_v53 = vsel %vm1049_vm7, %v12611_v9, %v12614_v54  ;;  %v4367_v16 = vsel %vm1049_vm7, %v12614_v54, %v12615_v45  ;;  %v11014_v4 = vpop.permute.xlu0 %6039 }
 0xd31   : > { %5976 = vrot.lane.b32.xlu1 %v5957_v7, %s6599_s17  ;;  %v4368_v62 = vsel %vm1049_vm7, %v12615_v45, %v12616_v60  ;;  %v6050_v1 = vmul.f32 %v10833_v19, %v6041_v28  ;;  %v5964_v32 = vrot.slane %v5925_v35, 5  ;;  %v11012_v61 = vmul.f32 %v10837_v48, %v6041_v28  ;;  %v12624_v7 = vld [vmem:[#allocation261_spill] sm:$0xff] }
 0xd32   : > { %v5963_v50 = vsel %vm211_vm0, %v5951_v63, %v5962_v47  ;;  %v5961_v29 = vsel %vm211_vm0, %v5948_v33, %v5960_v2  ;;  %v4369_v17 = vsel %vm1049_vm7, %v12618_v5, %v12617_v15  ;;  %v4370_v19 = vsel %vm1049_vm7, %v12617_v15, %v12619_v26  ;;  %v6468_v33 = vld [vmem:[#allocation2 + $0x8] sm:$0xff]  ;;  %v12629_v15 = vld [vmem:[#allocation265_spill] sm:$0xff] }
 0xd33   : > { %v6085_v36 = vrot.slane %v6051_v41, 6  ;;  %v6043_v48 = vsel %vm1049_vm7, %v12610_v52, %v11014_v4  ;;  %5982 = vrot.lane.b32.xlu0 %v5963_v50, %s6599_s17  ;;  %v6086_v24 = vrot.slane %v10999_v55, 6  ;;  %v6053_v63 = vmul.f32 %v6468_v33, %v11014_v4  ;;  %v12647_v55 = vld [vmem:[#allocation272_spill] sm:$0xff] }
 0xd34   : > { %v11035_v0 = vmul.f32 %v10496_v51, %v11014_v4  ;;  %v6081_v43 = vsel %vm927_vm6, %v6079_v38, %v6080_v31  ;;  %v4384_v6 = vadd.f32 %v4366_v53, %v10801_v12  ;;  %v4385_v44 = vadd.f32 %v4367_v16, %v10710_v49  ;;  %v12625_v16 = vld [vmem:[#allocation257_spill] sm:$0xff] }
 0xd35   : > { %5980 = vrot.lane.b32.xlu1 %v5961_v29, %s6599_s17  ;;  %v4387_v52 = vadd.f32 %v12616_v60, %v10814_v14  ;;  %v6082_v9 = vrot.slane %v6050_v1, 6  ;;  %v6083_v22 = vrot.slane %v11012_v61, 6  ;;  %v6052_v21 = vmul.f32 %v10882_v13, %v6043_v48  ;;  %v12620_v14 = vld [vmem:[#allocation256_spill] sm:$0xff] }
 0xd36   : > { %v11047_v2 = vmul.f32 %v10885_v20, %v6043_v48  ;;  %v5965_v51 = vsel %vm211_vm0, %v5954_v30, %v5964_v32  ;;  %v4386_v35 = vadd.f32 %v4368_v62, %v10764_v3  ;;  %v4388_v12 = vadd.f32 %v4369_v17, %v10940_v18  ;;  %v12621_v30 = vld [vmem:[#allocation259_spill] sm:$0xff]  ;;  %v12622_v3 = vld [vmem:[#allocation258_spill] sm:$0xff]  ;;  %v11086_v32 = vpop.permute.xlu0 %5292 }
 0xd37   : > { %v4389_v49 = vadd.f32 %v4370_v19, %v4286_v39  ;;  %6104 = vrot.lane.b32.xlu0 %v6081_v43, %s6599_s17  ;;  %v4371_v13 = vsel %vm1049_vm7, %v12619_v26, %v12620_v14  ;;  %v6091_v56 = vrot.slane %v6053_v63, 6  ;;  %v6092_v20 = vrot.slane %v11035_v0, 6  ;;  %v12623_v39 = vld [vmem:[#allocation260_spill] sm:$0xff] }
 0xd38   : > { %v6087_v27 = vsel %vm927_vm6, %v6085_v36, %v6086_v24  ;;  %v4503_v18 = vsel %vm1049_vm7, %v12622_v3, %v12621_v30  ;;  %v4504_v10 = vsel %vm1049_vm7, %v12621_v30, %v12623_v39  ;;  %v4505_v47 = vsel %vm1049_vm7, %v12623_v39, %v12624_v7  ;;  %v11131_v30 = vpop.permute.xlu1 %5294  ;;  %v12657_v0 = vld [vmem:[#allocation280_spill] sm:$0xff] }
 0xd39   : > { %5984 = vrot.lane.b32.xlu1 %v5965_v51, %s6599_s17  ;;  %v6059_v41 = vmul.f32 %v10923_v42, %v12609_v34  ;;  %v6060_v38 = vmul.f32 %v10927_v11, %v6041_v28  ;;  %v6084_v54 = vsel %vm927_vm6, %v6082_v9, %v6083_v22  ;;  %v6088_v53 = vrot.slane %v6052_v21, 6  ;;  %v12626_v11 = vld [vmem:[#allocation262_spill] sm:$0xff]  ;;  %v12627_v28 = vld [vmem:[#allocation264_spill] sm:$0xff] }
 0xd3a   : > { %v6089_v45 = vrot.slane %v11047_v2, 6  ;;  %v11078_v60 = vadd.f32 %v12625_v16, %v4289_v37  ;;  %v11083_v62 = vsel %vm1049_vm7, %v12620_v14, %v12625_v16  ;;  %v4390_v1 = vadd.f32 %v4371_v13, %v10979_v59  ;;  %v12628_v37 = vld [vmem:[#allocation263_spill] sm:$0xff]  ;;  %v12630_v9 = vld [vmem:[#allocation266_spill] sm:$0xff]  ;;  %v12632_v21 = vld [vmem:[#allocation268_spill] sm:$0xff] }
 0xd3b   : > { %6108 = vrot.lane.b32.xlu0 %v6087_v27, %s6599_s17  ;;  %v4521_v42 = vadd.f32 %v4503_v18, %v4383_v57  ;;  %v4506_v34 = vsel %vm1049_vm7, %v12624_v7, %v12626_v11  ;;  %v4507_v61 = vsel %vm1049_vm7, %v12628_v37, %v12627_v28  ;;  %v6093_v50 = vsel %vm927_vm6, %v6091_v56, %v6092_v20  ;;  %v12634_v2 = vld [vmem:[#allocation273_spill] sm:$0xff]  ;;  %v12637_v14 = vld [vmem:[#allocation284_spill] sm:$0xff]  ;;  %v12638_v13 = vld [vmem:[#allocation283_spill] sm:$0xff] }
 0xd3c   : > { %v4522_v59 = vadd.f32 %v4504_v10, %v4384_v6  ;;  %v4523_v29 = vadd.f32 %v4505_v47, %v4385_v44  ;;  %v4508_v5 = vsel %vm1049_vm7, %v12627_v28, %v12629_v15  ;;  %v6094_v17 = vrot.slane %v6059_v41, 6  ;;  %v5415_v6 = vpop.permute.xlu0 %5414  ;;  %v5417_v28 = vpop.permute.xlu1 %5416 }
 0xd3d   : > { %6106 = vrot.lane.b32.xlu1 %v6084_v54, %s6599_s17  ;;  %v6061_v57 = vmul.f32 %v10953_v46, %v10974_v58  ;;  %v6096_v26 = vrot.slane %v6060_v38, 6  ;;  %v6062_v19 = vmul.f32 %v10957_v25, %v6043_v48  ;;  %v6090_v36 = vsel %vm927_vm6, %v6088_v53, %v6089_v45  ;;  %v12631_v58 = vld [vmem:[#allocation269_spill] sm:$0xff]  ;;  %v12633_v48 = vld [vmem:[#allocation274_spill] sm:$0xff]  ;;  %v12640_v53 = vld [vmem:[#allocation276_spill] sm:$0xff] }
 0xd3e   : > { %v11106_v33 = vadd.f32 %v4506_v34, %v4386_v35  ;;  %v4525_v63 = vadd.f32 %v12626_v11, %v4387_v52  ;;  %v4526_v43 = vadd.f32 %v4507_v61, %v4388_v12  ;;  %v4527_v44 = vadd.f32 %v4508_v5, %v4389_v49  ;;  %v12635_v52 = vld [vmem:[#allocation270_spill] sm:$0xff]  ;;  %v12636_v12 = vld [vmem:[#allocation271_spill] sm:$0xff] }
 0xd3f   : > { %6112 = vrot.lane.b32.xlu0 %v6093_v50, %s6599_s17  ;;  %v4509_v46 = vsel %vm1049_vm7, %v12629_v15, %v12630_v9  ;;  %v4641_v25 = vsel %vm1049_vm7, %v12632_v21, %v12631_v58  ;;  %v4645_v51 = vsel %vm1049_vm7, %v12634_v2, %v12633_v48  ;;  %v4642_v35 = vsel %vm1049_vm7, %v12631_v58, %v12635_v52  ;;  %v12644_v5 = vld [vmem:[#allocation286_spill] sm:$0xff]  ;;  %v12650_v21 = vld [vmem:[#allocation295_spill] sm:$0xff]  ;;  %v12652_v2 = vld [vmem:[#allocation21_spill] sm:$0xff] }
 0xd40   : > { %v4643_v49 = vsel %vm1049_vm7, %v12635_v52, %v12636_v12  ;;  %v4783_v56 = vsel %vm1049_vm7, %v12638_v13, %v12637_v14  ;;  %v6063_v27 = vmul.f32 %v10787_v23, %v11014_v4  ;;  %v6098_v3 = vrot.slane %v6061_v57, 6  ;;  %v12639_v23 = vld [vmem:[#allocation275_spill] sm:$0xff]  ;;  %v5419_v37 = vpop.permute.xlu0 %5418  ;;  %v12645_v57 = vld [vmem:[#allocation304_spill] sm:$0xff]  ;;  %v5421_v13 = vpop.permute.xlu1 %5420 }
 0xd41   : > { %6110 = vrot.lane.b32.xlu1 %v6090_v36, %s6599_s17  ;;  %v6097_v18 = vsel %vm927_vm6, %v6083_v22, %v6096_v26  ;;  %v6095_v39 = vsel %vm927_vm6, %v6080_v31, %v6094_v17  ;;  %v6100_v10 = vrot.slane %v6062_v19, 6  ;;  %v4528_v7 = vadd.f32 %v4509_v46, %v4390_v1  ;;  %v12641_v22 = vld [vmem:[#allocation285_spill] sm:$0xff]  ;;  %v12642_v1 = vld [vmem:[#allocation294_spill] sm:$0xff]  ;;  %v12646_v26 = vld [vmem:[#allocation303_spill] sm:$0xff] }
 0xd42   : > { %v4659_v47 = vadd.f32 %v4641_v25, %v4521_v42  ;;  %v4664_v41 = vadd.f32 %v4645_v51, %v4526_v43  ;;  %v4660_v38 = vadd.f32 %v4642_v35, %v4522_v59  ;;  %v4661_v54 = vadd.f32 %v4643_v49, %v4523_v29  ;;  %v12643_v42 = vld [vmem:[#allocation293_spill] sm:$0xff] }
 0xd43   : > { %6116 = vrot.lane.b32.xlu0 %v6097_v18, %s6599_s17  ;;  %v4646_v4 = vsel %vm1049_vm7, %v12633_v48, %v12639_v23  ;;  %v4647_v40 = vsel %vm1049_vm7, %v12639_v23, %v12640_v53  ;;  %v4784_v31 = vsel %vm1049_vm7, %v12637_v14, %v12641_v22  ;;  %v4921_v11 = vsel %vm1049_vm7, %v12643_v42, %v12642_v1  ;;  %v12651_v48 = vld [vmem:[#allocation23_spill] sm:$0xff]  ;;  %v12656_v18 = vld [vmem:[#allocation41_spill] sm:$0xff]  ;;  %v12658_v23 = vld [vmem:[#allocation306_spill] sm:$0xff] }
 0xd44   : > { %v4802_v16 = vadd.f32 %v4783_v56, %v4664_v41  ;;  %v6102_v34 = vrot.slane %v6063_v27, 6  ;;  %v6101_v61 = vsel %vm927_vm6, %v6089_v45, %v6100_v10  ;;  %v6099_v50 = vsel %vm927_vm6, %v6086_v24, %v6098_v3  ;;  %v11182_v52 = vpop.permute.xlu0 %5422  ;;  %v12654_v56 = vld [vmem:[#allocation305_spill] sm:$0xff]  ;;  %v12655_v3 = vld [vmem:[#allocation44_spill] sm:$0xff] }
 0xd45   : > { %6114 = vrot.lane.b32.xlu1 %v6095_v39, %s6599_s17  ;;  %v11156_v59 = vsel %vm1000_vm1, %v5415_v6, %v5417_v28  ;;  %v11159_v29 = vsel %vm1000_vm1, %v5417_v28, %v5419_v37  ;;  %v4665_v15 = vadd.f32 %v4646_v4, %v4527_v44  ;;  %v4785_v17 = vsel %vm1049_vm7, %v12641_v22, %v12644_v5  ;;  %v12648_v6 = vld [vmem:[#allocation279_spill] sm:$0xff]  ;;  %v12649_v44 = vld [vmem:[#allocation278_spill] sm:$0xff] }
 0xd46   : > { %v5059_v19 = vsel %vm1049_vm7, %v12646_v26, %v12645_v57  ;;  %v4644_v24 = vsel %vm1049_vm7, %v12636_v12, %v12647_v55  ;;  %v4663_v45 = vadd.f32 %v12647_v55, %v4525_v63  ;;  %v4666_v36 = vadd.f32 %v4647_v40, %v4528_v7  ;;  %v12653_v12 = vld [vmem:[#allocation296_spill] sm:$0xff] }
 0xd47   : > { %6120 = vrot.lane.b32.xlu0 %v6101_v61, %s6599_s17  ;;  %v4940_v43 = vadd.f32 %v4921_v11, %v4802_v16  ;;  %v4779_v46 = vsel %vm1049_vm7, %v12649_v44, %v12648_v6  ;;  %v4803_v58 = vadd.f32 %v4784_v31, %v4665_v15  ;;  %v4922_v25 = vsel %vm1049_vm7, %v12642_v1, %v12650_v21  ;;  %v12659_v1 = vld [vmem:[#allocation22_spill] sm:$0xff]  ;;  %v12660_v11 = vld [vmem:[#allocation281_spill] sm:$0xff]  ;;  %v5425_v15 = vpop.permute.xlu1 %5424 }
 0xd48   : > { %v5197_v51 = vsel %vm1049_vm7, %v12652_v2, %v12651_v48  ;;  %v4804_v35 = vadd.f32 %v4785_v17, %v4666_v36  ;;  %v4923_v63 = vsel %vm1049_vm7, %v12650_v21, %v12653_v12  ;;  %v6103_v14 = vsel %vm927_vm6, %v6092_v20, %v6102_v34  ;;  %v5427_v17 = vpop.permute.xlu0 %5426 }
 0xd49   : > { %6118 = vrot.lane.b32.xlu1 %v6099_v50, %s6599_s17  ;;  %v5078_v49 = vadd.f32 %v5059_v19, %v4940_v43  ;;  %v5060_v27 = vsel %vm1049_vm7, %v12645_v57, %v12654_v56  ;;  %v5300_v39 = vsel %vm1000_vm1, %v12656_v18, %v12655_v3  ;;  %v11198_v10 = vsel %vm1000_vm1, %v5419_v37, %v5421_v13  ;;  %v12661_v37 = vld [vmem:[#allocation308_spill] sm:$0xff] }
 0xd4a   : > { %v11202_v7 = vsel %vm1000_vm1, %v5421_v13, %v11182_v52  ;;  %v4780_v20 = vsel %vm1049_vm7, %v12648_v6, %v12657_v0  ;;  %v4941_v41 = vadd.f32 %v4922_v25, %v4803_v58  ;;  %v5061_v4 = vsel %vm1049_vm7, %v12654_v56, %v12658_v23  ;;  %v12665_v6 = vld [vmem:[#allocation80_spill] sm:$0xff]  ;;  %v12670_v13 = vld [vmem:[#allocation79_spill] sm:$0xff] }
 0xd4b   : > { %v5216_v40 = vadd.f32 %v5197_v51, %v5078_v49  ;;  %v4662_v22 = vadd.f32 %v4644_v24, %v11106_v33  ;;  %v4797_v31 = vadd.f32 %v4779_v46, %v4659_v47  ;;  %v4942_v16 = vadd.f32 %v4923_v63, %v4804_v35  ;;  %v12662_v33 = vld [vmem:[#allocation289_spill] sm:$0xff]  ;;  %v12663_v47 = vld [vmem:[#allocation288_spill] sm:$0xff]  ;;  %v12664_v24 = vld [vmem:[#allocation290_spill] sm:$0xff] }
 0xd4c   : > { %v5198_v42 = vsel %vm1049_vm7, %v12651_v48, %v12659_v1  ;;  %v4781_v34 = vsel %vm1049_vm7, %v12657_v0, %v12660_v11  ;;  %v5079_v28 = vadd.f32 %v5060_v27, %v4941_v41  ;;  %v5199_v61 = vsel %vm1049_vm7, %v12659_v1, %v12661_v37  ;;  %v12667_v51 = vld [vmem:[#allocation299_spill] sm:$0xff]  ;;  %v12668_v35 = vld [vmem:[#allocation298_spill] sm:$0xff]  ;;  %v12669_v49 = vld [vmem:[#allocation300_spill] sm:$0xff]  ;;  %v5429_v27 = vpop.permute.xlu1 %5428  ;;  %v5431_v0 = vpop.permute.xlu0 %5430 }
 0xd4d   : > { %6122 = vrot.lane.b32.xlu1 %v6103_v14, %s6599_s17  ;;  %v5319_v50 = vadd.f32 %v5300_v39, %v5216_v40  ;;  %v4798_v57 = vadd.f32 %v4780_v20, %v4660_v38  ;;  %v4917_v26 = vsel %vm1049_vm7, %v12663_v47, %v12662_v33  ;;  %v5080_v19 = vadd.f32 %v5061_v4, %v4942_v16  ;;  %v12666_v38 = vld [vmem:[#allocation282_spill] sm:$0xff]  ;;  %v12672_v20 = vld [vmem:[#allocation17_spill] sm:$0xff]  ;;  %v12673_v41 = vld [vmem:[#allocation16_spill] sm:$0xff] }
 0xd4e   : > { %v5438_v55 = vsel %vm1000_vm1, %v5425_v15, %v5427_v17  ;;  %v4918_v36 = vsel %vm1049_vm7, %v12662_v33, %v12664_v24  ;;  %v5217_v43 = vadd.f32 %v5198_v42, %v5079_v28  ;;  %v5302_v44 = vsel %vm1000_vm1, %v12665_v6, %v11086_v32  ;;  %v12674_v40 = vld [vmem:[#allocation18_spill] sm:$0xff]  ;;  %v12675_v42 = vld [vmem:[#allocation292_spill] sm:$0xff]  ;;  %v12678_v47 = vld [vmem:[#allocation33_spill] sm:$0xff] }
 0xd4f   : > { %v11230_v46 = vadd.f32 %v5438_v55, %v5319_v50  ;;  %v4799_v58 = vadd.f32 %v4781_v34, %v4661_v54  ;;  %v4782_v21 = vsel %vm1049_vm7, %v12660_v11, %v12666_v38  ;;  %v4801_v25 = vadd.f32 %v12666_v38, %v4663_v45  ;;  %v12671_v54 = vld [vmem:[#allocation291_spill] sm:$0xff] }
 0xd50   : > { %v5218_v48 = vadd.f32 %v5199_v61, %v5080_v19  ;;  %v4935_v2 = vadd.f32 %v4917_v26, %v4797_v31  ;;  %v5055_v63 = vsel %vm1049_vm7, %v12668_v35, %v12667_v51  ;;  %v5056_v14 = vsel %vm1049_vm7, %v12667_v51, %v12669_v49  ;;  %v12679_v19 = vld [vmem:[#allocation301_spill] sm:$0xff]  ;;  %v11274_v6 = vpop.permute.xlu1 %5432  ;;  %v12682_v35 = vld [vmem:[#allocation20_spill] sm:$0xff] }
 0xd51   : > { %v5320_v56 = vadd.f32 %v12670_v13, %v5217_v43  ;;  %v4919_v3 = vsel %vm1049_vm7, %v12664_v24, %v12671_v54  ;;  %v4936_v18 = vadd.f32 %v4918_v36, %v4798_v57  ;;  %v5439_v45 = vsel %vm1000_vm1, %v5427_v17, %v5429_v27  ;;  %v12676_v17 = vld [vmem:[#allocation32_spill] sm:$0xff]  ;;  %v12677_v57 = vld [vmem:[#allocation31_spill] sm:$0xff]  ;;  %v12680_v24 = vld [vmem:[#allocation302_spill] sm:$0xff] }
 0xd52   : > { %v5321_v39 = vadd.f32 %v5302_v44, %v5218_v48  ;;  %v5193_v4 = vsel %vm1049_vm7, %v12673_v41, %v12672_v20  ;;  %v5194_v31 = vsel %vm1049_vm7, %v12672_v20, %v12674_v40  ;;  %v5440_v1 = vsel %vm1000_vm1, %v5429_v27, %v5431_v0  ;;  %v5553_v44 = vpop.permute.xlu0 %5552  ;;  %v12683_v13 = vld [vmem:[#allocation267_spill] sm:$0xff] }
 0xd53   : > { %v11253_v16 = vadd.f32 %v5439_v45, %v5320_v56  ;;  %v4920_v11 = vsel %vm1049_vm7, %v12671_v54, %v12675_v42  ;;  %v5073_v34 = vadd.f32 %v5055_v63, %v4935_v2  ;;  %v5074_v28 = vadd.f32 %v5056_v14, %v4936_v18  ;;  %v12681_v2 = vld [vmem:[#allocation19_spill] sm:$0xff] }
 0xd54   : > { %v11259_v61 = vadd.f32 %v5440_v1, %v5321_v39  ;;  %v4800_v50 = vadd.f32 %v4782_v21, %v4662_v22  ;;  %v4939_v15 = vadd.f32 %v12675_v42, %v4801_v25  ;;  %v5296_v33 = vsel %vm1000_vm1, %v12677_v57, %v12676_v17  ;;  %v12685_v39 = vld [vmem:[#allocation43_spill] sm:$0xff]  ;;  %v5555_v41 = vpop.permute.xlu1 %5554 }
 0xd55   : > { %v5297_v26 = vsel %vm1000_vm1, %v12676_v17, %v12678_v47  ;;  %v5057_v55 = vsel %vm1049_vm7, %v12669_v49, %v12679_v19  ;;  %v5058_v36 = vsel %vm1049_vm7, %v12679_v19, %v12680_v24  ;;  %v5211_v43 = vadd.f32 %v5193_v4, %v5073_v34 }
 0xd56   : > { %v5212_v22 = vadd.f32 %v5194_v31, %v5074_v28  ;;  %v4937_v38 = vadd.f32 %v4919_v3, %v4799_v58  ;;  %v4938_v21 = vadd.f32 %v4920_v11, %v4800_v50  ;;  %v5077_v25 = vadd.f32 %v12680_v24, %v4939_v15  ;;  %v12684_v3 = vld [vmem:[#allocation26_spill] sm:$0xff]  ;;  %v5557_v4 = vpop.permute.xlu0 %5556 }
 0xd57   : > { %v11279_v48 = vsel %vm1000_vm1, %v5431_v0, %v11274_v6  ;;  %v5195_v51 = vsel %vm1049_vm7, %v12674_v40, %v12681_v2  ;;  %v5196_v63 = vsel %vm1049_vm7, %v12681_v2, %v12682_v35  ;;  %v5314_v49 = vadd.f32 %v5296_v33, %v5211_v43 }
 0xd58   : > { %v5315_v14 = vadd.f32 %v5297_v26, %v5212_v22  ;;  %v4510_v58 = vsel %vm1049_vm7, %v12630_v9, %v12683_v13  ;;  %v5075_v56 = vadd.f32 %v5057_v55, %v4937_v38  ;;  %v5076_v27 = vadd.f32 %v5058_v36, %v4938_v21  ;;  %v12688_v22 = vld [vmem:[#allocation297_spill] sm:$0xff]  ;;  %v12689_v21 = vld [vmem:[#allocation307_spill] sm:$0xff] }
 0xd59   : > { %v5215_v54 = vadd.f32 %v12682_v35, %v5077_v25  ;;  %v5298_v18 = vsel %vm1000_vm1, %v12678_v47, %v12684_v3  ;;  %v5299_v45 = vsel %vm1000_vm1, %v12684_v3, %v12685_v39  ;;  %v5452_v0 = vadd.f32 %v11156_v59, %v5314_v49 }
 0xd5a   : > { %v5453_v20 = vadd.f32 %v11159_v29, %v5315_v14  ;;  %v5213_v40 = vadd.f32 %v5195_v51, %v5075_v56  ;;  %v5214_v9 = vadd.f32 %v5196_v63, %v5076_v27  ;;  %v5572_v31 = vsel %vm1000_vm1, %v5553_v44, %v5555_v41  ;;  %v12686_v29 = vld [vmem:[#allocation277_spill] sm:$0xff]  ;;  %v5561_v55 = vpop.permute.xlu0 %5560 }
 0xd5b   : > { %v5573_v1 = vsel %vm1000_vm1, %v5555_v41, %v5557_v4  ;;  %v4391_v42 = vadd.f32 %v11083_v62, %v10989_v8  ;;  %v5318_v11 = vadd.f32 %v12685_v39, %v5215_v54  ;;  %v11304_v34 = vadd.f32 %v5572_v31, %v5452_v0  ;;  %v12687_v62 = vld [vmem:[#allocation287_spill] sm:$0xff]  ;;  %v12690_v14 = vld [vmem:[#allocation309_spill] sm:$0xff] }
 0xd5c   : > { %v11306_v28 = vadd.f32 %v5573_v1, %v5453_v20  ;;  %v4530_v59 = vadd.f32 %v12683_v13, %v11078_v60  ;;  %v4648_v50 = vsel %vm1049_vm7, %v12640_v53, %v12686_v29  ;;  %v5316_v15 = vadd.f32 %v5298_v18, %v5213_v40  ;;  %v5559_v60 = vpop.permute.xlu1 %5558 }
 0xd5d   : > { %v5317_v17 = vadd.f32 %v5299_v45, %v5214_v9  ;;  %v4529_v57 = vadd.f32 %v4510_v58, %v4391_v42  ;;  %v5456_v33 = vadd.f32 %v11182_v52, %v5318_v11  ;;  %v4786_v47 = vsel %vm1049_vm7, %v12644_v5, %v12687_v62 }
 0xd5e   : > { %v4668_v8 = vadd.f32 %v12686_v29, %v4530_v59  ;;  %v5454_v26 = vadd.f32 %v11198_v10, %v5316_v15  ;;  %v5574_v53 = vsel %vm1000_vm1, %v5557_v4, %v5559_v60  ;;  %v5575_v36 = vsel %vm1000_vm1, %v5559_v60, %v5561_v55  ;;  %v5565_v51 = vpop.permute.xlu0 %5564 }
 0xd5f   : > { %v5455_v19 = vadd.f32 %v11202_v7, %v5317_v17  ;;  %v4667_v24 = vadd.f32 %v4648_v50, %v4529_v57  ;;  %v11322_v43 = vadd.f32 %v5561_v55, %v5456_v33  ;;  %v4924_v44 = vsel %vm1049_vm7, %v12653_v12, %v12688_v22 }
 0xd60   : > { %v4806_v52 = vadd.f32 %v12687_v62, %v4668_v8  ;;  %v11328_v5 = vadd.f32 %v5574_v53, %v5454_v26  ;;  %v5062_v25 = vsel %vm1049_vm7, %v12658_v23, %v12689_v21  ;;  %v5563_v2 = vpop.permute.xlu1 %5562  ;;  %v5200_v12 = vsel %vm1049_vm7, %v12661_v37, %v12690_v14 }
 0xd61   : > { %v11330_v10 = vadd.f32 %v5575_v36, %v5455_v19  ;;  %v4805_v7 = vadd.f32 %v4786_v47, %v4667_v24  ;;  %v5576_v63 = vsel %vm1000_vm1, %v5563_v2, %v5565_v51  ;;  %v5303_v23 = vsel %vm1000_vm1, %v11086_v32, %v11131_v30 }
 0xd62   : > { %v4944_v38 = vadd.f32 %v12688_v22, %v4806_v52  ;;  %v11342_v13 = vadd.f32 %v5576_v63, %v11230_v46  ;;  %v5569_v3 = vpop.permute.xlu0 %5568 }
 0xd63   : > { %v4943_v35 = vadd.f32 %v4924_v44, %v4805_v7 }
 0xd64   : > { %v5082_v49 = vadd.f32 %v12689_v21, %v4944_v38  ;;  %v5567_v54 = vpop.permute.xlu1 %5566 }
 0xd65   : > { %v5081_v58 = vadd.f32 %v5062_v25, %v4943_v35  ;;  %v5577_v39 = vsel %vm1000_vm1, %v5565_v51, %v5567_v54  ;;  %v5578_v45 = vsel %vm1000_vm1, %v5567_v54, %v5569_v3 }
 0xd66   : > { %v5220_v56 = vadd.f32 %v12690_v14, %v5082_v49  ;;  %v11352_v46 = vadd.f32 %v5577_v39, %v11253_v16  ;;  %v11355_v0 = vadd.f32 %v5578_v45, %v11259_v61  ;;  %v5691_v4 = vpop.permute.xlu0 %5690 }
 0xd67   : > { %v5219_v27 = vadd.f32 %v5200_v12, %v5081_v58 }
 0xd68   : > { %v5323_v18 = vadd.f32 %v11131_v30, %v5220_v56  ;;  %v5571_v41 = vpop.permute.xlu1 %5570 }
 0xd69   : > { %v5322_v37 = vadd.f32 %v5303_v23, %v5219_v27  ;;  %v5579_v40 = vsel %vm1000_vm1, %v5569_v3, %v5571_v41 }
 0xd6a   : > { %v5461_v20 = vadd.f32 %v11274_v6, %v5323_v18  ;;  %v5695_v1 = vpop.permute.xlu0 %5694 }
 0xd6b   : > { %v5460_v32 = vadd.f32 %v11279_v48, %v5322_v37 }
 0xd6c   : > { %v11360_v30 = vadd.f32 %v5571_v41, %v5461_v20  ;;  %v5693_v31 = vpop.permute.xlu1 %5692 }
 0xd6d   : > { %v11362_v9 = vadd.f32 %v5579_v40, %v5460_v32  ;;  %v5710_v7 = vsel %vm1000_vm1, %v5691_v4, %v5693_v31  ;;  %v5711_v38 = vsel %vm1000_vm1, %v5693_v31, %v5695_v1 }
 0xd6e   : > { %v5699_v16 = vpop.permute.xlu0 %5698  ;;  %v5728_v2 = vadd.f32 %v5710_v7, %v11304_v34  ;;  %v5729_v51 = vadd.f32 %v5711_v38, %v11306_v28 }
 0xd70   : > { %v5697_v42 = vpop.permute.xlu1 %5696 }
 0xd71   : > { %v5712_v35 = vsel %vm1000_vm1, %v5695_v1, %v5697_v42  ;;  %v5713_v14 = vsel %vm1000_vm1, %v5697_v42, %v5699_v16 }
 0xd72   : > { %v5703_v59 = vpop.permute.xlu0 %5702  ;;  %v5730_v27 = vadd.f32 %v5712_v35, %v11328_v5  ;;  %v5731_v28 = vadd.f32 %v5713_v14, %v11330_v10  ;;  %v5732_v10 = vadd.f32 %v5699_v16, %v11322_v43 }
 0xd74   : > { %v5701_v11 = vpop.permute.xlu1 %5700 }
 0xd75   : > { %v5714_v3 = vsel %vm1000_vm1, %v5701_v11, %v5703_v59 }
 0xd76   : > { %v11366_v29 = vpop.permute.xlu0 %5706  ;;  %v5733_v42 = vadd.f32 %v5714_v3, %v11342_v13 }
 0xd78   : > { %v11364_v61 = vpop.permute.xlu1 %5704 }
 0xd79   : > { %v5716_v43 = vsel %vm1000_vm1, %v11364_v61, %v11366_v29 }
 0xd7a   : > { %v5829_v48 = vpop.permute.xlu0 %5828 }
 0xd7c   : > { %v11368_v6 = vpop.permute.xlu1 %5708 }
 0xd7d   : > { %v5737_v14 = vadd.f32 %v11368_v6, %v11360_v30 }
 0xd7e   : > { %v5833_v15 = vpop.permute.xlu0 %5832 }
 0xd80   : > { %v5831_v50 = vpop.permute.xlu1 %5830 }
 0xd81   : > { %v5848_v21 = vsel %vm1000_vm1, %v5829_v48, %v5831_v50  ;;  %v5849_v25 = vsel %vm1000_vm1, %v5831_v50, %v5833_v15  ;;  %v5715_v48 = vsel %vm1000_vm1, %v5703_v59, %v11364_v61 }
 0xd82   : > { %v5837_v57 = vpop.permute.xlu0 %5836  ;;  %v5866_v56 = vadd.f32 %v5848_v21, %v5728_v2  ;;  %v5867_v23 = vadd.f32 %v5849_v25, %v5729_v51  ;;  %v5734_v7 = vadd.f32 %v5715_v48, %v11352_v46  ;;  %v5717_v46 = vsel %vm1000_vm1, %v11366_v29, %v11368_v6 }
 0xd83   : > { %v5870_v59 = vadd.f32 %v5837_v57, %v5732_v10 }
 0xd84   : > { %v5835_v17 = vpop.permute.xlu1 %5834 }
 0xd85   : > { %v5850_v54 = vsel %vm1000_vm1, %v5833_v15, %v5835_v17  ;;  %v5851_v34 = vsel %vm1000_vm1, %v5835_v17, %v5837_v57 }
 0xd86   : > { %v5868_v4 = vadd.f32 %v5850_v54, %v5730_v27  ;;  %v5869_v40 = vadd.f32 %v5851_v34, %v5731_v28 }
 0xd87   : > { %v11370_v8 = vpop.permute.xlu0 %5840 }
 0xd89   : > { %v5839_v33 = vpop.permute.xlu1 %5838 }
 0xd8a   : > { %v5852_v11 = vsel %vm1000_vm1, %v5839_v33, %v11370_v8 }
 0xd8c   : > { %v11374_v47 = vpop.permute.xlu0 %5844 }
 0xd8d   : > { %v11372_v62 = vpop.permute.xlu1 %5842 }
 0xd8e   : > { %v5853_v38 = vsel %vm1000_vm1, %v11370_v8, %v11372_v62  ;;  %v5854_v61 = vsel %vm1000_vm1, %v11372_v62, %v11374_v47 }
 0xd90   : > { %v5967_v19 = vpop.permute.xlu0 %5966 }
 0xd92   : > { %v11376_v26 = vpop.permute.xlu1 %5846 }
 0xd93   : > { %v5855_v29 = vsel %vm1000_vm1, %v11374_v47, %v11376_v26 }
 0xd95   : > { %v5971_v55 = vpop.permute.xlu0 %5970 }
 0xd97   : > { %v5969_v60 = vpop.permute.xlu1 %5968 }
 0xd98   : > { %v5986_v12 = vsel %vm1000_vm1, %v5967_v19, %v5969_v60  ;;  %v5987_v58 = vsel %vm1000_vm1, %v5969_v60, %v5971_v55  ;;  %v5871_v60 = vadd.f32 %v5852_v11, %v5733_v42 }
 0xd99   : > { %v6004_v18 = vadd.f32 %v5986_v12, %v5866_v56  ;;  %v6005_v39 = vadd.f32 %v5987_v58, %v5867_v23  ;;  %v5736_v12 = vadd.f32 %v5717_v46, %v11362_v9  ;;  %v5875_v23 = vadd.f32 %v11376_v26, %v5737_v14 }
 0xd9a   : > { %v5975_v53 = vpop.permute.xlu0 %5974 }
 0xd9b   : > { %v6008_v21 = vadd.f32 %v5975_v53, %v5870_v59  ;;  %v5874_v27 = vadd.f32 %v5855_v29, %v5736_v12 }
 0xd9d   : > { %v5973_v24 = vpop.permute.xlu1 %5972 }
 0xd9e   : > { %v5988_v20 = vsel %vm1000_vm1, %v5971_v55, %v5973_v24  ;;  %v5989_v32 = vsel %vm1000_vm1, %v5973_v24, %v5975_v53  ;;  %v5872_v53 = vadd.f32 %v5853_v38, %v5734_v7 }
 0xd9f   : > { %v6006_v50 = vadd.f32 %v5988_v20, %v5868_v4  ;;  %v6007_v15 = vadd.f32 %v5989_v32, %v5869_v40 }
 0xda0   : > { %v11378_v52 = vpop.permute.xlu0 %5978 }
 0xda3   : > { %v5977_v36 = vpop.permute.xlu1 %5976 }
 0xda4   : > { %v5990_v13 = vsel %vm1000_vm1, %v5977_v36, %v11378_v52  ;;  %v5735_v36 = vadd.f32 %v5716_v43, %v11355_v0 }
 0xda5   : > { %v11382_v44 = vpop.permute.xlu0 %5982  ;;  %v6009_v25 = vadd.f32 %v5990_v13, %v5871_v60 }
 0xda6   : > { %v5873_v51 = vadd.f32 %v5854_v61, %v5735_v36 }
 0xda7   : > { %v11380_v22 = vpop.permute.xlu1 %5980 }
 0xda8   : > { %v5991_v8 = vsel %vm1000_vm1, %v11378_v52, %v11380_v22  ;;  %v5992_v0 = vsel %vm1000_vm1, %v11380_v22, %v11382_v44 }
 0xda9   : > { %v6105_v49 = vpop.permute.xlu0 %6104  ;;  %v6010_v52 = vadd.f32 %v5991_v8, %v5872_v53  ;;  %v6011_v58 = vadd.f32 %v5992_v0, %v5873_v51 }
 0xdab   : > { %v11391_v63 = vpop.permute.xlu1 %5984 }
 0xdac   : > { %v5993_v30 = vsel %vm1000_vm1, %v11382_v44, %v11391_v63  ;;  %v6013_v34 = vadd.f32 %v11391_v63, %v5875_v23 }
 0xdad   : > { %v6109_v37 = vpop.permute.xlu0 %6108  ;;  %v6012_v28 = vadd.f32 %v5993_v30, %v5874_v27 }
 0xdaf   : > { %v6107_v45 = vpop.permute.xlu1 %6106 }
 0xdb0   : > { %v6124_v41 = vsel %vm1000_vm1, %v6105_v49, %v6107_v45  ;;  %v6125_v5 = vsel %vm1000_vm1, %v6107_v45, %v6109_v37 }
 0xdb1   : > { %v6142_v31 = vadd.f32 %v6124_v41, %v6004_v18  ;;  %v6143_v1 = vadd.f32 %v6125_v5, %v6005_v39  ;;  %v6113_v19 = vpop.permute.xlu0 %6112 }
 0xdb2   : > { %v6146_v35 = vadd.f32 %v6113_v19, %v6008_v21 }
 0xdb3   : > { %v6111_v17 = vpop.permute.xlu1 %6110  ;;  %6164 = vrot.lane.b32.xlu1 %v6143_v1, %s6600_s25  ;;  %6162 = vrot.lane.b32.xlu0 %v6142_v31, %s6600_s25 }
 0xdb4   : > { %v6126_v16 = vsel %vm1000_vm1, %v6109_v37, %v6111_v17  ;;  %v6127_v33 = vsel %vm1000_vm1, %v6111_v17, %v6113_v19 }
 0xdb5   : > { %v6144_v55 = vadd.f32 %v6126_v16, %v6006_v50  ;;  %v6145_v24 = vadd.f32 %v6127_v33, %v6007_v15  ;;  %v6117_v57 = vpop.permute.xlu0 %6116 }
 0xdb7   : > { %v6115_v2 = vpop.permute.xlu1 %6114  ;;  %6168 = vrot.lane.b32.xlu1 %v6145_v24, %s6600_s25  ;;  %6166 = vrot.lane.b32.xlu0 %v6144_v55, %s6600_s25 }
 0xdb8   : > { %v6128_v62 = vsel %vm1000_vm1, %v6115_v2, %v6117_v57 }
 0xdb9   : > { %v6147_v49 = vadd.f32 %v6128_v62, %v6009_v25  ;;  %v6121_v22 = vpop.permute.xlu0 %6120 }
 0xdbb   : > { %v6119_v56 = vpop.permute.xlu1 %6118  ;;  %6172 = vrot.lane.b32.xlu1 %v6147_v49, %s6600_s25  ;;  %6170 = vrot.lane.b32.xlu0 %v6146_v35, %s6600_s25 }
 0xdbc   : > { %v6129_v6 = vsel %vm1000_vm1, %v6117_v57, %v6119_v56  ;;  %v6130_v47 = vsel %vm1000_vm1, %v6119_v56, %v6121_v22 }
 0xdbd   : > { %v6148_v9 = vadd.f32 %v6129_v6, %v6010_v52  ;;  %v6149_v54 = vadd.f32 %v6130_v47, %v6011_v58 }
 0xdbf   : > { %v6123_v3 = vpop.permute.xlu1 %6122  ;;  %6176 = vrot.lane.b32.xlu1 %v6149_v54, %s6600_s25  ;;  %6174 = vrot.lane.b32.xlu0 %v6148_v9, %s6600_s25 }
 0xdc0   : > { %v6131_v26 = vsel %vm1000_vm1, %v6121_v22, %v6123_v3  ;;  %v6151_v18 = vadd.f32 %v6123_v3, %v6013_v34 }
 0xdc1   : > { %v6150_v44 = vadd.f32 %v6131_v26, %v6012_v28 }
 0xdc3   : > { %6180 = vrot.lane.b32.xlu1 %v6151_v18, %s6600_s25  ;;  %6178 = vrot.lane.b32.xlu0 %v6150_v44, %s6600_s25 }
 0xe25   : > { %v6165_v39 = vpop.permute.xlu1 %6164  ;;  %v6163_v45 = vpop.permute.xlu0 %6162 }
 0xe26   : > { %v6182_v37 = vsel %vm1049_vm7, %v6163_v45, %v6165_v39 }
 0xe27   : > { %6198 = vst [vmem:[%s176_s26] sm:$0xff] %v6182_v37 }
 0xe29   : > { %v6169_v63 = vpop.permute.xlu1 %6168  ;;  %v6167_v20 = vpop.permute.xlu0 %6166 }
 0xe2a   : > { %v6183_v32 = vsel %vm1049_vm7, %v6165_v39, %v6167_v20  ;;  %v6184_v41 = vsel %vm1049_vm7, %v6167_v20, %v6169_v63 }
 0xe2b   : > { %6199 = vst [vmem:[%s176_s26 + $0x8] sm:$0xff] %v6183_v32  ;;  %6200 = vst [vmem:[%s176_s26 + $0x10] sm:$0xff] %v6184_v41 }
 0xe2d   : > { %v6173_v5 = vpop.permute.xlu1 %6172  ;;  %v6171_v4 = vpop.permute.xlu0 %6170 }
 0xe2e   : > { %v6185_v40 = vsel %vm1049_vm7, %v6169_v63, %v6171_v4 }
 0xe2f   : > { %6201 = vst [vmem:[%s176_s26 + $0x18] sm:$0xff] %v6185_v40 }
 0xe31   : > { %v6177_v31 = vpop.permute.xlu1 %6176  ;;  %v6175_v1 = vpop.permute.xlu0 %6174 }
 0xe32   : > { %v6186_v10 = vsel %vm1049_vm7, %v6173_v5, %v6175_v1  ;;  %v6187_v42 = vsel %vm1049_vm7, %v6175_v1, %v6177_v31 }
 0xe33   : > { %6202 = vst [vmem:[%s176_s26 + $0x20] sm:$0xff] %v6186_v10  ;;  %6203 = vst [vmem:[%s176_s26 + $0x28] sm:$0xff] %v6187_v42 }
 0xe35   : > { %v6181_v11 = vpop.permute.xlu1 %6180  ;;  %v6179_v48 = vpop.permute.xlu0 %6178 }
 0xe36   : > { %v6188_v50 = vsel %vm1049_vm7, %v6177_v31, %v6179_v48  ;;  %v6189_v15 = vsel %vm1049_vm7, %v6179_v48, %v6181_v11 }
 0xe37   : > { %6204 = vst [vmem:[%s176_s26 + $0x30] sm:$0xff] %v6188_v50  ;;  %6205 = vst [vmem:[%s176_s26 + $0x38] sm:$0xff] %v6189_v15 }
 0xe38   : > { %6536 = shalt.err (!%p6533_p0)
}
 0xe39   : > { %s6537_s6 = scalar_lea.hbm %s11474_s27, 1024  ;;  %s6541_s23 = scalar_lea.hbm %s11522_s2, 2048 }
 0xe3a   : > { %p6538_p5 = scmp.ne.s32.totalorder %s11474_s27, %s6537_s6  ;;  %p6542_p4 = scmp.lt.s32.totalorder %s11474_s27, %s11522_s2 }
 0xe3b   : > { %p6543_p6 = scmp.lt.s32.totalorder %s6541_s23, %s6537_s6 }
 0xe3c   : > { %p6539_p2 = pnand %p6538_p5, %p12691_p11 }
 0xe3d   : > { %p6544_p8 = por %p6543_p6, %p6542_p4 }
 0xe3e   : > { %p6540_p1 = pneg %p6539_p2 }
 0xe40   : > { %p6545_p3 = pnand %p6544_p8, %p6540_p1 }
 0xe42   : > { %6548 = shalt.err (!%p6545_p3)
}
 0xe43   : > { %s6602_s25 = smov 512  }
 0xe44   : > { %6327 = dma.vmem_to_hbm [thread:$0]  (%p12691_p11), %s11469_s8, 1024, %s11474_s27, %s6207_s13, %s6602_s25, %s6602_s25, %s6598_s15  }
 0xe45 PF: > { %s6235_s26 = sand.u32 1, %s6579_s9   ;;  %p12692_p7 = scmp.ne.s32.totalorder %s11849_s16, 0 }
 0xe46   : > { %p12693_p9 = scmp.ge.s32.totalorder %s6591_s12, 2  ;;  %s6236_s18 = scalar_lea.sflag [#allocation5], %s6235_s26 }
 0xe48   : > { %p6338_p10 = pnand %p12693_p9, %p12692_p7 }
 0xe4a   : > { %p6339_p12 = pneg %p6338_p10 }
 0xe4c   : > { %6574 = dma.done.wait (%p6339_p12), %s6236_s18, 1024  }
 0xe4d   : > { %6576 = vsyncadd (%p6339_p12), %s6236_s18, 4294966272  ;;  %p16_p13 = scmp.ge.s32.totalorder %s6672_s21, 4   ;;  %s12694_s9 = smov %s6583_s10 }
 0xe4e   : > { %s12695_s10 = smov %s6587_s11  ;;  %s12696_s11 = smov %s6692_s29 }
 0xe4f   : > { %s12697_s12 = smov %s6672_s21  ;;  %18 = sbr.rel (!%p16_p13) target bundleno = 6 (0x6), region = 125 }
 0xe54   :  { %6241 = vsyncpa [#allocation4], 1 }
 0xe55   :  { %6243 = vsyncpa [#allocation4 + $0x1], 1 }
 0xe56   :  { %6244 = vsyncpa [#allocation7], 1 }
 0xe57   :  { %6245 = vsyncpa [#allocation5], 1 }
 0xe58   :  { %6247 = vsyncpa [#allocation5 + $0x1], 1 }

</bundles_post_ra>
